<compile_context>
chip_gen: v6e
topology: v6e:2x2x1
jax: 0.10.0
libtpu: 0.0.40
codegen_flags: <defaults>
</compile_context>

<pallas_src>
import jax
import jax.numpy as jnp
from jax.experimental import pallas as pl
from jax.experimental.pallas import tpu as pltpu


# ---------------------------------------------------------------------------
# Fused LeNet kernel (runs once per batch element)
# ---------------------------------------------------------------------------

def _lenet_kernel(xt_ref, w1_ref, b1_ref, w2_ref, b2_ref,
                  wfc1_ref, bfc1_ref, wfc2_ref, bfc2_ref,
                  out_ref,
                  p1_ref, a1_ref, a1p_ref, p2_ref, a2_ref, flat_ref):
    f32 = jnp.float32
    cdt = w2_ref.dtype            # MXU input dtype (bf16 by default)

    # ---------------- conv1: Conv2d(1, 20, 5), no padding ----------------
    # xt_ref block is (1, 28, 28) holding the image transposed to [w, h] so
    # every im2col column group below is a contiguous sublane slice.
    # Patch layout: P1[oy*24 + ox, kx*5 + ky] = x[oy+ky, ox+kx].
    for kx in range(5):
        xs = xt_ref[0, kx:kx + 24, :]                       # (24, 28) = [ox, h]
        for oy in range(24):
            p1_ref[oy * 24:(oy + 1) * 24, kx * 5:kx * 5 + 5] = xs[:, oy:oy + 5]
    a1_ref[...] = (
        jnp.dot(p1_ref[...], w1_ref[...], preferred_element_type=f32)
        + b1_ref[...])                                      # (576, 20)

    # ---------------- pool1: MaxPool2d(2, 2) on (24, 24, 20) ----------------
    for po in range(12):
        r0 = (2 * po) * 24
        r1 = (2 * po + 1) * 24
        c00 = a1_ref[pl.ds(r0, 12, stride=2), :]
        c01 = a1_ref[pl.ds(r0 + 1, 12, stride=2), :]
        c10 = a1_ref[pl.ds(r1, 12, stride=2), :]
        c11 = a1_ref[pl.ds(r1 + 1, 12, stride=2), :]
        a1p_ref[po * 12:(po + 1) * 12, :] = jnp.maximum(
            jnp.maximum(c00, c01), jnp.maximum(c10, c11))   # (144, 20)

    # ---------------- conv2: Conv2d(20, 50, 5), no padding ----------------
    # P2[oy*8 + ox, (ky*5 + kx)*20 + ci] = pool1[oy+ky, ox+kx, ci]
    for oy in range(8):
        for ky in range(5):
            for kx in range(5):
                r = ky * 5 + kx
                src = (oy + ky) * 12 + kx
                p2_ref[oy * 8:(oy + 1) * 8, r * 20:(r + 1) * 20] = (
                    a1p_ref[src:src + 8, :])
    a2_ref[...] = (
        jnp.dot(p2_ref[...].astype(cdt), w2_ref[...],
                preferred_element_type=f32)
        + b2_ref[...])                                      # (64, 50)

    # ------- pool2 + flatten (NHWC order; fc1 rows pre-permuted to match) -------
    for po in range(4):
        r0 = (2 * po) * 8
        r1 = (2 * po + 1) * 8
        c00 = a2_ref[pl.ds(r0, 4, stride=2), :]
        c01 = a2_ref[pl.ds(r0 + 1, 4, stride=2), :]
        c10 = a2_ref[pl.ds(r1, 4, stride=2), :]
        c11 = a2_ref[pl.ds(r1 + 1, 4, stride=2), :]
        m = jnp.maximum(jnp.maximum(c00, c01), jnp.maximum(c10, c11))  # (4, 50)
        for px in range(4):
            s = po * 4 + px
            flat_ref[0:1, s * 50:(s + 1) * 50] = m[px:px + 1, :]

    # ------------- fc1 (+ReLU) and fc2, padded to 512 / 128 lanes -------------
    h = jnp.dot(flat_ref[...].astype(cdt), wfc1_ref[...],
                preferred_element_type=f32) + bfc1_ref[...]
    h = jnp.maximum(h, 0.0)                                 # (1, 512)
    logits = jnp.dot(h.astype(cdt), wfc2_ref[...],
                     preferred_element_type=f32) + bfc2_ref[...]   # (1, 128)
    out_ref[0] = logits


# ---------------------------------------------------------------------------
# Parameter preparation (all layout plumbing done once, off the hot path)
# ---------------------------------------------------------------------------

def prepare_params(params, compute_dtype=jnp.bfloat16):
    f32 = jnp.float32
    w1, b1 = params["w1"], params["b1"]          # (20,1,5,5), (20,)
    w2, b2 = params["w2"], params["b2"]          # (50,20,5,5), (50,)
    wfc1, bfc1 = params["wfc1"], params["bfc1"]  # (800,500) stored (in, out)
    wfc2, bfc2 = params["wfc2"], params["bfc2"]  # (500,10)  stored (in, out)

    # conv1 weight -> rows ordered (kx*5 + ky); matches the in-kernel patches.
    w1m = jnp.transpose(w1, (3, 2, 1, 0)).reshape(25, 20).astype(f32)
    # conv2 weight -> rows ordered ((ky*5 + kx)*20 + ci).
    w2m = jnp.transpose(w2, (2, 3, 1, 0)).reshape(500, 50).astype(compute_dtype)

    # fc1: torch flatten indexes rows by (c*16 + h*4 + w); the kernel flattens
    # NHWC as ((h*4 + w)*50 + c).  Permute rows once, then pad 500 -> 512.
    wfc1_perm = wfc1.reshape(50, 16, 500).transpose(1, 0, 2).reshape(800, 500)
    wfc1_p = jnp.pad(wfc1_perm, ((0, 0), (0, 12))).astype(compute_dtype)
    bfc1_p = jnp.pad(bfc1.reshape(1, 500), ((0, 0), (0, 12))).astype(f32)

    # fc2: pad 500 -> 512 (input, zero rows) and 10 -> 128 (lane-dense output).
    wfc2_p = jnp.pad(wfc2, ((0, 12), (0, 118))).astype(compute_dtype)
    bfc2_p = jnp.pad(bfc2.reshape(1, 10), ((0, 0), (0, 118))).astype(f32)

    return dict(
        w1m=w1m, b1m=b1.reshape(1, 20).astype(f32),
        w2m=w2m, b2m=b2.reshape(1, 50).astype(f32),
        wfc1=wfc1_p, bfc1=bfc1_p, wfc2=wfc2_p, bfc2=bfc2_p,
    )


# ---------------------------------------------------------------------------
# Forward wrapper
# ---------------------------------------------------------------------------

@jax.jit
def lenet_forward(x_nchw, kp):
    """x_nchw: (B, 1, 28, 28) float32; kp: output of prepare_params."""
    B = x_nchw.shape[0]
    # Tiny layout plumbing: transpose the image to [w, h] so in-kernel im2col
    # uses contiguous sublane slices (3 KB per image).
    xt = jnp.transpose(x_nchw[:, 0, :, :], (0, 2, 1)).astype(jnp.float32)

    out = pl.pallas_call(
        _lenet_kernel,
        out_shape=jax.ShapeDtypeStruct((B, 1, 128), jnp.float32),
        grid=(B,),
        in_specs=[
            pl.BlockSpec((1, 28, 28), lambda b: (b, 0, 0)),   # image (transposed)
            pl.BlockSpec((25, 20), lambda b: (0, 0)),         # w1m
            pl.BlockSpec((1, 20), lambda b: (0, 0)),          # b1
            pl.BlockSpec((500, 50), lambda b: (0, 0)),        # w2m
            pl.BlockSpec((1, 50), lambda b: (0, 0)),          # b2
            pl.BlockSpec((800, 512), lambda b: (0, 0)),       # wfc1 (permuted+padded)
            pl.BlockSpec((1, 512), lambda b: (0, 0)),         # bfc1
            pl.BlockSpec((512, 128), lambda b: (0, 0)),       # wfc2 (padded)
            pl.BlockSpec((1, 128), lambda b: (0, 0)),         # bfc2
        ],
        out_specs=pl.BlockSpec((1, 1, 128), lambda b: (b, 0, 0)),
        scratch_shapes=[
            pltpu.VMEM((576, 25), jnp.float32),   # conv1 im2col patches
            pltpu.VMEM((576, 20), jnp.float32),   # conv1 output (24,24,20)
            pltpu.VMEM((144, 20), jnp.float32),   # pool1 output (12,12,20)
            pltpu.VMEM((64, 500), jnp.float32),   # conv2 im2col patches
            pltpu.VMEM((64, 50), jnp.float32),    # conv2 output (8,8,50)
            pltpu.VMEM((1, 800), jnp.float32),    # flattened pool2 output
        ],
        compiler_params=pltpu.CompilerParams(
            dimension_semantics=("parallel",),    # batch rows across TCs (v7x)
        ),
    )(xt, kp["w1m"], kp["b1m"], kp["w2m"], kp["b2m"],
      kp["wfc1"], kp["bfc1"], kp["wfc2"], kp["bfc2"])
    return out[:, 0, :10]


# ---------------------------------------------------------------------------
# Synthetic params + pure-JAX reference
# ---------------------------------------------------------------------------

def init_params(key):
    """Deterministic synthetic params (PyTorch-style uniform fan-in bounds)."""
    ks = jax.random.split(key, 8)

    def u(k, shape, fan_in):
        bound = 1.0 / (fan_in ** 0.5)
        return jax.random.uniform(k, shape, jnp.float32, -bound, bound)

    return dict(
        w1=u(ks[0], (20, 1, 5, 5), 1 * 5 * 5),     # Conv2d(1, 20, 5)
        b1=u(ks[1], (20,), 1 * 5 * 5),
        w2=u(ks[2], (50, 20, 5, 5), 20 * 5 * 5),   # Conv2d(20, 50, 5)
        b2=u(ks[3], (50,), 20 * 5 * 5),
        wfc1=u(ks[4], (800, 500), 800),            # Linear(800, 500), stored (in, out)
        bfc1=u(ks[5], (500,), 800),
        wfc2=u(ks[6], (500, 10), 500),             # Linear(500, 10), stored (in, out)
        bfc2=u(ks[7], (10,), 500),
    )


def lenet_reference(x_nchw, params):
    """Pure-JAX f32 reference mirroring the PyTorch module exactly."""
    def conv2d(x, w, b):                        # x: NHWC, w: (Cout, Cin, 5, 5)
        B, H, W, Cin = x.shape
        Cout, _, KH, KW = w.shape
        OH, OW = H - KH + 1, W - KW + 1
        out = jnp.zeros((B, OH, OW, Cout), jnp.float32)
        for ky in range(KH):
            for kx in range(KW):
                patch = x[:, ky:ky + OH, kx:kx + OW, :]
                out = out + jnp.einsum("bhwc,oc->bhwo", patch, w[:, :, ky, kx])
        return out + b

    def pool2x2(x):
        return jnp.maximum(
            jnp.maximum(x[:, 0::2, 0::2], x[:, 0::2, 1::2]),
            jnp.maximum(x[:, 1::2, 0::2], x[:, 1::2, 1::2]))

    x = jnp.transpose(x_nchw, (0, 2, 3, 1)).astype(jnp.float32)
    x = pool2x2(conv2d(x, params["w1"], params["b1"]))
    x = pool2x2(conv2d(x, params["w2"], params["b2"]))
    x = jnp.transpose(x, (0, 3, 1, 2)).reshape(x.shape[0], -1)  # torch flatten
    x = jnp.maximum(x @ params["wfc1"] + params["bfc1"], 0.0)
    return x @ params["wfc2"] + params["bfc2"]


if __name__ == "__main__":
    # The architecture's flatten (50 * 4 * 4 = 800) fixes the input at 28x28.
    x = jax.random.normal(jax.random.PRNGKey(0), (2, 1, 28, 28), jnp.float32)
    params = init_params(jax.random.PRNGKey(42))
    kparams = prepare_params(params)           # bf16 MXU inputs, f32 epilogue

    logits = lenet_forward(x, kparams)
    logits = jax.block_until_ready(logits)

    assert logits.shape == (2, 10), logits.shape
    assert bool(jnp.all(jnp.isfinite(logits)))

    # Numerical check against the f32 reference (bf16 MXU inputs give ~1e-3
    # absolute deviation on O(0.1)-scale logits; 5e-2 is a loose bound).
    ref = lenet_reference(x, params)
    max_err = float(jnp.max(jnp.abs(logits - ref)))
    assert max_err < 5e-2, f"max |err| = {max_err}"

    print("KERNEL_OK")
</pallas_src>

<mosaic_0001>
module attributes {stable_mosaic.version = 11 : i64} {
  func.func @_lenet_kernel(%arg0: i32, %arg1: memref<1x28x28xf32, #tpu.memory_space<vmem>>, %arg2: memref<25x20xf32, #tpu.memory_space<vmem>>, %arg3: memref<1x20xf32, #tpu.memory_space<vmem>>, %arg4: memref<500x50xbf16, #tpu.memory_space<vmem>>, %arg5: memref<1x50xf32, #tpu.memory_space<vmem>>, %arg6: memref<800x512xbf16, #tpu.memory_space<vmem>>, %arg7: memref<1x512xf32, #tpu.memory_space<vmem>>, %arg8: memref<512x128xbf16, #tpu.memory_space<vmem>>, %arg9: memref<1x128xf32, #tpu.memory_space<vmem>>, %arg10: memref<1x1x128xf32, #tpu.memory_space<vmem>>, %arg11: memref<576x25xf32, #tpu.memory_space<vmem>>, %arg12: memref<576x20xf32, #tpu.memory_space<vmem>>, %arg13: memref<144x20xf32, #tpu.memory_space<vmem>>, %arg14: memref<64x500xf32, #tpu.memory_space<vmem>>, %arg15: memref<64x50xf32, #tpu.memory_space<vmem>>, %arg16: memref<1x800xf32, #tpu.memory_space<vmem>>) attributes {dimension_semantics = [#tpu.dimension_semantics<parallel>], iteration_bounds = array<i64: 2>, scalar_prefetch = 0 : i64, scratch_operands = 6 : i64, tpu.core_type = #tpu.core_type<tc>, window_params = [{transform_indices = @transform_0, window_bounds = array<i64: 1, 28, 28>}, {pipeline_mode = #tpu.pipeline_mode<synchronous>, transform_indices = @transform_1, window_bounds = array<i64: 25, 20>}, {pipeline_mode = #tpu.pipeline_mode<synchronous>, transform_indices = @transform_2, window_bounds = array<i64: 1, 20>}, {pipeline_mode = #tpu.pipeline_mode<synchronous>, transform_indices = @transform_3, window_bounds = array<i64: 500, 50>}, {pipeline_mode = #tpu.pipeline_mode<synchronous>, transform_indices = @transform_4, window_bounds = array<i64: 1, 50>}, {pipeline_mode = #tpu.pipeline_mode<synchronous>, transform_indices = @transform_5, window_bounds = array<i64: 800, 512>}, {pipeline_mode = #tpu.pipeline_mode<synchronous>, transform_indices = @transform_6, window_bounds = array<i64: 1, 512>}, {pipeline_mode = #tpu.pipeline_mode<synchronous>, transform_indices = @transform_7, window_bounds = array<i64: 512, 128>}, {pipeline_mode = #tpu.pipeline_mode<synchronous>, transform_indices = @transform_8, window_bounds = array<i64: 1, 128>}, {transform_indices = @transform_9, window_bounds = array<i64: 1, 1, 128>}]} {
    %c0 = arith.constant 0 : index
    %c0_0 = arith.constant 0 : index
    %c0_1 = arith.constant 0 : index
    %0 = vector.load %arg1[%c0, %c0_0, %c0_1] : memref<1x28x28xf32, #tpu.memory_space<vmem>>, vector<1x24x28xf32>
    %1 = vector.shape_cast %0 : vector<1x24x28xf32> to vector<24x28xf32>
    %2 = vector.extract_strided_slice %1 {offsets = [0, 0], sizes = [24, 5], strides = [1, 1]} : vector<24x28xf32> to vector<24x5xf32>
    %c0_2 = arith.constant 0 : index
    %c0_3 = arith.constant 0 : index
    %3 = vector.load %arg11[%c0_2, %c0_3] : memref<576x25xf32, #tpu.memory_space<vmem>>, vector<24x5xf32>
    tpu.vector_store %arg11[%c0_2, %c0_3], %2 {strides = array<i32>} : memref<576x25xf32, #tpu.memory_space<vmem>>, vector<24x5xf32>,
    %4 = vector.extract_strided_slice %1 {offsets = [0, 1], sizes = [24, 5], strides = [1, 1]} : vector<24x28xf32> to vector<24x5xf32>
    %c24 = arith.constant 24 : index
    %c0_4 = arith.constant 0 : index
    %5 = vector.load %arg11[%c24, %c0_4] : memref<576x25xf32, #tpu.memory_space<vmem>>, vector<24x5xf32>
    tpu.vector_store %arg11[%c24, %c0_4], %4 {strides = array<i32>} : memref<576x25xf32, #tpu.memory_space<vmem>>, vector<24x5xf32>,
    %6 = vector.extract_strided_slice %1 {offsets = [0, 2], sizes = [24, 5], strides = [1, 1]} : vector<24x28xf32> to vector<24x5xf32>
    %c48 = arith.constant 48 : index
    %c0_5 = arith.constant 0 : index
    %7 = vector.load %arg11[%c48, %c0_5] : memref<576x25xf32, #tpu.memory_space<vmem>>, vector<24x5xf32>
    tpu.vector_store %arg11[%c48, %c0_5], %6 {strides = array<i32>} : memref<576x25xf32, #tpu.memory_space<vmem>>, vector<24x5xf32>,
    %8 = vector.extract_strided_slice %1 {offsets = [0, 3], sizes = [24, 5], strides = [1, 1]} : vector<24x28xf32> to vector<24x5xf32>
    %c72 = arith.constant 72 : index
    %c0_6 = arith.constant 0 : index
    %9 = vector.load %arg11[%c72, %c0_6] : memref<576x25xf32, #tpu.memory_space<vmem>>, vector<24x5xf32>
    tpu.vector_store %arg11[%c72, %c0_6], %8 {strides = array<i32>} : memref<576x25xf32, #tpu.memory_space<vmem>>, vector<24x5xf32>,
    %10 = vector.extract_strided_slice %1 {offsets = [0, 4], sizes = [24, 5], strides = [1, 1]} : vector<24x28xf32> to vector<24x5xf32>
    %c96 = arith.constant 96 : index
    %c0_7 = arith.constant 0 : index
    %11 = vector.load %arg11[%c96, %c0_7] : memref<576x25xf32, #tpu.memory_space<vmem>>, vector<24x5xf32>
    tpu.vector_store %arg11[%c96, %c0_7], %10 {strides = array<i32>} : memref<576x25xf32, #tpu.memory_space<vmem>>, vector<24x5xf32>,
    %12 = vector.extract_strided_slice %1 {offsets = [0, 5], sizes = [24, 5], strides = [1, 1]} : vector<24x28xf32> to vector<24x5xf32>
    %c120 = arith.constant 120 : index
    %c0_8 = arith.constant 0 : index
    %13 = vector.load %arg11[%c120, %c0_8] : memref<576x25xf32, #tpu.memory_space<vmem>>, vector<24x5xf32>
    tpu.vector_store %arg11[%c120, %c0_8], %12 {strides = array<i32>} : memref<576x25xf32, #tpu.memory_space<vmem>>, vector<24x5xf32>,
    %14 = vector.extract_strided_slice %1 {offsets = [0, 6], sizes = [24, 5], strides = [1, 1]} : vector<24x28xf32> to vector<24x5xf32>
    %c144 = arith.constant 144 : index
    %c0_9 = arith.constant 0 : index
    %15 = vector.load %arg11[%c144, %c0_9] : memref<576x25xf32, #tpu.memory_space<vmem>>, vector<24x5xf32>
    tpu.vector_store %arg11[%c144, %c0_9], %14 {strides = array<i32>} : memref<576x25xf32, #tpu.memory_space<vmem>>, vector<24x5xf32>,
    %16 = vector.extract_strided_slice %1 {offsets = [0, 7], sizes = [24, 5], strides = [1, 1]} : vector<24x28xf32> to vector<24x5xf32>
    %c168 = arith.constant 168 : index
    %c0_10 = arith.constant 0 : index
    %17 = vector.load %arg11[%c168, %c0_10] : memref<576x25xf32, #tpu.memory_space<vmem>>, vector<24x5xf32>
    tpu.vector_store %arg11[%c168, %c0_10], %16 {strides = array<i32>} : memref<576x25xf32, #tpu.memory_space<vmem>>, vector<24x5xf32>,
    %18 = vector.extract_strided_slice %1 {offsets = [0, 8], sizes = [24, 5], strides = [1, 1]} : vector<24x28xf32> to vector<24x5xf32>
    %c192 = arith.constant 192 : index
    %c0_11 = arith.constant 0 : index
    %19 = vector.load %arg11[%c192, %c0_11] : memref<576x25xf32, #tpu.memory_space<vmem>>, vector<24x5xf32>
    tpu.vector_store %arg11[%c192, %c0_11], %18 {strides = array<i32>} : memref<576x25xf32, #tpu.memory_space<vmem>>, vector<24x5xf32>,
    %20 = vector.extract_strided_slice %1 {offsets = [0, 9], sizes = [24, 5], strides = [1, 1]} : vector<24x28xf32> to vector<24x5xf32>
    %c216 = arith.constant 216 : index
    %c0_12 = arith.constant 0 : index
    %21 = vector.load %arg11[%c216, %c0_12] : memref<576x25xf32, #tpu.memory_space<vmem>>, vector<24x5xf32>
    tpu.vector_store %arg11[%c216, %c0_12], %20 {strides = array<i32>} : memref<576x25xf32, #tpu.memory_space<vmem>>, vector<24x5xf32>,
    %22 = vector.extract_strided_slice %1 {offsets = [0, 10], sizes = [24, 5], strides = [1, 1]} : vector<24x28xf32> to vector<24x5xf32>
    %c240 = arith.constant 240 : index
    %c0_13 = arith.constant 0 : index
    %23 = vector.load %arg11[%c240, %c0_13] : memref<576x25xf32, #tpu.memory_space<vmem>>, vector<24x5xf32>
    tpu.vector_store %arg11[%c240, %c0_13], %22 {strides = array<i32>} : memref<576x25xf32, #tpu.memory_space<vmem>>, vector<24x5xf32>,
    %24 = vector.extract_strided_slice %1 {offsets = [0, 11], sizes = [24, 5], strides = [1, 1]} : vector<24x28xf32> to vector<24x5xf32>
    %c264 = arith.constant 264 : index
    %c0_14 = arith.constant 0 : index
    %25 = vector.load %arg11[%c264, %c0_14] : memref<576x25xf32, #tpu.memory_space<vmem>>, vector<24x5xf32>
    tpu.vector_store %arg11[%c264, %c0_14], %24 {strides = array<i32>} : memref<576x25xf32, #tpu.memory_space<vmem>>, vector<24x5xf32>,
    %26 = vector.extract_strided_slice %1 {offsets = [0, 12], sizes = [24, 5], strides = [1, 1]} : vector<24x28xf32> to vector<24x5xf32>
    %c288 = arith.constant 288 : index
    %c0_15 = arith.constant 0 : index
    %27 = vector.load %arg11[%c288, %c0_15] : memref<576x25xf32, #tpu.memory_space<vmem>>, vector<24x5xf32>
    tpu.vector_store %arg11[%c288, %c0_15], %26 {strides = array<i32>} : memref<576x25xf32, #tpu.memory_space<vmem>>, vector<24x5xf32>,
    %28 = vector.extract_strided_slice %1 {offsets = [0, 13], sizes = [24, 5], strides = [1, 1]} : vector<24x28xf32> to vector<24x5xf32>
    %c312 = arith.constant 312 : index
    %c0_16 = arith.constant 0 : index
    %29 = vector.load %arg11[%c312, %c0_16] : memref<576x25xf32, #tpu.memory_space<vmem>>, vector<24x5xf32>
    tpu.vector_store %arg11[%c312, %c0_16], %28 {strides = array<i32>} : memref<576x25xf32, #tpu.memory_space<vmem>>, vector<24x5xf32>,
    %30 = vector.extract_strided_slice %1 {offsets = [0, 14], sizes = [24, 5], strides = [1, 1]} : vector<24x28xf32> to vector<24x5xf32>
    %c336 = arith.constant 336 : index
    %c0_17 = arith.constant 0 : index
    %31 = vector.load %arg11[%c336, %c0_17] : memref<576x25xf32, #tpu.memory_space<vmem>>, vector<24x5xf32>
    tpu.vector_store %arg11[%c336, %c0_17], %30 {strides = array<i32>} : memref<576x25xf32, #tpu.memory_space<vmem>>, vector<24x5xf32>,
    %32 = vector.extract_strided_slice %1 {offsets = [0, 15], sizes = [24, 5], strides = [1, 1]} : vector<24x28xf32> to vector<24x5xf32>
    %c360 = arith.constant 360 : index
    %c0_18 = arith.constant 0 : index
    %33 = vector.load %arg11[%c360, %c0_18] : memref<576x25xf32, #tpu.memory_space<vmem>>, vector<24x5xf32>
    tpu.vector_store %arg11[%c360, %c0_18], %32 {strides = array<i32>} : memref<576x25xf32, #tpu.memory_space<vmem>>, vector<24x5xf32>,
    %34 = vector.extract_strided_slice %1 {offsets = [0, 16], sizes = [24, 5], strides = [1, 1]} : vector<24x28xf32> to vector<24x5xf32>
    %c384 = arith.constant 384 : index
    %c0_19 = arith.constant 0 : index
    %35 = vector.load %arg11[%c384, %c0_19] : memref<576x25xf32, #tpu.memory_space<vmem>>, vector<24x5xf32>
    tpu.vector_store %arg11[%c384, %c0_19], %34 {strides = array<i32>} : memref<576x25xf32, #tpu.memory_space<vmem>>, vector<24x5xf32>,
    %36 = vector.extract_strided_slice %1 {offsets = [0, 17], sizes = [24, 5], strides = [1, 1]} : vector<24x28xf32> to vector<24x5xf32>
    %c408 = arith.constant 408 : index
    %c0_20 = arith.constant 0 : index
    %37 = vector.load %arg11[%c408, %c0_20] : memref<576x25xf32, #tpu.memory_space<vmem>>, vector<24x5xf32>
    tpu.vector_store %arg11[%c408, %c0_20], %36 {strides = array<i32>} : memref<576x25xf32, #tpu.memory_space<vmem>>, vector<24x5xf32>,
    %38 = vector.extract_strided_slice %1 {offsets = [0, 18], sizes = [24, 5], strides = [1, 1]} : vector<24x28xf32> to vector<24x5xf32>
    %c432 = arith.constant 432 : index
    %c0_21 = arith.constant 0 : index
    %39 = vector.load %arg11[%c432, %c0_21] : memref<576x25xf32, #tpu.memory_space<vmem>>, vector<24x5xf32>
    tpu.vector_store %arg11[%c432, %c0_21], %38 {strides = array<i32>} : memref<576x25xf32, #tpu.memory_space<vmem>>, vector<24x5xf32>,
    %40 = vector.extract_strided_slice %1 {offsets = [0, 19], sizes = [24, 5], strides = [1, 1]} : vector<24x28xf32> to vector<24x5xf32>
    %c456 = arith.constant 456 : index
    %c0_22 = arith.constant 0 : index
    %41 = vector.load %arg11[%c456, %c0_22] : memref<576x25xf32, #tpu.memory_space<vmem>>, vector<24x5xf32>
    tpu.vector_store %arg11[%c456, %c0_22], %40 {strides = array<i32>} : memref<576x25xf32, #tpu.memory_space<vmem>>, vector<24x5xf32>,
    %42 = vector.extract_strided_slice %1 {offsets = [0, 20], sizes = [24, 5], strides = [1, 1]} : vector<24x28xf32> to vector<24x5xf32>
    %c480 = arith.constant 480 : index
    %c0_23 = arith.constant 0 : index
    %43 = vector.load %arg11[%c480, %c0_23] : memref<576x25xf32, #tpu.memory_space<vmem>>, vector<24x5xf32>
    tpu.vector_store %arg11[%c480, %c0_23], %42 {strides = array<i32>} : memref<576x25xf32, #tpu.memory_space<vmem>>, vector<24x5xf32>,
    %44 = vector.extract_strided_slice %1 {offsets = [0, 21], sizes = [24, 5], strides = [1, 1]} : vector<24x28xf32> to vector<24x5xf32>
    %c504 = arith.constant 504 : index
    %c0_24 = arith.constant 0 : index
    %45 = vector.load %arg11[%c504, %c0_24] : memref<576x25xf32, #tpu.memory_space<vmem>>, vector<24x5xf32>
    tpu.vector_store %arg11[%c504, %c0_24], %44 {strides = array<i32>} : memref<576x25xf32, #tpu.memory_space<vmem>>, vector<24x5xf32>,
    %46 = vector.extract_strided_slice %1 {offsets = [0, 22], sizes = [24, 5], strides = [1, 1]} : vector<24x28xf32> to vector<24x5xf32>
    %c528 = arith.constant 528 : index
    %c0_25 = arith.constant 0 : index
    %47 = vector.load %arg11[%c528, %c0_25] : memref<576x25xf32, #tpu.memory_space<vmem>>, vector<24x5xf32>
    tpu.vector_store %arg11[%c528, %c0_25], %46 {strides = array<i32>} : memref<576x25xf32, #tpu.memory_space<vmem>>, vector<24x5xf32>,
    %48 = vector.extract_strided_slice %1 {offsets = [0, 23], sizes = [24, 5], strides = [1, 1]} : vector<24x28xf32> to vector<24x5xf32>
    %c552 = arith.constant 552 : index
    %c0_26 = arith.constant 0 : index
    %49 = vector.load %arg11[%c552, %c0_26] : memref<576x25xf32, #tpu.memory_space<vmem>>, vector<24x5xf32>
    tpu.vector_store %arg11[%c552, %c0_26], %48 {strides = array<i32>} : memref<576x25xf32, #tpu.memory_space<vmem>>, vector<24x5xf32>,
    %c0_27 = arith.constant 0 : index
    %c1 = arith.constant 1 : index
    %c0_28 = arith.constant 0 : index
    %50 = vector.load %arg1[%c0_27, %c1, %c0_28] : memref<1x28x28xf32, #tpu.memory_space<vmem>>, vector<1x24x28xf32>
    %51 = vector.shape_cast %50 : vector<1x24x28xf32> to vector<24x28xf32>
    %52 = vector.extract_strided_slice %51 {offsets = [0, 0], sizes = [24, 5], strides = [1, 1]} : vector<24x28xf32> to vector<24x5xf32>
    %c0_29 = arith.constant 0 : index
    %c5 = arith.constant 5 : index
    %53 = vector.load %arg11[%c0_29, %c5] : memref<576x25xf32, #tpu.memory_space<vmem>>, vector<24x5xf32>
    tpu.vector_store %arg11[%c0_29, %c5], %52 {strides = array<i32>} : memref<576x25xf32, #tpu.memory_space<vmem>>, vector<24x5xf32>,
    %54 = vector.extract_strided_slice %51 {offsets = [0, 1], sizes = [24, 5], strides = [1, 1]} : vector<24x28xf32> to vector<24x5xf32>
    %c24_30 = arith.constant 24 : index
    %c5_31 = arith.constant 5 : index
    %55 = vector.load %arg11[%c24_30, %c5_31] : memref<576x25xf32, #tpu.memory_space<vmem>>, vector<24x5xf32>
    tpu.vector_store %arg11[%c24_30, %c5_31], %54 {strides = array<i32>} : memref<576x25xf32, #tpu.memory_space<vmem>>, vector<24x5xf32>,
    %56 = vector.extract_strided_slice %51 {offsets = [0, 2], sizes = [24, 5], strides = [1, 1]} : vector<24x28xf32> to vector<24x5xf32>
    %c48_32 = arith.constant 48 : index
    %c5_33 = arith.constant 5 : index
    %57 = vector.load %arg11[%c48_32, %c5_33] : memref<576x25xf32, #tpu.memory_space<vmem>>, vector<24x5xf32>
    tpu.vector_store %arg11[%c48_32, %c5_33], %56 {strides = array<i32>} : memref<576x25xf32, #tpu.memory_space<vmem>>, vector<24x5xf32>,
    %58 = vector.extract_strided_slice %51 {offsets = [0, 3], sizes = [24, 5], strides = [1, 1]} : vector<24x28xf32> to vector<24x5xf32>
    %c72_34 = arith.constant 72 : index
    %c5_35 = arith.constant 5 : index
    %59 = vector.load %arg11[%c72_34, %c5_35] : memref<576x25xf32, #tpu.memory_space<vmem>>, vector<24x5xf32>
    tpu.vector_store %arg11[%c72_34, %c5_35], %58 {strides = array<i32>} : memref<576x25xf32, #tpu.memory_space<vmem>>, vector<24x5xf32>,
    %60 = vector.extract_strided_slice %51 {offsets = [0, 4], sizes = [24, 5], strides = [1, 1]} : vector<24x28xf32> to vector<24x5xf32>
    %c96_36 = arith.constant 96 : index
    %c5_37 = arith.constant 5 : index
    %61 = vector.load %arg11[%c96_36, %c5_37] : memref<576x25xf32, #tpu.memory_space<vmem>>, vector<24x5xf32>
    tpu.vector_store %arg11[%c96_36, %c5_37], %60 {strides = array<i32>} : memref<576x25xf32, #tpu.memory_space<vmem>>, vector<24x5xf32>,
    %62 = vector.extract_strided_slice %51 {offsets = [0, 5], sizes = [24, 5], strides = [1, 1]} : vector<24x28xf32> to vector<24x5xf32>
    %c120_38 = arith.constant 120 : index
    %c5_39 = arith.constant 5 : index
    %63 = vector.load %arg11[%c120_38, %c5_39] : memref<576x25xf32, #tpu.memory_space<vmem>>, vector<24x5xf32>
    tpu.vector_store %arg11[%c120_38, %c5_39], %62 {strides = array<i32>} : memref<576x25xf32, #tpu.memory_space<vmem>>, vector<24x5xf32>,
    %64 = vector.extract_strided_slice %51 {offsets = [0, 6], sizes = [24, 5], strides = [1, 1]} : vector<24x28xf32> to vector<24x5xf32>
    %c144_40 = arith.constant 144 : index
    %c5_41 = arith.constant 5 : index
    %65 = vector.load %arg11[%c144_40, %c5_41] : memref<576x25xf32, #tpu.memory_space<vmem>>, vector<24x5xf32>
    tpu.vector_store %arg11[%c144_40, %c5_41], %64 {strides = array<i32>} : memref<576x25xf32, #tpu.memory_space<vmem>>, vector<24x5xf32>,
    %66 = vector.extract_strided_slice %51 {offsets = [0, 7], sizes = [24, 5], strides = [1, 1]} : vector<24x28xf32> to vector<24x5xf32>
    %c168_42 = arith.constant 168 : index
    %c5_43 = arith.constant 5 : index
    %67 = vector.load %arg11[%c168_42, %c5_43] : memref<576x25xf32, #tpu.memory_space<vmem>>, vector<24x5xf32>
    tpu.vector_store %arg11[%c168_42, %c5_43], %66 {strides = array<i32>} : memref<576x25xf32, #tpu.memory_space<vmem>>, vector<24x5xf32>,
    %68 = vector.extract_strided_slice %51 {offsets = [0, 8], sizes = [24, 5], strides = [1, 1]} : vector<24x28xf32> to vector<24x5xf32>
    %c192_44 = arith.constant 192 : index
    %c5_45 = arith.constant 5 : index
    %69 = vector.load %arg11[%c192_44, %c5_45] : memref<576x25xf32, #tpu.memory_space<vmem>>, vector<24x5xf32>
    tpu.vector_store %arg11[%c192_44, %c5_45], %68 {strides = array<i32>} : memref<576x25xf32, #tpu.memory_space<vmem>>, vector<24x5xf32>,
    %70 = vector.extract_strided_slice %51 {offsets = [0, 9], sizes = [24, 5], strides = [1, 1]} : vector<24x28xf32> to vector<24x5xf32>
    %c216_46 = arith.constant 216 : index
    %c5_47 = arith.constant 5 : index
    %71 = vector.load %arg11[%c216_46, %c5_47] : memref<576x25xf32, #tpu.memory_space<vmem>>, vector<24x5xf32>
    tpu.vector_store %arg11[%c216_46, %c5_47], %70 {strides = array<i32>} : memref<576x25xf32, #tpu.memory_space<vmem>>, vector<24x5xf32>,
    %72 = vector.extract_strided_slice %51 {offsets = [0, 10], sizes = [24, 5], strides = [1, 1]} : vector<24x28xf32> to vector<24x5xf32>
    %c240_48 = arith.constant 240 : index
    %c5_49 = arith.constant 5 : index
    %73 = vector.load %arg11[%c240_48, %c5_49] : memref<576x25xf32, #tpu.memory_space<vmem>>, vector<24x5xf32>
    tpu.vector_store %arg11[%c240_48, %c5_49], %72 {strides = array<i32>} : memref<576x25xf32, #tpu.memory_space<vmem>>, vector<24x5xf32>,
    %74 = vector.extract_strided_slice %51 {offsets = [0, 11], sizes = [24, 5], strides = [1, 1]} : vector<24x28xf32> to vector<24x5xf32>
    %c264_50 = arith.constant 264 : index
    %c5_51 = arith.constant 5 : index
    %75 = vector.load %arg11[%c264_50, %c5_51] : memref<576x25xf32, #tpu.memory_space<vmem>>, vector<24x5xf32>
    tpu.vector_store %arg11[%c264_50, %c5_51], %74 {strides = array<i32>} : memref<576x25xf32, #tpu.memory_space<vmem>>, vector<24x5xf32>,
    %76 = vector.extract_strided_slice %51 {offsets = [0, 12], sizes = [24, 5], strides = [1, 1]} : vector<24x28xf32> to vector<24x5xf32>
    %c288_52 = arith.constant 288 : index
    %c5_53 = arith.constant 5 : index
    %77 = vector.load %arg11[%c288_52, %c5_53] : memref<576x25xf32, #tpu.memory_space<vmem>>, vector<24x5xf32>
    tpu.vector_store %arg11[%c288_52, %c5_53], %76 {strides = array<i32>} : memref<576x25xf32, #tpu.memory_space<vmem>>, vector<24x5xf32>,
    %78 = vector.extract_strided_slice %51 {offsets = [0, 13], sizes = [24, 5], strides = [1, 1]} : vector<24x28xf32> to vector<24x5xf32>
    %c312_54 = arith.constant 312 : index
    %c5_55 = arith.constant 5 : index
    %79 = vector.load %arg11[%c312_54, %c5_55] : memref<576x25xf32, #tpu.memory_space<vmem>>, vector<24x5xf32>
    tpu.vector_store %arg11[%c312_54, %c5_55], %78 {strides = array<i32>} : memref<576x25xf32, #tpu.memory_space<vmem>>, vector<24x5xf32>,
    %80 = vector.extract_strided_slice %51 {offsets = [0, 14], sizes = [24, 5], strides = [1, 1]} : vector<24x28xf32> to vector<24x5xf32>
    %c336_56 = arith.constant 336 : index
    %c5_57 = arith.constant 5 : index
    %81 = vector.load %arg11[%c336_56, %c5_57] : memref<576x25xf32, #tpu.memory_space<vmem>>, vector<24x5xf32>
    tpu.vector_store %arg11[%c336_56, %c5_57], %80 {strides = array<i32>} : memref<576x25xf32, #tpu.memory_space<vmem>>, vector<24x5xf32>,
    %82 = vector.extract_strided_slice %51 {offsets = [0, 15], sizes = [24, 5], strides = [1, 1]} : vector<24x28xf32> to vector<24x5xf32>
    %c360_58 = arith.constant 360 : index
    %c5_59 = arith.constant 5 : index
    %83 = vector.load %arg11[%c360_58, %c5_59] : memref<576x25xf32, #tpu.memory_space<vmem>>, vector<24x5xf32>
    tpu.vector_store %arg11[%c360_58, %c5_59], %82 {strides = array<i32>} : memref<576x25xf32, #tpu.memory_space<vmem>>, vector<24x5xf32>,
    %84 = vector.extract_strided_slice %51 {offsets = [0, 16], sizes = [24, 5], strides = [1, 1]} : vector<24x28xf32> to vector<24x5xf32>
    %c384_60 = arith.constant 384 : index
    %c5_61 = arith.constant 5 : index
    %85 = vector.load %arg11[%c384_60, %c5_61] : memref<576x25xf32, #tpu.memory_space<vmem>>, vector<24x5xf32>
    tpu.vector_store %arg11[%c384_60, %c5_61], %84 {strides = array<i32>} : memref<576x25xf32, #tpu.memory_space<vmem>>, vector<24x5xf32>,
    %86 = vector.extract_strided_slice %51 {offsets = [0, 17], sizes = [24, 5], strides = [1, 1]} : vector<24x28xf32> to vector<24x5xf32>
    %c408_62 = arith.constant 408 : index
    %c5_63 = arith.constant 5 : index
    %87 = vector.load %arg11[%c408_62, %c5_63] : memref<576x25xf32, #tpu.memory_space<vmem>>, vector<24x5xf32>
    tpu.vector_store %arg11[%c408_62, %c5_63], %86 {strides = array<i32>} : memref<576x25xf32, #tpu.memory_space<vmem>>, vector<24x5xf32>,
    %88 = vector.extract_strided_slice %51 {offsets = [0, 18], sizes = [24, 5], strides = [1, 1]} : vector<24x28xf32> to vector<24x5xf32>
    %c432_64 = arith.constant 432 : index
    %c5_65 = arith.constant 5 : index
    %89 = vector.load %arg11[%c432_64, %c5_65] : memref<576x25xf32, #tpu.memory_space<vmem>>, vector<24x5xf32>
    tpu.vector_store %arg11[%c432_64, %c5_65], %88 {strides = array<i32>} : memref<576x25xf32, #tpu.memory_space<vmem>>, vector<24x5xf32>,
    %90 = vector.extract_strided_slice %51 {offsets = [0, 19], sizes = [24, 5], strides = [1, 1]} : vector<24x28xf32> to vector<24x5xf32>
    %c456_66 = arith.constant 456 : index
    %c5_67 = arith.constant 5 : index
    %91 = vector.load %arg11[%c456_66, %c5_67] : memref<576x25xf32, #tpu.memory_space<vmem>>, vector<24x5xf32>
    tpu.vector_store %arg11[%c456_66, %c5_67], %90 {strides = array<i32>} : memref<576x25xf32, #tpu.memory_space<vmem>>, vector<24x5xf32>,
    %92 = vector.extract_strided_slice %51 {offsets = [0, 20], sizes = [24, 5], strides = [1, 1]} : vector<24x28xf32> to vector<24x5xf32>
    %c480_68 = arith.constant 480 : index
    %c5_69 = arith.constant 5 : index
    %93 = vector.load %arg11[%c480_68, %c5_69] : memref<576x25xf32, #tpu.memory_space<vmem>>, vector<24x5xf32>
    tpu.vector_store %arg11[%c480_68, %c5_69], %92 {strides = array<i32>} : memref<576x25xf32, #tpu.memory_space<vmem>>, vector<24x5xf32>,
    %94 = vector.extract_strided_slice %51 {offsets = [0, 21], sizes = [24, 5], strides = [1, 1]} : vector<24x28xf32> to vector<24x5xf32>
    %c504_70 = arith.constant 504 : index
    %c5_71 = arith.constant 5 : index
    %95 = vector.load %arg11[%c504_70, %c5_71] : memref<576x25xf32, #tpu.memory_space<vmem>>, vector<24x5xf32>
    tpu.vector_store %arg11[%c504_70, %c5_71], %94 {strides = array<i32>} : memref<576x25xf32, #tpu.memory_space<vmem>>, vector<24x5xf32>,
    %96 = vector.extract_strided_slice %51 {offsets = [0, 22], sizes = [24, 5], strides = [1, 1]} : vector<24x28xf32> to vector<24x5xf32>
    %c528_72 = arith.constant 528 : index
    %c5_73 = arith.constant 5 : index
    %97 = vector.load %arg11[%c528_72, %c5_73] : memref<576x25xf32, #tpu.memory_space<vmem>>, vector<24x5xf32>
    tpu.vector_store %arg11[%c528_72, %c5_73], %96 {strides = array<i32>} : memref<576x25xf32, #tpu.memory_space<vmem>>, vector<24x5xf32>,
    %98 = vector.extract_strided_slice %51 {offsets = [0, 23], sizes = [24, 5], strides = [1, 1]} : vector<24x28xf32> to vector<24x5xf32>
    %c552_74 = arith.constant 552 : index
    %c5_75 = arith.constant 5 : index
    %99 = vector.load %arg11[%c552_74, %c5_75] : memref<576x25xf32, #tpu.memory_space<vmem>>, vector<24x5xf32>
    tpu.vector_store %arg11[%c552_74, %c5_75], %98 {strides = array<i32>} : memref<576x25xf32, #tpu.memory_space<vmem>>, vector<24x5xf32>,
    %c0_76 = arith.constant 0 : index
    %c2 = arith.constant 2 : index
    %c0_77 = arith.constant 0 : index
    %100 = vector.load %arg1[%c0_76, %c2, %c0_77] : memref<1x28x28xf32, #tpu.memory_space<vmem>>, vector<1x24x28xf32>
    %101 = vector.shape_cast %100 : vector<1x24x28xf32> to vector<24x28xf32>
    %102 = vector.extract_strided_slice %101 {offsets = [0, 0], sizes = [24, 5], strides = [1, 1]} : vector<24x28xf32> to vector<24x5xf32>
    %c0_78 = arith.constant 0 : index
    %c10 = arith.constant 10 : index
    %103 = vector.load %arg11[%c0_78, %c10] : memref<576x25xf32, #tpu.memory_space<vmem>>, vector<24x5xf32>
    tpu.vector_store %arg11[%c0_78, %c10], %102 {strides = array<i32>} : memref<576x25xf32, #tpu.memory_space<vmem>>, vector<24x5xf32>,
    %104 = vector.extract_strided_slice %101 {offsets = [0, 1], sizes = [24, 5], strides = [1, 1]} : vector<24x28xf32> to vector<24x5xf32>
    %c24_79 = arith.constant 24 : index
    %c10_80 = arith.constant 10 : index
    %105 = vector.load %arg11[%c24_79, %c10_80] : memref<576x25xf32, #tpu.memory_space<vmem>>, vector<24x5xf32>
    tpu.vector_store %arg11[%c24_79, %c10_80], %104 {strides = array<i32>} : memref<576x25xf32, #tpu.memory_space<vmem>>, vector<24x5xf32>,
    %106 = vector.extract_strided_slice %101 {offsets = [0, 2], sizes = [24, 5], strides = [1, 1]} : vector<24x28xf32> to vector<24x5xf32>
    %c48_81 = arith.constant 48 : index
    %c10_82 = arith.constant 10 : index
    %107 = vector.load %arg11[%c48_81, %c10_82] : memref<576x25xf32, #tpu.memory_space<vmem>>, vector<24x5xf32>
    tpu.vector_store %arg11[%c48_81, %c10_82], %106 {strides = array<i32>} : memref<576x25xf32, #tpu.memory_space<vmem>>, vector<24x5xf32>,
    %108 = vector.extract_strided_slice %101 {offsets = [0, 3], sizes = [24, 5], strides = [1, 1]} : vector<24x28xf32> to vector<24x5xf32>
    %c72_83 = arith.constant 72 : index
    %c10_84 = arith.constant 10 : index
    %109 = vector.load %arg11[%c72_83, %c10_84] : memref<576x25xf32, #tpu.memory_space<vmem>>, vector<24x5xf32>
    tpu.vector_store %arg11[%c72_83, %c10_84], %108 {strides = array<i32>} : memref<576x25xf32, #tpu.memory_space<vmem>>, vector<24x5xf32>,
    %110 = vector.extract_strided_slice %101 {offsets = [0, 4], sizes = [24, 5], strides = [1, 1]} : vector<24x28xf32> to vector<24x5xf32>
    %c96_85 = arith.constant 96 : index
    %c10_86 = arith.constant 10 : index
    %111 = vector.load %arg11[%c96_85, %c10_86] : memref<576x25xf32, #tpu.memory_space<vmem>>, vector<24x5xf32>
    tpu.vector_store %arg11[%c96_85, %c10_86], %110 {strides = array<i32>} : memref<576x25xf32, #tpu.memory_space<vmem>>, vector<24x5xf32>,
    %112 = vector.extract_strided_slice %101 {offsets = [0, 5], sizes = [24, 5], strides = [1, 1]} : vector<24x28xf32> to vector<24x5xf32>
    %c120_87 = arith.constant 120 : index
    %c10_88 = arith.constant 10 : index
    %113 = vector.load %arg11[%c120_87, %c10_88] : memref<576x25xf32, #tpu.memory_space<vmem>>, vector<24x5xf32>
    tpu.vector_store %arg11[%c120_87, %c10_88], %112 {strides = array<i32>} : memref<576x25xf32, #tpu.memory_space<vmem>>, vector<24x5xf32>,
    %114 = vector.extract_strided_slice %101 {offsets = [0, 6], sizes = [24, 5], strides = [1, 1]} : vector<24x28xf32> to vector<24x5xf32>
    %c144_89 = arith.constant 144 : index
    %c10_90 = arith.constant 10 : index
    %115 = vector.load %arg11[%c144_89, %c10_90] : memref<576x25xf32, #tpu.memory_space<vmem>>, vector<24x5xf32>
    tpu.vector_store %arg11[%c144_89, %c10_90], %114 {strides = array<i32>} : memref<576x25xf32, #tpu.memory_space<vmem>>, vector<24x5xf32>,
    %116 = vector.extract_strided_slice %101 {offsets = [0, 7], sizes = [24, 5], strides = [1, 1]} : vector<24x28xf32> to vector<24x5xf32>
    %c168_91 = arith.constant 168 : index
    %c10_92 = arith.constant 10 : index
    %117 = vector.load %arg11[%c168_91, %c10_92] : memref<576x25xf32, #tpu.memory_space<vmem>>, vector<24x5xf32>
    tpu.vector_store %arg11[%c168_91, %c10_92], %116 {strides = array<i32>} : memref<576x25xf32, #tpu.memory_space<vmem>>, vector<24x5xf32>,
    %118 = vector.extract_strided_slice %101 {offsets = [0, 8], sizes = [24, 5], strides = [1, 1]} : vector<24x28xf32> to vector<24x5xf32>
    %c192_93 = arith.constant 192 : index
    %c10_94 = arith.constant 10 : index
    %119 = vector.load %arg11[%c192_93, %c10_94] : memref<576x25xf32, #tpu.memory_space<vmem>>, vector<24x5xf32>
    tpu.vector_store %arg11[%c192_93, %c10_94], %118 {strides = array<i32>} : memref<576x25xf32, #tpu.memory_space<vmem>>, vector<24x5xf32>,
    %120 = vector.extract_strided_slice %101 {offsets = [0, 9], sizes = [24, 5], strides = [1, 1]} : vector<24x28xf32> to vector<24x5xf32>
    %c216_95 = arith.constant 216 : index
    %c10_96 = arith.constant 10 : index
    %121 = vector.load %arg11[%c216_95, %c10_96] : memref<576x25xf32, #tpu.memory_space<vmem>>, vector<24x5xf32>
    tpu.vector_store %arg11[%c216_95, %c10_96], %120 {strides = array<i32>} : memref<576x25xf32, #tpu.memory_space<vmem>>, vector<24x5xf32>,
    %122 = vector.extract_strided_slice %101 {offsets = [0, 10], sizes = [24, 5], strides = [1, 1]} : vector<24x28xf32> to vector<24x5xf32>
    %c240_97 = arith.constant 240 : index
    %c10_98 = arith.constant 10 : index
    %123 = vector.load %arg11[%c240_97, %c10_98] : memref<576x25xf32, #tpu.memory_space<vmem>>, vector<24x5xf32>
    tpu.vector_store %arg11[%c240_97, %c10_98], %122 {strides = array<i32>} : memref<576x25xf32, #tpu.memory_space<vmem>>, vector<24x5xf32>,
    %124 = vector.extract_strided_slice %101 {offsets = [0, 11], sizes = [24, 5], strides = [1, 1]} : vector<24x28xf32> to vector<24x5xf32>
    %c264_99 = arith.constant 264 : index
    %c10_100 = arith.constant 10 : index
    %125 = vector.load %arg11[%c264_99, %c10_100] : memref<576x25xf32, #tpu.memory_space<vmem>>, vector<24x5xf32>
    tpu.vector_store %arg11[%c264_99, %c10_100], %124 {strides = array<i32>} : memref<576x25xf32, #tpu.memory_space<vmem>>, vector<24x5xf32>,
    %126 = vector.extract_strided_slice %101 {offsets = [0, 12], sizes = [24, 5], strides = [1, 1]} : vector<24x28xf32> to vector<24x5xf32>
    %c288_101 = arith.constant 288 : index
    %c10_102 = arith.constant 10 : index
    %127 = vector.load %arg11[%c288_101, %c10_102] : memref<576x25xf32, #tpu.memory_space<vmem>>, vector<24x5xf32>
    tpu.vector_store %arg11[%c288_101, %c10_102], %126 {strides = array<i32>} : memref<576x25xf32, #tpu.memory_space<vmem>>, vector<24x5xf32>,
    %128 = vector.extract_strided_slice %101 {offsets = [0, 13], sizes = [24, 5], strides = [1, 1]} : vector<24x28xf32> to vector<24x5xf32>
    %c312_103 = arith.constant 312 : index
    %c10_104 = arith.constant 10 : index
    %129 = vector.load %arg11[%c312_103, %c10_104] : memref<576x25xf32, #tpu.memory_space<vmem>>, vector<24x5xf32>
    tpu.vector_store %arg11[%c312_103, %c10_104], %128 {strides = array<i32>} : memref<576x25xf32, #tpu.memory_space<vmem>>, vector<24x5xf32>,
    %130 = vector.extract_strided_slice %101 {offsets = [0, 14], sizes = [24, 5], strides = [1, 1]} : vector<24x28xf32> to vector<24x5xf32>
    %c336_105 = arith.constant 336 : index
    %c10_106 = arith.constant 10 : index
    %131 = vector.load %arg11[%c336_105, %c10_106] : memref<576x25xf32, #tpu.memory_space<vmem>>, vector<24x5xf32>
    tpu.vector_store %arg11[%c336_105, %c10_106], %130 {strides = array<i32>} : memref<576x25xf32, #tpu.memory_space<vmem>>, vector<24x5xf32>,
    %132 = vector.extract_strided_slice %101 {offsets = [0, 15], sizes = [24, 5], strides = [1, 1]} : vector<24x28xf32> to vector<24x5xf32>
    %c360_107 = arith.constant 360 : index
    %c10_108 = arith.constant 10 : index
    %133 = vector.load %arg11[%c360_107, %c10_108] : memref<576x25xf32, #tpu.memory_space<vmem>>, vector<24x5xf32>
    tpu.vector_store %arg11[%c360_107, %c10_108], %132 {strides = array<i32>} : memref<576x25xf32, #tpu.memory_space<vmem>>, vector<24x5xf32>,
    %134 = vector.extract_strided_slice %101 {offsets = [0, 16], sizes = [24, 5], strides = [1, 1]} : vector<24x28xf32> to vector<24x5xf32>
    %c384_109 = arith.constant 384 : index
    %c10_110 = arith.constant 10 : index
    %135 = vector.load %arg11[%c384_109, %c10_110] : memref<576x25xf32, #tpu.memory_space<vmem>>, vector<24x5xf32>
    tpu.vector_store %arg11[%c384_109, %c10_110], %134 {strides = array<i32>} : memref<576x25xf32, #tpu.memory_space<vmem>>, vector<24x5xf32>,
    %136 = vector.extract_strided_slice %101 {offsets = [0, 17], sizes = [24, 5], strides = [1, 1]} : vector<24x28xf32> to vector<24x5xf32>
    %c408_111 = arith.constant 408 : index
    %c10_112 = arith.constant 10 : index
    %137 = vector.load %arg11[%c408_111, %c10_112] : memref<576x25xf32, #tpu.memory_space<vmem>>, vector<24x5xf32>
    tpu.vector_store %arg11[%c408_111, %c10_112], %136 {strides = array<i32>} : memref<576x25xf32, #tpu.memory_space<vmem>>, vector<24x5xf32>,
    %138 = vector.extract_strided_slice %101 {offsets = [0, 18], sizes = [24, 5], strides = [1, 1]} : vector<24x28xf32> to vector<24x5xf32>
    %c432_113 = arith.constant 432 : index
    %c10_114 = arith.constant 10 : index
    %139 = vector.load %arg11[%c432_113, %c10_114] : memref<576x25xf32, #tpu.memory_space<vmem>>, vector<24x5xf32>
    tpu.vector_store %arg11[%c432_113, %c10_114], %138 {strides = array<i32>} : memref<576x25xf32, #tpu.memory_space<vmem>>, vector<24x5xf32>,
    %140 = vector.extract_strided_slice %101 {offsets = [0, 19], sizes = [24, 5], strides = [1, 1]} : vector<24x28xf32> to vector<24x5xf32>
    %c456_115 = arith.constant 456 : index
    %c10_116 = arith.constant 10 : index
    %141 = vector.load %arg11[%c456_115, %c10_116] : memref<576x25xf32, #tpu.memory_space<vmem>>, vector<24x5xf32>
    tpu.vector_store %arg11[%c456_115, %c10_116], %140 {strides = array<i32>} : memref<576x25xf32, #tpu.memory_space<vmem>>, vector<24x5xf32>,
    %142 = vector.extract_strided_slice %101 {offsets = [0, 20], sizes = [24, 5], strides = [1, 1]} : vector<24x28xf32> to vector<24x5xf32>
    %c480_117 = arith.constant 480 : index
    %c10_118 = arith.constant 10 : index
    %143 = vector.load %arg11[%c480_117, %c10_118] : memref<576x25xf32, #tpu.memory_space<vmem>>, vector<24x5xf32>
    tpu.vector_store %arg11[%c480_117, %c10_118], %142 {strides = array<i32>} : memref<576x25xf32, #tpu.memory_space<vmem>>, vector<24x5xf32>,
    %144 = vector.extract_strided_slice %101 {offsets = [0, 21], sizes = [24, 5], strides = [1, 1]} : vector<24x28xf32> to vector<24x5xf32>
    %c504_119 = arith.constant 504 : index
    %c10_120 = arith.constant 10 : index
    %145 = vector.load %arg11[%c504_119, %c10_120] : memref<576x25xf32, #tpu.memory_space<vmem>>, vector<24x5xf32>
    tpu.vector_store %arg11[%c504_119, %c10_120], %144 {strides = array<i32>} : memref<576x25xf32, #tpu.memory_space<vmem>>, vector<24x5xf32>,
    %146 = vector.extract_strided_slice %101 {offsets = [0, 22], sizes = [24, 5], strides = [1, 1]} : vector<24x28xf32> to vector<24x5xf32>
    %c528_121 = arith.constant 528 : index
    %c10_122 = arith.constant 10 : index
    %147 = vector.load %arg11[%c528_121, %c10_122] : memref<576x25xf32, #tpu.memory_space<vmem>>, vector<24x5xf32>
    tpu.vector_store %arg11[%c528_121, %c10_122], %146 {strides = array<i32>} : memref<576x25xf32, #tpu.memory_space<vmem>>, vector<24x5xf32>,
    %148 = vector.extract_strided_slice %101 {offsets = [0, 23], sizes = [24, 5], strides = [1, 1]} : vector<24x28xf32> to vector<24x5xf32>
    %c552_123 = arith.constant 552 : index
    %c10_124 = arith.constant 10 : index
    %149 = vector.load %arg11[%c552_123, %c10_124] : memref<576x25xf32, #tpu.memory_space<vmem>>, vector<24x5xf32>
    tpu.vector_store %arg11[%c552_123, %c10_124], %148 {strides = array<i32>} : memref<576x25xf32, #tpu.memory_space<vmem>>, vector<24x5xf32>,
    %c0_125 = arith.constant 0 : index
    %c3 = arith.constant 3 : index
    %c0_126 = arith.constant 0 : index
    %150 = vector.load %arg1[%c0_125, %c3, %c0_126] : memref<1x28x28xf32, #tpu.memory_space<vmem>>, vector<1x24x28xf32>
    %151 = vector.shape_cast %150 : vector<1x24x28xf32> to vector<24x28xf32>
    %152 = vector.extract_strided_slice %151 {offsets = [0, 0], sizes = [24, 5], strides = [1, 1]} : vector<24x28xf32> to vector<24x5xf32>
    %c0_127 = arith.constant 0 : index
    %c15 = arith.constant 15 : index
    %153 = vector.load %arg11[%c0_127, %c15] : memref<576x25xf32, #tpu.memory_space<vmem>>, vector<24x5xf32>
    tpu.vector_store %arg11[%c0_127, %c15], %152 {strides = array<i32>} : memref<576x25xf32, #tpu.memory_space<vmem>>, vector<24x5xf32>,
    %154 = vector.extract_strided_slice %151 {offsets = [0, 1], sizes = [24, 5], strides = [1, 1]} : vector<24x28xf32> to vector<24x5xf32>
    %c24_128 = arith.constant 24 : index
    %c15_129 = arith.constant 15 : index
    %155 = vector.load %arg11[%c24_128, %c15_129] : memref<576x25xf32, #tpu.memory_space<vmem>>, vector<24x5xf32>
    tpu.vector_store %arg11[%c24_128, %c15_129], %154 {strides = array<i32>} : memref<576x25xf32, #tpu.memory_space<vmem>>, vector<24x5xf32>,
    %156 = vector.extract_strided_slice %151 {offsets = [0, 2], sizes = [24, 5], strides = [1, 1]} : vector<24x28xf32> to vector<24x5xf32>
    %c48_130 = arith.constant 48 : index
    %c15_131 = arith.constant 15 : index
    %157 = vector.load %arg11[%c48_130, %c15_131] : memref<576x25xf32, #tpu.memory_space<vmem>>, vector<24x5xf32>
    tpu.vector_store %arg11[%c48_130, %c15_131], %156 {strides = array<i32>} : memref<576x25xf32, #tpu.memory_space<vmem>>, vector<24x5xf32>,
    %158 = vector.extract_strided_slice %151 {offsets = [0, 3], sizes = [24, 5], strides = [1, 1]} : vector<24x28xf32> to vector<24x5xf32>
    %c72_132 = arith.constant 72 : index
    %c15_133 = arith.constant 15 : index
    %159 = vector.load %arg11[%c72_132, %c15_133] : memref<576x25xf32, #tpu.memory_space<vmem>>, vector<24x5xf32>
    tpu.vector_store %arg11[%c72_132, %c15_133], %158 {strides = array<i32>} : memref<576x25xf32, #tpu.memory_space<vmem>>, vector<24x5xf32>,
    %160 = vector.extract_strided_slice %151 {offsets = [0, 4], sizes = [24, 5], strides = [1, 1]} : vector<24x28xf32> to vector<24x5xf32>
    %c96_134 = arith.constant 96 : index
    %c15_135 = arith.constant 15 : index
    %161 = vector.load %arg11[%c96_134, %c15_135] : memref<576x25xf32, #tpu.memory_space<vmem>>, vector<24x5xf32>
    tpu.vector_store %arg11[%c96_134, %c15_135], %160 {strides = array<i32>} : memref<576x25xf32, #tpu.memory_space<vmem>>, vector<24x5xf32>,
    %162 = vector.extract_strided_slice %151 {offsets = [0, 5], sizes = [24, 5], strides = [1, 1]} : vector<24x28xf32> to vector<24x5xf32>
    %c120_136 = arith.constant 120 : index
    %c15_137 = arith.constant 15 : index
    %163 = vector.load %arg11[%c120_136, %c15_137] : memref<576x25xf32, #tpu.memory_space<vmem>>, vector<24x5xf32>
    tpu.vector_store %arg11[%c120_136, %c15_137], %162 {strides = array<i32>} : memref<576x25xf32, #tpu.memory_space<vmem>>, vector<24x5xf32>,
    %164 = vector.extract_strided_slice %151 {offsets = [0, 6], sizes = [24, 5], strides = [1, 1]} : vector<24x28xf32> to vector<24x5xf32>
    %c144_138 = arith.constant 144 : index
    %c15_139 = arith.constant 15 : index
    %165 = vector.load %arg11[%c144_138, %c15_139] : memref<576x25xf32, #tpu.memory_space<vmem>>, vector<24x5xf32>
    tpu.vector_store %arg11[%c144_138, %c15_139], %164 {strides = array<i32>} : memref<576x25xf32, #tpu.memory_space<vmem>>, vector<24x5xf32>,
    %166 = vector.extract_strided_slice %151 {offsets = [0, 7], sizes = [24, 5], strides = [1, 1]} : vector<24x28xf32> to vector<24x5xf32>
    %c168_140 = arith.constant 168 : index
    %c15_141 = arith.constant 15 : index
    %167 = vector.load %arg11[%c168_140, %c15_141] : memref<576x25xf32, #tpu.memory_space<vmem>>, vector<24x5xf32>
    tpu.vector_store %arg11[%c168_140, %c15_141], %166 {strides = array<i32>} : memref<576x25xf32, #tpu.memory_space<vmem>>, vector<24x5xf32>,
    %168 = vector.extract_strided_slice %151 {offsets = [0, 8], sizes = [24, 5], strides = [1, 1]} : vector<24x28xf32> to vector<24x5xf32>
    %c192_142 = arith.constant 192 : index
    %c15_143 = arith.constant 15 : index
    %169 = vector.load %arg11[%c192_142, %c15_143] : memref<576x25xf32, #tpu.memory_space<vmem>>, vector<24x5xf32>
    tpu.vector_store %arg11[%c192_142, %c15_143], %168 {strides = array<i32>} : memref<576x25xf32, #tpu.memory_space<vmem>>, vector<24x5xf32>,
    %170 = vector.extract_strided_slice %151 {offsets = [0, 9], sizes = [24, 5], strides = [1, 1]} : vector<24x28xf32> to vector<24x5xf32>
    %c216_144 = arith.constant 216 : index
    %c15_145 = arith.constant 15 : index
    %171 = vector.load %arg11[%c216_144, %c15_145] : memref<576x25xf32, #tpu.memory_space<vmem>>, vector<24x5xf32>
    tpu.vector_store %arg11[%c216_144, %c15_145], %170 {strides = array<i32>} : memref<576x25xf32, #tpu.memory_space<vmem>>, vector<24x5xf32>,
    %172 = vector.extract_strided_slice %151 {offsets = [0, 10], sizes = [24, 5], strides = [1, 1]} : vector<24x28xf32> to vector<24x5xf32>
    %c240_146 = arith.constant 240 : index
    %c15_147 = arith.constant 15 : index
    %173 = vector.load %arg11[%c240_146, %c15_147] : memref<576x25xf32, #tpu.memory_space<vmem>>, vector<24x5xf32>
    tpu.vector_store %arg11[%c240_146, %c15_147], %172 {strides = array<i32>} : memref<576x25xf32, #tpu.memory_space<vmem>>, vector<24x5xf32>,
    %174 = vector.extract_strided_slice %151 {offsets = [0, 11], sizes = [24, 5], strides = [1, 1]} : vector<24x28xf32> to vector<24x5xf32>
    %c264_148 = arith.constant 264 : index
    %c15_149 = arith.constant 15 : index
    %175 = vector.load %arg11[%c264_148, %c15_149] : memref<576x25xf32, #tpu.memory_space<vmem>>, vector<24x5xf32>
    tpu.vector_store %arg11[%c264_148, %c15_149], %174 {strides = array<i32>} : memref<576x25xf32, #tpu.memory_space<vmem>>, vector<24x5xf32>,
    %176 = vector.extract_strided_slice %151 {offsets = [0, 12], sizes = [24, 5], strides = [1, 1]} : vector<24x28xf32> to vector<24x5xf32>
    %c288_150 = arith.constant 288 : index
    %c15_151 = arith.constant 15 : index
    %177 = vector.load %arg11[%c288_150, %c15_151] : memref<576x25xf32, #tpu.memory_space<vmem>>, vector<24x5xf32>
    tpu.vector_store %arg11[%c288_150, %c15_151], %176 {strides = array<i32>} : memref<576x25xf32, #tpu.memory_space<vmem>>, vector<24x5xf32>,
    %178 = vector.extract_strided_slice %151 {offsets = [0, 13], sizes = [24, 5], strides = [1, 1]} : vector<24x28xf32> to vector<24x5xf32>
    %c312_152 = arith.constant 312 : index
    %c15_153 = arith.constant 15 : index
    %179 = vector.load %arg11[%c312_152, %c15_153] : memref<576x25xf32, #tpu.memory_space<vmem>>, vector<24x5xf32>
    tpu.vector_store %arg11[%c312_152, %c15_153], %178 {strides = array<i32>} : memref<576x25xf32, #tpu.memory_space<vmem>>, vector<24x5xf32>,
    %180 = vector.extract_strided_slice %151 {offsets = [0, 14], sizes = [24, 5], strides = [1, 1]} : vector<24x28xf32> to vector<24x5xf32>
    %c336_154 = arith.constant 336 : index
    %c15_155 = arith.constant 15 : index
    %181 = vector.load %arg11[%c336_154, %c15_155] : memref<576x25xf32, #tpu.memory_space<vmem>>, vector<24x5xf32>
    tpu.vector_store %arg11[%c336_154, %c15_155], %180 {strides = array<i32>} : memref<576x25xf32, #tpu.memory_space<vmem>>, vector<24x5xf32>,
    %182 = vector.extract_strided_slice %151 {offsets = [0, 15], sizes = [24, 5], strides = [1, 1]} : vector<24x28xf32> to vector<24x5xf32>
    %c360_156 = arith.constant 360 : index
    %c15_157 = arith.constant 15 : index
    %183 = vector.load %arg11[%c360_156, %c15_157] : memref<576x25xf32, #tpu.memory_space<vmem>>, vector<24x5xf32>
    tpu.vector_store %arg11[%c360_156, %c15_157], %182 {strides = array<i32>} : memref<576x25xf32, #tpu.memory_space<vmem>>, vector<24x5xf32>,
    %184 = vector.extract_strided_slice %151 {offsets = [0, 16], sizes = [24, 5], strides = [1, 1]} : vector<24x28xf32> to vector<24x5xf32>
    %c384_158 = arith.constant 384 : index
    %c15_159 = arith.constant 15 : index
    %185 = vector.load %arg11[%c384_158, %c15_159] : memref<576x25xf32, #tpu.memory_space<vmem>>, vector<24x5xf32>
    tpu.vector_store %arg11[%c384_158, %c15_159], %184 {strides = array<i32>} : memref<576x25xf32, #tpu.memory_space<vmem>>, vector<24x5xf32>,
    %186 = vector.extract_strided_slice %151 {offsets = [0, 17], sizes = [24, 5], strides = [1, 1]} : vector<24x28xf32> to vector<24x5xf32>
    %c408_160 = arith.constant 408 : index
    %c15_161 = arith.constant 15 : index
    %187 = vector.load %arg11[%c408_160, %c15_161] : memref<576x25xf32, #tpu.memory_space<vmem>>, vector<24x5xf32>
    tpu.vector_store %arg11[%c408_160, %c15_161], %186 {strides = array<i32>} : memref<576x25xf32, #tpu.memory_space<vmem>>, vector<24x5xf32>,
    %188 = vector.extract_strided_slice %151 {offsets = [0, 18], sizes = [24, 5], strides = [1, 1]} : vector<24x28xf32> to vector<24x5xf32>
    %c432_162 = arith.constant 432 : index
    %c15_163 = arith.constant 15 : index
    %189 = vector.load %arg11[%c432_162, %c15_163] : memref<576x25xf32, #tpu.memory_space<vmem>>, vector<24x5xf32>
    tpu.vector_store %arg11[%c432_162, %c15_163], %188 {strides = array<i32>} : memref<576x25xf32, #tpu.memory_space<vmem>>, vector<24x5xf32>,
    %190 = vector.extract_strided_slice %151 {offsets = [0, 19], sizes = [24, 5], strides = [1, 1]} : vector<24x28xf32> to vector<24x5xf32>
    %c456_164 = arith.constant 456 : index
    %c15_165 = arith.constant 15 : index
    %191 = vector.load %arg11[%c456_164, %c15_165] : memref<576x25xf32, #tpu.memory_space<vmem>>, vector<24x5xf32>
    tpu.vector_store %arg11[%c456_164, %c15_165], %190 {strides = array<i32>} : memref<576x25xf32, #tpu.memory_space<vmem>>, vector<24x5xf32>,
    %192 = vector.extract_strided_slice %151 {offsets = [0, 20], sizes = [24, 5], strides = [1, 1]} : vector<24x28xf32> to vector<24x5xf32>
    %c480_166 = arith.constant 480 : index
    %c15_167 = arith.constant 15 : index
    %193 = vector.load %arg11[%c480_166, %c15_167] : memref<576x25xf32, #tpu.memory_space<vmem>>, vector<24x5xf32>
    tpu.vector_store %arg11[%c480_166, %c15_167], %192 {strides = array<i32>} : memref<576x25xf32, #tpu.memory_space<vmem>>, vector<24x5xf32>,
    %194 = vector.extract_strided_slice %151 {offsets = [0, 21], sizes = [24, 5], strides = [1, 1]} : vector<24x28xf32> to vector<24x5xf32>
    %c504_168 = arith.constant 504 : index
    %c15_169 = arith.constant 15 : index
    %195 = vector.load %arg11[%c504_168, %c15_169] : memref<576x25xf32, #tpu.memory_space<vmem>>, vector<24x5xf32>
    tpu.vector_store %arg11[%c504_168, %c15_169], %194 {strides = array<i32>} : memref<576x25xf32, #tpu.memory_space<vmem>>, vector<24x5xf32>,
    %196 = vector.extract_strided_slice %151 {offsets = [0, 22], sizes = [24, 5], strides = [1, 1]} : vector<24x28xf32> to vector<24x5xf32>
    %c528_170 = arith.constant 528 : index
    %c15_171 = arith.constant 15 : index
    %197 = vector.load %arg11[%c528_170, %c15_171] : memref<576x25xf32, #tpu.memory_space<vmem>>, vector<24x5xf32>
    tpu.vector_store %arg11[%c528_170, %c15_171], %196 {strides = array<i32>} : memref<576x25xf32, #tpu.memory_space<vmem>>, vector<24x5xf32>,
    %198 = vector.extract_strided_slice %151 {offsets = [0, 23], sizes = [24, 5], strides = [1, 1]} : vector<24x28xf32> to vector<24x5xf32>
    %c552_172 = arith.constant 552 : index
    %c15_173 = arith.constant 15 : index
    %199 = vector.load %arg11[%c552_172, %c15_173] : memref<576x25xf32, #tpu.memory_space<vmem>>, vector<24x5xf32>
    tpu.vector_store %arg11[%c552_172, %c15_173], %198 {strides = array<i32>} : memref<576x25xf32, #tpu.memory_space<vmem>>, vector<24x5xf32>,
    %c0_174 = arith.constant 0 : index
    %c4 = arith.constant 4 : index
    %c0_175 = arith.constant 0 : index
    %200 = vector.load %arg1[%c0_174, %c4, %c0_175] : memref<1x28x28xf32, #tpu.memory_space<vmem>>, vector<1x24x28xf32>
    %201 = vector.shape_cast %200 : vector<1x24x28xf32> to vector<24x28xf32>
    %202 = vector.extract_strided_slice %201 {offsets = [0, 0], sizes = [24, 5], strides = [1, 1]} : vector<24x28xf32> to vector<24x5xf32>
    %c0_176 = arith.constant 0 : index
    %c20 = arith.constant 20 : index
    %203 = vector.load %arg11[%c0_176, %c20] : memref<576x25xf32, #tpu.memory_space<vmem>>, vector<24x5xf32>
    tpu.vector_store %arg11[%c0_176, %c20], %202 {strides = array<i32>} : memref<576x25xf32, #tpu.memory_space<vmem>>, vector<24x5xf32>,
    %204 = vector.extract_strided_slice %201 {offsets = [0, 1], sizes = [24, 5], strides = [1, 1]} : vector<24x28xf32> to vector<24x5xf32>
    %c24_177 = arith.constant 24 : index
    %c20_178 = arith.constant 20 : index
    %205 = vector.load %arg11[%c24_177, %c20_178] : memref<576x25xf32, #tpu.memory_space<vmem>>, vector<24x5xf32>
    tpu.vector_store %arg11[%c24_177, %c20_178], %204 {strides = array<i32>} : memref<576x25xf32, #tpu.memory_space<vmem>>, vector<24x5xf32>,
    %206 = vector.extract_strided_slice %201 {offsets = [0, 2], sizes = [24, 5], strides = [1, 1]} : vector<24x28xf32> to vector<24x5xf32>
    %c48_179 = arith.constant 48 : index
    %c20_180 = arith.constant 20 : index
    %207 = vector.load %arg11[%c48_179, %c20_180] : memref<576x25xf32, #tpu.memory_space<vmem>>, vector<24x5xf32>
    tpu.vector_store %arg11[%c48_179, %c20_180], %206 {strides = array<i32>} : memref<576x25xf32, #tpu.memory_space<vmem>>, vector<24x5xf32>,
    %208 = vector.extract_strided_slice %201 {offsets = [0, 3], sizes = [24, 5], strides = [1, 1]} : vector<24x28xf32> to vector<24x5xf32>
    %c72_181 = arith.constant 72 : index
    %c20_182 = arith.constant 20 : index
    %209 = vector.load %arg11[%c72_181, %c20_182] : memref<576x25xf32, #tpu.memory_space<vmem>>, vector<24x5xf32>
    tpu.vector_store %arg11[%c72_181, %c20_182], %208 {strides = array<i32>} : memref<576x25xf32, #tpu.memory_space<vmem>>, vector<24x5xf32>,
    %210 = vector.extract_strided_slice %201 {offsets = [0, 4], sizes = [24, 5], strides = [1, 1]} : vector<24x28xf32> to vector<24x5xf32>
    %c96_183 = arith.constant 96 : index
    %c20_184 = arith.constant 20 : index
    %211 = vector.load %arg11[%c96_183, %c20_184] : memref<576x25xf32, #tpu.memory_space<vmem>>, vector<24x5xf32>
    tpu.vector_store %arg11[%c96_183, %c20_184], %210 {strides = array<i32>} : memref<576x25xf32, #tpu.memory_space<vmem>>, vector<24x5xf32>,
    %212 = vector.extract_strided_slice %201 {offsets = [0, 5], sizes = [24, 5], strides = [1, 1]} : vector<24x28xf32> to vector<24x5xf32>
    %c120_185 = arith.constant 120 : index
    %c20_186 = arith.constant 20 : index
    %213 = vector.load %arg11[%c120_185, %c20_186] : memref<576x25xf32, #tpu.memory_space<vmem>>, vector<24x5xf32>
    tpu.vector_store %arg11[%c120_185, %c20_186], %212 {strides = array<i32>} : memref<576x25xf32, #tpu.memory_space<vmem>>, vector<24x5xf32>,
    %214 = vector.extract_strided_slice %201 {offsets = [0, 6], sizes = [24, 5], strides = [1, 1]} : vector<24x28xf32> to vector<24x5xf32>
    %c144_187 = arith.constant 144 : index
    %c20_188 = arith.constant 20 : index
    %215 = vector.load %arg11[%c144_187, %c20_188] : memref<576x25xf32, #tpu.memory_space<vmem>>, vector<24x5xf32>
    tpu.vector_store %arg11[%c144_187, %c20_188], %214 {strides = array<i32>} : memref<576x25xf32, #tpu.memory_space<vmem>>, vector<24x5xf32>,
    %216 = vector.extract_strided_slice %201 {offsets = [0, 7], sizes = [24, 5], strides = [1, 1]} : vector<24x28xf32> to vector<24x5xf32>
    %c168_189 = arith.constant 168 : index
    %c20_190 = arith.constant 20 : index
    %217 = vector.load %arg11[%c168_189, %c20_190] : memref<576x25xf32, #tpu.memory_space<vmem>>, vector<24x5xf32>
    tpu.vector_store %arg11[%c168_189, %c20_190], %216 {strides = array<i32>} : memref<576x25xf32, #tpu.memory_space<vmem>>, vector<24x5xf32>,
    %218 = vector.extract_strided_slice %201 {offsets = [0, 8], sizes = [24, 5], strides = [1, 1]} : vector<24x28xf32> to vector<24x5xf32>
    %c192_191 = arith.constant 192 : index
    %c20_192 = arith.constant 20 : index
    %219 = vector.load %arg11[%c192_191, %c20_192] : memref<576x25xf32, #tpu.memory_space<vmem>>, vector<24x5xf32>
    tpu.vector_store %arg11[%c192_191, %c20_192], %218 {strides = array<i32>} : memref<576x25xf32, #tpu.memory_space<vmem>>, vector<24x5xf32>,
    %220 = vector.extract_strided_slice %201 {offsets = [0, 9], sizes = [24, 5], strides = [1, 1]} : vector<24x28xf32> to vector<24x5xf32>
    %c216_193 = arith.constant 216 : index
    %c20_194 = arith.constant 20 : index
    %221 = vector.load %arg11[%c216_193, %c20_194] : memref<576x25xf32, #tpu.memory_space<vmem>>, vector<24x5xf32>
    tpu.vector_store %arg11[%c216_193, %c20_194], %220 {strides = array<i32>} : memref<576x25xf32, #tpu.memory_space<vmem>>, vector<24x5xf32>,
    %222 = vector.extract_strided_slice %201 {offsets = [0, 10], sizes = [24, 5], strides = [1, 1]} : vector<24x28xf32> to vector<24x5xf32>
    %c240_195 = arith.constant 240 : index
    %c20_196 = arith.constant 20 : index
    %223 = vector.load %arg11[%c240_195, %c20_196] : memref<576x25xf32, #tpu.memory_space<vmem>>, vector<24x5xf32>
    tpu.vector_store %arg11[%c240_195, %c20_196], %222 {strides = array<i32>} : memref<576x25xf32, #tpu.memory_space<vmem>>, vector<24x5xf32>,
    %224 = vector.extract_strided_slice %201 {offsets = [0, 11], sizes = [24, 5], strides = [1, 1]} : vector<24x28xf32> to vector<24x5xf32>
    %c264_197 = arith.constant 264 : index
    %c20_198 = arith.constant 20 : index
    %225 = vector.load %arg11[%c264_197, %c20_198] : memref<576x25xf32, #tpu.memory_space<vmem>>, vector<24x5xf32>
    tpu.vector_store %arg11[%c264_197, %c20_198], %224 {strides = array<i32>} : memref<576x25xf32, #tpu.memory_space<vmem>>, vector<24x5xf32>,
    %226 = vector.extract_strided_slice %201 {offsets = [0, 12], sizes = [24, 5], strides = [1, 1]} : vector<24x28xf32> to vector<24x5xf32>
    %c288_199 = arith.constant 288 : index
    %c20_200 = arith.constant 20 : index
    %227 = vector.load %arg11[%c288_199, %c20_200] : memref<576x25xf32, #tpu.memory_space<vmem>>, vector<24x5xf32>
    tpu.vector_store %arg11[%c288_199, %c20_200], %226 {strides = array<i32>} : memref<576x25xf32, #tpu.memory_space<vmem>>, vector<24x5xf32>,
    %228 = vector.extract_strided_slice %201 {offsets = [0, 13], sizes = [24, 5], strides = [1, 1]} : vector<24x28xf32> to vector<24x5xf32>
    %c312_201 = arith.constant 312 : index
    %c20_202 = arith.constant 20 : index
    %229 = vector.load %arg11[%c312_201, %c20_202] : memref<576x25xf32, #tpu.memory_space<vmem>>, vector<24x5xf32>
    tpu.vector_store %arg11[%c312_201, %c20_202], %228 {strides = array<i32>} : memref<576x25xf32, #tpu.memory_space<vmem>>, vector<24x5xf32>,
    %230 = vector.extract_strided_slice %201 {offsets = [0, 14], sizes = [24, 5], strides = [1, 1]} : vector<24x28xf32> to vector<24x5xf32>
    %c336_203 = arith.constant 336 : index
    %c20_204 = arith.constant 20 : index
    %231 = vector.load %arg11[%c336_203, %c20_204] : memref<576x25xf32, #tpu.memory_space<vmem>>, vector<24x5xf32>
    tpu.vector_store %arg11[%c336_203, %c20_204], %230 {strides = array<i32>} : memref<576x25xf32, #tpu.memory_space<vmem>>, vector<24x5xf32>,
    %232 = vector.extract_strided_slice %201 {offsets = [0, 15], sizes = [24, 5], strides = [1, 1]} : vector<24x28xf32> to vector<24x5xf32>
    %c360_205 = arith.constant 360 : index
    %c20_206 = arith.constant 20 : index
    %233 = vector.load %arg11[%c360_205, %c20_206] : memref<576x25xf32, #tpu.memory_space<vmem>>, vector<24x5xf32>
    tpu.vector_store %arg11[%c360_205, %c20_206], %232 {strides = array<i32>} : memref<576x25xf32, #tpu.memory_space<vmem>>, vector<24x5xf32>,
    %234 = vector.extract_strided_slice %201 {offsets = [0, 16], sizes = [24, 5], strides = [1, 1]} : vector<24x28xf32> to vector<24x5xf32>
    %c384_207 = arith.constant 384 : index
    %c20_208 = arith.constant 20 : index
    %235 = vector.load %arg11[%c384_207, %c20_208] : memref<576x25xf32, #tpu.memory_space<vmem>>, vector<24x5xf32>
    tpu.vector_store %arg11[%c384_207, %c20_208], %234 {strides = array<i32>} : memref<576x25xf32, #tpu.memory_space<vmem>>, vector<24x5xf32>,
    %236 = vector.extract_strided_slice %201 {offsets = [0, 17], sizes = [24, 5], strides = [1, 1]} : vector<24x28xf32> to vector<24x5xf32>
    %c408_209 = arith.constant 408 : index
    %c20_210 = arith.constant 20 : index
    %237 = vector.load %arg11[%c408_209, %c20_210] : memref<576x25xf32, #tpu.memory_space<vmem>>, vector<24x5xf32>
    tpu.vector_store %arg11[%c408_209, %c20_210], %236 {strides = array<i32>} : memref<576x25xf32, #tpu.memory_space<vmem>>, vector<24x5xf32>,
    %238 = vector.extract_strided_slice %201 {offsets = [0, 18], sizes = [24, 5], strides = [1, 1]} : vector<24x28xf32> to vector<24x5xf32>
    %c432_211 = arith.constant 432 : index
    %c20_212 = arith.constant 20 : index
    %239 = vector.load %arg11[%c432_211, %c20_212] : memref<576x25xf32, #tpu.memory_space<vmem>>, vector<24x5xf32>
    tpu.vector_store %arg11[%c432_211, %c20_212], %238 {strides = array<i32>} : memref<576x25xf32, #tpu.memory_space<vmem>>, vector<24x5xf32>,
    %240 = vector.extract_strided_slice %201 {offsets = [0, 19], sizes = [24, 5], strides = [1, 1]} : vector<24x28xf32> to vector<24x5xf32>
    %c456_213 = arith.constant 456 : index
    %c20_214 = arith.constant 20 : index
    %241 = vector.load %arg11[%c456_213, %c20_214] : memref<576x25xf32, #tpu.memory_space<vmem>>, vector<24x5xf32>
    tpu.vector_store %arg11[%c456_213, %c20_214], %240 {strides = array<i32>} : memref<576x25xf32, #tpu.memory_space<vmem>>, vector<24x5xf32>,
    %242 = vector.extract_strided_slice %201 {offsets = [0, 20], sizes = [24, 5], strides = [1, 1]} : vector<24x28xf32> to vector<24x5xf32>
    %c480_215 = arith.constant 480 : index
    %c20_216 = arith.constant 20 : index
    %243 = vector.load %arg11[%c480_215, %c20_216] : memref<576x25xf32, #tpu.memory_space<vmem>>, vector<24x5xf32>
    tpu.vector_store %arg11[%c480_215, %c20_216], %242 {strides = array<i32>} : memref<576x25xf32, #tpu.memory_space<vmem>>, vector<24x5xf32>,
    %244 = vector.extract_strided_slice %201 {offsets = [0, 21], sizes = [24, 5], strides = [1, 1]} : vector<24x28xf32> to vector<24x5xf32>
    %c504_217 = arith.constant 504 : index
    %c20_218 = arith.constant 20 : index
    %245 = vector.load %arg11[%c504_217, %c20_218] : memref<576x25xf32, #tpu.memory_space<vmem>>, vector<24x5xf32>
    tpu.vector_store %arg11[%c504_217, %c20_218], %244 {strides = array<i32>} : memref<576x25xf32, #tpu.memory_space<vmem>>, vector<24x5xf32>,
    %246 = vector.extract_strided_slice %201 {offsets = [0, 22], sizes = [24, 5], strides = [1, 1]} : vector<24x28xf32> to vector<24x5xf32>
    %c528_219 = arith.constant 528 : index
    %c20_220 = arith.constant 20 : index
    %247 = vector.load %arg11[%c528_219, %c20_220] : memref<576x25xf32, #tpu.memory_space<vmem>>, vector<24x5xf32>
    tpu.vector_store %arg11[%c528_219, %c20_220], %246 {strides = array<i32>} : memref<576x25xf32, #tpu.memory_space<vmem>>, vector<24x5xf32>,
    %248 = vector.extract_strided_slice %201 {offsets = [0, 23], sizes = [24, 5], strides = [1, 1]} : vector<24x28xf32> to vector<24x5xf32>
    %c552_221 = arith.constant 552 : index
    %c20_222 = arith.constant 20 : index
    %249 = vector.load %arg11[%c552_221, %c20_222] : memref<576x25xf32, #tpu.memory_space<vmem>>, vector<24x5xf32>
    tpu.vector_store %arg11[%c552_221, %c20_222], %248 {strides = array<i32>} : memref<576x25xf32, #tpu.memory_space<vmem>>, vector<24x5xf32>,
    %c0_223 = arith.constant 0 : index
    %c0_224 = arith.constant 0 : index
    %250 = vector.load %arg11[%c0_223, %c0_224] : memref<576x25xf32, #tpu.memory_space<vmem>>, vector<576x25xf32>
    %c0_225 = arith.constant 0 : index
    %c0_226 = arith.constant 0 : index
    %251 = vector.load %arg2[%c0_225, %c0_226] : memref<25x20xf32, #tpu.memory_space<vmem>>, vector<25x20xf32>
    %cst = arith.constant dense<0.000000e+00> : vector<576x20xf32>
    %252 = tpu.matmul %250, %251, %cst {dimension_numbers = #tpu.dot_dimension_numbers<[1], [0], [0], [1], [0, 0, 1, 1], [], []>} : vector<576x25xf32>, vector<25x20xf32>, vector<576x20xf32> -> vector<576x20xf32>
    %c0_227 = arith.constant 0 : index
    %c0_228 = arith.constant 0 : index
    %253 = vector.load %arg3[%c0_227, %c0_228] : memref<1x20xf32, #tpu.memory_space<vmem>>, vector<1x20xf32>
    %254 = vector.broadcast %253 : vector<1x20xf32> to vector<576x20xf32>
    %255 = arith.addf %252, %254 : vector<576x20xf32>
    %c0_229 = arith.constant 0 : index
    %c0_230 = arith.constant 0 : index
    %256 = vector.load %arg12[%c0_229, %c0_230] : memref<576x20xf32, #tpu.memory_space<vmem>>, vector<576x20xf32>
    tpu.vector_store %arg12[%c0_229, %c0_230], %255 {strides = array<i32>} : memref<576x20xf32, #tpu.memory_space<vmem>>, vector<576x20xf32>,
    %c0_231 = arith.constant 0 : index
    %c0_232 = arith.constant 0 : index
    %257 = tpu.strided_load %arg12[%c0_231, %c0_232] {strides = array<i32: 2, 1>} : memref<576x20xf32, #tpu.memory_space<vmem>>, vector<12x20xf32>
    %c1_233 = arith.constant 1 : index
    %c0_234 = arith.constant 0 : index
    %258 = tpu.strided_load %arg12[%c1_233, %c0_234] {strides = array<i32: 2, 1>} : memref<576x20xf32, #tpu.memory_space<vmem>>, vector<12x20xf32>
    %c24_235 = arith.constant 24 : index
    %c0_236 = arith.constant 0 : index
    %259 = tpu.strided_load %arg12[%c24_235, %c0_236] {strides = array<i32: 2, 1>} : memref<576x20xf32, #tpu.memory_space<vmem>>, vector<12x20xf32>
    %c25 = arith.constant 25 : index
    %c0_237 = arith.constant 0 : index
    %260 = tpu.strided_load %arg12[%c25, %c0_237] {strides = array<i32: 2, 1>} : memref<576x20xf32, #tpu.memory_space<vmem>>, vector<12x20xf32>
    %261 = arith.maximumf %257, %258 : vector<12x20xf32>
    %262 = arith.maximumf %259, %260 : vector<12x20xf32>
    %263 = arith.maximumf %261, %262 : vector<12x20xf32>
    %c0_238 = arith.constant 0 : index
    %c0_239 = arith.constant 0 : index
    %264 = vector.load %arg13[%c0_238, %c0_239] : memref<144x20xf32, #tpu.memory_space<vmem>>, vector<12x20xf32>
    tpu.vector_store %arg13[%c0_238, %c0_239], %263 {strides = array<i32>} : memref<144x20xf32, #tpu.memory_space<vmem>>, vector<12x20xf32>,
    %c48_240 = arith.constant 48 : index
    %c0_241 = arith.constant 0 : index
    %265 = tpu.strided_load %arg12[%c48_240, %c0_241] {strides = array<i32: 2, 1>} : memref<576x20xf32, #tpu.memory_space<vmem>>, vector<12x20xf32>
    %c49 = arith.constant 49 : index
    %c0_242 = arith.constant 0 : index
    %266 = tpu.strided_load %arg12[%c49, %c0_242] {strides = array<i32: 2, 1>} : memref<576x20xf32, #tpu.memory_space<vmem>>, vector<12x20xf32>
    %c72_243 = arith.constant 72 : index
    %c0_244 = arith.constant 0 : index
    %267 = tpu.strided_load %arg12[%c72_243, %c0_244] {strides = array<i32: 2, 1>} : memref<576x20xf32, #tpu.memory_space<vmem>>, vector<12x20xf32>
    %c73 = arith.constant 73 : index
    %c0_245 = arith.constant 0 : index
    %268 = tpu.strided_load %arg12[%c73, %c0_245] {strides = array<i32: 2, 1>} : memref<576x20xf32, #tpu.memory_space<vmem>>, vector<12x20xf32>
    %269 = arith.maximumf %265, %266 : vector<12x20xf32>
    %270 = arith.maximumf %267, %268 : vector<12x20xf32>
    %271 = arith.maximumf %269, %270 : vector<12x20xf32>
    %c12 = arith.constant 12 : index
    %c0_246 = arith.constant 0 : index
    %272 = vector.load %arg13[%c12, %c0_246] : memref<144x20xf32, #tpu.memory_space<vmem>>, vector<12x20xf32>
    tpu.vector_store %arg13[%c12, %c0_246], %271 {strides = array<i32>} : memref<144x20xf32, #tpu.memory_space<vmem>>, vector<12x20xf32>,
    %c96_247 = arith.constant 96 : index
    %c0_248 = arith.constant 0 : index
    %273 = tpu.strided_load %arg12[%c96_247, %c0_248] {strides = array<i32: 2, 1>} : memref<576x20xf32, #tpu.memory_space<vmem>>, vector<12x20xf32>
    %c97 = arith.constant 97 : index
    %c0_249 = arith.constant 0 : index
    %274 = tpu.strided_load %arg12[%c97, %c0_249] {strides = array<i32: 2, 1>} : memref<576x20xf32, #tpu.memory_space<vmem>>, vector<12x20xf32>
    %c120_250 = arith.constant 120 : index
    %c0_251 = arith.constant 0 : index
    %275 = tpu.strided_load %arg12[%c120_250, %c0_251] {strides = array<i32: 2, 1>} : memref<576x20xf32, #tpu.memory_space<vmem>>, vector<12x20xf32>
    %c121 = arith.constant 121 : index
    %c0_252 = arith.constant 0 : index
    %276 = tpu.strided_load %arg12[%c121, %c0_252] {strides = array<i32: 2, 1>} : memref<576x20xf32, #tpu.memory_space<vmem>>, vector<12x20xf32>
    %277 = arith.maximumf %273, %274 : vector<12x20xf32>
    %278 = arith.maximumf %275, %276 : vector<12x20xf32>
    %279 = arith.maximumf %277, %278 : vector<12x20xf32>
    %c24_253 = arith.constant 24 : index
    %c0_254 = arith.constant 0 : index
    %280 = vector.load %arg13[%c24_253, %c0_254] : memref<144x20xf32, #tpu.memory_space<vmem>>, vector<12x20xf32>
    tpu.vector_store %arg13[%c24_253, %c0_254], %279 {strides = array<i32>} : memref<144x20xf32, #tpu.memory_space<vmem>>, vector<12x20xf32>,
    %c144_255 = arith.constant 144 : index
    %c0_256 = arith.constant 0 : index
    %281 = tpu.strided_load %arg12[%c144_255, %c0_256] {strides = array<i32: 2, 1>} : memref<576x20xf32, #tpu.memory_space<vmem>>, vector<12x20xf32>
    %c145 = arith.constant 145 : index
    %c0_257 = arith.constant 0 : index
    %282 = tpu.strided_load %arg12[%c145, %c0_257] {strides = array<i32: 2, 1>} : memref<576x20xf32, #tpu.memory_space<vmem>>, vector<12x20xf32>
    %c168_258 = arith.constant 168 : index
    %c0_259 = arith.constant 0 : index
    %283 = tpu.strided_load %arg12[%c168_258, %c0_259] {strides = array<i32: 2, 1>} : memref<576x20xf32, #tpu.memory_space<vmem>>, vector<12x20xf32>
    %c169 = arith.constant 169 : index
    %c0_260 = arith.constant 0 : index
    %284 = tpu.strided_load %arg12[%c169, %c0_260] {strides = array<i32: 2, 1>} : memref<576x20xf32, #tpu.memory_space<vmem>>, vector<12x20xf32>
    %285 = arith.maximumf %281, %282 : vector<12x20xf32>
    %286 = arith.maximumf %283, %284 : vector<12x20xf32>
    %287 = arith.maximumf %285, %286 : vector<12x20xf32>
    %c36 = arith.constant 36 : index
    %c0_261 = arith.constant 0 : index
    %288 = vector.load %arg13[%c36, %c0_261] : memref<144x20xf32, #tpu.memory_space<vmem>>, vector<12x20xf32>
    tpu.vector_store %arg13[%c36, %c0_261], %287 {strides = array<i32>} : memref<144x20xf32, #tpu.memory_space<vmem>>, vector<12x20xf32>,
    %c192_262 = arith.constant 192 : index
    %c0_263 = arith.constant 0 : index
    %289 = tpu.strided_load %arg12[%c192_262, %c0_263] {strides = array<i32: 2, 1>} : memref<576x20xf32, #tpu.memory_space<vmem>>, vector<12x20xf32>
    %c193 = arith.constant 193 : index
    %c0_264 = arith.constant 0 : index
    %290 = tpu.strided_load %arg12[%c193, %c0_264] {strides = array<i32: 2, 1>} : memref<576x20xf32, #tpu.memory_space<vmem>>, vector<12x20xf32>
    %c216_265 = arith.constant 216 : index
    %c0_266 = arith.constant 0 : index
    %291 = tpu.strided_load %arg12[%c216_265, %c0_266] {strides = array<i32: 2, 1>} : memref<576x20xf32, #tpu.memory_space<vmem>>, vector<12x20xf32>
    %c217 = arith.constant 217 : index
    %c0_267 = arith.constant 0 : index
    %292 = tpu.strided_load %arg12[%c217, %c0_267] {strides = array<i32: 2, 1>} : memref<576x20xf32, #tpu.memory_space<vmem>>, vector<12x20xf32>
    %293 = arith.maximumf %289, %290 : vector<12x20xf32>
    %294 = arith.maximumf %291, %292 : vector<12x20xf32>
    %295 = arith.maximumf %293, %294 : vector<12x20xf32>
    %c48_268 = arith.constant 48 : index
    %c0_269 = arith.constant 0 : index
    %296 = vector.load %arg13[%c48_268, %c0_269] : memref<144x20xf32, #tpu.memory_space<vmem>>, vector<12x20xf32>
    tpu.vector_store %arg13[%c48_268, %c0_269], %295 {strides = array<i32>} : memref<144x20xf32, #tpu.memory_space<vmem>>, vector<12x20xf32>,
    %c240_270 = arith.constant 240 : index
    %c0_271 = arith.constant 0 : index
    %297 = tpu.strided_load %arg12[%c240_270, %c0_271] {strides = array<i32: 2, 1>} : memref<576x20xf32, #tpu.memory_space<vmem>>, vector<12x20xf32>
    %c241 = arith.constant 241 : index
    %c0_272 = arith.constant 0 : index
    %298 = tpu.strided_load %arg12[%c241, %c0_272] {strides = array<i32: 2, 1>} : memref<576x20xf32, #tpu.memory_space<vmem>>, vector<12x20xf32>
    %c264_273 = arith.constant 264 : index
    %c0_274 = arith.constant 0 : index
    %299 = tpu.strided_load %arg12[%c264_273, %c0_274] {strides = array<i32: 2, 1>} : memref<576x20xf32, #tpu.memory_space<vmem>>, vector<12x20xf32>
    %c265 = arith.constant 265 : index
    %c0_275 = arith.constant 0 : index
    %300 = tpu.strided_load %arg12[%c265, %c0_275] {strides = array<i32: 2, 1>} : memref<576x20xf32, #tpu.memory_space<vmem>>, vector<12x20xf32>
    %301 = arith.maximumf %297, %298 : vector<12x20xf32>
    %302 = arith.maximumf %299, %300 : vector<12x20xf32>
    %303 = arith.maximumf %301, %302 : vector<12x20xf32>
    %c60 = arith.constant 60 : index
    %c0_276 = arith.constant 0 : index
    %304 = vector.load %arg13[%c60, %c0_276] : memref<144x20xf32, #tpu.memory_space<vmem>>, vector<12x20xf32>
    tpu.vector_store %arg13[%c60, %c0_276], %303 {strides = array<i32>} : memref<144x20xf32, #tpu.memory_space<vmem>>, vector<12x20xf32>,
    %c288_277 = arith.constant 288 : index
    %c0_278 = arith.constant 0 : index
    %305 = tpu.strided_load %arg12[%c288_277, %c0_278] {strides = array<i32: 2, 1>} : memref<576x20xf32, #tpu.memory_space<vmem>>, vector<12x20xf32>
    %c289 = arith.constant 289 : index
    %c0_279 = arith.constant 0 : index
    %306 = tpu.strided_load %arg12[%c289, %c0_279] {strides = array<i32: 2, 1>} : memref<576x20xf32, #tpu.memory_space<vmem>>, vector<12x20xf32>
    %c312_280 = arith.constant 312 : index
    %c0_281 = arith.constant 0 : index
    %307 = tpu.strided_load %arg12[%c312_280, %c0_281] {strides = array<i32: 2, 1>} : memref<576x20xf32, #tpu.memory_space<vmem>>, vector<12x20xf32>
    %c313 = arith.constant 313 : index
    %c0_282 = arith.constant 0 : index
    %308 = tpu.strided_load %arg12[%c313, %c0_282] {strides = array<i32: 2, 1>} : memref<576x20xf32, #tpu.memory_space<vmem>>, vector<12x20xf32>
    %309 = arith.maximumf %305, %306 : vector<12x20xf32>
    %310 = arith.maximumf %307, %308 : vector<12x20xf32>
    %311 = arith.maximumf %309, %310 : vector<12x20xf32>
    %c72_283 = arith.constant 72 : index
    %c0_284 = arith.constant 0 : index
    %312 = vector.load %arg13[%c72_283, %c0_284] : memref<144x20xf32, #tpu.memory_space<vmem>>, vector<12x20xf32>
    tpu.vector_store %arg13[%c72_283, %c0_284], %311 {strides = array<i32>} : memref<144x20xf32, #tpu.memory_space<vmem>>, vector<12x20xf32>,
    %c336_285 = arith.constant 336 : index
    %c0_286 = arith.constant 0 : index
    %313 = tpu.strided_load %arg12[%c336_285, %c0_286] {strides = array<i32: 2, 1>} : memref<576x20xf32, #tpu.memory_space<vmem>>, vector<12x20xf32>
    %c337 = arith.constant 337 : index
    %c0_287 = arith.constant 0 : index
    %314 = tpu.strided_load %arg12[%c337, %c0_287] {strides = array<i32: 2, 1>} : memref<576x20xf32, #tpu.memory_space<vmem>>, vector<12x20xf32>
    %c360_288 = arith.constant 360 : index
    %c0_289 = arith.constant 0 : index
    %315 = tpu.strided_load %arg12[%c360_288, %c0_289] {strides = array<i32: 2, 1>} : memref<576x20xf32, #tpu.memory_space<vmem>>, vector<12x20xf32>
    %c361 = arith.constant 361 : index
    %c0_290 = arith.constant 0 : index
    %316 = tpu.strided_load %arg12[%c361, %c0_290] {strides = array<i32: 2, 1>} : memref<576x20xf32, #tpu.memory_space<vmem>>, vector<12x20xf32>
    %317 = arith.maximumf %313, %314 : vector<12x20xf32>
    %318 = arith.maximumf %315, %316 : vector<12x20xf32>
    %319 = arith.maximumf %317, %318 : vector<12x20xf32>
    %c84 = arith.constant 84 : index
    %c0_291 = arith.constant 0 : index
    %320 = vector.load %arg13[%c84, %c0_291] : memref<144x20xf32, #tpu.memory_space<vmem>>, vector<12x20xf32>
    tpu.vector_store %arg13[%c84, %c0_291], %319 {strides = array<i32>} : memref<144x20xf32, #tpu.memory_space<vmem>>, vector<12x20xf32>,
    %c384_292 = arith.constant 384 : index
    %c0_293 = arith.constant 0 : index
    %321 = tpu.strided_load %arg12[%c384_292, %c0_293] {strides = array<i32: 2, 1>} : memref<576x20xf32, #tpu.memory_space<vmem>>, vector<12x20xf32>
    %c385 = arith.constant 385 : index
    %c0_294 = arith.constant 0 : index
    %322 = tpu.strided_load %arg12[%c385, %c0_294] {strides = array<i32: 2, 1>} : memref<576x20xf32, #tpu.memory_space<vmem>>, vector<12x20xf32>
    %c408_295 = arith.constant 408 : index
    %c0_296 = arith.constant 0 : index
    %323 = tpu.strided_load %arg12[%c408_295, %c0_296] {strides = array<i32: 2, 1>} : memref<576x20xf32, #tpu.memory_space<vmem>>, vector<12x20xf32>
    %c409 = arith.constant 409 : index
    %c0_297 = arith.constant 0 : index
    %324 = tpu.strided_load %arg12[%c409, %c0_297] {strides = array<i32: 2, 1>} : memref<576x20xf32, #tpu.memory_space<vmem>>, vector<12x20xf32>
    %325 = arith.maximumf %321, %322 : vector<12x20xf32>
    %326 = arith.maximumf %323, %324 : vector<12x20xf32>
    %327 = arith.maximumf %325, %326 : vector<12x20xf32>
    %c96_298 = arith.constant 96 : index
    %c0_299 = arith.constant 0 : index
    %328 = vector.load %arg13[%c96_298, %c0_299] : memref<144x20xf32, #tpu.memory_space<vmem>>, vector<12x20xf32>
    tpu.vector_store %arg13[%c96_298, %c0_299], %327 {strides = array<i32>} : memref<144x20xf32, #tpu.memory_space<vmem>>, vector<12x20xf32>,
    %c432_300 = arith.constant 432 : index
    %c0_301 = arith.constant 0 : index
    %329 = tpu.strided_load %arg12[%c432_300, %c0_301] {strides = array<i32: 2, 1>} : memref<576x20xf32, #tpu.memory_space<vmem>>, vector<12x20xf32>
    %c433 = arith.constant 433 : index
    %c0_302 = arith.constant 0 : index
    %330 = tpu.strided_load %arg12[%c433, %c0_302] {strides = array<i32: 2, 1>} : memref<576x20xf32, #tpu.memory_space<vmem>>, vector<12x20xf32>
    %c456_303 = arith.constant 456 : index
    %c0_304 = arith.constant 0 : index
    %331 = tpu.strided_load %arg12[%c456_303, %c0_304] {strides = array<i32: 2, 1>} : memref<576x20xf32, #tpu.memory_space<vmem>>, vector<12x20xf32>
    %c457 = arith.constant 457 : index
    %c0_305 = arith.constant 0 : index
    %332 = tpu.strided_load %arg12[%c457, %c0_305] {strides = array<i32: 2, 1>} : memref<576x20xf32, #tpu.memory_space<vmem>>, vector<12x20xf32>
    %333 = arith.maximumf %329, %330 : vector<12x20xf32>
    %334 = arith.maximumf %331, %332 : vector<12x20xf32>
    %335 = arith.maximumf %333, %334 : vector<12x20xf32>
    %c108 = arith.constant 108 : index
    %c0_306 = arith.constant 0 : index
    %336 = vector.load %arg13[%c108, %c0_306] : memref<144x20xf32, #tpu.memory_space<vmem>>, vector<12x20xf32>
    tpu.vector_store %arg13[%c108, %c0_306], %335 {strides = array<i32>} : memref<144x20xf32, #tpu.memory_space<vmem>>, vector<12x20xf32>,
    %c480_307 = arith.constant 480 : index
    %c0_308 = arith.constant 0 : index
    %337 = tpu.strided_load %arg12[%c480_307, %c0_308] {strides = array<i32: 2, 1>} : memref<576x20xf32, #tpu.memory_space<vmem>>, vector<12x20xf32>
    %c481 = arith.constant 481 : index
    %c0_309 = arith.constant 0 : index
    %338 = tpu.strided_load %arg12[%c481, %c0_309] {strides = array<i32: 2, 1>} : memref<576x20xf32, #tpu.memory_space<vmem>>, vector<12x20xf32>
    %c504_310 = arith.constant 504 : index
    %c0_311 = arith.constant 0 : index
    %339 = tpu.strided_load %arg12[%c504_310, %c0_311] {strides = array<i32: 2, 1>} : memref<576x20xf32, #tpu.memory_space<vmem>>, vector<12x20xf32>
    %c505 = arith.constant 505 : index
    %c0_312 = arith.constant 0 : index
    %340 = tpu.strided_load %arg12[%c505, %c0_312] {strides = array<i32: 2, 1>} : memref<576x20xf32, #tpu.memory_space<vmem>>, vector<12x20xf32>
    %341 = arith.maximumf %337, %338 : vector<12x20xf32>
    %342 = arith.maximumf %339, %340 : vector<12x20xf32>
    %343 = arith.maximumf %341, %342 : vector<12x20xf32>
    %c120_313 = arith.constant 120 : index
    %c0_314 = arith.constant 0 : index
    %344 = vector.load %arg13[%c120_313, %c0_314] : memref<144x20xf32, #tpu.memory_space<vmem>>, vector<12x20xf32>
    tpu.vector_store %arg13[%c120_313, %c0_314], %343 {strides = array<i32>} : memref<144x20xf32, #tpu.memory_space<vmem>>, vector<12x20xf32>,
    %c528_315 = arith.constant 528 : index
    %c0_316 = arith.constant 0 : index
    %345 = tpu.strided_load %arg12[%c528_315, %c0_316] {strides = array<i32: 2, 1>} : memref<576x20xf32, #tpu.memory_space<vmem>>, vector<12x20xf32>
    %c529 = arith.constant 529 : index
    %c0_317 = arith.constant 0 : index
    %346 = tpu.strided_load %arg12[%c529, %c0_317] {strides = array<i32: 2, 1>} : memref<576x20xf32, #tpu.memory_space<vmem>>, vector<12x20xf32>
    %c552_318 = arith.constant 552 : index
    %c0_319 = arith.constant 0 : index
    %347 = tpu.strided_load %arg12[%c552_318, %c0_319] {strides = array<i32: 2, 1>} : memref<576x20xf32, #tpu.memory_space<vmem>>, vector<12x20xf32>
    %c553 = arith.constant 553 : index
    %c0_320 = arith.constant 0 : index
    %348 = tpu.strided_load %arg12[%c553, %c0_320] {strides = array<i32: 2, 1>} : memref<576x20xf32, #tpu.memory_space<vmem>>, vector<12x20xf32>
    %349 = arith.maximumf %345, %346 : vector<12x20xf32>
    %350 = arith.maximumf %347, %348 : vector<12x20xf32>
    %351 = arith.maximumf %349, %350 : vector<12x20xf32>
    %c132 = arith.constant 132 : index
    %c0_321 = arith.constant 0 : index
    %352 = vector.load %arg13[%c132, %c0_321] : memref<144x20xf32, #tpu.memory_space<vmem>>, vector<12x20xf32>
    tpu.vector_store %arg13[%c132, %c0_321], %351 {strides = array<i32>} : memref<144x20xf32, #tpu.memory_space<vmem>>, vector<12x20xf32>,
    %c0_322 = arith.constant 0 : index
    %c0_323 = arith.constant 0 : index
    %353 = vector.load %arg13[%c0_322, %c0_323] : memref<144x20xf32, #tpu.memory_space<vmem>>, vector<8x20xf32>
    %c0_324 = arith.constant 0 : index
    %c0_325 = arith.constant 0 : index
    %354 = vector.load %arg14[%c0_324, %c0_325] : memref<64x500xf32, #tpu.memory_space<vmem>>, vector<8x20xf32>
    tpu.vector_store %arg14[%c0_324, %c0_325], %353 {strides = array<i32>} : memref<64x500xf32, #tpu.memory_space<vmem>>, vector<8x20xf32>,
    %c1_326 = arith.constant 1 : index
    %c0_327 = arith.constant 0 : index
    %355 = vector.load %arg13[%c1_326, %c0_327] : memref<144x20xf32, #tpu.memory_space<vmem>>, vector<8x20xf32>
    %c0_328 = arith.constant 0 : index
    %c20_329 = arith.constant 20 : index
    %356 = vector.load %arg14[%c0_328, %c20_329] : memref<64x500xf32, #tpu.memory_space<vmem>>, vector<8x20xf32>
    tpu.vector_store %arg14[%c0_328, %c20_329], %355 {strides = array<i32>} : memref<64x500xf32, #tpu.memory_space<vmem>>, vector<8x20xf32>,
    %c2_330 = arith.constant 2 : index
    %c0_331 = arith.constant 0 : index
    %357 = vector.load %arg13[%c2_330, %c0_331] : memref<144x20xf32, #tpu.memory_space<vmem>>, vector<8x20xf32>
    %c0_332 = arith.constant 0 : index
    %c40 = arith.constant 40 : index
    %358 = vector.load %arg14[%c0_332, %c40] : memref<64x500xf32, #tpu.memory_space<vmem>>, vector<8x20xf32>
    tpu.vector_store %arg14[%c0_332, %c40], %357 {strides = array<i32>} : memref<64x500xf32, #tpu.memory_space<vmem>>, vector<8x20xf32>,
    %c3_333 = arith.constant 3 : index
    %c0_334 = arith.constant 0 : index
    %359 = vector.load %arg13[%c3_333, %c0_334] : memref<144x20xf32, #tpu.memory_space<vmem>>, vector<8x20xf32>
    %c0_335 = arith.constant 0 : index
    %c60_336 = arith.constant 60 : index
    %360 = vector.load %arg14[%c0_335, %c60_336] : memref<64x500xf32, #tpu.memory_space<vmem>>, vector<8x20xf32>
    tpu.vector_store %arg14[%c0_335, %c60_336], %359 {strides = array<i32>} : memref<64x500xf32, #tpu.memory_space<vmem>>, vector<8x20xf32>,
    %c4_337 = arith.constant 4 : index
    %c0_338 = arith.constant 0 : index
    %361 = vector.load %arg13[%c4_337, %c0_338] : memref<144x20xf32, #tpu.memory_space<vmem>>, vector<8x20xf32>
    %c0_339 = arith.constant 0 : index
    %c80 = arith.constant 80 : index
    %362 = vector.load %arg14[%c0_339, %c80] : memref<64x500xf32, #tpu.memory_space<vmem>>, vector<8x20xf32>
    tpu.vector_store %arg14[%c0_339, %c80], %361 {strides = array<i32>} : memref<64x500xf32, #tpu.memory_space<vmem>>, vector<8x20xf32>,
    %c12_340 = arith.constant 12 : index
    %c0_341 = arith.constant 0 : index
    %363 = vector.load %arg13[%c12_340, %c0_341] : memref<144x20xf32, #tpu.memory_space<vmem>>, vector<8x20xf32>
    %c0_342 = arith.constant 0 : index
    %c100 = arith.constant 100 : index
    %364 = vector.load %arg14[%c0_342, %c100] : memref<64x500xf32, #tpu.memory_space<vmem>>, vector<8x20xf32>
    tpu.vector_store %arg14[%c0_342, %c100], %363 {strides = array<i32>} : memref<64x500xf32, #tpu.memory_space<vmem>>, vector<8x20xf32>,
    %c13 = arith.constant 13 : index
    %c0_343 = arith.constant 0 : index
    %365 = vector.load %arg13[%c13, %c0_343] : memref<144x20xf32, #tpu.memory_space<vmem>>, vector<8x20xf32>
    %c0_344 = arith.constant 0 : index
    %c120_345 = arith.constant 120 : index
    %366 = vector.load %arg14[%c0_344, %c120_345] : memref<64x500xf32, #tpu.memory_space<vmem>>, vector<8x20xf32>
    tpu.vector_store %arg14[%c0_344, %c120_345], %365 {strides = array<i32>} : memref<64x500xf32, #tpu.memory_space<vmem>>, vector<8x20xf32>,
    %c14 = arith.constant 14 : index
    %c0_346 = arith.constant 0 : index
    %367 = vector.load %arg13[%c14, %c0_346] : memref<144x20xf32, #tpu.memory_space<vmem>>, vector<8x20xf32>
    %c0_347 = arith.constant 0 : index
    %c140 = arith.constant 140 : index
    %368 = vector.load %arg14[%c0_347, %c140] : memref<64x500xf32, #tpu.memory_space<vmem>>, vector<8x20xf32>
    tpu.vector_store %arg14[%c0_347, %c140], %367 {strides = array<i32>} : memref<64x500xf32, #tpu.memory_space<vmem>>, vector<8x20xf32>,
    %c15_348 = arith.constant 15 : index
    %c0_349 = arith.constant 0 : index
    %369 = vector.load %arg13[%c15_348, %c0_349] : memref<144x20xf32, #tpu.memory_space<vmem>>, vector<8x20xf32>
    %c0_350 = arith.constant 0 : index
    %c160 = arith.constant 160 : index
    %370 = vector.load %arg14[%c0_350, %c160] : memref<64x500xf32, #tpu.memory_space<vmem>>, vector<8x20xf32>
    tpu.vector_store %arg14[%c0_350, %c160], %369 {strides = array<i32>} : memref<64x500xf32, #tpu.memory_space<vmem>>, vector<8x20xf32>,
    %c16 = arith.constant 16 : index
    %c0_351 = arith.constant 0 : index
    %371 = vector.load %arg13[%c16, %c0_351] : memref<144x20xf32, #tpu.memory_space<vmem>>, vector<8x20xf32>
    %c0_352 = arith.constant 0 : index
    %c180 = arith.constant 180 : index
    %372 = vector.load %arg14[%c0_352, %c180] : memref<64x500xf32, #tpu.memory_space<vmem>>, vector<8x20xf32>
    tpu.vector_store %arg14[%c0_352, %c180], %371 {strides = array<i32>} : memref<64x500xf32, #tpu.memory_space<vmem>>, vector<8x20xf32>,
    %c24_353 = arith.constant 24 : index
    %c0_354 = arith.constant 0 : index
    %373 = vector.load %arg13[%c24_353, %c0_354] : memref<144x20xf32, #tpu.memory_space<vmem>>, vector<8x20xf32>
    %c0_355 = arith.constant 0 : index
    %c200 = arith.constant 200 : index
    %374 = vector.load %arg14[%c0_355, %c200] : memref<64x500xf32, #tpu.memory_space<vmem>>, vector<8x20xf32>
    tpu.vector_store %arg14[%c0_355, %c200], %373 {strides = array<i32>} : memref<64x500xf32, #tpu.memory_space<vmem>>, vector<8x20xf32>,
    %c25_356 = arith.constant 25 : index
    %c0_357 = arith.constant 0 : index
    %375 = vector.load %arg13[%c25_356, %c0_357] : memref<144x20xf32, #tpu.memory_space<vmem>>, vector<8x20xf32>
    %c0_358 = arith.constant 0 : index
    %c220 = arith.constant 220 : index
    %376 = vector.load %arg14[%c0_358, %c220] : memref<64x500xf32, #tpu.memory_space<vmem>>, vector<8x20xf32>
    tpu.vector_store %arg14[%c0_358, %c220], %375 {strides = array<i32>} : memref<64x500xf32, #tpu.memory_space<vmem>>, vector<8x20xf32>,
    %c26 = arith.constant 26 : index
    %c0_359 = arith.constant 0 : index
    %377 = vector.load %arg13[%c26, %c0_359] : memref<144x20xf32, #tpu.memory_space<vmem>>, vector<8x20xf32>
    %c0_360 = arith.constant 0 : index
    %c240_361 = arith.constant 240 : index
    %378 = vector.load %arg14[%c0_360, %c240_361] : memref<64x500xf32, #tpu.memory_space<vmem>>, vector<8x20xf32>
    tpu.vector_store %arg14[%c0_360, %c240_361], %377 {strides = array<i32>} : memref<64x500xf32, #tpu.memory_space<vmem>>, vector<8x20xf32>,
    %c27 = arith.constant 27 : index
    %c0_362 = arith.constant 0 : index
    %379 = vector.load %arg13[%c27, %c0_362] : memref<144x20xf32, #tpu.memory_space<vmem>>, vector<8x20xf32>
    %c0_363 = arith.constant 0 : index
    %c260 = arith.constant 260 : index
    %380 = vector.load %arg14[%c0_363, %c260] : memref<64x500xf32, #tpu.memory_space<vmem>>, vector<8x20xf32>
    tpu.vector_store %arg14[%c0_363, %c260], %379 {strides = array<i32>} : memref<64x500xf32, #tpu.memory_space<vmem>>, vector<8x20xf32>,
    %c28 = arith.constant 28 : index
    %c0_364 = arith.constant 0 : index
    %381 = vector.load %arg13[%c28, %c0_364] : memref<144x20xf32, #tpu.memory_space<vmem>>, vector<8x20xf32>
    %c0_365 = arith.constant 0 : index
    %c280 = arith.constant 280 : index
    %382 = vector.load %arg14[%c0_365, %c280] : memref<64x500xf32, #tpu.memory_space<vmem>>, vector<8x20xf32>
    tpu.vector_store %arg14[%c0_365, %c280], %381 {strides = array<i32>} : memref<64x500xf32, #tpu.memory_space<vmem>>, vector<8x20xf32>,
    %c36_366 = arith.constant 36 : index
    %c0_367 = arith.constant 0 : index
    %383 = vector.load %arg13[%c36_366, %c0_367] : memref<144x20xf32, #tpu.memory_space<vmem>>, vector<8x20xf32>
    %c0_368 = arith.constant 0 : index
    %c300 = arith.constant 300 : index
    %384 = vector.load %arg14[%c0_368, %c300] : memref<64x500xf32, #tpu.memory_space<vmem>>, vector<8x20xf32>
    tpu.vector_store %arg14[%c0_368, %c300], %383 {strides = array<i32>} : memref<64x500xf32, #tpu.memory_space<vmem>>, vector<8x20xf32>,
    %c37 = arith.constant 37 : index
    %c0_369 = arith.constant 0 : index
    %385 = vector.load %arg13[%c37, %c0_369] : memref<144x20xf32, #tpu.memory_space<vmem>>, vector<8x20xf32>
    %c0_370 = arith.constant 0 : index
    %c320 = arith.constant 320 : index
    %386 = vector.load %arg14[%c0_370, %c320] : memref<64x500xf32, #tpu.memory_space<vmem>>, vector<8x20xf32>
    tpu.vector_store %arg14[%c0_370, %c320], %385 {strides = array<i32>} : memref<64x500xf32, #tpu.memory_space<vmem>>, vector<8x20xf32>,
    %c38 = arith.constant 38 : index
    %c0_371 = arith.constant 0 : index
    %387 = vector.load %arg13[%c38, %c0_371] : memref<144x20xf32, #tpu.memory_space<vmem>>, vector<8x20xf32>
    %c0_372 = arith.constant 0 : index
    %c340 = arith.constant 340 : index
    %388 = vector.load %arg14[%c0_372, %c340] : memref<64x500xf32, #tpu.memory_space<vmem>>, vector<8x20xf32>
    tpu.vector_store %arg14[%c0_372, %c340], %387 {strides = array<i32>} : memref<64x500xf32, #tpu.memory_space<vmem>>, vector<8x20xf32>,
    %c39 = arith.constant 39 : index
    %c0_373 = arith.constant 0 : index
    %389 = vector.load %arg13[%c39, %c0_373] : memref<144x20xf32, #tpu.memory_space<vmem>>, vector<8x20xf32>
    %c0_374 = arith.constant 0 : index
    %c360_375 = arith.constant 360 : index
    %390 = vector.load %arg14[%c0_374, %c360_375] : memref<64x500xf32, #tpu.memory_space<vmem>>, vector<8x20xf32>
    tpu.vector_store %arg14[%c0_374, %c360_375], %389 {strides = array<i32>} : memref<64x500xf32, #tpu.memory_space<vmem>>, vector<8x20xf32>,
    %c40_376 = arith.constant 40 : index
    %c0_377 = arith.constant 0 : index
    %391 = vector.load %arg13[%c40_376, %c0_377] : memref<144x20xf32, #tpu.memory_space<vmem>>, vector<8x20xf32>
    %c0_378 = arith.constant 0 : index
    %c380 = arith.constant 380 : index
    %392 = vector.load %arg14[%c0_378, %c380] : memref<64x500xf32, #tpu.memory_space<vmem>>, vector<8x20xf32>
    tpu.vector_store %arg14[%c0_378, %c380], %391 {strides = array<i32>} : memref<64x500xf32, #tpu.memory_space<vmem>>, vector<8x20xf32>,
    %c48_379 = arith.constant 48 : index
    %c0_380 = arith.constant 0 : index
    %393 = vector.load %arg13[%c48_379, %c0_380] : memref<144x20xf32, #tpu.memory_space<vmem>>, vector<8x20xf32>
    %c0_381 = arith.constant 0 : index
    %c400 = arith.constant 400 : index
    %394 = vector.load %arg14[%c0_381, %c400] : memref<64x500xf32, #tpu.memory_space<vmem>>, vector<8x20xf32>
    tpu.vector_store %arg14[%c0_381, %c400], %393 {strides = array<i32>} : memref<64x500xf32, #tpu.memory_space<vmem>>, vector<8x20xf32>,
    %c49_382 = arith.constant 49 : index
    %c0_383 = arith.constant 0 : index
    %395 = vector.load %arg13[%c49_382, %c0_383] : memref<144x20xf32, #tpu.memory_space<vmem>>, vector<8x20xf32>
    %c0_384 = arith.constant 0 : index
    %c420 = arith.constant 420 : index
    %396 = vector.load %arg14[%c0_384, %c420] : memref<64x500xf32, #tpu.memory_space<vmem>>, vector<8x20xf32>
    tpu.vector_store %arg14[%c0_384, %c420], %395 {strides = array<i32>} : memref<64x500xf32, #tpu.memory_space<vmem>>, vector<8x20xf32>,
    %c50 = arith.constant 50 : index
    %c0_385 = arith.constant 0 : index
    %397 = vector.load %arg13[%c50, %c0_385] : memref<144x20xf32, #tpu.memory_space<vmem>>, vector<8x20xf32>
    %c0_386 = arith.constant 0 : index
    %c440 = arith.constant 440 : index
    %398 = vector.load %arg14[%c0_386, %c440] : memref<64x500xf32, #tpu.memory_space<vmem>>, vector<8x20xf32>
    tpu.vector_store %arg14[%c0_386, %c440], %397 {strides = array<i32>} : memref<64x500xf32, #tpu.memory_space<vmem>>, vector<8x20xf32>,
    %c51 = arith.constant 51 : index
    %c0_387 = arith.constant 0 : index
    %399 = vector.load %arg13[%c51, %c0_387] : memref<144x20xf32, #tpu.memory_space<vmem>>, vector<8x20xf32>
    %c0_388 = arith.constant 0 : index
    %c460 = arith.constant 460 : index
    %400 = vector.load %arg14[%c0_388, %c460] : memref<64x500xf32, #tpu.memory_space<vmem>>, vector<8x20xf32>
    tpu.vector_store %arg14[%c0_388, %c460], %399 {strides = array<i32>} : memref<64x500xf32, #tpu.memory_space<vmem>>, vector<8x20xf32>,
    %c52 = arith.constant 52 : index
    %c0_389 = arith.constant 0 : index
    %401 = vector.load %arg13[%c52, %c0_389] : memref<144x20xf32, #tpu.memory_space<vmem>>, vector<8x20xf32>
    %c0_390 = arith.constant 0 : index
    %c480_391 = arith.constant 480 : index
    %402 = vector.load %arg14[%c0_390, %c480_391] : memref<64x500xf32, #tpu.memory_space<vmem>>, vector<8x20xf32>
    tpu.vector_store %arg14[%c0_390, %c480_391], %401 {strides = array<i32>} : memref<64x500xf32, #tpu.memory_space<vmem>>, vector<8x20xf32>,
    %c12_392 = arith.constant 12 : index
    %c0_393 = arith.constant 0 : index
    %403 = vector.load %arg13[%c12_392, %c0_393] : memref<144x20xf32, #tpu.memory_space<vmem>>, vector<8x20xf32>
    %c8 = arith.constant 8 : index
    %c0_394 = arith.constant 0 : index
    %404 = vector.load %arg14[%c8, %c0_394] : memref<64x500xf32, #tpu.memory_space<vmem>>, vector<8x20xf32>
    tpu.vector_store %arg14[%c8, %c0_394], %403 {strides = array<i32>} : memref<64x500xf32, #tpu.memory_space<vmem>>, vector<8x20xf32>,
    %c13_395 = arith.constant 13 : index
    %c0_396 = arith.constant 0 : index
    %405 = vector.load %arg13[%c13_395, %c0_396] : memref<144x20xf32, #tpu.memory_space<vmem>>, vector<8x20xf32>
    %c8_397 = arith.constant 8 : index
    %c20_398 = arith.constant 20 : index
    %406 = vector.load %arg14[%c8_397, %c20_398] : memref<64x500xf32, #tpu.memory_space<vmem>>, vector<8x20xf32>
    tpu.vector_store %arg14[%c8_397, %c20_398], %405 {strides = array<i32>} : memref<64x500xf32, #tpu.memory_space<vmem>>, vector<8x20xf32>,
    %c14_399 = arith.constant 14 : index
    %c0_400 = arith.constant 0 : index
    %407 = vector.load %arg13[%c14_399, %c0_400] : memref<144x20xf32, #tpu.memory_space<vmem>>, vector<8x20xf32>
    %c8_401 = arith.constant 8 : index
    %c40_402 = arith.constant 40 : index
    %408 = vector.load %arg14[%c8_401, %c40_402] : memref<64x500xf32, #tpu.memory_space<vmem>>, vector<8x20xf32>
    tpu.vector_store %arg14[%c8_401, %c40_402], %407 {strides = array<i32>} : memref<64x500xf32, #tpu.memory_space<vmem>>, vector<8x20xf32>,
    %c15_403 = arith.constant 15 : index
    %c0_404 = arith.constant 0 : index
    %409 = vector.load %arg13[%c15_403, %c0_404] : memref<144x20xf32, #tpu.memory_space<vmem>>, vector<8x20xf32>
    %c8_405 = arith.constant 8 : index
    %c60_406 = arith.constant 60 : index
    %410 = vector.load %arg14[%c8_405, %c60_406] : memref<64x500xf32, #tpu.memory_space<vmem>>, vector<8x20xf32>
    tpu.vector_store %arg14[%c8_405, %c60_406], %409 {strides = array<i32>} : memref<64x500xf32, #tpu.memory_space<vmem>>, vector<8x20xf32>,
    %c16_407 = arith.constant 16 : index
    %c0_408 = arith.constant 0 : index
    %411 = vector.load %arg13[%c16_407, %c0_408] : memref<144x20xf32, #tpu.memory_space<vmem>>, vector<8x20xf32>
    %c8_409 = arith.constant 8 : index
    %c80_410 = arith.constant 80 : index
    %412 = vector.load %arg14[%c8_409, %c80_410] : memref<64x500xf32, #tpu.memory_space<vmem>>, vector<8x20xf32>
    tpu.vector_store %arg14[%c8_409, %c80_410], %411 {strides = array<i32>} : memref<64x500xf32, #tpu.memory_space<vmem>>, vector<8x20xf32>,
    %c24_411 = arith.constant 24 : index
    %c0_412 = arith.constant 0 : index
    %413 = vector.load %arg13[%c24_411, %c0_412] : memref<144x20xf32, #tpu.memory_space<vmem>>, vector<8x20xf32>
    %c8_413 = arith.constant 8 : index
    %c100_414 = arith.constant 100 : index
    %414 = vector.load %arg14[%c8_413, %c100_414] : memref<64x500xf32, #tpu.memory_space<vmem>>, vector<8x20xf32>
    tpu.vector_store %arg14[%c8_413, %c100_414], %413 {strides = array<i32>} : memref<64x500xf32, #tpu.memory_space<vmem>>, vector<8x20xf32>,
    %c25_415 = arith.constant 25 : index
    %c0_416 = arith.constant 0 : index
    %415 = vector.load %arg13[%c25_415, %c0_416] : memref<144x20xf32, #tpu.memory_space<vmem>>, vector<8x20xf32>
    %c8_417 = arith.constant 8 : index
    %c120_418 = arith.constant 120 : index
    %416 = vector.load %arg14[%c8_417, %c120_418] : memref<64x500xf32, #tpu.memory_space<vmem>>, vector<8x20xf32>
    tpu.vector_store %arg14[%c8_417, %c120_418], %415 {strides = array<i32>} : memref<64x500xf32, #tpu.memory_space<vmem>>, vector<8x20xf32>,
    %c26_419 = arith.constant 26 : index
    %c0_420 = arith.constant 0 : index
    %417 = vector.load %arg13[%c26_419, %c0_420] : memref<144x20xf32, #tpu.memory_space<vmem>>, vector<8x20xf32>
    %c8_421 = arith.constant 8 : index
    %c140_422 = arith.constant 140 : index
    %418 = vector.load %arg14[%c8_421, %c140_422] : memref<64x500xf32, #tpu.memory_space<vmem>>, vector<8x20xf32>
    tpu.vector_store %arg14[%c8_421, %c140_422], %417 {strides = array<i32>} : memref<64x500xf32, #tpu.memory_space<vmem>>, vector<8x20xf32>,
    %c27_423 = arith.constant 27 : index
    %c0_424 = arith.constant 0 : index
    %419 = vector.load %arg13[%c27_423, %c0_424] : memref<144x20xf32, #tpu.memory_space<vmem>>, vector<8x20xf32>
    %c8_425 = arith.constant 8 : index
    %c160_426 = arith.constant 160 : index
    %420 = vector.load %arg14[%c8_425, %c160_426] : memref<64x500xf32, #tpu.memory_space<vmem>>, vector<8x20xf32>
    tpu.vector_store %arg14[%c8_425, %c160_426], %419 {strides = array<i32>} : memref<64x500xf32, #tpu.memory_space<vmem>>, vector<8x20xf32>,
    %c28_427 = arith.constant 28 : index
    %c0_428 = arith.constant 0 : index
    %421 = vector.load %arg13[%c28_427, %c0_428] : memref<144x20xf32, #tpu.memory_space<vmem>>, vector<8x20xf32>
    %c8_429 = arith.constant 8 : index
    %c180_430 = arith.constant 180 : index
    %422 = vector.load %arg14[%c8_429, %c180_430] : memref<64x500xf32, #tpu.memory_space<vmem>>, vector<8x20xf32>
    tpu.vector_store %arg14[%c8_429, %c180_430], %421 {strides = array<i32>} : memref<64x500xf32, #tpu.memory_space<vmem>>, vector<8x20xf32>,
    %c36_431 = arith.constant 36 : index
    %c0_432 = arith.constant 0 : index
    %423 = vector.load %arg13[%c36_431, %c0_432] : memref<144x20xf32, #tpu.memory_space<vmem>>, vector<8x20xf32>
    %c8_433 = arith.constant 8 : index
    %c200_434 = arith.constant 200 : index
    %424 = vector.load %arg14[%c8_433, %c200_434] : memref<64x500xf32, #tpu.memory_space<vmem>>, vector<8x20xf32>
    tpu.vector_store %arg14[%c8_433, %c200_434], %423 {strides = array<i32>} : memref<64x500xf32, #tpu.memory_space<vmem>>, vector<8x20xf32>,
    %c37_435 = arith.constant 37 : index
    %c0_436 = arith.constant 0 : index
    %425 = vector.load %arg13[%c37_435, %c0_436] : memref<144x20xf32, #tpu.memory_space<vmem>>, vector<8x20xf32>
    %c8_437 = arith.constant 8 : index
    %c220_438 = arith.constant 220 : index
    %426 = vector.load %arg14[%c8_437, %c220_438] : memref<64x500xf32, #tpu.memory_space<vmem>>, vector<8x20xf32>
    tpu.vector_store %arg14[%c8_437, %c220_438], %425 {strides = array<i32>} : memref<64x500xf32, #tpu.memory_space<vmem>>, vector<8x20xf32>,
    %c38_439 = arith.constant 38 : index
    %c0_440 = arith.constant 0 : index
    %427 = vector.load %arg13[%c38_439, %c0_440] : memref<144x20xf32, #tpu.memory_space<vmem>>, vector<8x20xf32>
    %c8_441 = arith.constant 8 : index
    %c240_442 = arith.constant 240 : index
    %428 = vector.load %arg14[%c8_441, %c240_442] : memref<64x500xf32, #tpu.memory_space<vmem>>, vector<8x20xf32>
    tpu.vector_store %arg14[%c8_441, %c240_442], %427 {strides = array<i32>} : memref<64x500xf32, #tpu.memory_space<vmem>>, vector<8x20xf32>,
    %c39_443 = arith.constant 39 : index
    %c0_444 = arith.constant 0 : index
    %429 = vector.load %arg13[%c39_443, %c0_444] : memref<144x20xf32, #tpu.memory_space<vmem>>, vector<8x20xf32>
    %c8_445 = arith.constant 8 : index
    %c260_446 = arith.constant 260 : index
    %430 = vector.load %arg14[%c8_445, %c260_446] : memref<64x500xf32, #tpu.memory_space<vmem>>, vector<8x20xf32>
    tpu.vector_store %arg14[%c8_445, %c260_446], %429 {strides = array<i32>} : memref<64x500xf32, #tpu.memory_space<vmem>>, vector<8x20xf32>,
    %c40_447 = arith.constant 40 : index
    %c0_448 = arith.constant 0 : index
    %431 = vector.load %arg13[%c40_447, %c0_448] : memref<144x20xf32, #tpu.memory_space<vmem>>, vector<8x20xf32>
    %c8_449 = arith.constant 8 : index
    %c280_450 = arith.constant 280 : index
    %432 = vector.load %arg14[%c8_449, %c280_450] : memref<64x500xf32, #tpu.memory_space<vmem>>, vector<8x20xf32>
    tpu.vector_store %arg14[%c8_449, %c280_450], %431 {strides = array<i32>} : memref<64x500xf32, #tpu.memory_space<vmem>>, vector<8x20xf32>,
    %c48_451 = arith.constant 48 : index
    %c0_452 = arith.constant 0 : index
    %433 = vector.load %arg13[%c48_451, %c0_452] : memref<144x20xf32, #tpu.memory_space<vmem>>, vector<8x20xf32>
    %c8_453 = arith.constant 8 : index
    %c300_454 = arith.constant 300 : index
    %434 = vector.load %arg14[%c8_453, %c300_454] : memref<64x500xf32, #tpu.memory_space<vmem>>, vector<8x20xf32>
    tpu.vector_store %arg14[%c8_453, %c300_454], %433 {strides = array<i32>} : memref<64x500xf32, #tpu.memory_space<vmem>>, vector<8x20xf32>,
    %c49_455 = arith.constant 49 : index
    %c0_456 = arith.constant 0 : index
    %435 = vector.load %arg13[%c49_455, %c0_456] : memref<144x20xf32, #tpu.memory_space<vmem>>, vector<8x20xf32>
    %c8_457 = arith.constant 8 : index
    %c320_458 = arith.constant 320 : index
    %436 = vector.load %arg14[%c8_457, %c320_458] : memref<64x500xf32, #tpu.memory_space<vmem>>, vector<8x20xf32>
    tpu.vector_store %arg14[%c8_457, %c320_458], %435 {strides = array<i32>} : memref<64x500xf32, #tpu.memory_space<vmem>>, vector<8x20xf32>,
    %c50_459 = arith.constant 50 : index
    %c0_460 = arith.constant 0 : index
    %437 = vector.load %arg13[%c50_459, %c0_460] : memref<144x20xf32, #tpu.memory_space<vmem>>, vector<8x20xf32>
    %c8_461 = arith.constant 8 : index
    %c340_462 = arith.constant 340 : index
    %438 = vector.load %arg14[%c8_461, %c340_462] : memref<64x500xf32, #tpu.memory_space<vmem>>, vector<8x20xf32>
    tpu.vector_store %arg14[%c8_461, %c340_462], %437 {strides = array<i32>} : memref<64x500xf32, #tpu.memory_space<vmem>>, vector<8x20xf32>,
    %c51_463 = arith.constant 51 : index
    %c0_464 = arith.constant 0 : index
    %439 = vector.load %arg13[%c51_463, %c0_464] : memref<144x20xf32, #tpu.memory_space<vmem>>, vector<8x20xf32>
    %c8_465 = arith.constant 8 : index
    %c360_466 = arith.constant 360 : index
    %440 = vector.load %arg14[%c8_465, %c360_466] : memref<64x500xf32, #tpu.memory_space<vmem>>, vector<8x20xf32>
    tpu.vector_store %arg14[%c8_465, %c360_466], %439 {strides = array<i32>} : memref<64x500xf32, #tpu.memory_space<vmem>>, vector<8x20xf32>,
    %c52_467 = arith.constant 52 : index
    %c0_468 = arith.constant 0 : index
    %441 = vector.load %arg13[%c52_467, %c0_468] : memref<144x20xf32, #tpu.memory_space<vmem>>, vector<8x20xf32>
    %c8_469 = arith.constant 8 : index
    %c380_470 = arith.constant 380 : index
    %442 = vector.load %arg14[%c8_469, %c380_470] : memref<64x500xf32, #tpu.memory_space<vmem>>, vector<8x20xf32>
    tpu.vector_store %arg14[%c8_469, %c380_470], %441 {strides = array<i32>} : memref<64x500xf32, #tpu.memory_space<vmem>>, vector<8x20xf32>,
    %c60_471 = arith.constant 60 : index
    %c0_472 = arith.constant 0 : index
    %443 = vector.load %arg13[%c60_471, %c0_472] : memref<144x20xf32, #tpu.memory_space<vmem>>, vector<8x20xf32>
    %c8_473 = arith.constant 8 : index
    %c400_474 = arith.constant 400 : index
    %444 = vector.load %arg14[%c8_473, %c400_474] : memref<64x500xf32, #tpu.memory_space<vmem>>, vector<8x20xf32>
    tpu.vector_store %arg14[%c8_473, %c400_474], %443 {strides = array<i32>} : memref<64x500xf32, #tpu.memory_space<vmem>>, vector<8x20xf32>,
    %c61 = arith.constant 61 : index
    %c0_475 = arith.constant 0 : index
    %445 = vector.load %arg13[%c61, %c0_475] : memref<144x20xf32, #tpu.memory_space<vmem>>, vector<8x20xf32>
    %c8_476 = arith.constant 8 : index
    %c420_477 = arith.constant 420 : index
    %446 = vector.load %arg14[%c8_476, %c420_477] : memref<64x500xf32, #tpu.memory_space<vmem>>, vector<8x20xf32>
    tpu.vector_store %arg14[%c8_476, %c420_477], %445 {strides = array<i32>} : memref<64x500xf32, #tpu.memory_space<vmem>>, vector<8x20xf32>,
    %c62 = arith.constant 62 : index
    %c0_478 = arith.constant 0 : index
    %447 = vector.load %arg13[%c62, %c0_478] : memref<144x20xf32, #tpu.memory_space<vmem>>, vector<8x20xf32>
    %c8_479 = arith.constant 8 : index
    %c440_480 = arith.constant 440 : index
    %448 = vector.load %arg14[%c8_479, %c440_480] : memref<64x500xf32, #tpu.memory_space<vmem>>, vector<8x20xf32>
    tpu.vector_store %arg14[%c8_479, %c440_480], %447 {strides = array<i32>} : memref<64x500xf32, #tpu.memory_space<vmem>>, vector<8x20xf32>,
    %c63 = arith.constant 63 : index
    %c0_481 = arith.constant 0 : index
    %449 = vector.load %arg13[%c63, %c0_481] : memref<144x20xf32, #tpu.memory_space<vmem>>, vector<8x20xf32>
    %c8_482 = arith.constant 8 : index
    %c460_483 = arith.constant 460 : index
    %450 = vector.load %arg14[%c8_482, %c460_483] : memref<64x500xf32, #tpu.memory_space<vmem>>, vector<8x20xf32>
    tpu.vector_store %arg14[%c8_482, %c460_483], %449 {strides = array<i32>} : memref<64x500xf32, #tpu.memory_space<vmem>>, vector<8x20xf32>,
    %c64 = arith.constant 64 : index
    %c0_484 = arith.constant 0 : index
    %451 = vector.load %arg13[%c64, %c0_484] : memref<144x20xf32, #tpu.memory_space<vmem>>, vector<8x20xf32>
    %c8_485 = arith.constant 8 : index
    %c480_486 = arith.constant 480 : index
    %452 = vector.load %arg14[%c8_485, %c480_486] : memref<64x500xf32, #tpu.memory_space<vmem>>, vector<8x20xf32>
    tpu.vector_store %arg14[%c8_485, %c480_486], %451 {strides = array<i32>} : memref<64x500xf32, #tpu.memory_space<vmem>>, vector<8x20xf32>,
    %c24_487 = arith.constant 24 : index
    %c0_488 = arith.constant 0 : index
    %453 = vector.load %arg13[%c24_487, %c0_488] : memref<144x20xf32, #tpu.memory_space<vmem>>, vector<8x20xf32>
    %c16_489 = arith.constant 16 : index
    %c0_490 = arith.constant 0 : index
    %454 = vector.load %arg14[%c16_489, %c0_490] : memref<64x500xf32, #tpu.memory_space<vmem>>, vector<8x20xf32>
    tpu.vector_store %arg14[%c16_489, %c0_490], %453 {strides = array<i32>} : memref<64x500xf32, #tpu.memory_space<vmem>>, vector<8x20xf32>,
    %c25_491 = arith.constant 25 : index
    %c0_492 = arith.constant 0 : index
    %455 = vector.load %arg13[%c25_491, %c0_492] : memref<144x20xf32, #tpu.memory_space<vmem>>, vector<8x20xf32>
    %c16_493 = arith.constant 16 : index
    %c20_494 = arith.constant 20 : index
    %456 = vector.load %arg14[%c16_493, %c20_494] : memref<64x500xf32, #tpu.memory_space<vmem>>, vector<8x20xf32>
    tpu.vector_store %arg14[%c16_493, %c20_494], %455 {strides = array<i32>} : memref<64x500xf32, #tpu.memory_space<vmem>>, vector<8x20xf32>,
    %c26_495 = arith.constant 26 : index
    %c0_496 = arith.constant 0 : index
    %457 = vector.load %arg13[%c26_495, %c0_496] : memref<144x20xf32, #tpu.memory_space<vmem>>, vector<8x20xf32>
    %c16_497 = arith.constant 16 : index
    %c40_498 = arith.constant 40 : index
    %458 = vector.load %arg14[%c16_497, %c40_498] : memref<64x500xf32, #tpu.memory_space<vmem>>, vector<8x20xf32>
    tpu.vector_store %arg14[%c16_497, %c40_498], %457 {strides = array<i32>} : memref<64x500xf32, #tpu.memory_space<vmem>>, vector<8x20xf32>,
    %c27_499 = arith.constant 27 : index
    %c0_500 = arith.constant 0 : index
    %459 = vector.load %arg13[%c27_499, %c0_500] : memref<144x20xf32, #tpu.memory_space<vmem>>, vector<8x20xf32>
    %c16_501 = arith.constant 16 : index
    %c60_502 = arith.constant 60 : index
    %460 = vector.load %arg14[%c16_501, %c60_502] : memref<64x500xf32, #tpu.memory_space<vmem>>, vector<8x20xf32>
    tpu.vector_store %arg14[%c16_501, %c60_502], %459 {strides = array<i32>} : memref<64x500xf32, #tpu.memory_space<vmem>>, vector<8x20xf32>,
    %c28_503 = arith.constant 28 : index
    %c0_504 = arith.constant 0 : index
    %461 = vector.load %arg13[%c28_503, %c0_504] : memref<144x20xf32, #tpu.memory_space<vmem>>, vector<8x20xf32>
    %c16_505 = arith.constant 16 : index
    %c80_506 = arith.constant 80 : index
    %462 = vector.load %arg14[%c16_505, %c80_506] : memref<64x500xf32, #tpu.memory_space<vmem>>, vector<8x20xf32>
    tpu.vector_store %arg14[%c16_505, %c80_506], %461 {strides = array<i32>} : memref<64x500xf32, #tpu.memory_space<vmem>>, vector<8x20xf32>,
    %c36_507 = arith.constant 36 : index
    %c0_508 = arith.constant 0 : index
    %463 = vector.load %arg13[%c36_507, %c0_508] : memref<144x20xf32, #tpu.memory_space<vmem>>, vector<8x20xf32>
    %c16_509 = arith.constant 16 : index
    %c100_510 = arith.constant 100 : index
    %464 = vector.load %arg14[%c16_509, %c100_510] : memref<64x500xf32, #tpu.memory_space<vmem>>, vector<8x20xf32>
    tpu.vector_store %arg14[%c16_509, %c100_510], %463 {strides = array<i32>} : memref<64x500xf32, #tpu.memory_space<vmem>>, vector<8x20xf32>,
    %c37_511 = arith.constant 37 : index
    %c0_512 = arith.constant 0 : index
    %465 = vector.load %arg13[%c37_511, %c0_512] : memref<144x20xf32, #tpu.memory_space<vmem>>, vector<8x20xf32>
    %c16_513 = arith.constant 16 : index
    %c120_514 = arith.constant 120 : index
    %466 = vector.load %arg14[%c16_513, %c120_514] : memref<64x500xf32, #tpu.memory_space<vmem>>, vector<8x20xf32>
    tpu.vector_store %arg14[%c16_513, %c120_514], %465 {strides = array<i32>} : memref<64x500xf32, #tpu.memory_space<vmem>>, vector<8x20xf32>,
    %c38_515 = arith.constant 38 : index
    %c0_516 = arith.constant 0 : index
    %467 = vector.load %arg13[%c38_515, %c0_516] : memref<144x20xf32, #tpu.memory_space<vmem>>, vector<8x20xf32>
    %c16_517 = arith.constant 16 : index
    %c140_518 = arith.constant 140 : index
    %468 = vector.load %arg14[%c16_517, %c140_518] : memref<64x500xf32, #tpu.memory_space<vmem>>, vector<8x20xf32>
    tpu.vector_store %arg14[%c16_517, %c140_518], %467 {strides = array<i32>} : memref<64x500xf32, #tpu.memory_space<vmem>>, vector<8x20xf32>,
    %c39_519 = arith.constant 39 : index
    %c0_520 = arith.constant 0 : index
    %469 = vector.load %arg13[%c39_519, %c0_520] : memref<144x20xf32, #tpu.memory_space<vmem>>, vector<8x20xf32>
    %c16_521 = arith.constant 16 : index
    %c160_522 = arith.constant 160 : index
    %470 = vector.load %arg14[%c16_521, %c160_522] : memref<64x500xf32, #tpu.memory_space<vmem>>, vector<8x20xf32>
    tpu.vector_store %arg14[%c16_521, %c160_522], %469 {strides = array<i32>} : memref<64x500xf32, #tpu.memory_space<vmem>>, vector<8x20xf32>,
    %c40_523 = arith.constant 40 : index
    %c0_524 = arith.constant 0 : index
    %471 = vector.load %arg13[%c40_523, %c0_524] : memref<144x20xf32, #tpu.memory_space<vmem>>, vector<8x20xf32>
    %c16_525 = arith.constant 16 : index
    %c180_526 = arith.constant 180 : index
    %472 = vector.load %arg14[%c16_525, %c180_526] : memref<64x500xf32, #tpu.memory_space<vmem>>, vector<8x20xf32>
    tpu.vector_store %arg14[%c16_525, %c180_526], %471 {strides = array<i32>} : memref<64x500xf32, #tpu.memory_space<vmem>>, vector<8x20xf32>,
    %c48_527 = arith.constant 48 : index
    %c0_528 = arith.constant 0 : index
    %473 = vector.load %arg13[%c48_527, %c0_528] : memref<144x20xf32, #tpu.memory_space<vmem>>, vector<8x20xf32>
    %c16_529 = arith.constant 16 : index
    %c200_530 = arith.constant 200 : index
    %474 = vector.load %arg14[%c16_529, %c200_530] : memref<64x500xf32, #tpu.memory_space<vmem>>, vector<8x20xf32>
    tpu.vector_store %arg14[%c16_529, %c200_530], %473 {strides = array<i32>} : memref<64x500xf32, #tpu.memory_space<vmem>>, vector<8x20xf32>,
    %c49_531 = arith.constant 49 : index
    %c0_532 = arith.constant 0 : index
    %475 = vector.load %arg13[%c49_531, %c0_532] : memref<144x20xf32, #tpu.memory_space<vmem>>, vector<8x20xf32>
    %c16_533 = arith.constant 16 : index
    %c220_534 = arith.constant 220 : index
    %476 = vector.load %arg14[%c16_533, %c220_534] : memref<64x500xf32, #tpu.memory_space<vmem>>, vector<8x20xf32>
    tpu.vector_store %arg14[%c16_533, %c220_534], %475 {strides = array<i32>} : memref<64x500xf32, #tpu.memory_space<vmem>>, vector<8x20xf32>,
    %c50_535 = arith.constant 50 : index
    %c0_536 = arith.constant 0 : index
    %477 = vector.load %arg13[%c50_535, %c0_536] : memref<144x20xf32, #tpu.memory_space<vmem>>, vector<8x20xf32>
    %c16_537 = arith.constant 16 : index
    %c240_538 = arith.constant 240 : index
    %478 = vector.load %arg14[%c16_537, %c240_538] : memref<64x500xf32, #tpu.memory_space<vmem>>, vector<8x20xf32>
    tpu.vector_store %arg14[%c16_537, %c240_538], %477 {strides = array<i32>} : memref<64x500xf32, #tpu.memory_space<vmem>>, vector<8x20xf32>,
    %c51_539 = arith.constant 51 : index
    %c0_540 = arith.constant 0 : index
    %479 = vector.load %arg13[%c51_539, %c0_540] : memref<144x20xf32, #tpu.memory_space<vmem>>, vector<8x20xf32>
    %c16_541 = arith.constant 16 : index
    %c260_542 = arith.constant 260 : index
    %480 = vector.load %arg14[%c16_541, %c260_542] : memref<64x500xf32, #tpu.memory_space<vmem>>, vector<8x20xf32>
    tpu.vector_store %arg14[%c16_541, %c260_542], %479 {strides = array<i32>} : memref<64x500xf32, #tpu.memory_space<vmem>>, vector<8x20xf32>,
    %c52_543 = arith.constant 52 : index
    %c0_544 = arith.constant 0 : index
    %481 = vector.load %arg13[%c52_543, %c0_544] : memref<144x20xf32, #tpu.memory_space<vmem>>, vector<8x20xf32>
    %c16_545 = arith.constant 16 : index
    %c280_546 = arith.constant 280 : index
    %482 = vector.load %arg14[%c16_545, %c280_546] : memref<64x500xf32, #tpu.memory_space<vmem>>, vector<8x20xf32>
    tpu.vector_store %arg14[%c16_545, %c280_546], %481 {strides = array<i32>} : memref<64x500xf32, #tpu.memory_space<vmem>>, vector<8x20xf32>,
    %c60_547 = arith.constant 60 : index
    %c0_548 = arith.constant 0 : index
    %483 = vector.load %arg13[%c60_547, %c0_548] : memref<144x20xf32, #tpu.memory_space<vmem>>, vector<8x20xf32>
    %c16_549 = arith.constant 16 : index
    %c300_550 = arith.constant 300 : index
    %484 = vector.load %arg14[%c16_549, %c300_550] : memref<64x500xf32, #tpu.memory_space<vmem>>, vector<8x20xf32>
    tpu.vector_store %arg14[%c16_549, %c300_550], %483 {strides = array<i32>} : memref<64x500xf32, #tpu.memory_space<vmem>>, vector<8x20xf32>,
    %c61_551 = arith.constant 61 : index
    %c0_552 = arith.constant 0 : index
    %485 = vector.load %arg13[%c61_551, %c0_552] : memref<144x20xf32, #tpu.memory_space<vmem>>, vector<8x20xf32>
    %c16_553 = arith.constant 16 : index
    %c320_554 = arith.constant 320 : index
    %486 = vector.load %arg14[%c16_553, %c320_554] : memref<64x500xf32, #tpu.memory_space<vmem>>, vector<8x20xf32>
    tpu.vector_store %arg14[%c16_553, %c320_554], %485 {strides = array<i32>} : memref<64x500xf32, #tpu.memory_space<vmem>>, vector<8x20xf32>,
    %c62_555 = arith.constant 62 : index
    %c0_556 = arith.constant 0 : index
    %487 = vector.load %arg13[%c62_555, %c0_556] : memref<144x20xf32, #tpu.memory_space<vmem>>, vector<8x20xf32>
    %c16_557 = arith.constant 16 : index
    %c340_558 = arith.constant 340 : index
    %488 = vector.load %arg14[%c16_557, %c340_558] : memref<64x500xf32, #tpu.memory_space<vmem>>, vector<8x20xf32>
    tpu.vector_store %arg14[%c16_557, %c340_558], %487 {strides = array<i32>} : memref<64x500xf32, #tpu.memory_space<vmem>>, vector<8x20xf32>,
    %c63_559 = arith.constant 63 : index
    %c0_560 = arith.constant 0 : index
    %489 = vector.load %arg13[%c63_559, %c0_560] : memref<144x20xf32, #tpu.memory_space<vmem>>, vector<8x20xf32>
    %c16_561 = arith.constant 16 : index
    %c360_562 = arith.constant 360 : index
    %490 = vector.load %arg14[%c16_561, %c360_562] : memref<64x500xf32, #tpu.memory_space<vmem>>, vector<8x20xf32>
    tpu.vector_store %arg14[%c16_561, %c360_562], %489 {strides = array<i32>} : memref<64x500xf32, #tpu.memory_space<vmem>>, vector<8x20xf32>,
    %c64_563 = arith.constant 64 : index
    %c0_564 = arith.constant 0 : index
    %491 = vector.load %arg13[%c64_563, %c0_564] : memref<144x20xf32, #tpu.memory_space<vmem>>, vector<8x20xf32>
    %c16_565 = arith.constant 16 : index
    %c380_566 = arith.constant 380 : index
    %492 = vector.load %arg14[%c16_565, %c380_566] : memref<64x500xf32, #tpu.memory_space<vmem>>, vector<8x20xf32>
    tpu.vector_store %arg14[%c16_565, %c380_566], %491 {strides = array<i32>} : memref<64x500xf32, #tpu.memory_space<vmem>>, vector<8x20xf32>,
    %c72_567 = arith.constant 72 : index
    %c0_568 = arith.constant 0 : index
    %493 = vector.load %arg13[%c72_567, %c0_568] : memref<144x20xf32, #tpu.memory_space<vmem>>, vector<8x20xf32>
    %c16_569 = arith.constant 16 : index
    %c400_570 = arith.constant 400 : index
    %494 = vector.load %arg14[%c16_569, %c400_570] : memref<64x500xf32, #tpu.memory_space<vmem>>, vector<8x20xf32>
    tpu.vector_store %arg14[%c16_569, %c400_570], %493 {strides = array<i32>} : memref<64x500xf32, #tpu.memory_space<vmem>>, vector<8x20xf32>,
    %c73_571 = arith.constant 73 : index
    %c0_572 = arith.constant 0 : index
    %495 = vector.load %arg13[%c73_571, %c0_572] : memref<144x20xf32, #tpu.memory_space<vmem>>, vector<8x20xf32>
    %c16_573 = arith.constant 16 : index
    %c420_574 = arith.constant 420 : index
    %496 = vector.load %arg14[%c16_573, %c420_574] : memref<64x500xf32, #tpu.memory_space<vmem>>, vector<8x20xf32>
    tpu.vector_store %arg14[%c16_573, %c420_574], %495 {strides = array<i32>} : memref<64x500xf32, #tpu.memory_space<vmem>>, vector<8x20xf32>,
    %c74 = arith.constant 74 : index
    %c0_575 = arith.constant 0 : index
    %497 = vector.load %arg13[%c74, %c0_575] : memref<144x20xf32, #tpu.memory_space<vmem>>, vector<8x20xf32>
    %c16_576 = arith.constant 16 : index
    %c440_577 = arith.constant 440 : index
    %498 = vector.load %arg14[%c16_576, %c440_577] : memref<64x500xf32, #tpu.memory_space<vmem>>, vector<8x20xf32>
    tpu.vector_store %arg14[%c16_576, %c440_577], %497 {strides = array<i32>} : memref<64x500xf32, #tpu.memory_space<vmem>>, vector<8x20xf32>,
    %c75 = arith.constant 75 : index
    %c0_578 = arith.constant 0 : index
    %499 = vector.load %arg13[%c75, %c0_578] : memref<144x20xf32, #tpu.memory_space<vmem>>, vector<8x20xf32>
    %c16_579 = arith.constant 16 : index
    %c460_580 = arith.constant 460 : index
    %500 = vector.load %arg14[%c16_579, %c460_580] : memref<64x500xf32, #tpu.memory_space<vmem>>, vector<8x20xf32>
    tpu.vector_store %arg14[%c16_579, %c460_580], %499 {strides = array<i32>} : memref<64x500xf32, #tpu.memory_space<vmem>>, vector<8x20xf32>,
    %c76 = arith.constant 76 : index
    %c0_581 = arith.constant 0 : index
    %501 = vector.load %arg13[%c76, %c0_581] : memref<144x20xf32, #tpu.memory_space<vmem>>, vector<8x20xf32>
    %c16_582 = arith.constant 16 : index
    %c480_583 = arith.constant 480 : index
    %502 = vector.load %arg14[%c16_582, %c480_583] : memref<64x500xf32, #tpu.memory_space<vmem>>, vector<8x20xf32>
    tpu.vector_store %arg14[%c16_582, %c480_583], %501 {strides = array<i32>} : memref<64x500xf32, #tpu.memory_space<vmem>>, vector<8x20xf32>,
    %c36_584 = arith.constant 36 : index
    %c0_585 = arith.constant 0 : index
    %503 = vector.load %arg13[%c36_584, %c0_585] : memref<144x20xf32, #tpu.memory_space<vmem>>, vector<8x20xf32>
    %c24_586 = arith.constant 24 : index
    %c0_587 = arith.constant 0 : index
    %504 = vector.load %arg14[%c24_586, %c0_587] : memref<64x500xf32, #tpu.memory_space<vmem>>, vector<8x20xf32>
    tpu.vector_store %arg14[%c24_586, %c0_587], %503 {strides = array<i32>} : memref<64x500xf32, #tpu.memory_space<vmem>>, vector<8x20xf32>,
    %c37_588 = arith.constant 37 : index
    %c0_589 = arith.constant 0 : index
    %505 = vector.load %arg13[%c37_588, %c0_589] : memref<144x20xf32, #tpu.memory_space<vmem>>, vector<8x20xf32>
    %c24_590 = arith.constant 24 : index
    %c20_591 = arith.constant 20 : index
    %506 = vector.load %arg14[%c24_590, %c20_591] : memref<64x500xf32, #tpu.memory_space<vmem>>, vector<8x20xf32>
    tpu.vector_store %arg14[%c24_590, %c20_591], %505 {strides = array<i32>} : memref<64x500xf32, #tpu.memory_space<vmem>>, vector<8x20xf32>,
    %c38_592 = arith.constant 38 : index
    %c0_593 = arith.constant 0 : index
    %507 = vector.load %arg13[%c38_592, %c0_593] : memref<144x20xf32, #tpu.memory_space<vmem>>, vector<8x20xf32>
    %c24_594 = arith.constant 24 : index
    %c40_595 = arith.constant 40 : index
    %508 = vector.load %arg14[%c24_594, %c40_595] : memref<64x500xf32, #tpu.memory_space<vmem>>, vector<8x20xf32>
    tpu.vector_store %arg14[%c24_594, %c40_595], %507 {strides = array<i32>} : memref<64x500xf32, #tpu.memory_space<vmem>>, vector<8x20xf32>,
    %c39_596 = arith.constant 39 : index
    %c0_597 = arith.constant 0 : index
    %509 = vector.load %arg13[%c39_596, %c0_597] : memref<144x20xf32, #tpu.memory_space<vmem>>, vector<8x20xf32>
    %c24_598 = arith.constant 24 : index
    %c60_599 = arith.constant 60 : index
    %510 = vector.load %arg14[%c24_598, %c60_599] : memref<64x500xf32, #tpu.memory_space<vmem>>, vector<8x20xf32>
    tpu.vector_store %arg14[%c24_598, %c60_599], %509 {strides = array<i32>} : memref<64x500xf32, #tpu.memory_space<vmem>>, vector<8x20xf32>,
    %c40_600 = arith.constant 40 : index
    %c0_601 = arith.constant 0 : index
    %511 = vector.load %arg13[%c40_600, %c0_601] : memref<144x20xf32, #tpu.memory_space<vmem>>, vector<8x20xf32>
    %c24_602 = arith.constant 24 : index
    %c80_603 = arith.constant 80 : index
    %512 = vector.load %arg14[%c24_602, %c80_603] : memref<64x500xf32, #tpu.memory_space<vmem>>, vector<8x20xf32>
    tpu.vector_store %arg14[%c24_602, %c80_603], %511 {strides = array<i32>} : memref<64x500xf32, #tpu.memory_space<vmem>>, vector<8x20xf32>,
    %c48_604 = arith.constant 48 : index
    %c0_605 = arith.constant 0 : index
    %513 = vector.load %arg13[%c48_604, %c0_605] : memref<144x20xf32, #tpu.memory_space<vmem>>, vector<8x20xf32>
    %c24_606 = arith.constant 24 : index
    %c100_607 = arith.constant 100 : index
    %514 = vector.load %arg14[%c24_606, %c100_607] : memref<64x500xf32, #tpu.memory_space<vmem>>, vector<8x20xf32>
    tpu.vector_store %arg14[%c24_606, %c100_607], %513 {strides = array<i32>} : memref<64x500xf32, #tpu.memory_space<vmem>>, vector<8x20xf32>,
    %c49_608 = arith.constant 49 : index
    %c0_609 = arith.constant 0 : index
    %515 = vector.load %arg13[%c49_608, %c0_609] : memref<144x20xf32, #tpu.memory_space<vmem>>, vector<8x20xf32>
    %c24_610 = arith.constant 24 : index
    %c120_611 = arith.constant 120 : index
    %516 = vector.load %arg14[%c24_610, %c120_611] : memref<64x500xf32, #tpu.memory_space<vmem>>, vector<8x20xf32>
    tpu.vector_store %arg14[%c24_610, %c120_611], %515 {strides = array<i32>} : memref<64x500xf32, #tpu.memory_space<vmem>>, vector<8x20xf32>,
    %c50_612 = arith.constant 50 : index
    %c0_613 = arith.constant 0 : index
    %517 = vector.load %arg13[%c50_612, %c0_613] : memref<144x20xf32, #tpu.memory_space<vmem>>, vector<8x20xf32>
    %c24_614 = arith.constant 24 : index
    %c140_615 = arith.constant 140 : index
    %518 = vector.load %arg14[%c24_614, %c140_615] : memref<64x500xf32, #tpu.memory_space<vmem>>, vector<8x20xf32>
    tpu.vector_store %arg14[%c24_614, %c140_615], %517 {strides = array<i32>} : memref<64x500xf32, #tpu.memory_space<vmem>>, vector<8x20xf32>,
    %c51_616 = arith.constant 51 : index
    %c0_617 = arith.constant 0 : index
    %519 = vector.load %arg13[%c51_616, %c0_617] : memref<144x20xf32, #tpu.memory_space<vmem>>, vector<8x20xf32>
    %c24_618 = arith.constant 24 : index
    %c160_619 = arith.constant 160 : index
    %520 = vector.load %arg14[%c24_618, %c160_619] : memref<64x500xf32, #tpu.memory_space<vmem>>, vector<8x20xf32>
    tpu.vector_store %arg14[%c24_618, %c160_619], %519 {strides = array<i32>} : memref<64x500xf32, #tpu.memory_space<vmem>>, vector<8x20xf32>,
    %c52_620 = arith.constant 52 : index
    %c0_621 = arith.constant 0 : index
    %521 = vector.load %arg13[%c52_620, %c0_621] : memref<144x20xf32, #tpu.memory_space<vmem>>, vector<8x20xf32>
    %c24_622 = arith.constant 24 : index
    %c180_623 = arith.constant 180 : index
    %522 = vector.load %arg14[%c24_622, %c180_623] : memref<64x500xf32, #tpu.memory_space<vmem>>, vector<8x20xf32>
    tpu.vector_store %arg14[%c24_622, %c180_623], %521 {strides = array<i32>} : memref<64x500xf32, #tpu.memory_space<vmem>>, vector<8x20xf32>,
    %c60_624 = arith.constant 60 : index
    %c0_625 = arith.constant 0 : index
    %523 = vector.load %arg13[%c60_624, %c0_625] : memref<144x20xf32, #tpu.memory_space<vmem>>, vector<8x20xf32>
    %c24_626 = arith.constant 24 : index
    %c200_627 = arith.constant 200 : index
    %524 = vector.load %arg14[%c24_626, %c200_627] : memref<64x500xf32, #tpu.memory_space<vmem>>, vector<8x20xf32>
    tpu.vector_store %arg14[%c24_626, %c200_627], %523 {strides = array<i32>} : memref<64x500xf32, #tpu.memory_space<vmem>>, vector<8x20xf32>,
    %c61_628 = arith.constant 61 : index
    %c0_629 = arith.constant 0 : index
    %525 = vector.load %arg13[%c61_628, %c0_629] : memref<144x20xf32, #tpu.memory_space<vmem>>, vector<8x20xf32>
    %c24_630 = arith.constant 24 : index
    %c220_631 = arith.constant 220 : index
    %526 = vector.load %arg14[%c24_630, %c220_631] : memref<64x500xf32, #tpu.memory_space<vmem>>, vector<8x20xf32>
    tpu.vector_store %arg14[%c24_630, %c220_631], %525 {strides = array<i32>} : memref<64x500xf32, #tpu.memory_space<vmem>>, vector<8x20xf32>,
    %c62_632 = arith.constant 62 : index
    %c0_633 = arith.constant 0 : index
    %527 = vector.load %arg13[%c62_632, %c0_633] : memref<144x20xf32, #tpu.memory_space<vmem>>, vector<8x20xf32>
    %c24_634 = arith.constant 24 : index
    %c240_635 = arith.constant 240 : index
    %528 = vector.load %arg14[%c24_634, %c240_635] : memref<64x500xf32, #tpu.memory_space<vmem>>, vector<8x20xf32>
    tpu.vector_store %arg14[%c24_634, %c240_635], %527 {strides = array<i32>} : memref<64x500xf32, #tpu.memory_space<vmem>>, vector<8x20xf32>,
    %c63_636 = arith.constant 63 : index
    %c0_637 = arith.constant 0 : index
    %529 = vector.load %arg13[%c63_636, %c0_637] : memref<144x20xf32, #tpu.memory_space<vmem>>, vector<8x20xf32>
    %c24_638 = arith.constant 24 : index
    %c260_639 = arith.constant 260 : index
    %530 = vector.load %arg14[%c24_638, %c260_639] : memref<64x500xf32, #tpu.memory_space<vmem>>, vector<8x20xf32>
    tpu.vector_store %arg14[%c24_638, %c260_639], %529 {strides = array<i32>} : memref<64x500xf32, #tpu.memory_space<vmem>>, vector<8x20xf32>,
    %c64_640 = arith.constant 64 : index
    %c0_641 = arith.constant 0 : index
    %531 = vector.load %arg13[%c64_640, %c0_641] : memref<144x20xf32, #tpu.memory_space<vmem>>, vector<8x20xf32>
    %c24_642 = arith.constant 24 : index
    %c280_643 = arith.constant 280 : index
    %532 = vector.load %arg14[%c24_642, %c280_643] : memref<64x500xf32, #tpu.memory_space<vmem>>, vector<8x20xf32>
    tpu.vector_store %arg14[%c24_642, %c280_643], %531 {strides = array<i32>} : memref<64x500xf32, #tpu.memory_space<vmem>>, vector<8x20xf32>,
    %c72_644 = arith.constant 72 : index
    %c0_645 = arith.constant 0 : index
    %533 = vector.load %arg13[%c72_644, %c0_645] : memref<144x20xf32, #tpu.memory_space<vmem>>, vector<8x20xf32>
    %c24_646 = arith.constant 24 : index
    %c300_647 = arith.constant 300 : index
    %534 = vector.load %arg14[%c24_646, %c300_647] : memref<64x500xf32, #tpu.memory_space<vmem>>, vector<8x20xf32>
    tpu.vector_store %arg14[%c24_646, %c300_647], %533 {strides = array<i32>} : memref<64x500xf32, #tpu.memory_space<vmem>>, vector<8x20xf32>,
    %c73_648 = arith.constant 73 : index
    %c0_649 = arith.constant 0 : index
    %535 = vector.load %arg13[%c73_648, %c0_649] : memref<144x20xf32, #tpu.memory_space<vmem>>, vector<8x20xf32>
    %c24_650 = arith.constant 24 : index
    %c320_651 = arith.constant 320 : index
    %536 = vector.load %arg14[%c24_650, %c320_651] : memref<64x500xf32, #tpu.memory_space<vmem>>, vector<8x20xf32>
    tpu.vector_store %arg14[%c24_650, %c320_651], %535 {strides = array<i32>} : memref<64x500xf32, #tpu.memory_space<vmem>>, vector<8x20xf32>,
    %c74_652 = arith.constant 74 : index
    %c0_653 = arith.constant 0 : index
    %537 = vector.load %arg13[%c74_652, %c0_653] : memref<144x20xf32, #tpu.memory_space<vmem>>, vector<8x20xf32>
    %c24_654 = arith.constant 24 : index
    %c340_655 = arith.constant 340 : index
    %538 = vector.load %arg14[%c24_654, %c340_655] : memref<64x500xf32, #tpu.memory_space<vmem>>, vector<8x20xf32>
    tpu.vector_store %arg14[%c24_654, %c340_655], %537 {strides = array<i32>} : memref<64x500xf32, #tpu.memory_space<vmem>>, vector<8x20xf32>,
    %c75_656 = arith.constant 75 : index
    %c0_657 = arith.constant 0 : index
    %539 = vector.load %arg13[%c75_656, %c0_657] : memref<144x20xf32, #tpu.memory_space<vmem>>, vector<8x20xf32>
    %c24_658 = arith.constant 24 : index
    %c360_659 = arith.constant 360 : index
    %540 = vector.load %arg14[%c24_658, %c360_659] : memref<64x500xf32, #tpu.memory_space<vmem>>, vector<8x20xf32>
    tpu.vector_store %arg14[%c24_658, %c360_659], %539 {strides = array<i32>} : memref<64x500xf32, #tpu.memory_space<vmem>>, vector<8x20xf32>,
    %c76_660 = arith.constant 76 : index
    %c0_661 = arith.constant 0 : index
    %541 = vector.load %arg13[%c76_660, %c0_661] : memref<144x20xf32, #tpu.memory_space<vmem>>, vector<8x20xf32>
    %c24_662 = arith.constant 24 : index
    %c380_663 = arith.constant 380 : index
    %542 = vector.load %arg14[%c24_662, %c380_663] : memref<64x500xf32, #tpu.memory_space<vmem>>, vector<8x20xf32>
    tpu.vector_store %arg14[%c24_662, %c380_663], %541 {strides = array<i32>} : memref<64x500xf32, #tpu.memory_space<vmem>>, vector<8x20xf32>,
    %c84_664 = arith.constant 84 : index
    %c0_665 = arith.constant 0 : index
    %543 = vector.load %arg13[%c84_664, %c0_665] : memref<144x20xf32, #tpu.memory_space<vmem>>, vector<8x20xf32>
    %c24_666 = arith.constant 24 : index
    %c400_667 = arith.constant 400 : index
    %544 = vector.load %arg14[%c24_666, %c400_667] : memref<64x500xf32, #tpu.memory_space<vmem>>, vector<8x20xf32>
    tpu.vector_store %arg14[%c24_666, %c400_667], %543 {strides = array<i32>} : memref<64x500xf32, #tpu.memory_space<vmem>>, vector<8x20xf32>,
    %c85 = arith.constant 85 : index
    %c0_668 = arith.constant 0 : index
    %545 = vector.load %arg13[%c85, %c0_668] : memref<144x20xf32, #tpu.memory_space<vmem>>, vector<8x20xf32>
    %c24_669 = arith.constant 24 : index
    %c420_670 = arith.constant 420 : index
    %546 = vector.load %arg14[%c24_669, %c420_670] : memref<64x500xf32, #tpu.memory_space<vmem>>, vector<8x20xf32>
    tpu.vector_store %arg14[%c24_669, %c420_670], %545 {strides = array<i32>} : memref<64x500xf32, #tpu.memory_space<vmem>>, vector<8x20xf32>,
    %c86 = arith.constant 86 : index
    %c0_671 = arith.constant 0 : index
    %547 = vector.load %arg13[%c86, %c0_671] : memref<144x20xf32, #tpu.memory_space<vmem>>, vector<8x20xf32>
    %c24_672 = arith.constant 24 : index
    %c440_673 = arith.constant 440 : index
    %548 = vector.load %arg14[%c24_672, %c440_673] : memref<64x500xf32, #tpu.memory_space<vmem>>, vector<8x20xf32>
    tpu.vector_store %arg14[%c24_672, %c440_673], %547 {strides = array<i32>} : memref<64x500xf32, #tpu.memory_space<vmem>>, vector<8x20xf32>,
    %c87 = arith.constant 87 : index
    %c0_674 = arith.constant 0 : index
    %549 = vector.load %arg13[%c87, %c0_674] : memref<144x20xf32, #tpu.memory_space<vmem>>, vector<8x20xf32>
    %c24_675 = arith.constant 24 : index
    %c460_676 = arith.constant 460 : index
    %550 = vector.load %arg14[%c24_675, %c460_676] : memref<64x500xf32, #tpu.memory_space<vmem>>, vector<8x20xf32>
    tpu.vector_store %arg14[%c24_675, %c460_676], %549 {strides = array<i32>} : memref<64x500xf32, #tpu.memory_space<vmem>>, vector<8x20xf32>,
    %c88 = arith.constant 88 : index
    %c0_677 = arith.constant 0 : index
    %551 = vector.load %arg13[%c88, %c0_677] : memref<144x20xf32, #tpu.memory_space<vmem>>, vector<8x20xf32>
    %c24_678 = arith.constant 24 : index
    %c480_679 = arith.constant 480 : index
    %552 = vector.load %arg14[%c24_678, %c480_679] : memref<64x500xf32, #tpu.memory_space<vmem>>, vector<8x20xf32>
    tpu.vector_store %arg14[%c24_678, %c480_679], %551 {strides = array<i32>} : memref<64x500xf32, #tpu.memory_space<vmem>>, vector<8x20xf32>,
    %c48_680 = arith.constant 48 : index
    %c0_681 = arith.constant 0 : index
    %553 = vector.load %arg13[%c48_680, %c0_681] : memref<144x20xf32, #tpu.memory_space<vmem>>, vector<8x20xf32>
    %c32 = arith.constant 32 : index
    %c0_682 = arith.constant 0 : index
    %554 = vector.load %arg14[%c32, %c0_682] : memref<64x500xf32, #tpu.memory_space<vmem>>, vector<8x20xf32>
    tpu.vector_store %arg14[%c32, %c0_682], %553 {strides = array<i32>} : memref<64x500xf32, #tpu.memory_space<vmem>>, vector<8x20xf32>,
    %c49_683 = arith.constant 49 : index
    %c0_684 = arith.constant 0 : index
    %555 = vector.load %arg13[%c49_683, %c0_684] : memref<144x20xf32, #tpu.memory_space<vmem>>, vector<8x20xf32>
    %c32_685 = arith.constant 32 : index
    %c20_686 = arith.constant 20 : index
    %556 = vector.load %arg14[%c32_685, %c20_686] : memref<64x500xf32, #tpu.memory_space<vmem>>, vector<8x20xf32>
    tpu.vector_store %arg14[%c32_685, %c20_686], %555 {strides = array<i32>} : memref<64x500xf32, #tpu.memory_space<vmem>>, vector<8x20xf32>,
    %c50_687 = arith.constant 50 : index
    %c0_688 = arith.constant 0 : index
    %557 = vector.load %arg13[%c50_687, %c0_688] : memref<144x20xf32, #tpu.memory_space<vmem>>, vector<8x20xf32>
    %c32_689 = arith.constant 32 : index
    %c40_690 = arith.constant 40 : index
    %558 = vector.load %arg14[%c32_689, %c40_690] : memref<64x500xf32, #tpu.memory_space<vmem>>, vector<8x20xf32>
    tpu.vector_store %arg14[%c32_689, %c40_690], %557 {strides = array<i32>} : memref<64x500xf32, #tpu.memory_space<vmem>>, vector<8x20xf32>,
    %c51_691 = arith.constant 51 : index
    %c0_692 = arith.constant 0 : index
    %559 = vector.load %arg13[%c51_691, %c0_692] : memref<144x20xf32, #tpu.memory_space<vmem>>, vector<8x20xf32>
    %c32_693 = arith.constant 32 : index
    %c60_694 = arith.constant 60 : index
    %560 = vector.load %arg14[%c32_693, %c60_694] : memref<64x500xf32, #tpu.memory_space<vmem>>, vector<8x20xf32>
    tpu.vector_store %arg14[%c32_693, %c60_694], %559 {strides = array<i32>} : memref<64x500xf32, #tpu.memory_space<vmem>>, vector<8x20xf32>,
    %c52_695 = arith.constant 52 : index
    %c0_696 = arith.constant 0 : index
    %561 = vector.load %arg13[%c52_695, %c0_696] : memref<144x20xf32, #tpu.memory_space<vmem>>, vector<8x20xf32>
    %c32_697 = arith.constant 32 : index
    %c80_698 = arith.constant 80 : index
    %562 = vector.load %arg14[%c32_697, %c80_698] : memref<64x500xf32, #tpu.memory_space<vmem>>, vector<8x20xf32>
    tpu.vector_store %arg14[%c32_697, %c80_698], %561 {strides = array<i32>} : memref<64x500xf32, #tpu.memory_space<vmem>>, vector<8x20xf32>,
    %c60_699 = arith.constant 60 : index
    %c0_700 = arith.constant 0 : index
    %563 = vector.load %arg13[%c60_699, %c0_700] : memref<144x20xf32, #tpu.memory_space<vmem>>, vector<8x20xf32>
    %c32_701 = arith.constant 32 : index
    %c100_702 = arith.constant 100 : index
    %564 = vector.load %arg14[%c32_701, %c100_702] : memref<64x500xf32, #tpu.memory_space<vmem>>, vector<8x20xf32>
    tpu.vector_store %arg14[%c32_701, %c100_702], %563 {strides = array<i32>} : memref<64x500xf32, #tpu.memory_space<vmem>>, vector<8x20xf32>,
    %c61_703 = arith.constant 61 : index
    %c0_704 = arith.constant 0 : index
    %565 = vector.load %arg13[%c61_703, %c0_704] : memref<144x20xf32, #tpu.memory_space<vmem>>, vector<8x20xf32>
    %c32_705 = arith.constant 32 : index
    %c120_706 = arith.constant 120 : index
    %566 = vector.load %arg14[%c32_705, %c120_706] : memref<64x500xf32, #tpu.memory_space<vmem>>, vector<8x20xf32>
    tpu.vector_store %arg14[%c32_705, %c120_706], %565 {strides = array<i32>} : memref<64x500xf32, #tpu.memory_space<vmem>>, vector<8x20xf32>,
    %c62_707 = arith.constant 62 : index
    %c0_708 = arith.constant 0 : index
    %567 = vector.load %arg13[%c62_707, %c0_708] : memref<144x20xf32, #tpu.memory_space<vmem>>, vector<8x20xf32>
    %c32_709 = arith.constant 32 : index
    %c140_710 = arith.constant 140 : index
    %568 = vector.load %arg14[%c32_709, %c140_710] : memref<64x500xf32, #tpu.memory_space<vmem>>, vector<8x20xf32>
    tpu.vector_store %arg14[%c32_709, %c140_710], %567 {strides = array<i32>} : memref<64x500xf32, #tpu.memory_space<vmem>>, vector<8x20xf32>,
    %c63_711 = arith.constant 63 : index
    %c0_712 = arith.constant 0 : index
    %569 = vector.load %arg13[%c63_711, %c0_712] : memref<144x20xf32, #tpu.memory_space<vmem>>, vector<8x20xf32>
    %c32_713 = arith.constant 32 : index
    %c160_714 = arith.constant 160 : index
    %570 = vector.load %arg14[%c32_713, %c160_714] : memref<64x500xf32, #tpu.memory_space<vmem>>, vector<8x20xf32>
    tpu.vector_store %arg14[%c32_713, %c160_714], %569 {strides = array<i32>} : memref<64x500xf32, #tpu.memory_space<vmem>>, vector<8x20xf32>,
    %c64_715 = arith.constant 64 : index
    %c0_716 = arith.constant 0 : index
    %571 = vector.load %arg13[%c64_715, %c0_716] : memref<144x20xf32, #tpu.memory_space<vmem>>, vector<8x20xf32>
    %c32_717 = arith.constant 32 : index
    %c180_718 = arith.constant 180 : index
    %572 = vector.load %arg14[%c32_717, %c180_718] : memref<64x500xf32, #tpu.memory_space<vmem>>, vector<8x20xf32>
    tpu.vector_store %arg14[%c32_717, %c180_718], %571 {strides = array<i32>} : memref<64x500xf32, #tpu.memory_space<vmem>>, vector<8x20xf32>,
    %c72_719 = arith.constant 72 : index
    %c0_720 = arith.constant 0 : index
    %573 = vector.load %arg13[%c72_719, %c0_720] : memref<144x20xf32, #tpu.memory_space<vmem>>, vector<8x20xf32>
    %c32_721 = arith.constant 32 : index
    %c200_722 = arith.constant 200 : index
    %574 = vector.load %arg14[%c32_721, %c200_722] : memref<64x500xf32, #tpu.memory_space<vmem>>, vector<8x20xf32>
    tpu.vector_store %arg14[%c32_721, %c200_722], %573 {strides = array<i32>} : memref<64x500xf32, #tpu.memory_space<vmem>>, vector<8x20xf32>,
    %c73_723 = arith.constant 73 : index
    %c0_724 = arith.constant 0 : index
    %575 = vector.load %arg13[%c73_723, %c0_724] : memref<144x20xf32, #tpu.memory_space<vmem>>, vector<8x20xf32>
    %c32_725 = arith.constant 32 : index
    %c220_726 = arith.constant 220 : index
    %576 = vector.load %arg14[%c32_725, %c220_726] : memref<64x500xf32, #tpu.memory_space<vmem>>, vector<8x20xf32>
    tpu.vector_store %arg14[%c32_725, %c220_726], %575 {strides = array<i32>} : memref<64x500xf32, #tpu.memory_space<vmem>>, vector<8x20xf32>,
    %c74_727 = arith.constant 74 : index
    %c0_728 = arith.constant 0 : index
    %577 = vector.load %arg13[%c74_727, %c0_728] : memref<144x20xf32, #tpu.memory_space<vmem>>, vector<8x20xf32>
    %c32_729 = arith.constant 32 : index
    %c240_730 = arith.constant 240 : index
    %578 = vector.load %arg14[%c32_729, %c240_730] : memref<64x500xf32, #tpu.memory_space<vmem>>, vector<8x20xf32>
    tpu.vector_store %arg14[%c32_729, %c240_730], %577 {strides = array<i32>} : memref<64x500xf32, #tpu.memory_space<vmem>>, vector<8x20xf32>,
    %c75_731 = arith.constant 75 : index
    %c0_732 = arith.constant 0 : index
    %579 = vector.load %arg13[%c75_731, %c0_732] : memref<144x20xf32, #tpu.memory_space<vmem>>, vector<8x20xf32>
    %c32_733 = arith.constant 32 : index
    %c260_734 = arith.constant 260 : index
    %580 = vector.load %arg14[%c32_733, %c260_734] : memref<64x500xf32, #tpu.memory_space<vmem>>, vector<8x20xf32>
    tpu.vector_store %arg14[%c32_733, %c260_734], %579 {strides = array<i32>} : memref<64x500xf32, #tpu.memory_space<vmem>>, vector<8x20xf32>,
    %c76_735 = arith.constant 76 : index
    %c0_736 = arith.constant 0 : index
    %581 = vector.load %arg13[%c76_735, %c0_736] : memref<144x20xf32, #tpu.memory_space<vmem>>, vector<8x20xf32>
    %c32_737 = arith.constant 32 : index
    %c280_738 = arith.constant 280 : index
    %582 = vector.load %arg14[%c32_737, %c280_738] : memref<64x500xf32, #tpu.memory_space<vmem>>, vector<8x20xf32>
    tpu.vector_store %arg14[%c32_737, %c280_738], %581 {strides = array<i32>} : memref<64x500xf32, #tpu.memory_space<vmem>>, vector<8x20xf32>,
    %c84_739 = arith.constant 84 : index
    %c0_740 = arith.constant 0 : index
    %583 = vector.load %arg13[%c84_739, %c0_740] : memref<144x20xf32, #tpu.memory_space<vmem>>, vector<8x20xf32>
    %c32_741 = arith.constant 32 : index
    %c300_742 = arith.constant 300 : index
    %584 = vector.load %arg14[%c32_741, %c300_742] : memref<64x500xf32, #tpu.memory_space<vmem>>, vector<8x20xf32>
    tpu.vector_store %arg14[%c32_741, %c300_742], %583 {strides = array<i32>} : memref<64x500xf32, #tpu.memory_space<vmem>>, vector<8x20xf32>,
    %c85_743 = arith.constant 85 : index
    %c0_744 = arith.constant 0 : index
    %585 = vector.load %arg13[%c85_743, %c0_744] : memref<144x20xf32, #tpu.memory_space<vmem>>, vector<8x20xf32>
    %c32_745 = arith.constant 32 : index
    %c320_746 = arith.constant 320 : index
    %586 = vector.load %arg14[%c32_745, %c320_746] : memref<64x500xf32, #tpu.memory_space<vmem>>, vector<8x20xf32>
    tpu.vector_store %arg14[%c32_745, %c320_746], %585 {strides = array<i32>} : memref<64x500xf32, #tpu.memory_space<vmem>>, vector<8x20xf32>,
    %c86_747 = arith.constant 86 : index
    %c0_748 = arith.constant 0 : index
    %587 = vector.load %arg13[%c86_747, %c0_748] : memref<144x20xf32, #tpu.memory_space<vmem>>, vector<8x20xf32>
    %c32_749 = arith.constant 32 : index
    %c340_750 = arith.constant 340 : index
    %588 = vector.load %arg14[%c32_749, %c340_750] : memref<64x500xf32, #tpu.memory_space<vmem>>, vector<8x20xf32>
    tpu.vector_store %arg14[%c32_749, %c340_750], %587 {strides = array<i32>} : memref<64x500xf32, #tpu.memory_space<vmem>>, vector<8x20xf32>,
    %c87_751 = arith.constant 87 : index
    %c0_752 = arith.constant 0 : index
    %589 = vector.load %arg13[%c87_751, %c0_752] : memref<144x20xf32, #tpu.memory_space<vmem>>, vector<8x20xf32>
    %c32_753 = arith.constant 32 : index
    %c360_754 = arith.constant 360 : index
    %590 = vector.load %arg14[%c32_753, %c360_754] : memref<64x500xf32, #tpu.memory_space<vmem>>, vector<8x20xf32>
    tpu.vector_store %arg14[%c32_753, %c360_754], %589 {strides = array<i32>} : memref<64x500xf32, #tpu.memory_space<vmem>>, vector<8x20xf32>,
    %c88_755 = arith.constant 88 : index
    %c0_756 = arith.constant 0 : index
    %591 = vector.load %arg13[%c88_755, %c0_756] : memref<144x20xf32, #tpu.memory_space<vmem>>, vector<8x20xf32>
    %c32_757 = arith.constant 32 : index
    %c380_758 = arith.constant 380 : index
    %592 = vector.load %arg14[%c32_757, %c380_758] : memref<64x500xf32, #tpu.memory_space<vmem>>, vector<8x20xf32>
    tpu.vector_store %arg14[%c32_757, %c380_758], %591 {strides = array<i32>} : memref<64x500xf32, #tpu.memory_space<vmem>>, vector<8x20xf32>,
    %c96_759 = arith.constant 96 : index
    %c0_760 = arith.constant 0 : index
    %593 = vector.load %arg13[%c96_759, %c0_760] : memref<144x20xf32, #tpu.memory_space<vmem>>, vector<8x20xf32>
    %c32_761 = arith.constant 32 : index
    %c400_762 = arith.constant 400 : index
    %594 = vector.load %arg14[%c32_761, %c400_762] : memref<64x500xf32, #tpu.memory_space<vmem>>, vector<8x20xf32>
    tpu.vector_store %arg14[%c32_761, %c400_762], %593 {strides = array<i32>} : memref<64x500xf32, #tpu.memory_space<vmem>>, vector<8x20xf32>,
    %c97_763 = arith.constant 97 : index
    %c0_764 = arith.constant 0 : index
    %595 = vector.load %arg13[%c97_763, %c0_764] : memref<144x20xf32, #tpu.memory_space<vmem>>, vector<8x20xf32>
    %c32_765 = arith.constant 32 : index
    %c420_766 = arith.constant 420 : index
    %596 = vector.load %arg14[%c32_765, %c420_766] : memref<64x500xf32, #tpu.memory_space<vmem>>, vector<8x20xf32>
    tpu.vector_store %arg14[%c32_765, %c420_766], %595 {strides = array<i32>} : memref<64x500xf32, #tpu.memory_space<vmem>>, vector<8x20xf32>,
    %c98 = arith.constant 98 : index
    %c0_767 = arith.constant 0 : index
    %597 = vector.load %arg13[%c98, %c0_767] : memref<144x20xf32, #tpu.memory_space<vmem>>, vector<8x20xf32>
    %c32_768 = arith.constant 32 : index
    %c440_769 = arith.constant 440 : index
    %598 = vector.load %arg14[%c32_768, %c440_769] : memref<64x500xf32, #tpu.memory_space<vmem>>, vector<8x20xf32>
    tpu.vector_store %arg14[%c32_768, %c440_769], %597 {strides = array<i32>} : memref<64x500xf32, #tpu.memory_space<vmem>>, vector<8x20xf32>,
    %c99 = arith.constant 99 : index
    %c0_770 = arith.constant 0 : index
    %599 = vector.load %arg13[%c99, %c0_770] : memref<144x20xf32, #tpu.memory_space<vmem>>, vector<8x20xf32>
    %c32_771 = arith.constant 32 : index
    %c460_772 = arith.constant 460 : index
    %600 = vector.load %arg14[%c32_771, %c460_772] : memref<64x500xf32, #tpu.memory_space<vmem>>, vector<8x20xf32>
    tpu.vector_store %arg14[%c32_771, %c460_772], %599 {strides = array<i32>} : memref<64x500xf32, #tpu.memory_space<vmem>>, vector<8x20xf32>,
    %c100_773 = arith.constant 100 : index
    %c0_774 = arith.constant 0 : index
    %601 = vector.load %arg13[%c100_773, %c0_774] : memref<144x20xf32, #tpu.memory_space<vmem>>, vector<8x20xf32>
    %c32_775 = arith.constant 32 : index
    %c480_776 = arith.constant 480 : index
    %602 = vector.load %arg14[%c32_775, %c480_776] : memref<64x500xf32, #tpu.memory_space<vmem>>, vector<8x20xf32>
    tpu.vector_store %arg14[%c32_775, %c480_776], %601 {strides = array<i32>} : memref<64x500xf32, #tpu.memory_space<vmem>>, vector<8x20xf32>,
    %c60_777 = arith.constant 60 : index
    %c0_778 = arith.constant 0 : index
    %603 = vector.load %arg13[%c60_777, %c0_778] : memref<144x20xf32, #tpu.memory_space<vmem>>, vector<8x20xf32>
    %c40_779 = arith.constant 40 : index
    %c0_780 = arith.constant 0 : index
    %604 = vector.load %arg14[%c40_779, %c0_780] : memref<64x500xf32, #tpu.memory_space<vmem>>, vector<8x20xf32>
    tpu.vector_store %arg14[%c40_779, %c0_780], %603 {strides = array<i32>} : memref<64x500xf32, #tpu.memory_space<vmem>>, vector<8x20xf32>,
    %c61_781 = arith.constant 61 : index
    %c0_782 = arith.constant 0 : index
    %605 = vector.load %arg13[%c61_781, %c0_782] : memref<144x20xf32, #tpu.memory_space<vmem>>, vector<8x20xf32>
    %c40_783 = arith.constant 40 : index
    %c20_784 = arith.constant 20 : index
    %606 = vector.load %arg14[%c40_783, %c20_784] : memref<64x500xf32, #tpu.memory_space<vmem>>, vector<8x20xf32>
    tpu.vector_store %arg14[%c40_783, %c20_784], %605 {strides = array<i32>} : memref<64x500xf32, #tpu.memory_space<vmem>>, vector<8x20xf32>,
    %c62_785 = arith.constant 62 : index
    %c0_786 = arith.constant 0 : index
    %607 = vector.load %arg13[%c62_785, %c0_786] : memref<144x20xf32, #tpu.memory_space<vmem>>, vector<8x20xf32>
    %c40_787 = arith.constant 40 : index
    %c40_788 = arith.constant 40 : index
    %608 = vector.load %arg14[%c40_787, %c40_788] : memref<64x500xf32, #tpu.memory_space<vmem>>, vector<8x20xf32>
    tpu.vector_store %arg14[%c40_787, %c40_788], %607 {strides = array<i32>} : memref<64x500xf32, #tpu.memory_space<vmem>>, vector<8x20xf32>,
    %c63_789 = arith.constant 63 : index
    %c0_790 = arith.constant 0 : index
    %609 = vector.load %arg13[%c63_789, %c0_790] : memref<144x20xf32, #tpu.memory_space<vmem>>, vector<8x20xf32>
    %c40_791 = arith.constant 40 : index
    %c60_792 = arith.constant 60 : index
    %610 = vector.load %arg14[%c40_791, %c60_792] : memref<64x500xf32, #tpu.memory_space<vmem>>, vector<8x20xf32>
    tpu.vector_store %arg14[%c40_791, %c60_792], %609 {strides = array<i32>} : memref<64x500xf32, #tpu.memory_space<vmem>>, vector<8x20xf32>,
    %c64_793 = arith.constant 64 : index
    %c0_794 = arith.constant 0 : index
    %611 = vector.load %arg13[%c64_793, %c0_794] : memref<144x20xf32, #tpu.memory_space<vmem>>, vector<8x20xf32>
    %c40_795 = arith.constant 40 : index
    %c80_796 = arith.constant 80 : index
    %612 = vector.load %arg14[%c40_795, %c80_796] : memref<64x500xf32, #tpu.memory_space<vmem>>, vector<8x20xf32>
    tpu.vector_store %arg14[%c40_795, %c80_796], %611 {strides = array<i32>} : memref<64x500xf32, #tpu.memory_space<vmem>>, vector<8x20xf32>,
    %c72_797 = arith.constant 72 : index
    %c0_798 = arith.constant 0 : index
    %613 = vector.load %arg13[%c72_797, %c0_798] : memref<144x20xf32, #tpu.memory_space<vmem>>, vector<8x20xf32>
    %c40_799 = arith.constant 40 : index
    %c100_800 = arith.constant 100 : index
    %614 = vector.load %arg14[%c40_799, %c100_800] : memref<64x500xf32, #tpu.memory_space<vmem>>, vector<8x20xf32>
    tpu.vector_store %arg14[%c40_799, %c100_800], %613 {strides = array<i32>} : memref<64x500xf32, #tpu.memory_space<vmem>>, vector<8x20xf32>,
    %c73_801 = arith.constant 73 : index
    %c0_802 = arith.constant 0 : index
    %615 = vector.load %arg13[%c73_801, %c0_802] : memref<144x20xf32, #tpu.memory_space<vmem>>, vector<8x20xf32>
    %c40_803 = arith.constant 40 : index
    %c120_804 = arith.constant 120 : index
    %616 = vector.load %arg14[%c40_803, %c120_804] : memref<64x500xf32, #tpu.memory_space<vmem>>, vector<8x20xf32>
    tpu.vector_store %arg14[%c40_803, %c120_804], %615 {strides = array<i32>} : memref<64x500xf32, #tpu.memory_space<vmem>>, vector<8x20xf32>,
    %c74_805 = arith.constant 74 : index
    %c0_806 = arith.constant 0 : index
    %617 = vector.load %arg13[%c74_805, %c0_806] : memref<144x20xf32, #tpu.memory_space<vmem>>, vector<8x20xf32>
    %c40_807 = arith.constant 40 : index
    %c140_808 = arith.constant 140 : index
    %618 = vector.load %arg14[%c40_807, %c140_808] : memref<64x500xf32, #tpu.memory_space<vmem>>, vector<8x20xf32>
    tpu.vector_store %arg14[%c40_807, %c140_808], %617 {strides = array<i32>} : memref<64x500xf32, #tpu.memory_space<vmem>>, vector<8x20xf32>,
    %c75_809 = arith.constant 75 : index
    %c0_810 = arith.constant 0 : index
    %619 = vector.load %arg13[%c75_809, %c0_810] : memref<144x20xf32, #tpu.memory_space<vmem>>, vector<8x20xf32>
    %c40_811 = arith.constant 40 : index
    %c160_812 = arith.constant 160 : index
    %620 = vector.load %arg14[%c40_811, %c160_812] : memref<64x500xf32, #tpu.memory_space<vmem>>, vector<8x20xf32>
    tpu.vector_store %arg14[%c40_811, %c160_812], %619 {strides = array<i32>} : memref<64x500xf32, #tpu.memory_space<vmem>>, vector<8x20xf32>,
    %c76_813 = arith.constant 76 : index
    %c0_814 = arith.constant 0 : index
    %621 = vector.load %arg13[%c76_813, %c0_814] : memref<144x20xf32, #tpu.memory_space<vmem>>, vector<8x20xf32>
    %c40_815 = arith.constant 40 : index
    %c180_816 = arith.constant 180 : index
    %622 = vector.load %arg14[%c40_815, %c180_816] : memref<64x500xf32, #tpu.memory_space<vmem>>, vector<8x20xf32>
    tpu.vector_store %arg14[%c40_815, %c180_816], %621 {strides = array<i32>} : memref<64x500xf32, #tpu.memory_space<vmem>>, vector<8x20xf32>,
    %c84_817 = arith.constant 84 : index
    %c0_818 = arith.constant 0 : index
    %623 = vector.load %arg13[%c84_817, %c0_818] : memref<144x20xf32, #tpu.memory_space<vmem>>, vector<8x20xf32>
    %c40_819 = arith.constant 40 : index
    %c200_820 = arith.constant 200 : index
    %624 = vector.load %arg14[%c40_819, %c200_820] : memref<64x500xf32, #tpu.memory_space<vmem>>, vector<8x20xf32>
    tpu.vector_store %arg14[%c40_819, %c200_820], %623 {strides = array<i32>} : memref<64x500xf32, #tpu.memory_space<vmem>>, vector<8x20xf32>,
    %c85_821 = arith.constant 85 : index
    %c0_822 = arith.constant 0 : index
    %625 = vector.load %arg13[%c85_821, %c0_822] : memref<144x20xf32, #tpu.memory_space<vmem>>, vector<8x20xf32>
    %c40_823 = arith.constant 40 : index
    %c220_824 = arith.constant 220 : index
    %626 = vector.load %arg14[%c40_823, %c220_824] : memref<64x500xf32, #tpu.memory_space<vmem>>, vector<8x20xf32>
    tpu.vector_store %arg14[%c40_823, %c220_824], %625 {strides = array<i32>} : memref<64x500xf32, #tpu.memory_space<vmem>>, vector<8x20xf32>,
    %c86_825 = arith.constant 86 : index
    %c0_826 = arith.constant 0 : index
    %627 = vector.load %arg13[%c86_825, %c0_826] : memref<144x20xf32, #tpu.memory_space<vmem>>, vector<8x20xf32>
    %c40_827 = arith.constant 40 : index
    %c240_828 = arith.constant 240 : index
    %628 = vector.load %arg14[%c40_827, %c240_828] : memref<64x500xf32, #tpu.memory_space<vmem>>, vector<8x20xf32>
    tpu.vector_store %arg14[%c40_827, %c240_828], %627 {strides = array<i32>} : memref<64x500xf32, #tpu.memory_space<vmem>>, vector<8x20xf32>,
    %c87_829 = arith.constant 87 : index
    %c0_830 = arith.constant 0 : index
    %629 = vector.load %arg13[%c87_829, %c0_830] : memref<144x20xf32, #tpu.memory_space<vmem>>, vector<8x20xf32>
    %c40_831 = arith.constant 40 : index
    %c260_832 = arith.constant 260 : index
    %630 = vector.load %arg14[%c40_831, %c260_832] : memref<64x500xf32, #tpu.memory_space<vmem>>, vector<8x20xf32>
    tpu.vector_store %arg14[%c40_831, %c260_832], %629 {strides = array<i32>} : memref<64x500xf32, #tpu.memory_space<vmem>>, vector<8x20xf32>,
    %c88_833 = arith.constant 88 : index
    %c0_834 = arith.constant 0 : index
    %631 = vector.load %arg13[%c88_833, %c0_834] : memref<144x20xf32, #tpu.memory_space<vmem>>, vector<8x20xf32>
    %c40_835 = arith.constant 40 : index
    %c280_836 = arith.constant 280 : index
    %632 = vector.load %arg14[%c40_835, %c280_836] : memref<64x500xf32, #tpu.memory_space<vmem>>, vector<8x20xf32>
    tpu.vector_store %arg14[%c40_835, %c280_836], %631 {strides = array<i32>} : memref<64x500xf32, #tpu.memory_space<vmem>>, vector<8x20xf32>,
    %c96_837 = arith.constant 96 : index
    %c0_838 = arith.constant 0 : index
    %633 = vector.load %arg13[%c96_837, %c0_838] : memref<144x20xf32, #tpu.memory_space<vmem>>, vector<8x20xf32>
    %c40_839 = arith.constant 40 : index
    %c300_840 = arith.constant 300 : index
    %634 = vector.load %arg14[%c40_839, %c300_840] : memref<64x500xf32, #tpu.memory_space<vmem>>, vector<8x20xf32>
    tpu.vector_store %arg14[%c40_839, %c300_840], %633 {strides = array<i32>} : memref<64x500xf32, #tpu.memory_space<vmem>>, vector<8x20xf32>,
    %c97_841 = arith.constant 97 : index
    %c0_842 = arith.constant 0 : index
    %635 = vector.load %arg13[%c97_841, %c0_842] : memref<144x20xf32, #tpu.memory_space<vmem>>, vector<8x20xf32>
    %c40_843 = arith.constant 40 : index
    %c320_844 = arith.constant 320 : index
    %636 = vector.load %arg14[%c40_843, %c320_844] : memref<64x500xf32, #tpu.memory_space<vmem>>, vector<8x20xf32>
    tpu.vector_store %arg14[%c40_843, %c320_844], %635 {strides = array<i32>} : memref<64x500xf32, #tpu.memory_space<vmem>>, vector<8x20xf32>,
    %c98_845 = arith.constant 98 : index
    %c0_846 = arith.constant 0 : index
    %637 = vector.load %arg13[%c98_845, %c0_846] : memref<144x20xf32, #tpu.memory_space<vmem>>, vector<8x20xf32>
    %c40_847 = arith.constant 40 : index
    %c340_848 = arith.constant 340 : index
    %638 = vector.load %arg14[%c40_847, %c340_848] : memref<64x500xf32, #tpu.memory_space<vmem>>, vector<8x20xf32>
    tpu.vector_store %arg14[%c40_847, %c340_848], %637 {strides = array<i32>} : memref<64x500xf32, #tpu.memory_space<vmem>>, vector<8x20xf32>,
    %c99_849 = arith.constant 99 : index
    %c0_850 = arith.constant 0 : index
    %639 = vector.load %arg13[%c99_849, %c0_850] : memref<144x20xf32, #tpu.memory_space<vmem>>, vector<8x20xf32>
    %c40_851 = arith.constant 40 : index
    %c360_852 = arith.constant 360 : index
    %640 = vector.load %arg14[%c40_851, %c360_852] : memref<64x500xf32, #tpu.memory_space<vmem>>, vector<8x20xf32>
    tpu.vector_store %arg14[%c40_851, %c360_852], %639 {strides = array<i32>} : memref<64x500xf32, #tpu.memory_space<vmem>>, vector<8x20xf32>,
    %c100_853 = arith.constant 100 : index
    %c0_854 = arith.constant 0 : index
    %641 = vector.load %arg13[%c100_853, %c0_854] : memref<144x20xf32, #tpu.memory_space<vmem>>, vector<8x20xf32>
    %c40_855 = arith.constant 40 : index
    %c380_856 = arith.constant 380 : index
    %642 = vector.load %arg14[%c40_855, %c380_856] : memref<64x500xf32, #tpu.memory_space<vmem>>, vector<8x20xf32>
    tpu.vector_store %arg14[%c40_855, %c380_856], %641 {strides = array<i32>} : memref<64x500xf32, #tpu.memory_space<vmem>>, vector<8x20xf32>,
    %c108_857 = arith.constant 108 : index
    %c0_858 = arith.constant 0 : index
    %643 = vector.load %arg13[%c108_857, %c0_858] : memref<144x20xf32, #tpu.memory_space<vmem>>, vector<8x20xf32>
    %c40_859 = arith.constant 40 : index
    %c400_860 = arith.constant 400 : index
    %644 = vector.load %arg14[%c40_859, %c400_860] : memref<64x500xf32, #tpu.memory_space<vmem>>, vector<8x20xf32>
    tpu.vector_store %arg14[%c40_859, %c400_860], %643 {strides = array<i32>} : memref<64x500xf32, #tpu.memory_space<vmem>>, vector<8x20xf32>,
    %c109 = arith.constant 109 : index
    %c0_861 = arith.constant 0 : index
    %645 = vector.load %arg13[%c109, %c0_861] : memref<144x20xf32, #tpu.memory_space<vmem>>, vector<8x20xf32>
    %c40_862 = arith.constant 40 : index
    %c420_863 = arith.constant 420 : index
    %646 = vector.load %arg14[%c40_862, %c420_863] : memref<64x500xf32, #tpu.memory_space<vmem>>, vector<8x20xf32>
    tpu.vector_store %arg14[%c40_862, %c420_863], %645 {strides = array<i32>} : memref<64x500xf32, #tpu.memory_space<vmem>>, vector<8x20xf32>,
    %c110 = arith.constant 110 : index
    %c0_864 = arith.constant 0 : index
    %647 = vector.load %arg13[%c110, %c0_864] : memref<144x20xf32, #tpu.memory_space<vmem>>, vector<8x20xf32>
    %c40_865 = arith.constant 40 : index
    %c440_866 = arith.constant 440 : index
    %648 = vector.load %arg14[%c40_865, %c440_866] : memref<64x500xf32, #tpu.memory_space<vmem>>, vector<8x20xf32>
    tpu.vector_store %arg14[%c40_865, %c440_866], %647 {strides = array<i32>} : memref<64x500xf32, #tpu.memory_space<vmem>>, vector<8x20xf32>,
    %c111 = arith.constant 111 : index
    %c0_867 = arith.constant 0 : index
    %649 = vector.load %arg13[%c111, %c0_867] : memref<144x20xf32, #tpu.memory_space<vmem>>, vector<8x20xf32>
    %c40_868 = arith.constant 40 : index
    %c460_869 = arith.constant 460 : index
    %650 = vector.load %arg14[%c40_868, %c460_869] : memref<64x500xf32, #tpu.memory_space<vmem>>, vector<8x20xf32>
    tpu.vector_store %arg14[%c40_868, %c460_869], %649 {strides = array<i32>} : memref<64x500xf32, #tpu.memory_space<vmem>>, vector<8x20xf32>,
    %c112 = arith.constant 112 : index
    %c0_870 = arith.constant 0 : index
    %651 = vector.load %arg13[%c112, %c0_870] : memref<144x20xf32, #tpu.memory_space<vmem>>, vector<8x20xf32>
    %c40_871 = arith.constant 40 : index
    %c480_872 = arith.constant 480 : index
    %652 = vector.load %arg14[%c40_871, %c480_872] : memref<64x500xf32, #tpu.memory_space<vmem>>, vector<8x20xf32>
    tpu.vector_store %arg14[%c40_871, %c480_872], %651 {strides = array<i32>} : memref<64x500xf32, #tpu.memory_space<vmem>>, vector<8x20xf32>,
    %c72_873 = arith.constant 72 : index
    %c0_874 = arith.constant 0 : index
    %653 = vector.load %arg13[%c72_873, %c0_874] : memref<144x20xf32, #tpu.memory_space<vmem>>, vector<8x20xf32>
    %c48_875 = arith.constant 48 : index
    %c0_876 = arith.constant 0 : index
    %654 = vector.load %arg14[%c48_875, %c0_876] : memref<64x500xf32, #tpu.memory_space<vmem>>, vector<8x20xf32>
    tpu.vector_store %arg14[%c48_875, %c0_876], %653 {strides = array<i32>} : memref<64x500xf32, #tpu.memory_space<vmem>>, vector<8x20xf32>,
    %c73_877 = arith.constant 73 : index
    %c0_878 = arith.constant 0 : index
    %655 = vector.load %arg13[%c73_877, %c0_878] : memref<144x20xf32, #tpu.memory_space<vmem>>, vector<8x20xf32>
    %c48_879 = arith.constant 48 : index
    %c20_880 = arith.constant 20 : index
    %656 = vector.load %arg14[%c48_879, %c20_880] : memref<64x500xf32, #tpu.memory_space<vmem>>, vector<8x20xf32>
    tpu.vector_store %arg14[%c48_879, %c20_880], %655 {strides = array<i32>} : memref<64x500xf32, #tpu.memory_space<vmem>>, vector<8x20xf32>,
    %c74_881 = arith.constant 74 : index
    %c0_882 = arith.constant 0 : index
    %657 = vector.load %arg13[%c74_881, %c0_882] : memref<144x20xf32, #tpu.memory_space<vmem>>, vector<8x20xf32>
    %c48_883 = arith.constant 48 : index
    %c40_884 = arith.constant 40 : index
    %658 = vector.load %arg14[%c48_883, %c40_884] : memref<64x500xf32, #tpu.memory_space<vmem>>, vector<8x20xf32>
    tpu.vector_store %arg14[%c48_883, %c40_884], %657 {strides = array<i32>} : memref<64x500xf32, #tpu.memory_space<vmem>>, vector<8x20xf32>,
    %c75_885 = arith.constant 75 : index
    %c0_886 = arith.constant 0 : index
    %659 = vector.load %arg13[%c75_885, %c0_886] : memref<144x20xf32, #tpu.memory_space<vmem>>, vector<8x20xf32>
    %c48_887 = arith.constant 48 : index
    %c60_888 = arith.constant 60 : index
    %660 = vector.load %arg14[%c48_887, %c60_888] : memref<64x500xf32, #tpu.memory_space<vmem>>, vector<8x20xf32>
    tpu.vector_store %arg14[%c48_887, %c60_888], %659 {strides = array<i32>} : memref<64x500xf32, #tpu.memory_space<vmem>>, vector<8x20xf32>,
    %c76_889 = arith.constant 76 : index
    %c0_890 = arith.constant 0 : index
    %661 = vector.load %arg13[%c76_889, %c0_890] : memref<144x20xf32, #tpu.memory_space<vmem>>, vector<8x20xf32>
    %c48_891 = arith.constant 48 : index
    %c80_892 = arith.constant 80 : index
    %662 = vector.load %arg14[%c48_891, %c80_892] : memref<64x500xf32, #tpu.memory_space<vmem>>, vector<8x20xf32>
    tpu.vector_store %arg14[%c48_891, %c80_892], %661 {strides = array<i32>} : memref<64x500xf32, #tpu.memory_space<vmem>>, vector<8x20xf32>,
    %c84_893 = arith.constant 84 : index
    %c0_894 = arith.constant 0 : index
    %663 = vector.load %arg13[%c84_893, %c0_894] : memref<144x20xf32, #tpu.memory_space<vmem>>, vector<8x20xf32>
    %c48_895 = arith.constant 48 : index
    %c100_896 = arith.constant 100 : index
    %664 = vector.load %arg14[%c48_895, %c100_896] : memref<64x500xf32, #tpu.memory_space<vmem>>, vector<8x20xf32>
    tpu.vector_store %arg14[%c48_895, %c100_896], %663 {strides = array<i32>} : memref<64x500xf32, #tpu.memory_space<vmem>>, vector<8x20xf32>,
    %c85_897 = arith.constant 85 : index
    %c0_898 = arith.constant 0 : index
    %665 = vector.load %arg13[%c85_897, %c0_898] : memref<144x20xf32, #tpu.memory_space<vmem>>, vector<8x20xf32>
    %c48_899 = arith.constant 48 : index
    %c120_900 = arith.constant 120 : index
    %666 = vector.load %arg14[%c48_899, %c120_900] : memref<64x500xf32, #tpu.memory_space<vmem>>, vector<8x20xf32>
    tpu.vector_store %arg14[%c48_899, %c120_900], %665 {strides = array<i32>} : memref<64x500xf32, #tpu.memory_space<vmem>>, vector<8x20xf32>,
    %c86_901 = arith.constant 86 : index
    %c0_902 = arith.constant 0 : index
    %667 = vector.load %arg13[%c86_901, %c0_902] : memref<144x20xf32, #tpu.memory_space<vmem>>, vector<8x20xf32>
    %c48_903 = arith.constant 48 : index
    %c140_904 = arith.constant 140 : index
    %668 = vector.load %arg14[%c48_903, %c140_904] : memref<64x500xf32, #tpu.memory_space<vmem>>, vector<8x20xf32>
    tpu.vector_store %arg14[%c48_903, %c140_904], %667 {strides = array<i32>} : memref<64x500xf32, #tpu.memory_space<vmem>>, vector<8x20xf32>,
    %c87_905 = arith.constant 87 : index
    %c0_906 = arith.constant 0 : index
    %669 = vector.load %arg13[%c87_905, %c0_906] : memref<144x20xf32, #tpu.memory_space<vmem>>, vector<8x20xf32>
    %c48_907 = arith.constant 48 : index
    %c160_908 = arith.constant 160 : index
    %670 = vector.load %arg14[%c48_907, %c160_908] : memref<64x500xf32, #tpu.memory_space<vmem>>, vector<8x20xf32>
    tpu.vector_store %arg14[%c48_907, %c160_908], %669 {strides = array<i32>} : memref<64x500xf32, #tpu.memory_space<vmem>>, vector<8x20xf32>,
    %c88_909 = arith.constant 88 : index
    %c0_910 = arith.constant 0 : index
    %671 = vector.load %arg13[%c88_909, %c0_910] : memref<144x20xf32, #tpu.memory_space<vmem>>, vector<8x20xf32>
    %c48_911 = arith.constant 48 : index
    %c180_912 = arith.constant 180 : index
    %672 = vector.load %arg14[%c48_911, %c180_912] : memref<64x500xf32, #tpu.memory_space<vmem>>, vector<8x20xf32>
    tpu.vector_store %arg14[%c48_911, %c180_912], %671 {strides = array<i32>} : memref<64x500xf32, #tpu.memory_space<vmem>>, vector<8x20xf32>,
    %c96_913 = arith.constant 96 : index
    %c0_914 = arith.constant 0 : index
    %673 = vector.load %arg13[%c96_913, %c0_914] : memref<144x20xf32, #tpu.memory_space<vmem>>, vector<8x20xf32>
    %c48_915 = arith.constant 48 : index
    %c200_916 = arith.constant 200 : index
    %674 = vector.load %arg14[%c48_915, %c200_916] : memref<64x500xf32, #tpu.memory_space<vmem>>, vector<8x20xf32>
    tpu.vector_store %arg14[%c48_915, %c200_916], %673 {strides = array<i32>} : memref<64x500xf32, #tpu.memory_space<vmem>>, vector<8x20xf32>,
    %c97_917 = arith.constant 97 : index
    %c0_918 = arith.constant 0 : index
    %675 = vector.load %arg13[%c97_917, %c0_918] : memref<144x20xf32, #tpu.memory_space<vmem>>, vector<8x20xf32>
    %c48_919 = arith.constant 48 : index
    %c220_920 = arith.constant 220 : index
    %676 = vector.load %arg14[%c48_919, %c220_920] : memref<64x500xf32, #tpu.memory_space<vmem>>, vector<8x20xf32>
    tpu.vector_store %arg14[%c48_919, %c220_920], %675 {strides = array<i32>} : memref<64x500xf32, #tpu.memory_space<vmem>>, vector<8x20xf32>,
    %c98_921 = arith.constant 98 : index
    %c0_922 = arith.constant 0 : index
    %677 = vector.load %arg13[%c98_921, %c0_922] : memref<144x20xf32, #tpu.memory_space<vmem>>, vector<8x20xf32>
    %c48_923 = arith.constant 48 : index
    %c240_924 = arith.constant 240 : index
    %678 = vector.load %arg14[%c48_923, %c240_924] : memref<64x500xf32, #tpu.memory_space<vmem>>, vector<8x20xf32>
    tpu.vector_store %arg14[%c48_923, %c240_924], %677 {strides = array<i32>} : memref<64x500xf32, #tpu.memory_space<vmem>>, vector<8x20xf32>,
    %c99_925 = arith.constant 99 : index
    %c0_926 = arith.constant 0 : index
    %679 = vector.load %arg13[%c99_925, %c0_926] : memref<144x20xf32, #tpu.memory_space<vmem>>, vector<8x20xf32>
    %c48_927 = arith.constant 48 : index
    %c260_928 = arith.constant 260 : index
    %680 = vector.load %arg14[%c48_927, %c260_928] : memref<64x500xf32, #tpu.memory_space<vmem>>, vector<8x20xf32>
    tpu.vector_store %arg14[%c48_927, %c260_928], %679 {strides = array<i32>} : memref<64x500xf32, #tpu.memory_space<vmem>>, vector<8x20xf32>,
    %c100_929 = arith.constant 100 : index
    %c0_930 = arith.constant 0 : index
    %681 = vector.load %arg13[%c100_929, %c0_930] : memref<144x20xf32, #tpu.memory_space<vmem>>, vector<8x20xf32>
    %c48_931 = arith.constant 48 : index
    %c280_932 = arith.constant 280 : index
    %682 = vector.load %arg14[%c48_931, %c280_932] : memref<64x500xf32, #tpu.memory_space<vmem>>, vector<8x20xf32>
    tpu.vector_store %arg14[%c48_931, %c280_932], %681 {strides = array<i32>} : memref<64x500xf32, #tpu.memory_space<vmem>>, vector<8x20xf32>,
    %c108_933 = arith.constant 108 : index
    %c0_934 = arith.constant 0 : index
    %683 = vector.load %arg13[%c108_933, %c0_934] : memref<144x20xf32, #tpu.memory_space<vmem>>, vector<8x20xf32>
    %c48_935 = arith.constant 48 : index
    %c300_936 = arith.constant 300 : index
    %684 = vector.load %arg14[%c48_935, %c300_936] : memref<64x500xf32, #tpu.memory_space<vmem>>, vector<8x20xf32>
    tpu.vector_store %arg14[%c48_935, %c300_936], %683 {strides = array<i32>} : memref<64x500xf32, #tpu.memory_space<vmem>>, vector<8x20xf32>,
    %c109_937 = arith.constant 109 : index
    %c0_938 = arith.constant 0 : index
    %685 = vector.load %arg13[%c109_937, %c0_938] : memref<144x20xf32, #tpu.memory_space<vmem>>, vector<8x20xf32>
    %c48_939 = arith.constant 48 : index
    %c320_940 = arith.constant 320 : index
    %686 = vector.load %arg14[%c48_939, %c320_940] : memref<64x500xf32, #tpu.memory_space<vmem>>, vector<8x20xf32>
    tpu.vector_store %arg14[%c48_939, %c320_940], %685 {strides = array<i32>} : memref<64x500xf32, #tpu.memory_space<vmem>>, vector<8x20xf32>,
    %c110_941 = arith.constant 110 : index
    %c0_942 = arith.constant 0 : index
    %687 = vector.load %arg13[%c110_941, %c0_942] : memref<144x20xf32, #tpu.memory_space<vmem>>, vector<8x20xf32>
    %c48_943 = arith.constant 48 : index
    %c340_944 = arith.constant 340 : index
    %688 = vector.load %arg14[%c48_943, %c340_944] : memref<64x500xf32, #tpu.memory_space<vmem>>, vector<8x20xf32>
    tpu.vector_store %arg14[%c48_943, %c340_944], %687 {strides = array<i32>} : memref<64x500xf32, #tpu.memory_space<vmem>>, vector<8x20xf32>,
    %c111_945 = arith.constant 111 : index
    %c0_946 = arith.constant 0 : index
    %689 = vector.load %arg13[%c111_945, %c0_946] : memref<144x20xf32, #tpu.memory_space<vmem>>, vector<8x20xf32>
    %c48_947 = arith.constant 48 : index
    %c360_948 = arith.constant 360 : index
    %690 = vector.load %arg14[%c48_947, %c360_948] : memref<64x500xf32, #tpu.memory_space<vmem>>, vector<8x20xf32>
    tpu.vector_store %arg14[%c48_947, %c360_948], %689 {strides = array<i32>} : memref<64x500xf32, #tpu.memory_space<vmem>>, vector<8x20xf32>,
    %c112_949 = arith.constant 112 : index
    %c0_950 = arith.constant 0 : index
    %691 = vector.load %arg13[%c112_949, %c0_950] : memref<144x20xf32, #tpu.memory_space<vmem>>, vector<8x20xf32>
    %c48_951 = arith.constant 48 : index
    %c380_952 = arith.constant 380 : index
    %692 = vector.load %arg14[%c48_951, %c380_952] : memref<64x500xf32, #tpu.memory_space<vmem>>, vector<8x20xf32>
    tpu.vector_store %arg14[%c48_951, %c380_952], %691 {strides = array<i32>} : memref<64x500xf32, #tpu.memory_space<vmem>>, vector<8x20xf32>,
    %c120_953 = arith.constant 120 : index
    %c0_954 = arith.constant 0 : index
    %693 = vector.load %arg13[%c120_953, %c0_954] : memref<144x20xf32, #tpu.memory_space<vmem>>, vector<8x20xf32>
    %c48_955 = arith.constant 48 : index
    %c400_956 = arith.constant 400 : index
    %694 = vector.load %arg14[%c48_955, %c400_956] : memref<64x500xf32, #tpu.memory_space<vmem>>, vector<8x20xf32>
    tpu.vector_store %arg14[%c48_955, %c400_956], %693 {strides = array<i32>} : memref<64x500xf32, #tpu.memory_space<vmem>>, vector<8x20xf32>,
    %c121_957 = arith.constant 121 : index
    %c0_958 = arith.constant 0 : index
    %695 = vector.load %arg13[%c121_957, %c0_958] : memref<144x20xf32, #tpu.memory_space<vmem>>, vector<8x20xf32>
    %c48_959 = arith.constant 48 : index
    %c420_960 = arith.constant 420 : index
    %696 = vector.load %arg14[%c48_959, %c420_960] : memref<64x500xf32, #tpu.memory_space<vmem>>, vector<8x20xf32>
    tpu.vector_store %arg14[%c48_959, %c420_960], %695 {strides = array<i32>} : memref<64x500xf32, #tpu.memory_space<vmem>>, vector<8x20xf32>,
    %c122 = arith.constant 122 : index
    %c0_961 = arith.constant 0 : index
    %697 = vector.load %arg13[%c122, %c0_961] : memref<144x20xf32, #tpu.memory_space<vmem>>, vector<8x20xf32>
    %c48_962 = arith.constant 48 : index
    %c440_963 = arith.constant 440 : index
    %698 = vector.load %arg14[%c48_962, %c440_963] : memref<64x500xf32, #tpu.memory_space<vmem>>, vector<8x20xf32>
    tpu.vector_store %arg14[%c48_962, %c440_963], %697 {strides = array<i32>} : memref<64x500xf32, #tpu.memory_space<vmem>>, vector<8x20xf32>,
    %c123 = arith.constant 123 : index
    %c0_964 = arith.constant 0 : index
    %699 = vector.load %arg13[%c123, %c0_964] : memref<144x20xf32, #tpu.memory_space<vmem>>, vector<8x20xf32>
    %c48_965 = arith.constant 48 : index
    %c460_966 = arith.constant 460 : index
    %700 = vector.load %arg14[%c48_965, %c460_966] : memref<64x500xf32, #tpu.memory_space<vmem>>, vector<8x20xf32>
    tpu.vector_store %arg14[%c48_965, %c460_966], %699 {strides = array<i32>} : memref<64x500xf32, #tpu.memory_space<vmem>>, vector<8x20xf32>,
    %c124 = arith.constant 124 : index
    %c0_967 = arith.constant 0 : index
    %701 = vector.load %arg13[%c124, %c0_967] : memref<144x20xf32, #tpu.memory_space<vmem>>, vector<8x20xf32>
    %c48_968 = arith.constant 48 : index
    %c480_969 = arith.constant 480 : index
    %702 = vector.load %arg14[%c48_968, %c480_969] : memref<64x500xf32, #tpu.memory_space<vmem>>, vector<8x20xf32>
    tpu.vector_store %arg14[%c48_968, %c480_969], %701 {strides = array<i32>} : memref<64x500xf32, #tpu.memory_space<vmem>>, vector<8x20xf32>,
    %c84_970 = arith.constant 84 : index
    %c0_971 = arith.constant 0 : index
    %703 = vector.load %arg13[%c84_970, %c0_971] : memref<144x20xf32, #tpu.memory_space<vmem>>, vector<8x20xf32>
    %c56 = arith.constant 56 : index
    %c0_972 = arith.constant 0 : index
    %704 = vector.load %arg14[%c56, %c0_972] : memref<64x500xf32, #tpu.memory_space<vmem>>, vector<8x20xf32>
    tpu.vector_store %arg14[%c56, %c0_972], %703 {strides = array<i32>} : memref<64x500xf32, #tpu.memory_space<vmem>>, vector<8x20xf32>,
    %c85_973 = arith.constant 85 : index
    %c0_974 = arith.constant 0 : index
    %705 = vector.load %arg13[%c85_973, %c0_974] : memref<144x20xf32, #tpu.memory_space<vmem>>, vector<8x20xf32>
    %c56_975 = arith.constant 56 : index
    %c20_976 = arith.constant 20 : index
    %706 = vector.load %arg14[%c56_975, %c20_976] : memref<64x500xf32, #tpu.memory_space<vmem>>, vector<8x20xf32>
    tpu.vector_store %arg14[%c56_975, %c20_976], %705 {strides = array<i32>} : memref<64x500xf32, #tpu.memory_space<vmem>>, vector<8x20xf32>,
    %c86_977 = arith.constant 86 : index
    %c0_978 = arith.constant 0 : index
    %707 = vector.load %arg13[%c86_977, %c0_978] : memref<144x20xf32, #tpu.memory_space<vmem>>, vector<8x20xf32>
    %c56_979 = arith.constant 56 : index
    %c40_980 = arith.constant 40 : index
    %708 = vector.load %arg14[%c56_979, %c40_980] : memref<64x500xf32, #tpu.memory_space<vmem>>, vector<8x20xf32>
    tpu.vector_store %arg14[%c56_979, %c40_980], %707 {strides = array<i32>} : memref<64x500xf32, #tpu.memory_space<vmem>>, vector<8x20xf32>,
    %c87_981 = arith.constant 87 : index
    %c0_982 = arith.constant 0 : index
    %709 = vector.load %arg13[%c87_981, %c0_982] : memref<144x20xf32, #tpu.memory_space<vmem>>, vector<8x20xf32>
    %c56_983 = arith.constant 56 : index
    %c60_984 = arith.constant 60 : index
    %710 = vector.load %arg14[%c56_983, %c60_984] : memref<64x500xf32, #tpu.memory_space<vmem>>, vector<8x20xf32>
    tpu.vector_store %arg14[%c56_983, %c60_984], %709 {strides = array<i32>} : memref<64x500xf32, #tpu.memory_space<vmem>>, vector<8x20xf32>,
    %c88_985 = arith.constant 88 : index
    %c0_986 = arith.constant 0 : index
    %711 = vector.load %arg13[%c88_985, %c0_986] : memref<144x20xf32, #tpu.memory_space<vmem>>, vector<8x20xf32>
    %c56_987 = arith.constant 56 : index
    %c80_988 = arith.constant 80 : index
    %712 = vector.load %arg14[%c56_987, %c80_988] : memref<64x500xf32, #tpu.memory_space<vmem>>, vector<8x20xf32>
    tpu.vector_store %arg14[%c56_987, %c80_988], %711 {strides = array<i32>} : memref<64x500xf32, #tpu.memory_space<vmem>>, vector<8x20xf32>,
    %c96_989 = arith.constant 96 : index
    %c0_990 = arith.constant 0 : index
    %713 = vector.load %arg13[%c96_989, %c0_990] : memref<144x20xf32, #tpu.memory_space<vmem>>, vector<8x20xf32>
    %c56_991 = arith.constant 56 : index
    %c100_992 = arith.constant 100 : index
    %714 = vector.load %arg14[%c56_991, %c100_992] : memref<64x500xf32, #tpu.memory_space<vmem>>, vector<8x20xf32>
    tpu.vector_store %arg14[%c56_991, %c100_992], %713 {strides = array<i32>} : memref<64x500xf32, #tpu.memory_space<vmem>>, vector<8x20xf32>,
    %c97_993 = arith.constant 97 : index
    %c0_994 = arith.constant 0 : index
    %715 = vector.load %arg13[%c97_993, %c0_994] : memref<144x20xf32, #tpu.memory_space<vmem>>, vector<8x20xf32>
    %c56_995 = arith.constant 56 : index
    %c120_996 = arith.constant 120 : index
    %716 = vector.load %arg14[%c56_995, %c120_996] : memref<64x500xf32, #tpu.memory_space<vmem>>, vector<8x20xf32>
    tpu.vector_store %arg14[%c56_995, %c120_996], %715 {strides = array<i32>} : memref<64x500xf32, #tpu.memory_space<vmem>>, vector<8x20xf32>,
    %c98_997 = arith.constant 98 : index
    %c0_998 = arith.constant 0 : index
    %717 = vector.load %arg13[%c98_997, %c0_998] : memref<144x20xf32, #tpu.memory_space<vmem>>, vector<8x20xf32>
    %c56_999 = arith.constant 56 : index
    %c140_1000 = arith.constant 140 : index
    %718 = vector.load %arg14[%c56_999, %c140_1000] : memref<64x500xf32, #tpu.memory_space<vmem>>, vector<8x20xf32>
    tpu.vector_store %arg14[%c56_999, %c140_1000], %717 {strides = array<i32>} : memref<64x500xf32, #tpu.memory_space<vmem>>, vector<8x20xf32>,
    %c99_1001 = arith.constant 99 : index
    %c0_1002 = arith.constant 0 : index
    %719 = vector.load %arg13[%c99_1001, %c0_1002] : memref<144x20xf32, #tpu.memory_space<vmem>>, vector<8x20xf32>
    %c56_1003 = arith.constant 56 : index
    %c160_1004 = arith.constant 160 : index
    %720 = vector.load %arg14[%c56_1003, %c160_1004] : memref<64x500xf32, #tpu.memory_space<vmem>>, vector<8x20xf32>
    tpu.vector_store %arg14[%c56_1003, %c160_1004], %719 {strides = array<i32>} : memref<64x500xf32, #tpu.memory_space<vmem>>, vector<8x20xf32>,
    %c100_1005 = arith.constant 100 : index
    %c0_1006 = arith.constant 0 : index
    %721 = vector.load %arg13[%c100_1005, %c0_1006] : memref<144x20xf32, #tpu.memory_space<vmem>>, vector<8x20xf32>
    %c56_1007 = arith.constant 56 : index
    %c180_1008 = arith.constant 180 : index
    %722 = vector.load %arg14[%c56_1007, %c180_1008] : memref<64x500xf32, #tpu.memory_space<vmem>>, vector<8x20xf32>
    tpu.vector_store %arg14[%c56_1007, %c180_1008], %721 {strides = array<i32>} : memref<64x500xf32, #tpu.memory_space<vmem>>, vector<8x20xf32>,
    %c108_1009 = arith.constant 108 : index
    %c0_1010 = arith.constant 0 : index
    %723 = vector.load %arg13[%c108_1009, %c0_1010] : memref<144x20xf32, #tpu.memory_space<vmem>>, vector<8x20xf32>
    %c56_1011 = arith.constant 56 : index
    %c200_1012 = arith.constant 200 : index
    %724 = vector.load %arg14[%c56_1011, %c200_1012] : memref<64x500xf32, #tpu.memory_space<vmem>>, vector<8x20xf32>
    tpu.vector_store %arg14[%c56_1011, %c200_1012], %723 {strides = array<i32>} : memref<64x500xf32, #tpu.memory_space<vmem>>, vector<8x20xf32>,
    %c109_1013 = arith.constant 109 : index
    %c0_1014 = arith.constant 0 : index
    %725 = vector.load %arg13[%c109_1013, %c0_1014] : memref<144x20xf32, #tpu.memory_space<vmem>>, vector<8x20xf32>
    %c56_1015 = arith.constant 56 : index
    %c220_1016 = arith.constant 220 : index
    %726 = vector.load %arg14[%c56_1015, %c220_1016] : memref<64x500xf32, #tpu.memory_space<vmem>>, vector<8x20xf32>
    tpu.vector_store %arg14[%c56_1015, %c220_1016], %725 {strides = array<i32>} : memref<64x500xf32, #tpu.memory_space<vmem>>, vector<8x20xf32>,
    %c110_1017 = arith.constant 110 : index
    %c0_1018 = arith.constant 0 : index
    %727 = vector.load %arg13[%c110_1017, %c0_1018] : memref<144x20xf32, #tpu.memory_space<vmem>>, vector<8x20xf32>
    %c56_1019 = arith.constant 56 : index
    %c240_1020 = arith.constant 240 : index
    %728 = vector.load %arg14[%c56_1019, %c240_1020] : memref<64x500xf32, #tpu.memory_space<vmem>>, vector<8x20xf32>
    tpu.vector_store %arg14[%c56_1019, %c240_1020], %727 {strides = array<i32>} : memref<64x500xf32, #tpu.memory_space<vmem>>, vector<8x20xf32>,
    %c111_1021 = arith.constant 111 : index
    %c0_1022 = arith.constant 0 : index
    %729 = vector.load %arg13[%c111_1021, %c0_1022] : memref<144x20xf32, #tpu.memory_space<vmem>>, vector<8x20xf32>
    %c56_1023 = arith.constant 56 : index
    %c260_1024 = arith.constant 260 : index
    %730 = vector.load %arg14[%c56_1023, %c260_1024] : memref<64x500xf32, #tpu.memory_space<vmem>>, vector<8x20xf32>
    tpu.vector_store %arg14[%c56_1023, %c260_1024], %729 {strides = array<i32>} : memref<64x500xf32, #tpu.memory_space<vmem>>, vector<8x20xf32>,
    %c112_1025 = arith.constant 112 : index
    %c0_1026 = arith.constant 0 : index
    %731 = vector.load %arg13[%c112_1025, %c0_1026] : memref<144x20xf32, #tpu.memory_space<vmem>>, vector<8x20xf32>
    %c56_1027 = arith.constant 56 : index
    %c280_1028 = arith.constant 280 : index
    %732 = vector.load %arg14[%c56_1027, %c280_1028] : memref<64x500xf32, #tpu.memory_space<vmem>>, vector<8x20xf32>
    tpu.vector_store %arg14[%c56_1027, %c280_1028], %731 {strides = array<i32>} : memref<64x500xf32, #tpu.memory_space<vmem>>, vector<8x20xf32>,
    %c120_1029 = arith.constant 120 : index
    %c0_1030 = arith.constant 0 : index
    %733 = vector.load %arg13[%c120_1029, %c0_1030] : memref<144x20xf32, #tpu.memory_space<vmem>>, vector<8x20xf32>
    %c56_1031 = arith.constant 56 : index
    %c300_1032 = arith.constant 300 : index
    %734 = vector.load %arg14[%c56_1031, %c300_1032] : memref<64x500xf32, #tpu.memory_space<vmem>>, vector<8x20xf32>
    tpu.vector_store %arg14[%c56_1031, %c300_1032], %733 {strides = array<i32>} : memref<64x500xf32, #tpu.memory_space<vmem>>, vector<8x20xf32>,
    %c121_1033 = arith.constant 121 : index
    %c0_1034 = arith.constant 0 : index
    %735 = vector.load %arg13[%c121_1033, %c0_1034] : memref<144x20xf32, #tpu.memory_space<vmem>>, vector<8x20xf32>
    %c56_1035 = arith.constant 56 : index
    %c320_1036 = arith.constant 320 : index
    %736 = vector.load %arg14[%c56_1035, %c320_1036] : memref<64x500xf32, #tpu.memory_space<vmem>>, vector<8x20xf32>
    tpu.vector_store %arg14[%c56_1035, %c320_1036], %735 {strides = array<i32>} : memref<64x500xf32, #tpu.memory_space<vmem>>, vector<8x20xf32>,
    %c122_1037 = arith.constant 122 : index
    %c0_1038 = arith.constant 0 : index
    %737 = vector.load %arg13[%c122_1037, %c0_1038] : memref<144x20xf32, #tpu.memory_space<vmem>>, vector<8x20xf32>
    %c56_1039 = arith.constant 56 : index
    %c340_1040 = arith.constant 340 : index
    %738 = vector.load %arg14[%c56_1039, %c340_1040] : memref<64x500xf32, #tpu.memory_space<vmem>>, vector<8x20xf32>
    tpu.vector_store %arg14[%c56_1039, %c340_1040], %737 {strides = array<i32>} : memref<64x500xf32, #tpu.memory_space<vmem>>, vector<8x20xf32>,
    %c123_1041 = arith.constant 123 : index
    %c0_1042 = arith.constant 0 : index
    %739 = vector.load %arg13[%c123_1041, %c0_1042] : memref<144x20xf32, #tpu.memory_space<vmem>>, vector<8x20xf32>
    %c56_1043 = arith.constant 56 : index
    %c360_1044 = arith.constant 360 : index
    %740 = vector.load %arg14[%c56_1043, %c360_1044] : memref<64x500xf32, #tpu.memory_space<vmem>>, vector<8x20xf32>
    tpu.vector_store %arg14[%c56_1043, %c360_1044], %739 {strides = array<i32>} : memref<64x500xf32, #tpu.memory_space<vmem>>, vector<8x20xf32>,
    %c124_1045 = arith.constant 124 : index
    %c0_1046 = arith.constant 0 : index
    %741 = vector.load %arg13[%c124_1045, %c0_1046] : memref<144x20xf32, #tpu.memory_space<vmem>>, vector<8x20xf32>
    %c56_1047 = arith.constant 56 : index
    %c380_1048 = arith.constant 380 : index
    %742 = vector.load %arg14[%c56_1047, %c380_1048] : memref<64x500xf32, #tpu.memory_space<vmem>>, vector<8x20xf32>
    tpu.vector_store %arg14[%c56_1047, %c380_1048], %741 {strides = array<i32>} : memref<64x500xf32, #tpu.memory_space<vmem>>, vector<8x20xf32>,
    %c132_1049 = arith.constant 132 : index
    %c0_1050 = arith.constant 0 : index
    %743 = vector.load %arg13[%c132_1049, %c0_1050] : memref<144x20xf32, #tpu.memory_space<vmem>>, vector<8x20xf32>
    %c56_1051 = arith.constant 56 : index
    %c400_1052 = arith.constant 400 : index
    %744 = vector.load %arg14[%c56_1051, %c400_1052] : memref<64x500xf32, #tpu.memory_space<vmem>>, vector<8x20xf32>
    tpu.vector_store %arg14[%c56_1051, %c400_1052], %743 {strides = array<i32>} : memref<64x500xf32, #tpu.memory_space<vmem>>, vector<8x20xf32>,
    %c133 = arith.constant 133 : index
    %c0_1053 = arith.constant 0 : index
    %745 = vector.load %arg13[%c133, %c0_1053] : memref<144x20xf32, #tpu.memory_space<vmem>>, vector<8x20xf32>
    %c56_1054 = arith.constant 56 : index
    %c420_1055 = arith.constant 420 : index
    %746 = vector.load %arg14[%c56_1054, %c420_1055] : memref<64x500xf32, #tpu.memory_space<vmem>>, vector<8x20xf32>
    tpu.vector_store %arg14[%c56_1054, %c420_1055], %745 {strides = array<i32>} : memref<64x500xf32, #tpu.memory_space<vmem>>, vector<8x20xf32>,
    %c134 = arith.constant 134 : index
    %c0_1056 = arith.constant 0 : index
    %747 = vector.load %arg13[%c134, %c0_1056] : memref<144x20xf32, #tpu.memory_space<vmem>>, vector<8x20xf32>
    %c56_1057 = arith.constant 56 : index
    %c440_1058 = arith.constant 440 : index
    %748 = vector.load %arg14[%c56_1057, %c440_1058] : memref<64x500xf32, #tpu.memory_space<vmem>>, vector<8x20xf32>
    tpu.vector_store %arg14[%c56_1057, %c440_1058], %747 {strides = array<i32>} : memref<64x500xf32, #tpu.memory_space<vmem>>, vector<8x20xf32>,
    %c135 = arith.constant 135 : index
    %c0_1059 = arith.constant 0 : index
    %749 = vector.load %arg13[%c135, %c0_1059] : memref<144x20xf32, #tpu.memory_space<vmem>>, vector<8x20xf32>
    %c56_1060 = arith.constant 56 : index
    %c460_1061 = arith.constant 460 : index
    %750 = vector.load %arg14[%c56_1060, %c460_1061] : memref<64x500xf32, #tpu.memory_space<vmem>>, vector<8x20xf32>
    tpu.vector_store %arg14[%c56_1060, %c460_1061], %749 {strides = array<i32>} : memref<64x500xf32, #tpu.memory_space<vmem>>, vector<8x20xf32>,
    %c136 = arith.constant 136 : index
    %c0_1062 = arith.constant 0 : index
    %751 = vector.load %arg13[%c136, %c0_1062] : memref<144x20xf32, #tpu.memory_space<vmem>>, vector<8x20xf32>
    %c56_1063 = arith.constant 56 : index
    %c480_1064 = arith.constant 480 : index
    %752 = vector.load %arg14[%c56_1063, %c480_1064] : memref<64x500xf32, #tpu.memory_space<vmem>>, vector<8x20xf32>
    tpu.vector_store %arg14[%c56_1063, %c480_1064], %751 {strides = array<i32>} : memref<64x500xf32, #tpu.memory_space<vmem>>, vector<8x20xf32>,
    %c0_1065 = arith.constant 0 : index
    %c0_1066 = arith.constant 0 : index
    %753 = vector.load %arg14[%c0_1065, %c0_1066] : memref<64x500xf32, #tpu.memory_space<vmem>>, vector<64x500xf32>
    %754 = arith.truncf %753 : vector<64x500xf32> to vector<64x500xbf16>
    %c0_1067 = arith.constant 0 : index
    %c0_1068 = arith.constant 0 : index
    %755 = vector.load %arg4[%c0_1067, %c0_1068] : memref<500x50xbf16, #tpu.memory_space<vmem>>, vector<500x50xbf16>
    %cst_1069 = arith.constant dense<0.000000e+00> : vector<64x50xf32>
    %756 = tpu.matmul %754, %755, %cst_1069 {dimension_numbers = #tpu.dot_dimension_numbers<[1], [0], [0], [1], [0, 0, 1, 1], [], []>} : vector<64x500xbf16>, vector<500x50xbf16>, vector<64x50xf32> -> vector<64x50xf32>
    %c0_1070 = arith.constant 0 : index
    %c0_1071 = arith.constant 0 : index
    %757 = vector.load %arg5[%c0_1070, %c0_1071] : memref<1x50xf32, #tpu.memory_space<vmem>>, vector<1x50xf32>
    %758 = vector.broadcast %757 : vector<1x50xf32> to vector<64x50xf32>
    %759 = arith.addf %756, %758 : vector<64x50xf32>
    %c0_1072 = arith.constant 0 : index
    %c0_1073 = arith.constant 0 : index
    %760 = vector.load %arg15[%c0_1072, %c0_1073] : memref<64x50xf32, #tpu.memory_space<vmem>>, vector<64x50xf32>
    tpu.vector_store %arg15[%c0_1072, %c0_1073], %759 {strides = array<i32>} : memref<64x50xf32, #tpu.memory_space<vmem>>, vector<64x50xf32>,
    %c0_1074 = arith.constant 0 : index
    %c0_1075 = arith.constant 0 : index
    %761 = tpu.strided_load %arg15[%c0_1074, %c0_1075] {strides = array<i32: 2, 1>} : memref<64x50xf32, #tpu.memory_space<vmem>>, vector<4x50xf32>
    %c1_1076 = arith.constant 1 : index
    %c0_1077 = arith.constant 0 : index
    %762 = tpu.strided_load %arg15[%c1_1076, %c0_1077] {strides = array<i32: 2, 1>} : memref<64x50xf32, #tpu.memory_space<vmem>>, vector<4x50xf32>
    %c8_1078 = arith.constant 8 : index
    %c0_1079 = arith.constant 0 : index
    %763 = tpu.strided_load %arg15[%c8_1078, %c0_1079] {strides = array<i32: 2, 1>} : memref<64x50xf32, #tpu.memory_space<vmem>>, vector<4x50xf32>
    %c9 = arith.constant 9 : index
    %c0_1080 = arith.constant 0 : index
    %764 = tpu.strided_load %arg15[%c9, %c0_1080] {strides = array<i32: 2, 1>} : memref<64x50xf32, #tpu.memory_space<vmem>>, vector<4x50xf32>
    %765 = arith.maximumf %761, %762 : vector<4x50xf32>
    %766 = arith.maximumf %763, %764 : vector<4x50xf32>
    %767 = arith.maximumf %765, %766 : vector<4x50xf32>
    %768 = vector.extract_strided_slice %767 {offsets = [0, 0], sizes = [1, 50], strides = [1, 1]} : vector<4x50xf32> to vector<1x50xf32>
    %c0_1081 = arith.constant 0 : index
    %c0_1082 = arith.constant 0 : index
    %769 = vector.load %arg16[%c0_1081, %c0_1082] : memref<1x800xf32, #tpu.memory_space<vmem>>, vector<1x50xf32>
    tpu.vector_store %arg16[%c0_1081, %c0_1082], %768 {strides = array<i32>} : memref<1x800xf32, #tpu.memory_space<vmem>>, vector<1x50xf32>,
    %770 = vector.extract_strided_slice %767 {offsets = [1, 0], sizes = [1, 50], strides = [1, 1]} : vector<4x50xf32> to vector<1x50xf32>
    %c0_1083 = arith.constant 0 : index
    %c50_1084 = arith.constant 50 : index
    %771 = vector.load %arg16[%c0_1083, %c50_1084] : memref<1x800xf32, #tpu.memory_space<vmem>>, vector<1x50xf32>
    tpu.vector_store %arg16[%c0_1083, %c50_1084], %770 {strides = array<i32>} : memref<1x800xf32, #tpu.memory_space<vmem>>, vector<1x50xf32>,
    %772 = vector.extract_strided_slice %767 {offsets = [2, 0], sizes = [1, 50], strides = [1, 1]} : vector<4x50xf32> to vector<1x50xf32>
    %c0_1085 = arith.constant 0 : index
    %c100_1086 = arith.constant 100 : index
    %773 = vector.load %arg16[%c0_1085, %c100_1086] : memref<1x800xf32, #tpu.memory_space<vmem>>, vector<1x50xf32>
    tpu.vector_store %arg16[%c0_1085, %c100_1086], %772 {strides = array<i32>} : memref<1x800xf32, #tpu.memory_space<vmem>>, vector<1x50xf32>,
    %774 = vector.extract_strided_slice %767 {offsets = [3, 0], sizes = [1, 50], strides = [1, 1]} : vector<4x50xf32> to vector<1x50xf32>
    %c0_1087 = arith.constant 0 : index
    %c150 = arith.constant 150 : index
    %775 = vector.load %arg16[%c0_1087, %c150] : memref<1x800xf32, #tpu.memory_space<vmem>>, vector<1x50xf32>
    tpu.vector_store %arg16[%c0_1087, %c150], %774 {strides = array<i32>} : memref<1x800xf32, #tpu.memory_space<vmem>>, vector<1x50xf32>,
    %c16_1088 = arith.constant 16 : index
    %c0_1089 = arith.constant 0 : index
    %776 = tpu.strided_load %arg15[%c16_1088, %c0_1089] {strides = array<i32: 2, 1>} : memref<64x50xf32, #tpu.memory_space<vmem>>, vector<4x50xf32>
    %c17 = arith.constant 17 : index
    %c0_1090 = arith.constant 0 : index
    %777 = tpu.strided_load %arg15[%c17, %c0_1090] {strides = array<i32: 2, 1>} : memref<64x50xf32, #tpu.memory_space<vmem>>, vector<4x50xf32>
    %c24_1091 = arith.constant 24 : index
    %c0_1092 = arith.constant 0 : index
    %778 = tpu.strided_load %arg15[%c24_1091, %c0_1092] {strides = array<i32: 2, 1>} : memref<64x50xf32, #tpu.memory_space<vmem>>, vector<4x50xf32>
    %c25_1093 = arith.constant 25 : index
    %c0_1094 = arith.constant 0 : index
    %779 = tpu.strided_load %arg15[%c25_1093, %c0_1094] {strides = array<i32: 2, 1>} : memref<64x50xf32, #tpu.memory_space<vmem>>, vector<4x50xf32>
    %780 = arith.maximumf %776, %777 : vector<4x50xf32>
    %781 = arith.maximumf %778, %779 : vector<4x50xf32>
    %782 = arith.maximumf %780, %781 : vector<4x50xf32>
    %783 = vector.extract_strided_slice %782 {offsets = [0, 0], sizes = [1, 50], strides = [1, 1]} : vector<4x50xf32> to vector<1x50xf32>
    %c0_1095 = arith.constant 0 : index
    %c200_1096 = arith.constant 200 : index
    %784 = vector.load %arg16[%c0_1095, %c200_1096] : memref<1x800xf32, #tpu.memory_space<vmem>>, vector<1x50xf32>
    tpu.vector_store %arg16[%c0_1095, %c200_1096], %783 {strides = array<i32>} : memref<1x800xf32, #tpu.memory_space<vmem>>, vector<1x50xf32>,
    %785 = vector.extract_strided_slice %782 {offsets = [1, 0], sizes = [1, 50], strides = [1, 1]} : vector<4x50xf32> to vector<1x50xf32>
    %c0_1097 = arith.constant 0 : index
    %c250 = arith.constant 250 : index
    %786 = vector.load %arg16[%c0_1097, %c250] : memref<1x800xf32, #tpu.memory_space<vmem>>, vector<1x50xf32>
    tpu.vector_store %arg16[%c0_1097, %c250], %785 {strides = array<i32>} : memref<1x800xf32, #tpu.memory_space<vmem>>, vector<1x50xf32>,
    %787 = vector.extract_strided_slice %782 {offsets = [2, 0], sizes = [1, 50], strides = [1, 1]} : vector<4x50xf32> to vector<1x50xf32>
    %c0_1098 = arith.constant 0 : index
    %c300_1099 = arith.constant 300 : index
    %788 = vector.load %arg16[%c0_1098, %c300_1099] : memref<1x800xf32, #tpu.memory_space<vmem>>, vector<1x50xf32>
    tpu.vector_store %arg16[%c0_1098, %c300_1099], %787 {strides = array<i32>} : memref<1x800xf32, #tpu.memory_space<vmem>>, vector<1x50xf32>,
    %789 = vector.extract_strided_slice %782 {offsets = [3, 0], sizes = [1, 50], strides = [1, 1]} : vector<4x50xf32> to vector<1x50xf32>
    %c0_1100 = arith.constant 0 : index
    %c350 = arith.constant 350 : index
    %790 = vector.load %arg16[%c0_1100, %c350] : memref<1x800xf32, #tpu.memory_space<vmem>>, vector<1x50xf32>
    tpu.vector_store %arg16[%c0_1100, %c350], %789 {strides = array<i32>} : memref<1x800xf32, #tpu.memory_space<vmem>>, vector<1x50xf32>,
    %c32_1101 = arith.constant 32 : index
    %c0_1102 = arith.constant 0 : index
    %791 = tpu.strided_load %arg15[%c32_1101, %c0_1102] {strides = array<i32: 2, 1>} : memref<64x50xf32, #tpu.memory_space<vmem>>, vector<4x50xf32>
    %c33 = arith.constant 33 : index
    %c0_1103 = arith.constant 0 : index
    %792 = tpu.strided_load %arg15[%c33, %c0_1103] {strides = array<i32: 2, 1>} : memref<64x50xf32, #tpu.memory_space<vmem>>, vector<4x50xf32>
    %c40_1104 = arith.constant 40 : index
    %c0_1105 = arith.constant 0 : index
    %793 = tpu.strided_load %arg15[%c40_1104, %c0_1105] {strides = array<i32: 2, 1>} : memref<64x50xf32, #tpu.memory_space<vmem>>, vector<4x50xf32>
    %c41 = arith.constant 41 : index
    %c0_1106 = arith.constant 0 : index
    %794 = tpu.strided_load %arg15[%c41, %c0_1106] {strides = array<i32: 2, 1>} : memref<64x50xf32, #tpu.memory_space<vmem>>, vector<4x50xf32>
    %795 = arith.maximumf %791, %792 : vector<4x50xf32>
    %796 = arith.maximumf %793, %794 : vector<4x50xf32>
    %797 = arith.maximumf %795, %796 : vector<4x50xf32>
    %798 = vector.extract_strided_slice %797 {offsets = [0, 0], sizes = [1, 50], strides = [1, 1]} : vector<4x50xf32> to vector<1x50xf32>
    %c0_1107 = arith.constant 0 : index
    %c400_1108 = arith.constant 400 : index
    %799 = vector.load %arg16[%c0_1107, %c400_1108] : memref<1x800xf32, #tpu.memory_space<vmem>>, vector<1x50xf32>
    tpu.vector_store %arg16[%c0_1107, %c400_1108], %798 {strides = array<i32>} : memref<1x800xf32, #tpu.memory_space<vmem>>, vector<1x50xf32>,
    %800 = vector.extract_strided_slice %797 {offsets = [1, 0], sizes = [1, 50], strides = [1, 1]} : vector<4x50xf32> to vector<1x50xf32>
    %c0_1109 = arith.constant 0 : index
    %c450 = arith.constant 450 : index
    %801 = vector.load %arg16[%c0_1109, %c450] : memref<1x800xf32, #tpu.memory_space<vmem>>, vector<1x50xf32>
    tpu.vector_store %arg16[%c0_1109, %c450], %800 {strides = array<i32>} : memref<1x800xf32, #tpu.memory_space<vmem>>, vector<1x50xf32>,
    %802 = vector.extract_strided_slice %797 {offsets = [2, 0], sizes = [1, 50], strides = [1, 1]} : vector<4x50xf32> to vector<1x50xf32>
    %c0_1110 = arith.constant 0 : index
    %c500 = arith.constant 500 : index
    %803 = vector.load %arg16[%c0_1110, %c500] : memref<1x800xf32, #tpu.memory_space<vmem>>, vector<1x50xf32>
    tpu.vector_store %arg16[%c0_1110, %c500], %802 {strides = array<i32>} : memref<1x800xf32, #tpu.memory_space<vmem>>, vector<1x50xf32>,
    %804 = vector.extract_strided_slice %797 {offsets = [3, 0], sizes = [1, 50], strides = [1, 1]} : vector<4x50xf32> to vector<1x50xf32>
    %c0_1111 = arith.constant 0 : index
    %c550 = arith.constant 550 : index
    %805 = vector.load %arg16[%c0_1111, %c550] : memref<1x800xf32, #tpu.memory_space<vmem>>, vector<1x50xf32>
    tpu.vector_store %arg16[%c0_1111, %c550], %804 {strides = array<i32>} : memref<1x800xf32, #tpu.memory_space<vmem>>, vector<1x50xf32>,
    %c48_1112 = arith.constant 48 : index
    %c0_1113 = arith.constant 0 : index
    %806 = tpu.strided_load %arg15[%c48_1112, %c0_1113] {strides = array<i32: 2, 1>} : memref<64x50xf32, #tpu.memory_space<vmem>>, vector<4x50xf32>
    %c49_1114 = arith.constant 49 : index
    %c0_1115 = arith.constant 0 : index
    %807 = tpu.strided_load %arg15[%c49_1114, %c0_1115] {strides = array<i32: 2, 1>} : memref<64x50xf32, #tpu.memory_space<vmem>>, vector<4x50xf32>
    %c56_1116 = arith.constant 56 : index
    %c0_1117 = arith.constant 0 : index
    %808 = tpu.strided_load %arg15[%c56_1116, %c0_1117] {strides = array<i32: 2, 1>} : memref<64x50xf32, #tpu.memory_space<vmem>>, vector<4x50xf32>
    %c57 = arith.constant 57 : index
    %c0_1118 = arith.constant 0 : index
    %809 = tpu.strided_load %arg15[%c57, %c0_1118] {strides = array<i32: 2, 1>} : memref<64x50xf32, #tpu.memory_space<vmem>>, vector<4x50xf32>
    %810 = arith.maximumf %806, %807 : vector<4x50xf32>
    %811 = arith.maximumf %808, %809 : vector<4x50xf32>
    %812 = arith.maximumf %810, %811 : vector<4x50xf32>
    %813 = vector.extract_strided_slice %812 {offsets = [0, 0], sizes = [1, 50], strides = [1, 1]} : vector<4x50xf32> to vector<1x50xf32>
    %c0_1119 = arith.constant 0 : index
    %c600 = arith.constant 600 : index
    %814 = vector.load %arg16[%c0_1119, %c600] : memref<1x800xf32, #tpu.memory_space<vmem>>, vector<1x50xf32>
    tpu.vector_store %arg16[%c0_1119, %c600], %813 {strides = array<i32>} : memref<1x800xf32, #tpu.memory_space<vmem>>, vector<1x50xf32>,
    %815 = vector.extract_strided_slice %812 {offsets = [1, 0], sizes = [1, 50], strides = [1, 1]} : vector<4x50xf32> to vector<1x50xf32>
    %c0_1120 = arith.constant 0 : index
    %c650 = arith.constant 650 : index
    %816 = vector.load %arg16[%c0_1120, %c650] : memref<1x800xf32, #tpu.memory_space<vmem>>, vector<1x50xf32>
    tpu.vector_store %arg16[%c0_1120, %c650], %815 {strides = array<i32>} : memref<1x800xf32, #tpu.memory_space<vmem>>, vector<1x50xf32>,
    %817 = vector.extract_strided_slice %812 {offsets = [2, 0], sizes = [1, 50], strides = [1, 1]} : vector<4x50xf32> to vector<1x50xf32>
    %c0_1121 = arith.constant 0 : index
    %c700 = arith.constant 700 : index
    %818 = vector.load %arg16[%c0_1121, %c700] : memref<1x800xf32, #tpu.memory_space<vmem>>, vector<1x50xf32>
    tpu.vector_store %arg16[%c0_1121, %c700], %817 {strides = array<i32>} : memref<1x800xf32, #tpu.memory_space<vmem>>, vector<1x50xf32>,
    %819 = vector.extract_strided_slice %812 {offsets = [3, 0], sizes = [1, 50], strides = [1, 1]} : vector<4x50xf32> to vector<1x50xf32>
    %c0_1122 = arith.constant 0 : index
    %c750 = arith.constant 750 : index
    %820 = vector.load %arg16[%c0_1122, %c750] : memref<1x800xf32, #tpu.memory_space<vmem>>, vector<1x50xf32>
    tpu.vector_store %arg16[%c0_1122, %c750], %819 {strides = array<i32>} : memref<1x800xf32, #tpu.memory_space<vmem>>, vector<1x50xf32>,
    %c0_1123 = arith.constant 0 : index
    %c0_1124 = arith.constant 0 : index
    %821 = vector.load %arg16[%c0_1123, %c0_1124] : memref<1x800xf32, #tpu.memory_space<vmem>>, vector<1x800xf32>
    %822 = arith.truncf %821 : vector<1x800xf32> to vector<1x800xbf16>
    %c0_1125 = arith.constant 0 : index
    %c0_1126 = arith.constant 0 : index
    %823 = vector.load %arg6[%c0_1125, %c0_1126] : memref<800x512xbf16, #tpu.memory_space<vmem>>, vector<800x512xbf16>
    %cst_1127 = arith.constant dense<0.000000e+00> : vector<1x512xf32>
    %824 = tpu.matmul %822, %823, %cst_1127 {dimension_numbers = #tpu.dot_dimension_numbers<[1], [0], [0], [1], [0, 0, 1, 1], [], []>} : vector<1x800xbf16>, vector<800x512xbf16>, vector<1x512xf32> -> vector<1x512xf32>
    %c0_1128 = arith.constant 0 : index
    %c0_1129 = arith.constant 0 : index
    %825 = vector.load %arg7[%c0_1128, %c0_1129] : memref<1x512xf32, #tpu.memory_space<vmem>>, vector<1x512xf32>
    %826 = arith.addf %824, %825 : vector<1x512xf32>
    %cst_1130 = arith.constant 0.000000e+00 : f32
    %827 = vector.broadcast %cst_1130 : f32 to vector<1x512xf32>
    %828 = arith.maximumf %826, %827 : vector<1x512xf32>
    %829 = arith.truncf %828 : vector<1x512xf32> to vector<1x512xbf16>
    %c0_1131 = arith.constant 0 : index
    %c0_1132 = arith.constant 0 : index
    %830 = vector.load %arg8[%c0_1131, %c0_1132] : memref<512x128xbf16, #tpu.memory_space<vmem>>, vector<512x128xbf16>
    %cst_1133 = arith.constant dense<0.000000e+00> : vector<1x128xf32>
    %831 = tpu.matmul %829, %830, %cst_1133 {dimension_numbers = #tpu.dot_dimension_numbers<[1], [0], [0], [1], [0, 0, 1, 1], [], []>} : vector<1x512xbf16>, vector<512x128xbf16>, vector<1x128xf32> -> vector<1x128xf32>
    %c0_1134 = arith.constant 0 : index
    %c0_1135 = arith.constant 0 : index
    %832 = vector.load %arg9[%c0_1134, %c0_1135] : memref<1x128xf32, #tpu.memory_space<vmem>>, vector<1x128xf32>
    %833 = arith.addf %831, %832 : vector<1x128xf32>
    %c0_1136 = arith.constant 0 : index
    %c0_1137 = arith.constant 0 : index
    %c0_1138 = arith.constant 0 : index
    %834 = vector.load %arg10[%c0_1136, %c0_1137, %c0_1138] : memref<1x1x128xf32, #tpu.memory_space<vmem>>, vector<1x1x128xf32>
    %835 = vector.shape_cast %834 : vector<1x1x128xf32> to vector<1x128xf32>
    %836 = vector.shape_cast %833 : vector<1x128xf32> to vector<1x1x128xf32>
    tpu.vector_store %arg10[%c0_1136, %c0_1137, %c0_1138], %836 {strides = array<i32>} : memref<1x1x128xf32, #tpu.memory_space<vmem>>, vector<1x1x128xf32>,
    return
  }
  func.func @transform_0(%arg0: i32) -> (i32, i32, i32) {
    %c0_i32 = arith.constant 0 : i32
    %c0_i32_0 = arith.constant 0 : i32
    %c0_i32_1 = arith.constant 0 : i32
    return %arg0, %c0_i32, %c0_i32_0 : i32, i32, i32
  }
  func.func @transform_1(%arg0: i32) -> (i32, i32) {
    %c0_i32 = arith.constant 0 : i32
    %c0_i32_0 = arith.constant 0 : i32
    %c0_i32_1 = arith.constant 0 : i32
    return %c0_i32, %c0_i32_0 : i32, i32
  }
  func.func @transform_2(%arg0: i32) -> (i32, i32) {
    %c0_i32 = arith.constant 0 : i32
    %c0_i32_0 = arith.constant 0 : i32
    %c0_i32_1 = arith.constant 0 : i32
    return %c0_i32, %c0_i32_0 : i32, i32
  }
  func.func @transform_3(%arg0: i32) -> (i32, i32) {
    %c0_i32 = arith.constant 0 : i32
    %c0_i32_0 = arith.constant 0 : i32
    %c0_i32_1 = arith.constant 0 : i32
    return %c0_i32, %c0_i32_0 : i32, i32
  }
  func.func @transform_4(%arg0: i32) -> (i32, i32) {
    %c0_i32 = arith.constant 0 : i32
    %c0_i32_0 = arith.constant 0 : i32
    %c0_i32_1 = arith.constant 0 : i32
    return %c0_i32, %c0_i32_0 : i32, i32
  }
  func.func @transform_5(%arg0: i32) -> (i32, i32) {
    %c0_i32 = arith.constant 0 : i32
    %c0_i32_0 = arith.constant 0 : i32
    %c0_i32_1 = arith.constant 0 : i32
    return %c0_i32, %c0_i32_0 : i32, i32
  }
  func.func @transform_6(%arg0: i32) -> (i32, i32) {
    %c0_i32 = arith.constant 0 : i32
    %c0_i32_0 = arith.constant 0 : i32
    %c0_i32_1 = arith.constant 0 : i32
    return %c0_i32, %c0_i32_0 : i32, i32
  }
  func.func @transform_7(%arg0: i32) -> (i32, i32) {
    %c0_i32 = arith.constant 0 : i32
    %c0_i32_0 = arith.constant 0 : i32
    %c0_i32_1 = arith.constant 0 : i32
    return %c0_i32, %c0_i32_0 : i32, i32
  }
  func.func @transform_8(%arg0: i32) -> (i32, i32) {
    %c0_i32 = arith.constant 0 : i32
    %c0_i32_0 = arith.constant 0 : i32
    %c0_i32_1 = arith.constant 0 : i32
    return %c0_i32, %c0_i32_0 : i32, i32
  }
  func.func @transform_9(%arg0: i32) -> (i32, i32, i32) {
    %c0_i32 = arith.constant 0 : i32
    %c0_i32_0 = arith.constant 0 : i32
    %c0_i32_1 = arith.constant 0 : i32
    return %arg0, %c0_i32, %c0_i32_0 : i32, i32, i32
  }
}

</mosaic_0001>

<bundles_post_ra>
// kernel: lenet_forward.1
= control target key start
LH: loop header
LB: loop body
LE: loop exit
PB: predicated region body
PF: predicated region fallthrough
CT: control target
= control target key end

     0   :  { %s10915_s0 = inlined_call_operand.vmem [shape: f32[2,28,28], index: 0, kind: input, shape index: {}]   ;;  %s10916_s1 = inlined_call_operand.vmem [shape: f32[25,20], index: 1, kind: input, shape index: {}]   ;;  %s10917_s2 = inlined_call_operand.vmem [shape: f32[1,20], index: 2, kind: input, shape index: {}]   ;;  %s10918_s3 = inlined_call_operand.vmem [shape: bf16[500,50], index: 3, kind: input, shape index: {}]   ;;  %s10919_s4 = inlined_call_operand.vmem [shape: f32[1,50], index: 4, kind: input, shape index: {}]   ;;  %s10920_s5 = inlined_call_operand.hbm [shape: bf16[800,512], index: 5, kind: input, shape index: {}]   ;;  %s10921_s6 = inlined_call_operand.vmem [shape: f32[1,512], index: 6, kind: input, shape index: {}]   ;;  %s10922_s7 = inlined_call_operand.vmem [shape: bf16[512,128], index: 7, kind: input, shape index: {}]   ;;  %s10923_s8 = inlined_call_operand.vmem [shape: f32[1,128], index: 8, kind: input, shape index: {}]   ;;  %s10924_s9 = inlined_call_operand.hbm [shape: f32[2,1,128], index: 9, kind: output, shape index: {}]  }
   0x1   :  { %10997 = sst [smem:[#allocation21_spill]] %s10915_s0 }
   0x2   :  { %10998 = sst [smem:[#allocation22_spill]] %s10916_s1 }
   0x3   :  { %10999 = sst [smem:[#allocation23_spill]] %s10920_s5 }
   0x4   :  { %11000 = sst [smem:[#allocation24_spill]] %s10924_s9 }
   0x5   :  { %14 = vsyncpa [#allocation9], 0 }
   0x6   :  { %15 = vsyncpa [#allocation10], 0 }
   0x7   :  { %17 = vsyncpa [#allocation10 + $0x1], 0  ;;  %s8237_s30 = smov 0   ;;  %s8239_s10 = smov 0  }
   0x8   :  { %s8241_s11 = smov 0   ;;  %s8243_s12 = smov 0  }
   0x9 LB: > { %11001 = sst [smem:[#allocation14_spill]] %s8101_s30  ;;  %s8258_s13 = sadd.s32 4294967295, %s8113_s12   ;;  %s8113_s12 = sphi %s8243_s12, %s11073_s12   ;;  %s8109_s11 = sphi %s8241_s11, %s11075_s11   ;;  %s8105_s10 = sphi %s8239_s10, %s11077_s10   ;;  %s8101_s30 = sphi %s8237_s30, %s11076_s30  }
   0xa   : > { %11002 = sst [smem:[#allocation15_spill]] %s8109_s11  ;;  %s6842_s14 = sadd.s32 4294967294, %s8113_s12  }
   0xb   : > { %11003 = sst [smem:[#allocation16_spill]] %s8113_s12  ;;  %s8262_s15 = sadd.s32 1, %s8113_s12  }
   0xc   : > { %11004 = sst [smem:[#allocation17_spill]] %s8262_s15  ;;  %s224_s16 = sadd.s32 1, %s8109_s11 }
   0xd   : > { %s221_s17 = ssub.s32 %s8113_s12, %s8262_s15  ;;  %p234_p0 = scmp.ne.s32.totalorder %s8109_s11, %s8105_s10 }
   0xe   : > { %p222_p1 = scmp.eq.s32.totalorder %s221_s17, 0  ;;  %p235_p2 = scmp.eq.s32.totalorder %s8258_s13, 1 }
   0xf   : > { %p240_p3 = scmp.ne.s32.totalorder %s8105_s10, %s8101_s30  ;;  %p241_p4 = scmp.eq.s32.totalorder %s6842_s14, 1 }
  0x10   : > { %s8273_s18 = scalar_select %p222_p1, %s8109_s11, %s224_s16  }
  0x11   : > { %p8275_p5 = por %p235_p2, %p234_p0  ;;  %p8279_p6 = por %p241_p4, %p240_p3 }
  0x12   : > { %11005 = sst [smem:[#allocation18_spill]] %s8273_s18  ;;  %p6843_p7 = scmp.ge.s32.totalorder %s8113_s12, 1 }
  0x13   : > { %s11006_s19 = scalar_select %p8275_p5, 1, 0 }
  0x14   : > { %s11008_s20 = scalar_select %p8279_p6, 1, 0 }
  0x15   : > { %11007 = sst [smem:[#allocation19_spill]] %s11006_s19  ;;  %p248_p8 = scmp.lt.s32.totalorder %s8113_s12, 3 }
  0x16   : > { %11009 = sst [smem:[#allocation20_spill]] %s11008_s20  ;;  %p7530_p9 = scmp.eq.s32.totalorder %s8258_s13, 0 }
  0x17   : > { %p8286_p10 = pnand %p6843_p7, %p248_p8  ;;  %s8115_s22 = smov [#allocation8]  }
  0x18   : > { %s272_s23 = sshll.u32 %s8115_s22, 4  ;;  %s273_s23 = int_to_ptr.vmem [resolvable:$true] %s272_s23 }
  0x19   : > { %p7522_p11 = pneg %p8286_p10  ;;  %s8034_s24 = scalar_lea.vmem %s273_s23, 25600 }
  0x1a   : > { %p8035_p0 = scmp.ne.s32.totalorder %s273_s23, %s8034_s24  ;;  %p8042_p3 = scmp.lt.s32.totalorder %s273_s23, %s273_s23 }
  0x1b   : > { %p7523_p12 = pnand %p7530_p9, %p7522_p11  ;;  %p8043_p4 = scmp.lt.s32.totalorder %s8034_s24, %s8034_s24 }
  0x1d   : > { %p8025_p13 = pneg %p7523_p12  ;;  %p8044_p6 = por %p8043_p4, %p8042_p3 }
  0x1f   : > { %p8037_p1 = pnand %p8035_p0, %p8025_p13 }
  0x21   : > { %p8038_p2 = pneg %p8037_p1 }
  0x23   : > { %p8045_p7 = pnand %p8044_p6, %p8038_p2 }
  0x25   : > { %8048 = shalt.err (!%p8045_p7)
}
  0x26   : > { %s8116_s25 = smov 256   ;;  %s8117_s26 = smov 16  }
  0x27   : > { %s11011_s5 = sld [smem:[#allocation23_spill]] }
  0x29   : > { %305 = sbr.rel (%p8286_p10) target bundleno = 2217 (0x8a9), region = 56 }
  0x2d   : > { %7525 = dma.hbm_to_vmem [thread:$0]  (!%p7523_p12), %s11011_s5, 25600, %s273_s23, [#allocation9], %s8116_s25, %s8116_s25, %s8117_s26  }
  0x2e   : > { %8092 = dma.done.wait (%p7530_p9), [#allocation9], 25600  }
  0x2f   : > { %8094 = vsyncadd (%p7530_p9), [#allocation9], 4294941696  ;;  %p340_p8 = scmp.lt.s32.totalorder %s8258_s13, 1  ;;  %s11012_s0 = sld [smem:[#allocation21_spill]]  ;;  %vm349_vm0 = vcmask 39936   ;;  %vm2076_vm1 = vcmask 1040384  }
  0x30   : > { %s10949_s21 = smov 10   ;;  %s10951_s23 = smov 5   ;;  %vm647_vm2 = vcmask 80936   ;;  %vm933_vm3 = vcmask 121936   ;;  %vm1219_vm4 = vcmask 162936   ;;  %vm1505_vm5 = vcmask 203936  }
  0x31   : > { %s341_s29 = scalar_select %p340_p8, %s8258_s13, 1  ;;  %vm1859_vm6 = vcmask 203776   ;;  %vm2505_vm7 = vcmask 162816   ;;  %vm2600_vm8 = vcmask 158720   ;;  %vm2910_vm9 = vcmask 97280  }
  0x32   : > { %s11013_s1 = sld [smem:[#allocation22_spill]]  ;;  %s10925_s24 = smov 20   ;;  %vm2917_vm10 = vcmask 261216   ;;  %vm2873_vm11 = vcmask 326816   ;;  %vm2924_vm12 = vcmask 425216   ;;  %vm2880_vm13 = vcmask 490816  }
  0x33   : > { %s7198_s14 = sshll.u32 %s341_s29, 5  ;;  %s10957_s25 = smov 127   ;;  %vm2931_vm14 = vcmask 589216   ;;  %vm2887_vm15 = vcmask 654816  }
  0x34   : > { %s10931_s26 = smov 4   ;;  %s10929_s27 = smov 9  }
  0x35   : > { %s8308_s22 = scalar_lea.vmem %s11012_s0, %s7198_s14  ;;  %s8120_s14 = smov 15  }
  0x36   : > { %v8311_v0 = vld [vmem:[%s8308_s22 + $0x2] sm:$0xff]  ;;  %v8321_v2 = vld [vmem:[%s8308_s22 + $0xa] sm:$0xff]  ;;  %v8381_v16 = vld [vmem:[%s8308_s22 + $0x12] sm:$0xff]  ;;  %s10927_s28 = smov 14   ;;  %s8126_s29 = smov 19  }
  0x37   : > { %v8314_v1 = vld [vmem:[%s8308_s22 + $0x1] sm:$0xff]  ;;  %924 = vrot.lane.b32.xlu1 %v8311_v0, %s10949_s21  ;;  %v8324_v3 = vld [vmem:[%s8308_s22 + $0x9] sm:$0xff]  ;;  %v8371_v14 = vld [vmem:[%s8308_s22 + $0x11] sm:$0xff]  ;;  %s10933_s16 = smov 126   ;;  %s10935_s17 = smov 3  }
  0x38   : > { %638 = vrot.lane.b32.xlu0 %v8314_v1, %s10951_s23  ;;  %v8327_v4 = vld [vmem:[%s8308_s22] sm:$0xff]  ;;  %v8332_v5 = vld [vmem:[%s8308_s22 + $0xb] sm:$0xff]  ;;  %v1851_v9 = vld [vmem:[%s11013_s1 + $0x18] sm:$0x1]  ;;  %s11026_s0 = smov 6   ;;  %s11028_s5 = smov 11  }
  0x39   : > { %350 = vst.msk [vmem:[#allocation2] sm:$0xff] %vm349_vm0, %v8327_v4  ;;  %v8335_v6 = vld [vmem:[%s8308_s22 + $0x3] sm:$0xff]  ;;  %v8345_v8 = vld [vmem:[%s8308_s22 + $0x10] sm:$0xff]  ;;  %7399 = vmatprep.subr.msk.mxu0 %vm2076_vm1, %v1851_v9  ;;  %s10974_s18 = smov 118   ;;  %s11029_s11 = smov 123  }
  0x3a   : > { %v8338_v7 = vld [vmem:[%s8308_s22 + $0x8] sm:$0xff]  ;;  %352 = vst.msk [vmem:[#allocation2 + $0x10] sm:$0xff] %vm349_vm0, %v8345_v8  ;;  %v1850_v10 = vld [vmem:[%s11013_s1 + $0x10] sm:$0xff]  ;;  %7400 = vmatpush3.msk.msra.mxu0 %vm2076_vm1, %v1851_v9  ;;  %v1848_v13 = vld [vmem:[%s11013_s1] sm:$0xff]  ;;  %s11031_s15 = smov 118   ;;  %s10980_s20 = smov 117  }
  0x3b   : > { %926 = vrot.lane.b32.xlu1 %v8321_v2, %s10949_s21  ;;  %351 = vst.msk [vmem:[#allocation2 + $0x8] sm:$0xff] %vm349_vm0, %v8338_v7  ;;  %v1849_v11 = vld [vmem:[%s11013_s1 + $0x8] sm:$0xff]  ;;  %7401 = vmatprep.subr.mxu0 %v1850_v10  ;;  %v8388_v17 = vld [vmem:[%s8308_s22 + $0x13] sm:$0xff]  ;;  %s11027_s1 = smov 124   ;;  %s11033_s30 = smov 122   ;;  %vm2894_vm1 = vcmask 818816  }
  0x3c   : > { %640 = vrot.lane.b32.xlu0 %v8324_v3, %s10951_s23  ;;  %v8361_v12 = vld [vmem:[%s8308_s22 + $0x4] sm:$0xff]  ;;  %7402 = vmatpush3.msra.mxu0 %v1850_v10  ;;  %v8374_v15 = vld [vmem:[%s8308_s22 + $0xc] sm:$0xff]  ;;  %v8399_v18 = vld [vmem:[%s8308_s22 + $0x14] sm:$0xff]  ;;  %s11035_s12 = smov 117   ;;  %s10986_s9 = smov 116  }
  0x3d   : > { %7403 = vmatprep.subr.mxu0 %v1849_v11  ;;  %v8553_v47 = vld [vmem:[%s8308_s22 + $0xb] sm:$0xff]  ;;  %v8570_v52 = vld [vmem:[%s8308_s22 + $0x1] sm:$0xff]  ;;  %s11036_s19 = smov 121  }
  0x3e   : > { %7404 = vmatpush3.msra.mxu0 %v1849_v11  ;;  %v8579_v55 = vld [vmem:[%s8308_s22 + $0x9] sm:$0xff]  ;;  %v8620_v9 = vld [vmem:[%s8308_s22 + $0x11] sm:$0xff] }
  0x3f   : > { %1212 = vrot.lane.b32.xlu1 %v8332_v5, %s8120_s14  ;;  %7405 = vmatprep.subr.mxu0 %v1848_v13  ;;  %v8587_v59 = vld [vmem:[%s8308_s22 + $0x2] sm:$0xff]  ;;  %v8592_v60 = vld [vmem:[%s8308_s22 + $0xa] sm:$0xff] }
  0x40   : > { %1210 = vrot.lane.b32.xlu0 %v8335_v6, %s8120_s14  ;;  %7406 = vmatpush3.msra.mxu0 %v1848_v13 }
  0x43   : > { %356 = vrot.lane.b32.xlu1 %v8327_v4, %s10957_s25 }
  0x44   : > { %1496 = vrot.lane.b32.xlu0 %v8361_v12, %s10925_s24 }
  0x47   : > { %1498 = vrot.lane.b32.xlu1 %v8374_v15, %s10925_s24 }
  0x48   : > { %642 = vrot.lane.b32.xlu0 %v8371_v14, %s10951_s23 }
  0x4b   : > { %928 = vrot.lane.b32.xlu1 %v8381_v16, %s10949_s21 }
  0x4c   : > { %651 = vrot.lane.b32.xlu0 %v8314_v1, %s10931_s26 }
  0x4f   : > { %1214 = vrot.lane.b32.xlu1 %v8388_v17, %s8120_s14 }
  0x50   : > { %937 = vrot.lane.b32.xlu0 %v8311_v0, %s10929_s27 }
  0x53   : > { %1223 = vrot.lane.b32.xlu1 %v8335_v6, %s10927_s28 }
  0x54   : > { %358 = vrot.lane.b32.xlu0 %v8338_v7, %s10957_s25 }
  0x57   : > { %360 = vrot.lane.b32.xlu1 %v8345_v8, %s10957_s25 }
  0x58   : > { %1500 = vrot.lane.b32.xlu0 %v8399_v18, %s10925_s24  ;;  %s10937_s24 = smov 8  }
  0x5b   : > { %1509 = vrot.lane.b32.xlu1 %v8361_v12, %s8126_s29 }
  0x5c   : > { %653 = vrot.lane.b32.xlu0 %v8324_v3, %s10931_s26 }
  0x5f   : > { %939 = vrot.lane.b32.xlu1 %v8321_v2, %s10929_s27 }
  0x60   : > { %655 = vrot.lane.b32.xlu0 %v8371_v14, %s10931_s26  ;;  %s10943_s26 = smov 2  }
  0x63   : > { %1225 = vrot.lane.b32.xlu1 %v8332_v5, %s10927_s28 }
  0x64   : > { %941 = vrot.lane.b32.xlu0 %v8381_v16, %s10929_s27  ;;  %s10945_s27 = smov 125  }
  0x67   : > { %1227 = vrot.lane.b32.xlu1 %v8388_v17, %s10927_s28  ;;  %s8130_s28 = smov 13  }
  0x68   : > { %368 = vrot.lane.b32.xlu0 %v8327_v4, %s10933_s16 }
  0x6b   : > { %370 = vrot.lane.b32.xlu1 %v8338_v7, %s10933_s16 }
  0x6c   : > { %1511 = vrot.lane.b32.xlu0 %v8374_v15, %s8126_s29 }
  0x6f   : > { %1513 = vrot.lane.b32.xlu1 %v8399_v18, %s8126_s29  ;;  %s8131_s29 = smov 18  }
  0x70   : > { %663 = vrot.lane.b32.xlu0 %v8314_v1, %s10935_s17 }
  0x73   : > { %949 = vrot.lane.b32.xlu1 %v8311_v0, %s10937_s24 }
  0x74   : > { %665 = vrot.lane.b32.xlu0 %v8324_v3, %s10935_s17 }
  0x77   : > { %1235 = vrot.lane.b32.xlu1 %v8335_v6, %s8130_s28 }
  0x78   : > { %951 = vrot.lane.b32.xlu0 %v8321_v2, %s10937_s24 }
  0x7b   : > { %1237 = vrot.lane.b32.xlu1 %v8332_v5, %s8130_s28 }
  0x7c   : > { %372 = vrot.lane.b32.xlu0 %v8345_v8, %s10933_s16  ;;  %s10939_s16 = smov 7  }
  0x7f   : > { %380 = vrot.lane.b32.xlu1 %v8327_v4, %s10945_s27 }
  0x80   : > { %1521 = vrot.lane.b32.xlu0 %v8361_v12, %s8131_s29 }
  0x83   : > { %1523 = vrot.lane.b32.xlu1 %v8374_v15, %s8131_s29 }
  0x84   : > { %667 = vrot.lane.b32.xlu0 %v8371_v14, %s10935_s17  ;;  %s10941_s17 = smov 12  }
  0x87   : > { %953 = vrot.lane.b32.xlu1 %v8381_v16, %s10937_s24  ;;  %s8136_s24 = smov 17  }
  0x88   : > { %675 = vrot.lane.b32.xlu0 %v8314_v1, %s10943_s26 }
  0x8b   : > { %1239 = vrot.lane.b32.xlu1 %v8388_v17, %s8130_s28 }
  0x8c   : > { %961 = vrot.lane.b32.xlu0 %v8311_v0, %s10939_s16 }
  0x8f   : > { %1247 = vrot.lane.b32.xlu1 %v8335_v6, %s10941_s17 }
  0x90   : > { %382 = vrot.lane.b32.xlu0 %v8338_v7, %s10945_s27 }
  0x93   : > { %384 = vrot.lane.b32.xlu1 %v8345_v8, %s10945_s27  ;;  %s10955_s27 = smov 123  }
  0x94   : > { %1525 = vrot.lane.b32.xlu0 %v8399_v18, %s8131_s29  ;;  %s10971_s29 = smov 124  }
  0x97   : > { %1533 = vrot.lane.b32.xlu1 %v8361_v12, %s8136_s24 }
  0x98   : > { %677 = vrot.lane.b32.xlu0 %v8324_v3, %s10943_s26 }
  0x9b   : > { %963 = vrot.lane.b32.xlu1 %v8321_v2, %s10939_s16 }
  0x9c   : > { %679 = vrot.lane.b32.xlu0 %v8371_v14, %s10943_s26  ;;  %s10947_s26 = smov 16  }
  0x9f   : > { %1249 = vrot.lane.b32.xlu1 %v8332_v5, %s10941_s17 }
  0xa0   : > { %965 = vrot.lane.b32.xlu0 %v8381_v16, %s10939_s16  ;;  %s10965_s16 = smov 1  }
  0xa3   : > { %1251 = vrot.lane.b32.xlu1 %v8388_v17, %s10941_s17  ;;  %s10963_s17 = smov 6  }
  0xa4   : > { %392 = vrot.lane.b32.xlu0 %v8327_v4, %s10971_s29 }
  0xa7   : > { %394 = vrot.lane.b32.xlu1 %v8338_v7, %s10971_s29 }
  0xa8   : > { %1535 = vrot.lane.b32.xlu0 %v8374_v15, %s8136_s24 }
  0xa9   : > { %v925_v19 = vpop.permute.xlu1 %924 }
  0xaa   : > { %v639_v20 = vpop.permute.xlu0 %638 }
  0xab   : > { %648 = vst.msk [vmem:[#allocation2] sm:$0xff] %vm647_vm2, %v639_v20  ;;  %1537 = vrot.lane.b32.xlu1 %v8399_v18, %s8136_s24  ;;  %s10959_s24 = smov 11  }
  0xac   : > { %687 = vrot.lane.b32.xlu0 %v8314_v1, %s10965_s16  ;;  %934 = vst.msk [vmem:[#allocation2] sm:$0xff] %vm933_vm3, %v925_v19 }
  0xad   : > { %v927_v21 = vpop.permute.xlu1 %926 }
  0xae   : > { %v641_v22 = vpop.permute.xlu0 %640 }
  0xaf   : > { %649 = vst.msk [vmem:[#allocation2 + $0x8] sm:$0xff] %vm647_vm2, %v641_v22  ;;  %973 = vrot.lane.b32.xlu1 %v8311_v0, %s10963_s17 }
  0xb0   : > { %689 = vrot.lane.b32.xlu0 %v8324_v3, %s10965_s16  ;;  %935 = vst.msk [vmem:[#allocation2 + $0x8] sm:$0xff] %vm933_vm3, %v927_v21  ;;  %v8611_v3 = vld [vmem:[%s8308_s22 + $0x4] sm:$0xff] }
  0xb1   : > { %v1213_v23 = vpop.permute.xlu1 %1212 }
  0xb2   : > { %v1211_v24 = vpop.permute.xlu0 %1210  ;;  %1221 = vst.msk [vmem:[#allocation2 + $0x8] sm:$0xff] %vm1219_vm4, %v1213_v23 }
  0xb3   : > { %1220 = vst.msk [vmem:[#allocation2] sm:$0xff] %vm1219_vm4, %v1211_v24  ;;  %1259 = vrot.lane.b32.xlu1 %v8335_v6, %s10959_s24 }
  0xb4   : > { %975 = vrot.lane.b32.xlu0 %v8321_v2, %s10963_s17 }
  0xb5   : > { %v357_v26 = vpop.permute.xlu1 %356 }
  0xb6   : > { %v1497_v25 = vpop.permute.xlu0 %1496  ;;  %365 = vst.msk [vmem:[#allocation2 + $0x18] sm:$0xff] %vm349_vm0, %v357_v26 }
  0xb7   : > { %1506 = vst.msk [vmem:[#allocation2] sm:$0xff] %vm1505_vm5, %v1497_v25  ;;  %1261 = vrot.lane.b32.xlu1 %v8332_v5, %s10959_s24 }
  0xb8   : > { %396 = vrot.lane.b32.xlu0 %v8345_v8, %s10971_s29 }
  0xb9   : > { %v1499_v28 = vpop.permute.xlu1 %1498 }
  0xba   : > { %v643_v27 = vpop.permute.xlu0 %642  ;;  %1507 = vst.msk [vmem:[#allocation2 + $0x8] sm:$0xff] %vm1505_vm5, %v1499_v28 }
  0xbb   : > { %650 = vst.msk [vmem:[#allocation2 + $0x10] sm:$0xff] %vm647_vm2, %v643_v27  ;;  %404 = vrot.lane.b32.xlu1 %v8327_v4, %s10955_s27 }
  0xbc   : > { %1545 = vrot.lane.b32.xlu0 %v8361_v12, %s10947_s26 }
  0xbd   : > { %v929_v30 = vpop.permute.xlu1 %928 }
  0xbe   : > { %v652_v29 = vpop.permute.xlu0 %651  ;;  %v1776_v31 = vld [vmem:[#allocation2] sm:$0xff]  ;;  %936 = vst.msk [vmem:[#allocation2 + $0x10] sm:$0xff] %vm933_vm3, %v929_v30 }
  0xbf   : > { %660 = vst.msk [vmem:[#allocation2 + $0x18] sm:$0xff] %vm647_vm2, %v652_v29  ;;  %7407 = vmatprep.mubr.msk.f32.mxu0 %vm1859_vm6, %v1776_v31  ;;  %1547 = vrot.lane.b32.xlu1 %v8374_v15, %s10947_s26 }
  0xc0   : > { %691 = vrot.lane.b32.xlu0 %v8371_v14, %s10965_s16  ;;  %s11023_s16 = smov 12  }
  0xc1   : > { %v1215_v33 = vpop.permute.xlu1 %1214  ;;  %v1777_v34 = vld [vmem:[#allocation2 + $0x8] sm:$0xff] }
  0xc2   : > { %v938_v32 = vpop.permute.xlu0 %937  ;;  %1222 = vst.msk [vmem:[#allocation2 + $0x10] sm:$0xff] %vm1219_vm4, %v1215_v33  ;;  %7408 = vmatmul.mubr.msk.f32.vlgmr.msra.gmra.mxu0 %vm1859_vm6, %v1777_v34  ;;  %v8685_v34 = vld [vmem:[%s8308_s22 + $0x13] sm:$0xff] }
  0xc3   : > { %946 = vst.msk [vmem:[#allocation2 + $0x18] sm:$0xff] %vm933_vm3, %v938_v32  ;;  %985 = vrot.lane.b32.xlu1 %v8311_v0, %s10951_s23  ;;  %v8600_v0 = vld [vmem:[%s8308_s22 + $0x3] sm:$0xff] }
  0xc4   : > { %977 = vrot.lane.b32.xlu0 %v8381_v16, %s10963_s17  ;;  %s11021_s17 = smov 2  }
  0xc5   : > { %v1224_v36 = vpop.permute.xlu1 %1223 }
  0xc6   : > { %v359_v35 = vpop.permute.xlu0 %358  ;;  %1232 = vst.msk [vmem:[#allocation2 + $0x18] sm:$0xff] %vm1219_vm4, %v1224_v36 }
  0xc7   : > { %366 = vst.msk [vmem:[#allocation2 + $0x20] sm:$0xff] %vm349_vm0, %v359_v35  ;;  %406 = vrot.lane.b32.xlu1 %v8338_v7, %s10955_s27 }
  0xc8   : > { %1263 = vrot.lane.b32.xlu0 %v8388_v17, %s10959_s24  ;;  %s11019_s24 = smov 8  }
  0xc9   : > { %v361_v38 = vpop.permute.xlu1 %360 }
  0xca   : > { %v1501_v37 = vpop.permute.xlu0 %1500  ;;  %367 = vst.msk [vmem:[#allocation2 + $0x28] sm:$0xff] %vm349_vm0, %v361_v38 }
  0xcb   : > { %1508 = vst.msk [vmem:[#allocation2 + $0x10] sm:$0xff] %vm1505_vm5, %v1501_v37  ;;  %1549 = vrot.lane.b32.xlu1 %v8399_v18, %s10947_s26  ;;  %s10953_s26 = smov 122  }
  0xcc   : > { %1271 = vrot.lane.b32.xlu0 %v8335_v6, %s10949_s21 }
  0xcd   : > { %v1510_v40 = vpop.permute.xlu1 %1509 }
  0xce   : > { %v654_v39 = vpop.permute.xlu0 %653  ;;  %1518 = vst.msk [vmem:[#allocation2 + $0x18] sm:$0xff] %vm1505_vm5, %v1510_v40 }
  0xcf   : > { %661 = vst.msk [vmem:[#allocation2 + $0x20] sm:$0xff] %vm647_vm2, %v654_v39  ;;  %1557 = vrot.lane.b32.xlu1 %v8361_v12, %s8120_s14  ;;  %v8627_v12 = vld [vmem:[%s8308_s22 + $0xc] sm:$0xff]  ;;  %v8700_v39 = vld [vmem:[%s8308_s22 + $0x14] sm:$0xff] }
  0xd0   : > { %408 = vrot.lane.b32.xlu0 %v8345_v8, %s10955_s27  ;;  %s11017_s27 = smov 126  }
  0xd1   : > { %v940_v42 = vpop.permute.xlu1 %939 }
  0xd2   : > { %v656_v41 = vpop.permute.xlu0 %655  ;;  %v1778_v43 = vld [vmem:[#allocation2 + $0x10] sm:$0xff]  ;;  %947 = vst.msk [vmem:[#allocation2 + $0x20] sm:$0xff] %vm933_vm3, %v940_v42 }
  0xd3   : > { %662 = vst.msk [vmem:[#allocation2 + $0x28] sm:$0xff] %vm647_vm2, %v656_v41  ;;  %7410 = vmatprep.mubr.msk.f32.mxu0 %vm1859_vm6, %v1778_v43  ;;  %989 = vrot.lane.b32.xlu1 %v8381_v16, %s10951_s23  ;;  %v8637_v16 = vld [vmem:[%s8308_s22 + $0x12] sm:$0xff] }
  0xd4   : > { %987 = vrot.lane.b32.xlu0 %v8321_v2, %s10951_s23  ;;  %s11016_s23 = smov 14  }
  0xd5   : > { %v1226_v45 = vpop.permute.xlu1 %1225  ;;  %v1779_v46 = vld [vmem:[#allocation2 + $0x18] sm:$0xff] }
  0xd6   : > { %v942_v44 = vpop.permute.xlu0 %941  ;;  %1233 = vst.msk [vmem:[#allocation2 + $0x20] sm:$0xff] %vm1219_vm4, %v1226_v45  ;;  %7411 = vmatmul.mubr.msk.f32.gmra.mxu0 %vm1859_vm6, %v1779_v46 }
  0xd7   : > { %948 = vst.msk [vmem:[#allocation2 + $0x28] sm:$0xff] %vm933_vm3, %v942_v44  ;;  %416 = vrot.lane.b32.xlu1 %v8327_v4, %s10953_s26 }
  0xd8   : > { %1273 = vrot.lane.b32.xlu0 %v8553_v47, %s10949_s21 }
  0xd9   : > { %v1228_v49 = vpop.permute.xlu1 %1227 }
  0xda   : > { %v369_v48 = vpop.permute.xlu0 %368  ;;  %1234 = vst.msk [vmem:[#allocation2 + $0x28] sm:$0xff] %vm1219_vm4, %v1228_v49 }
  0xdb   : > { %377 = vst.msk [vmem:[#allocation2 + $0x30] sm:$0xff] %vm349_vm0, %v369_v48  ;;  %1559 = vrot.lane.b32.xlu1 %v8374_v15, %s8120_s14 }
  0xdc   : > { %1275 = vrot.lane.b32.xlu0 %v8388_v17, %s10949_s21  ;;  %s11014_s21 = smov 4  }
  0xdd   : > { %v371_v51 = vpop.permute.xlu1 %370 }
  0xde   : > { %v1512_v50 = vpop.permute.xlu0 %1511  ;;  %378 = vst.msk [vmem:[#allocation2 + $0x38] sm:$0xff] %vm349_vm0, %v371_v51 }
  0xdf   : > { %1519 = vst.msk [vmem:[#allocation2 + $0x20] sm:$0xff] %vm1505_vm5, %v1512_v50  ;;  %702 = vrot.lane.b32.xlu1 %v8570_v52, %s10957_s25 }
  0xe0   : > { %418 = vrot.lane.b32.xlu0 %v8338_v7, %s10953_s26 }
  0xe1   : > { %v1514_v54 = vpop.permute.xlu1 %1513 }
  0xe2   : > { %v664_v53 = vpop.permute.xlu0 %663  ;;  %1520 = vst.msk [vmem:[#allocation2 + $0x28] sm:$0xff] %vm1505_vm5, %v1514_v54 }
  0xe3   : > { %672 = vst.msk [vmem:[#allocation2 + $0x30] sm:$0xff] %vm647_vm2, %v664_v53  ;;  %704 = vrot.lane.b32.xlu1 %v8579_v55, %s10957_s25 }
  0xe4   : > { %1561 = vrot.lane.b32.xlu0 %v8399_v18, %s8120_s14  ;;  %s11015_s14 = smov 9  }
  0xe5   : > { %v950_v57 = vpop.permute.xlu1 %949 }
  0xe6   : > { %v666_v56 = vpop.permute.xlu0 %665  ;;  %v1780_v58 = vld [vmem:[#allocation2 + $0x20] sm:$0xff]  ;;  %958 = vst.msk [vmem:[#allocation2 + $0x30] sm:$0xff] %vm933_vm3, %v950_v57 }
  0xe7   : > { %673 = vst.msk [vmem:[#allocation2 + $0x38] sm:$0xff] %vm647_vm2, %v666_v56  ;;  %7413 = vmatprep.mubr.msk.f32.mxu0 %vm1859_vm6, %v1780_v58  ;;  %999 = vrot.lane.b32.xlu1 %v8592_v60, %s11014_s21 }
  0xe8   : > { %997 = vrot.lane.b32.xlu0 %v8587_v59, %s11014_s21 }
  0xe9   : > { %v1236_v62 = vpop.permute.xlu1 %1235  ;;  %v1781_v63 = vld [vmem:[#allocation2 + $0x28] sm:$0xff] }
  0xea   : > { %v952_v61 = vpop.permute.xlu0 %951  ;;  %1244 = vst.msk [vmem:[#allocation2 + $0x30] sm:$0xff] %vm1219_vm4, %v1236_v62  ;;  %7414 = vmatmul.mubr.msk.f32.gmra.mxu0 %vm1859_vm6, %v1781_v63 }
  0xeb   : > { %959 = vst.msk [vmem:[#allocation2 + $0x38] sm:$0xff] %vm933_vm3, %v952_v61  ;;  %420 = vrot.lane.b32.xlu1 %v8345_v8, %s10953_s26  ;;  %s10961_s26 = smov 121  }
  0xec   : > { %1283 = vrot.lane.b32.xlu0 %v8600_v0, %s11015_s14 }
  0xed   : > { %v1238_v2 = vpop.permute.xlu1 %1237 }
  0xee   : > { %v373_v1 = vpop.permute.xlu0 %372  ;;  %1245 = vst.msk [vmem:[#allocation2 + $0x38] sm:$0xff] %vm1219_vm4, %v1238_v2 }
  0xef   : > { %379 = vst.msk [vmem:[#allocation2 + $0x40] sm:$0xff] %vm349_vm0, %v373_v1  ;;  %1569 = vrot.lane.b32.xlu1 %v8611_v3, %s11016_s23 }
  0xf0   : > { %1285 = vrot.lane.b32.xlu0 %v8553_v47, %s11015_s14 }
  0xf1   : > { %v381_v6 = vpop.permute.xlu1 %380 }
  0xf2   : > { %v1522_v5 = vpop.permute.xlu0 %1521  ;;  %389 = vst.msk [vmem:[#allocation2 + $0x48] sm:$0xff] %vm349_vm0, %v381_v6 }
  0xf3   : > { %1530 = vst.msk [vmem:[#allocation2 + $0x30] sm:$0xff] %vm1505_vm5, %v1522_v5  ;;  %706 = vrot.lane.b32.xlu1 %v8620_v9, %s10957_s25  ;;  %s11018_s25 = smov 3  }
  0xf4   : > { %428 = vrot.lane.b32.xlu0 %v8327_v4, %s10961_s26 }
  0xf5   : > { %v1524_v11 = vpop.permute.xlu1 %1523 }
  0xf6   : > { %v668_v10 = vpop.permute.xlu0 %667  ;;  %1531 = vst.msk [vmem:[#allocation2 + $0x38] sm:$0xff] %vm1505_vm5, %v1524_v11 }
  0xf7   : > { %674 = vst.msk [vmem:[#allocation2 + $0x40] sm:$0xff] %vm647_vm2, %v668_v10  ;;  %714 = vrot.lane.b32.xlu1 %v8570_v52, %s11017_s27 }
  0xf8   : > { %1571 = vrot.lane.b32.xlu0 %v8627_v12, %s11016_s23 }
  0xf9   : > { %v954_v14 = vpop.permute.xlu1 %953 }
  0xfa   : > { %v676_v13 = vpop.permute.xlu0 %675  ;;  %v1782_v15 = vld [vmem:[#allocation2 + $0x30] sm:$0xff]  ;;  %960 = vst.msk [vmem:[#allocation2 + $0x40] sm:$0xff] %vm933_vm3, %v954_v14 }
  0xfb   : > { %684 = vst.msk [vmem:[#allocation2 + $0x48] sm:$0xff] %vm647_vm2, %v676_v13  ;;  %7416 = vmatprep.mubr.msk.f32.mxu0 %vm1859_vm6, %v1782_v15  ;;  %1009 = vrot.lane.b32.xlu1 %v8587_v59, %s11018_s25 }
  0xfc   : > { %1001 = vrot.lane.b32.xlu0 %v8637_v16, %s11014_s21 }
  0xfd   : > { %v1240_v20 = vpop.permute.xlu1 %1239  ;;  %v1783_v21 = vld [vmem:[#allocation2 + $0x38] sm:$0xff] }
  0xfe   : > { %v962_v19 = vpop.permute.xlu0 %961  ;;  %1246 = vst.msk [vmem:[#allocation2 + $0x40] sm:$0xff] %vm1219_vm4, %v1240_v20  ;;  %7417 = vmatmul.mubr.msk.f32.gmra.mxu0 %vm1859_vm6, %v1783_v21 }
  0xff   : > { %970 = vst.msk [vmem:[#allocation2 + $0x48] sm:$0xff] %vm933_vm3, %v962_v19  ;;  %430 = vrot.lane.b32.xlu1 %v8338_v7, %s10961_s26 }
 0x100   : > { %1287 = vrot.lane.b32.xlu0 %v8388_v17, %s11015_s14 }
 0x101   : > { %v1248_v23 = vpop.permute.xlu1 %1247 }
 0x102   : > { %v383_v22 = vpop.permute.xlu0 %382  ;;  %1256 = vst.msk [vmem:[#allocation2 + $0x48] sm:$0xff] %vm1219_vm4, %v1248_v23 }
 0x103   : > { %390 = vst.msk [vmem:[#allocation2 + $0x50] sm:$0xff] %vm349_vm0, %v383_v22  ;;  %1573 = vrot.lane.b32.xlu1 %v8399_v18, %s11016_s23  ;;  %s10967_s23 = smov 120  }
 0x104   : > { %1295 = vrot.lane.b32.xlu0 %v8600_v0, %s11019_s24 }
 0x105   : > { %v385_v25 = vpop.permute.xlu1 %384 }
 0x106   : > { %v1526_v24 = vpop.permute.xlu0 %1525  ;;  %391 = vst.msk [vmem:[#allocation2 + $0x58] sm:$0xff] %vm349_vm0, %v385_v25 }
 0x107   : > { %1532 = vst.msk [vmem:[#allocation2 + $0x40] sm:$0xff] %vm1505_vm5, %v1526_v24  ;;  %716 = vrot.lane.b32.xlu1 %v8579_v55, %s11017_s27 }
 0x108   : > { %432 = vrot.lane.b32.xlu0 %v8345_v8, %s10961_s26  ;;  %s11020_s26 = smov 125  }
 0x109   : > { %v1534_v26 = vpop.permute.xlu1 %1533 }
 0x10a   : > { %v678_v17 = vpop.permute.xlu0 %677  ;;  %1542 = vst.msk [vmem:[#allocation2 + $0x48] sm:$0xff] %vm1505_vm5, %v1534_v26 }
 0x10b   : > { %685 = vst.msk [vmem:[#allocation2 + $0x50] sm:$0xff] %vm647_vm2, %v678_v17  ;;  %718 = vrot.lane.b32.xlu1 %v8620_v9, %s11017_s27 }
 0x10c   : > { %1581 = vrot.lane.b32.xlu0 %v8611_v3, %s8130_s28 }
 0x10d   : > { %v964_v27 = vpop.permute.xlu1 %963 }
 0x10e   : > { %v680_v18 = vpop.permute.xlu0 %679  ;;  %v1784_v28 = vld [vmem:[#allocation2 + $0x40] sm:$0xff]  ;;  %971 = vst.msk [vmem:[#allocation2 + $0x50] sm:$0xff] %vm933_vm3, %v964_v27 }
 0x10f   : > { %686 = vst.msk [vmem:[#allocation2 + $0x58] sm:$0xff] %vm647_vm2, %v680_v18  ;;  %7419 = vmatprep.mubr.msk.f32.mxu0 %vm1859_vm6, %v1784_v28  ;;  %1013 = vrot.lane.b32.xlu1 %v8637_v16, %s11018_s25 }
 0x110   : > { %1011 = vrot.lane.b32.xlu0 %v8592_v60, %s11018_s25 }
 0x111   : > { %v1250_v30 = vpop.permute.xlu1 %1249  ;;  %v1785_v31 = vld [vmem:[#allocation2 + $0x48] sm:$0xff] }
 0x112   : > { %v966_v29 = vpop.permute.xlu0 %965  ;;  %1257 = vst.msk [vmem:[#allocation2 + $0x50] sm:$0xff] %vm1219_vm4, %v1250_v30  ;;  %7420 = vmatmul.mubr.msk.f32.gmra.mxu0 %vm1859_vm6, %v1785_v31 }
 0x113   : > { %972 = vst.msk [vmem:[#allocation2 + $0x58] sm:$0xff] %vm933_vm3, %v966_v29  ;;  %440 = vrot.lane.b32.xlu1 %v8327_v4, %s10967_s23 }
 0x114   : > { %1297 = vrot.lane.b32.xlu0 %v8553_v47, %s11019_s24 }
 0x115   : > { %v1252_v33 = vpop.permute.xlu1 %1251 }
 0x116   : > { %v393_v32 = vpop.permute.xlu0 %392  ;;  %1258 = vst.msk [vmem:[#allocation2 + $0x58] sm:$0xff] %vm1219_vm4, %v1252_v33 }
 0x117   : > { %401 = vst.msk [vmem:[#allocation2 + $0x60] sm:$0xff] %vm349_vm0, %v393_v32  ;;  %1583 = vrot.lane.b32.xlu1 %v8627_v12, %s8130_s28 }
 0x118   : > { %1299 = vrot.lane.b32.xlu0 %v8685_v34, %s11019_s24 }
 0x119   : > { %v395_v36 = vpop.permute.xlu1 %394 }
 0x11a   : > { %v1536_v35 = vpop.permute.xlu0 %1535  ;;  %402 = vst.msk [vmem:[#allocation2 + $0x68] sm:$0xff] %vm349_vm0, %v395_v36 }
 0x11b   : > { %1543 = vst.msk [vmem:[#allocation2 + $0x50] sm:$0xff] %vm1505_vm5, %v1536_v35  ;;  %726 = vrot.lane.b32.xlu1 %v8570_v52, %s11020_s26 }
 0x11c   : > { %442 = vrot.lane.b32.xlu0 %v8338_v7, %s10967_s23 }
 0x11d   : > { %v1538_v38 = vpop.permute.xlu1 %1537 }
 0x11e   : > { %v688_v37 = vpop.permute.xlu0 %687  ;;  %1544 = vst.msk [vmem:[#allocation2 + $0x58] sm:$0xff] %vm1505_vm5, %v1538_v38 }
 0x11f   : > { %696 = vst.msk [vmem:[#allocation2 + $0x60] sm:$0xff] %vm647_vm2, %v688_v37  ;;  %728 = vrot.lane.b32.xlu1 %v8579_v55, %s11020_s26 }
 0x120   : > { %1585 = vrot.lane.b32.xlu0 %v8700_v39, %s8130_s28  ;;  %s11022_s28 = smov 7  }
 0x121   : > { %v974_v41 = vpop.permute.xlu1 %973 }
 0x122   : > { %v690_v40 = vpop.permute.xlu0 %689  ;;  %v1786_v42 = vld [vmem:[#allocation2 + $0x50] sm:$0xff]  ;;  %982 = vst.msk [vmem:[#allocation2 + $0x60] sm:$0xff] %vm933_vm3, %v974_v41 }
 0x123   : > { %697 = vst.msk [vmem:[#allocation2 + $0x68] sm:$0xff] %vm647_vm2, %v690_v40  ;;  %7422 = vmatprep.mubr.msk.f32.mxu0 %vm1859_vm6, %v1786_v42  ;;  %1023 = vrot.lane.b32.xlu1 %v8592_v60, %s11021_s17 }
 0x124   : > { %1021 = vrot.lane.b32.xlu0 %v8587_v59, %s11021_s17 }
 0x125   : > { %v1260_v44 = vpop.permute.xlu1 %1259  ;;  %v1787_v45 = vld [vmem:[#allocation2 + $0x58] sm:$0xff] }
 0x126   : > { %v976_v43 = vpop.permute.xlu0 %975  ;;  %1268 = vst.msk [vmem:[#allocation2 + $0x60] sm:$0xff] %vm1219_vm4, %v1260_v44  ;;  %7423 = vmatmul.mubr.msk.f32.gmra.mxu0 %vm1859_vm6, %v1787_v45 }
 0x127   : > { %983 = vst.msk [vmem:[#allocation2 + $0x68] sm:$0xff] %vm933_vm3, %v976_v43  ;;  %444 = vrot.lane.b32.xlu1 %v8345_v8, %s10967_s23  ;;  %s10969_s23 = smov 119  }
 0x128   : > { %1307 = vrot.lane.b32.xlu0 %v8600_v0, %s11022_s28 }
 0x129   : > { %v1262_v48 = vpop.permute.xlu1 %1261 }
 0x12a   : > { %v397_v46 = vpop.permute.xlu0 %396  ;;  %1269 = vst.msk [vmem:[#allocation2 + $0x68] sm:$0xff] %vm1219_vm4, %v1262_v48 }
 0x12b   : > { %403 = vst.msk [vmem:[#allocation2 + $0x70] sm:$0xff] %vm349_vm0, %v397_v46  ;;  %1593 = vrot.lane.b32.xlu1 %v8611_v3, %s11023_s16 }
 0x12c   : > { %1309 = vrot.lane.b32.xlu0 %v8553_v47, %s11022_s28 }
 0x12d   : > { %v405_v50 = vpop.permute.xlu1 %404 }
 0x12e   : > { %v1546_v49 = vpop.permute.xlu0 %1545  ;;  %413 = vst.msk [vmem:[#allocation2 + $0x78] sm:$0xff] %vm349_vm0, %v405_v50 }
 0x12f   : > { %1554 = vst.msk [vmem:[#allocation2 + $0x60] sm:$0xff] %vm1505_vm5, %v1546_v49  ;;  %730 = vrot.lane.b32.xlu1 %v8620_v9, %s11020_s26 }
 0x130   : > { %699 = vst.msk [vmem:[#allocation2 + $0x78] sm:$0xff] %vm647_vm2, %v8570_v52  ;;  %452 = vrot.lane.b32.xlu0 %v8327_v4, %s10969_s23  ;;  %s11024_s23 = smov 1  }
 0x131   : > { %v1548_v53 = vpop.permute.xlu1 %1547 }
 0x132   : > { %v692_v51 = vpop.permute.xlu0 %691  ;;  %1555 = vst.msk [vmem:[#allocation2 + $0x68] sm:$0xff] %vm1505_vm5, %v1548_v53 }
 0x133   : > { %698 = vst.msk [vmem:[#allocation2 + $0x70] sm:$0xff] %vm647_vm2, %v692_v51  ;;  %738 = vrot.lane.b32.xlu1 %v8570_v52, %s10971_s29  ;;  %s11025_s29 = smov 119   ;;  %v8870_v51 = vld [vmem:[%s10917_s2] ss:$0 sm:$0xff] }
 0x134   : > { %1595 = vrot.lane.b32.xlu0 %v8627_v12, %s11023_s16 }
 0x135   : > { %v986_v56 = vpop.permute.xlu1 %985 }
 0x136   : > { %v978_v54 = vpop.permute.xlu0 %977  ;;  %v1788_v57 = vld [vmem:[#allocation2 + $0x60] sm:$0xff]  ;;  %994 = vst.msk [vmem:[#allocation2 + $0x78] sm:$0xff] %vm933_vm3, %v986_v56 }
 0x137   : > { %984 = vst.msk [vmem:[#allocation2 + $0x70] sm:$0xff] %vm933_vm3, %v978_v54  ;;  %7425 = vmatprep.mubr.msk.f32.mxu0 %vm1859_vm6, %v1788_v57  ;;  %1033 = vrot.lane.b32.xlu1 %v8587_v59, %s11024_s23 }
 0x138   : > { %1025 = vrot.lane.b32.xlu0 %v8637_v16, %s11021_s17 }
 0x139   : > { %v407_v61 = vpop.permute.xlu1 %406  ;;  %v1789_v62 = vld [vmem:[#allocation2 + $0x68] sm:$0xff] }
 0x13a   : > { %v1264_v58 = vpop.permute.xlu0 %1263  ;;  %414 = vst.msk [vmem:[#allocation2 + $0x80] sm:$0xff] %vm349_vm0, %v407_v61  ;;  %7426 = vmatmul.mubr.msk.f32.gmra.mxu0 %vm1859_vm6, %v1789_v62 }
 0x13b   : > { %1270 = vst.msk [vmem:[#allocation2 + $0x70] sm:$0xff] %vm1219_vm4, %v1264_v58  ;;  %454 = vrot.lane.b32.xlu1 %v8338_v7, %s11025_s29 }
 0x13c   : > { %700 = vst.msk [vmem:[#allocation2 + $0x80] sm:$0xff] %vm647_vm2, %v8579_v55  ;;  %1311 = vrot.lane.b32.xlu0 %v8685_v34, %s11022_s28 }
 0x13d   : > { %v1550_v1 = vpop.permute.xlu1 %1549 }
 0x13e   : > { %v1272_v63 = vpop.permute.xlu0 %1271  ;;  %1556 = vst.msk [vmem:[#allocation2 + $0x70] sm:$0xff] %vm1505_vm5, %v1550_v1 }
 0x13f   : > { %1280 = vst.msk [vmem:[#allocation2 + $0x78] sm:$0xff] %vm1219_vm4, %v1272_v63  ;;  %1597 = vrot.lane.b32.xlu1 %v8700_v39, %s11023_s16 }
 0x140   : > { %1319 = vrot.lane.b32.xlu0 %v8600_v0, %s11026_s0 }
 0x141   : > { %v1558_v5 = vpop.permute.xlu1 %1557 }
 0x142   : > { %v409_v2 = vpop.permute.xlu0 %408  ;;  %1566 = vst.msk [vmem:[#allocation2 + $0x78] sm:$0xff] %vm1505_vm5, %v1558_v5 }
 0x143   : > { %415 = vst.msk [vmem:[#allocation2 + $0x88] sm:$0xff] %vm349_vm0, %v409_v2  ;;  %740 = vrot.lane.b32.xlu1 %v8579_v55, %s11027_s1 }
 0x144   : > { %701 = vst.msk [vmem:[#allocation2 + $0x88] sm:$0xff] %vm647_vm2, %v8620_v9  ;;  %456 = vrot.lane.b32.xlu0 %v8345_v8, %s11025_s29 }
 0x145   : > { %v990_v10 = vpop.permute.xlu1 %989  ;;  %v1790_v11 = vld [vmem:[#allocation2 + $0x70] sm:$0xff] }
 0x146   : > { %v988_v6 = vpop.permute.xlu0 %987  ;;  %996 = vst.msk [vmem:[#allocation2 + $0x88] sm:$0xff] %vm933_vm3, %v990_v10  ;;  %7428 = vmatprep.mubr.msk.f32.mxu0 %vm1859_vm6, %v1790_v11 }
 0x147   : > { %995 = vst.msk [vmem:[#allocation2 + $0x80] sm:$0xff] %vm933_vm3, %v988_v6  ;;  %742 = vrot.lane.b32.xlu1 %v8620_v9, %s11027_s1 }
 0x148   : > { %1605 = vrot.lane.b32.xlu0 %v8611_v3, %s11028_s5 }
 0x149   : > { %v417_v14 = vpop.permute.xlu1 %416  ;;  %v1791_v15 = vld [vmem:[#allocation2 + $0x78] sm:$0xff] }
 0x14a   : > { %v1274_v13 = vpop.permute.xlu0 %1273  ;;  %425 = vst.msk [vmem:[#allocation2 + $0x90] sm:$0xff] %vm349_vm0, %v417_v14  ;;  %7429 = vmatmul.mubr.msk.f32.gmra.mxu0 %vm1859_vm6, %v1791_v15 }
 0x14b   : > { %1281 = vst.msk [vmem:[#allocation2 + $0x80] sm:$0xff] %vm1219_vm4, %v1274_v13  ;;  %1037 = vrot.lane.b32.xlu1 %v8637_v16, %s11024_s23 }
 0x14c   : > { %1035 = vrot.lane.b32.xlu0 %v8592_v60, %s11024_s23 }
 0x14d   : > { %v1560_v20 = vpop.permute.xlu1 %1559 }
 0x14e   : > { %v1276_v19 = vpop.permute.xlu0 %1275  ;;  %1567 = vst.msk [vmem:[#allocation2 + $0x80] sm:$0xff] %vm1505_vm5, %v1560_v20 }
 0x14f   : > { %1282 = vst.msk [vmem:[#allocation2 + $0x88] sm:$0xff] %vm1219_vm4, %v1276_v19  ;;  %464 = vrot.lane.b32.xlu1 %v8327_v4, %s10974_s18 }
 0x150   : > { %1321 = vrot.lane.b32.xlu0 %v8553_v47, %s11026_s0 }
 0x151   : > { %v703_v22 = vpop.permute.xlu1 %702 }
 0x152   : > { %v419_v21 = vpop.permute.xlu0 %418  ;;  %711 = vst.msk [vmem:[#allocation2 + $0x90] sm:$0xff] %vm647_vm2, %v703_v22 }
 0x153   : > { %426 = vst.msk [vmem:[#allocation2 + $0x98] sm:$0xff] %vm349_vm0, %v419_v21  ;;  %1607 = vrot.lane.b32.xlu1 %v8627_v12, %s11028_s5 }
 0x154   : > { %1323 = vrot.lane.b32.xlu0 %v8685_v34, %s11026_s0 }
 0x155   : > { %v705_v24 = vpop.permute.xlu1 %704  ;;  %v1792_v25 = vld [vmem:[#allocation2 + $0x80] sm:$0xff] }
 0x156   : > { %v1562_v23 = vpop.permute.xlu0 %1561  ;;  %712 = vst.msk [vmem:[#allocation2 + $0x98] sm:$0xff] %vm647_vm2, %v705_v24  ;;  %7431 = vmatprep.mubr.msk.f32.mxu0 %vm1859_vm6, %v1792_v25 }
 0x157   : > { %1568 = vst.msk [vmem:[#allocation2 + $0x88] sm:$0xff] %vm1505_vm5, %v1562_v23  ;;  %750 = vrot.lane.b32.xlu1 %v8570_v52, %s11029_s11 }
 0x158   : > { %466 = vrot.lane.b32.xlu0 %v8338_v7, %s10974_s18  ;;  %s11030_s18 = smov 5  }
 0x159   : > { %v1000_v26 = vpop.permute.xlu1 %999 }
 0x15a   : > { %v998_v17 = vpop.permute.xlu0 %997  ;;  %1007 = vst.msk [vmem:[#allocation2 + $0x98] sm:$0xff] %vm933_vm3, %v1000_v26 }
 0x15b   : > { %1006 = vst.msk [vmem:[#allocation2 + $0x90] sm:$0xff] %vm933_vm3, %v998_v17  ;;  %752 = vrot.lane.b32.xlu1 %v8579_v55, %s11029_s11 }
 0x15c   : > { %1609 = vrot.lane.b32.xlu0 %v8700_v39, %s11028_s5  ;;  %s11032_s5 = smov 10  }
 0x15d   : > { %v421_v27 = vpop.permute.xlu1 %420 }
 0x15e   : > { %v1284_v18 = vpop.permute.xlu0 %1283  ;;  %v1793_v28 = vld [vmem:[#allocation2 + $0x88] sm:$0xff]  ;;  %427 = vst.msk [vmem:[#allocation2 + $0xa0] sm:$0xff] %vm349_vm0, %v421_v27 }
 0x15f   : > { %1292 = vst.msk [vmem:[#allocation2 + $0x90] sm:$0xff] %vm1219_vm4, %v1284_v18  ;;  %7432 = vmatmul.mubr.msk.f32.gmra.mxu0 %vm1859_vm6, %v1793_v28  ;;  %468 = vrot.lane.b32.xlu1 %v8345_v8, %s11031_s15 }
 0x160   : > { %1331 = vrot.lane.b32.xlu0 %v8600_v0, %s11030_s18 }
 0x161   : > { %v1570_v30 = vpop.permute.xlu1 %1569 }
 0x162   : > { %v1286_v29 = vpop.permute.xlu0 %1285  ;;  %1578 = vst.msk [vmem:[#allocation2 + $0x90] sm:$0xff] %vm1505_vm5, %v1570_v30 }
 0x163   : > { %1293 = vst.msk [vmem:[#allocation2 + $0x98] sm:$0xff] %vm1219_vm4, %v1286_v29  ;;  %1617 = vrot.lane.b32.xlu1 %v8611_v3, %s11032_s5 }
 0x164   : > { %1333 = vrot.lane.b32.xlu0 %v8553_v47, %s11030_s18 }
 0x165   : > { %v707_v32 = vpop.permute.xlu1 %706 }
 0x166   : > { %v429_v31 = vpop.permute.xlu0 %428  ;;  %713 = vst.msk [vmem:[#allocation2 + $0xa0] sm:$0xff] %vm647_vm2, %v707_v32 }
 0x167   : > { %437 = vst.msk [vmem:[#allocation2 + $0xa8] sm:$0xff] %vm349_vm0, %v429_v31  ;;  %754 = vrot.lane.b32.xlu1 %v8620_v9, %s11029_s11 }
 0x168   : > { %476 = vrot.lane.b32.xlu0 %v8327_v4, %s10980_s20  ;;  %s11034_s20 = smov 127  }
 0x169   : > { %v715_v35 = vpop.permute.xlu1 %714  ;;  %v1794_v36 = vld [vmem:[#allocation2 + $0x90] sm:$0xff] }
 0x16a   : > { %v1572_v33 = vpop.permute.xlu0 %1571  ;;  %723 = vst.msk [vmem:[#allocation2 + $0xa8] sm:$0xff] %vm647_vm2, %v715_v35  ;;  %7434 = vmatprep.mubr.msk.f32.mxu0 %vm1859_vm6, %v1794_v36 }
 0x16b   : > { %1579 = vst.msk [vmem:[#allocation2 + $0x98] sm:$0xff] %vm1505_vm5, %v1572_v33  ;;  %762 = vrot.lane.b32.xlu1 %v8570_v52, %s11033_s30 }
 0x16c   : > { %1619 = vrot.lane.b32.xlu0 %v8627_v12, %s11032_s5 }
 0x16d   : > { %v1010_v38 = vpop.permute.xlu1 %1009 }
 0x16e   : > { %v1002_v37 = vpop.permute.xlu0 %1001  ;;  %1018 = vst.msk [vmem:[#allocation2 + $0xa8] sm:$0xff] %vm933_vm3, %v1010_v38 }
 0x16f   : > { %1008 = vst.msk [vmem:[#allocation2 + $0xa0] sm:$0xff] %vm933_vm3, %v1002_v37  ;;  %1335 = vrot.lane.b32.xlu1 %v8685_v34, %s11030_s18 }
 0x170   : > { %1048 = vrot.lane.b32.xlu0 %v8587_v59, %s11034_s20 }
 0x171   : > { %v431_v41 = vpop.permute.xlu1 %430 }
 0x172   : > { %v1288_v40 = vpop.permute.xlu0 %1287  ;;  %v1795_v42 = vld [vmem:[#allocation2 + $0x98] sm:$0xff]  ;;  %438 = vst.msk [vmem:[#allocation2 + $0xb0] sm:$0xff] %vm349_vm0, %v431_v41 }
 0x173   : > { %1294 = vst.msk [vmem:[#allocation2 + $0xa0] sm:$0xff] %vm1219_vm4, %v1288_v40  ;;  %7435 = vmatmul.mubr.msk.f32.gmra.mxu0 %vm1859_vm6, %v1795_v42  ;;  %1343 = vrot.lane.b32.xlu1 %v8600_v0, %s11014_s21 }
 0x174   : > { %478 = vrot.lane.b32.xlu0 %v8338_v7, %s11035_s12 }
 0x175   : > { %v1574_v44 = vpop.permute.xlu1 %1573 }
 0x176   : > { %v1296_v43 = vpop.permute.xlu0 %1295  ;;  %1580 = vst.msk [vmem:[#allocation2 + $0xa0] sm:$0xff] %vm1505_vm5, %v1574_v44 }
 0x177   : > { %1304 = vst.msk [vmem:[#allocation2 + $0xa8] sm:$0xff] %vm1219_vm4, %v1296_v43  ;;  %480 = vrot.lane.b32.xlu1 %v8345_v8, %s11035_s12 }
 0x178   : > { %1621 = vrot.lane.b32.xlu0 %v8700_v39, %s11032_s5 }
 0x179   : > { %v717_v46 = vpop.permute.xlu1 %716 }
 0x17a   : > { %v433_v45 = vpop.permute.xlu0 %432  ;;  %724 = vst.msk [vmem:[#allocation2 + $0xb0] sm:$0xff] %vm647_vm2, %v717_v46 }
 0x17b   : > { %439 = vst.msk [vmem:[#allocation2 + $0xb8] sm:$0xff] %vm349_vm0, %v433_v45  ;;  %1629 = vrot.lane.b32.xlu1 %v8611_v3, %s11015_s14 }
 0x17c   : > { %764 = vrot.lane.b32.xlu0 %v8579_v55, %s11033_s30 }
 0x17d   : > { %v719_v49 = vpop.permute.xlu1 %718  ;;  %v1796_v50 = vld [vmem:[#allocation2 + $0xa0] sm:$0xff] }
 0x17e   : > { %v1582_v48 = vpop.permute.xlu0 %1581  ;;  %725 = vst.msk [vmem:[#allocation2 + $0xb8] sm:$0xff] %vm647_vm2, %v719_v49  ;;  %7437 = vmatprep.mubr.msk.f32.mxu0 %vm1859_vm6, %v1796_v50 }
 0x17f   : > { %1590 = vst.msk [vmem:[#allocation2 + $0xa8] sm:$0xff] %vm1505_vm5, %v1582_v48  ;;  %1050 = vrot.lane.b32.xlu1 %v8592_v60, %s11034_s20 }
 0x180   : > { %766 = vrot.lane.b32.xlu0 %v8620_v9, %s11033_s30 }
 0x181   : > { %v1014_v54 = vpop.permute.xlu1 %1013 }
 0x182   : > { %v1012_v53 = vpop.permute.xlu0 %1011  ;;  %1020 = vst.msk [vmem:[#allocation2 + $0xb8] sm:$0xff] %vm933_vm3, %v1014_v54  ;;  %v7409_v56 = vpop.f32.mrf.mxu0 }
 0x183   : > { %1019 = vst.msk [vmem:[#allocation2 + $0xb0] sm:$0xff] %vm933_vm3, %v1012_v53  ;;  %v2152_v57 = vadd.f32 %v7409_v56, %v8870_v51  ;;  %1345 = vrot.lane.b32.xlu1 %v8553_v47, %s11014_s21 }
 0x184   : > { %1052 = vrot.lane.b32.xlu0 %v8637_v16, %s11034_s20  ;;  %v2146_v58 = vpop.f32.mrf.mxu0 }
 0x185   : > { %2507 = vst.msk [vmem:[#allocation3 + $0x8] sm:$0xff] %vm2505_vm7, %v2152_v57  ;;  %v2147_v61 = vadd.f32 %v8870_v51, %v2146_v58  ;;  %v441_v63 = vpop.permute.xlu1 %440 }
 0x186   : > { %v1298_v62 = vpop.permute.xlu0 %1297  ;;  %v1797_v1 = vld [vmem:[#allocation2 + $0xa8] sm:$0xff]  ;;  %449 = vst.msk [vmem:[#allocation2 + $0xc0] sm:$0xff] %vm349_vm0, %v441_v63 }
 0x187   : > { %1305 = vst.msk [vmem:[#allocation2 + $0xb0] sm:$0xff] %vm1219_vm4, %v1298_v62  ;;  %7438 = vmatmul.mubr.msk.f32.gmra.mxu0 %vm1859_vm6, %v1797_v1  ;;  %1347 = vrot.lane.b32.xlu1 %v8685_v34, %s11014_s21 }
 0x188   : > { %2506 = vst.msk [vmem:[#allocation3] sm:$0xff] %vm2505_vm7, %v2147_v61  ;;  %488 = vrot.lane.b32.xlu0 %v8327_v4, %s10986_s9 }
 0x189   : > { %v1584_v5 = vpop.permute.xlu1 %1583 }
 0x18a   : > { %v1300_v2 = vpop.permute.xlu0 %1299  ;;  %1591 = vst.msk [vmem:[#allocation2 + $0xb0] sm:$0xff] %vm1505_vm5, %v1584_v5 }
 0x18b   : > { %1306 = vst.msk [vmem:[#allocation2 + $0xb8] sm:$0xff] %vm1219_vm4, %v1300_v2  ;;  %490 = vrot.lane.b32.xlu1 %v8338_v7, %s10986_s9 }
 0x18c   : > { %1631 = vrot.lane.b32.xlu0 %v8627_v12, %s11015_s14 }
 0x18d   : > { %v727_v10 = vpop.permute.xlu1 %726 }
 0x18e   : > { %v443_v6 = vpop.permute.xlu0 %442  ;;  %735 = vst.msk [vmem:[#allocation2 + $0xc0] sm:$0xff] %vm647_vm2, %v727_v10 }
 0x18f   : > { %450 = vst.msk [vmem:[#allocation2 + $0xc8] sm:$0xff] %vm349_vm0, %v443_v6  ;;  %1633 = vrot.lane.b32.xlu1 %v8700_v39, %s11015_s14  ;;  %s10992_s14 = smov 115   ;;  %v2578_v48 = vld [vmem:[#allocation3] ss:$2 sm:$0xff]  ;;  %v2582_v49 = vld [vmem:[#allocation3 + $0x1] ss:$2 sm:$0xff] }
 0x190   : > { %774 = vrot.lane.b32.xlu0 %v8570_v52, %s11036_s19  ;;  %v2593_v63 = vmax.f32 %v2578_v48, %v2582_v49 }
 0x191   : > { %v729_v13 = vpop.permute.xlu1 %728  ;;  %v1798_v14 = vld [vmem:[#allocation2 + $0xb0] sm:$0xff] }
 0x192   : > { %v1586_v11 = vpop.permute.xlu0 %1585  ;;  %736 = vst.msk [vmem:[#allocation2 + $0xc8] sm:$0xff] %vm647_vm2, %v729_v13  ;;  %7440 = vmatprep.mubr.msk.f32.mxu0 %vm1859_vm6, %v1798_v14 }
 0x193   : > { %1592 = vst.msk [vmem:[#allocation2 + $0xb8] sm:$0xff] %vm1505_vm5, %v1586_v11  ;;  %1060 = vrot.lane.b32.xlu1 %v8587_v59, %s11017_s27 }
 0x194   : > { %776 = vrot.lane.b32.xlu0 %v8579_v55, %s11036_s19 }
 0x195   : > { %v1024_v19 = vpop.permute.xlu1 %1023 }
 0x196   : > { %v1022_v15 = vpop.permute.xlu0 %1021  ;;  %1031 = vst.msk [vmem:[#allocation2 + $0xc8] sm:$0xff] %vm933_vm3, %v1024_v19  ;;  %v7412_v20 = vpop.f32.mrf.mxu0 }
 0x197   : > { %1030 = vst.msk [vmem:[#allocation2 + $0xc0] sm:$0xff] %vm933_vm3, %v1022_v15  ;;  %v2162_v21 = vadd.f32 %v7412_v20, %v8870_v51  ;;  %1355 = vrot.lane.b32.xlu1 %v8600_v0, %s11018_s25 }
 0x198   : > { %1062 = vrot.lane.b32.xlu0 %v8592_v60, %s11017_s27  ;;  %v2156_v22 = vpop.f32.mrf.mxu0 }
 0x199   : > { %2509 = vst.msk [vmem:[#allocation3 + $0x18] sm:$0xff] %vm2505_vm7, %v2162_v21  ;;  %v2157_v23 = vadd.f32 %v8870_v51, %v2156_v22  ;;  %v445_v25 = vpop.permute.xlu1 %444 }
 0x19a   : > { %v1308_v24 = vpop.permute.xlu0 %1307  ;;  %v1799_v17 = vld [vmem:[#allocation2 + $0xb8] sm:$0xff]  ;;  %451 = vst.msk [vmem:[#allocation2 + $0xd0] sm:$0xff] %vm349_vm0, %v445_v25 }
 0x19b   : > { %1316 = vst.msk [vmem:[#allocation2 + $0xc0] sm:$0xff] %vm1219_vm4, %v1308_v24  ;;  %7441 = vmatmul.mubr.msk.f32.gmra.mxu0 %vm1859_vm6, %v1799_v17  ;;  %1357 = vrot.lane.b32.xlu1 %v8553_v47, %s11018_s25 }
 0x19c   : > { %2508 = vst.msk [vmem:[#allocation3 + $0x10] sm:$0xff] %vm2505_vm7, %v2157_v23  ;;  %492 = vrot.lane.b32.xlu0 %v8345_v8, %s10986_s9  ;;  %s11037_s9 = smov 120  }
 0x19d   : > { %v1594_v18 = vpop.permute.xlu1 %1593 }
 0x19e   : > { %v1310_v26 = vpop.permute.xlu0 %1309  ;;  %1602 = vst.msk [vmem:[#allocation2 + $0xc0] sm:$0xff] %vm1505_vm5, %v1594_v18 }
 0x19f   : > { %1317 = vst.msk [vmem:[#allocation2 + $0xc8] sm:$0xff] %vm1219_vm4, %v1310_v26  ;;  %500 = vrot.lane.b32.xlu1 %v8327_v4, %s10992_s14 }
 0x1a0   : > { %1641 = vrot.lane.b32.xlu0 %v8611_v3, %s11019_s24 }
 0x1a1   : > { %v731_v28 = vpop.permute.xlu1 %730 }
 0x1a2   : > { %v453_v27 = vpop.permute.xlu0 %452  ;;  %737 = vst.msk [vmem:[#allocation2 + $0xd0] sm:$0xff] %vm647_vm2, %v731_v28 }
 0x1a3   : > { %461 = vst.msk [vmem:[#allocation2 + $0xd8] sm:$0xff] %vm349_vm0, %v453_v27  ;;  %1643 = vrot.lane.b32.xlu1 %v8627_v12, %s11019_s24  ;;  %v2580_v45 = vld [vmem:[#allocation3 + $0x10] ss:$2 sm:$0xf] }
 0x1a4   : > { %778 = vrot.lane.b32.xlu0 %v8620_v9, %s11036_s19  ;;  %v2584_v46 = vld [vmem:[#allocation3 + $0x11] ss:$2 sm:$0xf] }
 0x1a5   : > { %v739_v30 = vpop.permute.xlu1 %738  ;;  %v1800_v31 = vld [vmem:[#allocation2 + $0xc0] sm:$0xff]  ;;  %v2594_v54 = vmax.f32 %v2580_v45, %v2584_v46 }
 0x1a6   : > { %v1596_v29 = vpop.permute.xlu0 %1595  ;;  %747 = vst.msk [vmem:[#allocation2 + $0xd8] sm:$0xff] %vm647_vm2, %v739_v30  ;;  %7443 = vmatprep.mubr.msk.f32.mxu0 %vm1859_vm6, %v1800_v31 }
 0x1a7   : > { %1603 = vst.msk [vmem:[#allocation2 + $0xc8] sm:$0xff] %vm1505_vm5, %v1596_v29  ;;  %1064 = vrot.lane.b32.xlu1 %v8637_v16, %s11017_s27 }
 0x1a8   : > { %786 = vrot.lane.b32.xlu0 %v8570_v52, %s11037_s9 }
 0x1a9   : > { %v1034_v33 = vpop.permute.xlu1 %1033 }
 0x1aa   : > { %v1026_v32 = vpop.permute.xlu0 %1025  ;;  %1042 = vst.msk [vmem:[#allocation2 + $0xd8] sm:$0xff] %vm933_vm3, %v1034_v33  ;;  %v7415_v35 = vpop.f32.mrf.mxu0 }
 0x1ab   : > { %1032 = vst.msk [vmem:[#allocation2 + $0xd0] sm:$0xff] %vm933_vm3, %v1026_v32  ;;  %v2172_v36 = vadd.f32 %v7415_v35, %v8870_v51  ;;  %1359 = vrot.lane.b32.xlu1 %v8685_v34, %s11018_s25 }
 0x1ac   : > { %1072 = vrot.lane.b32.xlu0 %v8587_v59, %s11020_s26  ;;  %v2166_v37 = vpop.f32.mrf.mxu0 }
 0x1ad   : > { %2511 = vst.msk [vmem:[#allocation3 + $0x28] sm:$0xff] %vm2505_vm7, %v2172_v36  ;;  %v2167_v38 = vadd.f32 %v8870_v51, %v2166_v37  ;;  %v455_v41 = vpop.permute.xlu1 %454 }
 0x1ae   : > { %v1312_v40 = vpop.permute.xlu0 %1311  ;;  %v1801_v42 = vld [vmem:[#allocation2 + $0xc8] sm:$0xff]  ;;  %462 = vst.msk [vmem:[#allocation2 + $0xe0] sm:$0xff] %vm349_vm0, %v455_v41 }
 0x1af   : > { %1318 = vst.msk [vmem:[#allocation2 + $0xd0] sm:$0xff] %vm1219_vm4, %v1312_v40  ;;  %7444 = vmatmul.mubr.msk.f32.gmra.mxu0 %vm1859_vm6, %v1801_v42  ;;  %1367 = vrot.lane.b32.xlu1 %v8600_v0, %s11021_s17 }
 0x1b0   : > { %2510 = vst.msk [vmem:[#allocation3 + $0x20] sm:$0xff] %vm2505_vm7, %v2167_v38  ;;  %502 = vrot.lane.b32.xlu0 %v8338_v7, %s10992_s14 }
 0x1b1   : > { %v1598_v44 = vpop.permute.xlu1 %1597 }
 0x1b2   : > { %v1320_v43 = vpop.permute.xlu0 %1319  ;;  %1604 = vst.msk [vmem:[#allocation2 + $0xd0] sm:$0xff] %vm1505_vm5, %v1598_v44 }
 0x1b3   : > { %1328 = vst.msk [vmem:[#allocation2 + $0xd8] sm:$0xff] %vm1219_vm4, %v1320_v43  ;;  %504 = vrot.lane.b32.xlu1 %v8345_v8, %s10992_s14 }
 0x1b4   : > { %1645 = vrot.lane.b32.xlu0 %v8700_v39, %s11019_s24  ;;  %v2588_v50 = vld [vmem:[#allocation3 + $0x28] ss:$2 sm:$0xf]  ;;  %v2592_v53 = vld [vmem:[#allocation3 + $0x29] ss:$2 sm:$0xf] }
 0x1b5   : > { %v2596_v56 = vmax.f32 %v2588_v50, %v2592_v53  ;;  %v741_v58 = vpop.permute.xlu1 %740  ;;  %s8151_s24 = smov 114  }
 0x1b6   : > { %v457_v57 = vpop.permute.xlu0 %456  ;;  %748 = vst.msk [vmem:[#allocation2 + $0xe0] sm:$0xff] %vm647_vm2, %v741_v58 }
 0x1b7   : > { %v2586_v61 = vld [vmem:[#allocation3 + $0x18] ss:$2 sm:$0xff]  ;;  %v2590_v62 = vld [vmem:[#allocation3 + $0x19] ss:$2 sm:$0xff]  ;;  %463 = vst.msk [vmem:[#allocation2 + $0xe8] sm:$0xff] %vm349_vm0, %v457_v57  ;;  %1653 = vrot.lane.b32.xlu1 %v8611_v3, %s11022_s28  ;;  %v2598_v2 = vmax.f32 %v2594_v54, %v2596_v56 }
 0x1b8   : > { %v2595_v1 = vmax.f32 %v2586_v61, %v2590_v62  ;;  %788 = vrot.lane.b32.xlu0 %v8579_v55, %s11037_s9 }
 0x1b9   : > { %v743_v6 = vpop.permute.xlu1 %742  ;;  %v1802_v10 = vld [vmem:[#allocation2 + $0xd0] sm:$0xff]  ;;  %2601 = vst.msk [vmem:[#allocation4 + $0x8] sm:$0xf] %vm2600_vm8, %v2598_v2 }
 0x1ba   : > { %v1606_v5 = vpop.permute.xlu0 %1605  ;;  %v2597_v11 = vmax.f32 %v2593_v63, %v2595_v1  ;;  %749 = vst.msk [vmem:[#allocation2 + $0xe8] sm:$0xff] %vm647_vm2, %v743_v6  ;;  %7446 = vmatprep.mubr.msk.f32.mxu0 %vm1859_vm6, %v1802_v10 }
 0x1bb   : > { %1614 = vst.msk [vmem:[#allocation2 + $0xd8] sm:$0xff] %vm1505_vm5, %v1606_v5  ;;  %1074 = vrot.lane.b32.xlu1 %v8592_v60, %s11020_s26 }
 0x1bc   : > { %790 = vrot.lane.b32.xlu0 %v8620_v9, %s11037_s9  ;;  %2599 = vst.msk [vmem:[#allocation4] sm:$0xff] %vm2505_vm7, %v2597_v11 }
 0x1bd   : > { %v1038_v14 = vpop.permute.xlu1 %1037 }
 0x1be   : > { %v1036_v13 = vpop.permute.xlu0 %1035  ;;  %1044 = vst.msk [vmem:[#allocation2 + $0xe8] sm:$0xff] %vm933_vm3, %v1038_v14  ;;  %v7418_v15 = vpop.f32.mrf.mxu0 }
 0x1bf   : > { %1043 = vst.msk [vmem:[#allocation2 + $0xe0] sm:$0xff] %vm933_vm3, %v1036_v13  ;;  %v2182_v19 = vadd.f32 %v7418_v15, %v8870_v51  ;;  %1369 = vrot.lane.b32.xlu1 %v8553_v47, %s11021_s17 }
 0x1c0   : > { %1076 = vrot.lane.b32.xlu0 %v8637_v16, %s11020_s26  ;;  %v2176_v20 = vpop.f32.mrf.mxu0 }
 0x1c1   : > { %2513 = vst.msk [vmem:[#allocation3 + $0x38] sm:$0xff] %vm2505_vm7, %v2182_v19  ;;  %v2177_v21 = vadd.f32 %v8870_v51, %v2176_v20  ;;  %v465_v23 = vpop.permute.xlu1 %464 }
 0x1c2   : > { %v1322_v22 = vpop.permute.xlu0 %1321  ;;  %v1803_v24 = vld [vmem:[#allocation2 + $0xd8] sm:$0xff]  ;;  %473 = vst.msk [vmem:[#allocation2 + $0xf0] sm:$0xff] %vm349_vm0, %v465_v23 }
 0x1c3   : > { %1329 = vst.msk [vmem:[#allocation2 + $0xe0] sm:$0xff] %vm1219_vm4, %v1322_v22  ;;  %7447 = vmatmul.mubr.msk.f32.gmra.mxu0 %vm1859_vm6, %v1803_v24  ;;  %1371 = vrot.lane.b32.xlu1 %v8685_v34, %s11021_s17  ;;  %v2866_v25 = vld [vmem:[#allocation4] sm:$0xff] }
 0x1c4   : > { %2512 = vst.msk [vmem:[#allocation3 + $0x30] sm:$0xff] %vm2505_vm7, %v2177_v21  ;;  %512 = vrot.lane.b32.xlu0 %v8327_v4, %s8151_s24  ;;  %2867 = vst.msk [vmem:[#allocation5] sm:$0xff] %vm2505_vm7, %v2866_v25  ;;  %v9088_v22 = vld [vmem:[%s8308_s22 + $0x4] sm:$0xff] }
 0x1c5   : > { %v1608_v26 = vpop.permute.xlu1 %1607 }
 0x1c6   : > { %v1324_v17 = vpop.permute.xlu0 %1323  ;;  %1615 = vst.msk [vmem:[#allocation2 + $0xe0] sm:$0xff] %vm1505_vm5, %v1608_v26 }
 0x1c7   : > { %1330 = vst.msk [vmem:[#allocation2 + $0xe8] sm:$0xff] %vm1219_vm4, %v1324_v17  ;;  %514 = vrot.lane.b32.xlu1 %v8338_v7, %s8151_s24 }
 0x1c8   : > { %1655 = vrot.lane.b32.xlu0 %v8627_v12, %s11022_s28 }
 0x1c9   : > { %v751_v27 = vpop.permute.xlu1 %750 }
 0x1ca   : > { %v467_v18 = vpop.permute.xlu0 %466  ;;  %759 = vst.msk [vmem:[#allocation2 + $0xf0] sm:$0xff] %vm647_vm2, %v751_v27 }
 0x1cb   : > { %474 = vst.msk [vmem:[#allocation2 + $0xf8] sm:$0xff] %vm349_vm0, %v467_v18  ;;  %1657 = vrot.lane.b32.xlu1 %v8700_v39, %s11022_s28  ;;  %s8152_s28 = smov 113   ;;  %v2603_v63 = vld [vmem:[#allocation3 + $0x30] ss:$2 sm:$0xff]  ;;  %v2607_v1 = vld [vmem:[#allocation3 + $0x31] ss:$2 sm:$0xff] }
 0x1cc   : > { %1045 = vst.msk [vmem:[#allocation2 + $0xf0] sm:$0xff] %vm933_vm3, %v8587_v59  ;;  %798 = vrot.lane.b32.xlu0 %v8570_v52, %s11025_s29  ;;  %v2618_v20 = vmax.f32 %v2603_v63, %v2607_v1 }
 0x1cd   : > { %v753_v29 = vpop.permute.xlu1 %752  ;;  %v1804_v30 = vld [vmem:[#allocation2 + $0xe0] sm:$0xff] }
 0x1ce   : > { %v1610_v28 = vpop.permute.xlu0 %1609  ;;  %760 = vst.msk [vmem:[#allocation2 + $0xf8] sm:$0xff] %vm647_vm2, %v753_v29  ;;  %7449 = vmatprep.mubr.msk.f32.mxu0 %vm1859_vm6, %v1804_v30  ;;  %v9109_v30 = vld [vmem:[%s8308_s22 + $0xc] sm:$0xff] }
 0x1cf   : > { %1616 = vst.msk [vmem:[#allocation2 + $0xe8] sm:$0xff] %vm1505_vm5, %v1610_v28  ;;  %1084 = vrot.lane.b32.xlu1 %v8587_v59, %s11027_s1 }
 0x1d0   : > { %1046 = vst.msk [vmem:[#allocation2 + $0xf8] sm:$0xff] %vm933_vm3, %v8592_v60  ;;  %800 = vrot.lane.b32.xlu0 %v8579_v55, %s11025_s29 }
 0x1d1   : > { %v469_v32 = vpop.permute.xlu1 %468 }
 0x1d2   : > { %v1332_v31 = vpop.permute.xlu0 %1331  ;;  %475 = vst.msk [vmem:[#allocation2 + $0x100] sm:$0xff] %vm349_vm0, %v469_v32  ;;  %v7421_v33 = vpop.f32.mrf.mxu0 }
 0x1d3   : > { %1340 = vst.msk [vmem:[#allocation2 + $0xf0] sm:$0xff] %vm1219_vm4, %v1332_v31  ;;  %v2192_v35 = vadd.f32 %v7421_v33, %v8870_v51  ;;  %1379 = vrot.lane.b32.xlu1 %v8600_v0, %s11024_s23 }
 0x1d4   : > { %1086 = vrot.lane.b32.xlu0 %v8592_v60, %s11027_s1  ;;  %v2186_v36 = vpop.f32.mrf.mxu0 }
 0x1d5   : > { %2515 = vst.msk [vmem:[#allocation3 + $0x48] sm:$0xff] %vm2505_vm7, %v2192_v35  ;;  %v2187_v37 = vadd.f32 %v8870_v51, %v2186_v36  ;;  %v1618_v40 = vpop.permute.xlu1 %1617 }
 0x1d6   : > { %v1334_v38 = vpop.permute.xlu0 %1333  ;;  %v1805_v41 = vld [vmem:[#allocation2 + $0xe8] sm:$0xff]  ;;  %1626 = vst.msk [vmem:[#allocation2 + $0xf0] sm:$0xff] %vm1505_vm5, %v1618_v40 }
 0x1d7   : > { %1341 = vst.msk [vmem:[#allocation2 + $0xf8] sm:$0xff] %vm1219_vm4, %v1334_v38  ;;  %7450 = vmatmul.mubr.msk.f32.gmra.mxu0 %vm1859_vm6, %v1805_v41  ;;  %1381 = vrot.lane.b32.xlu1 %v8553_v47, %s11024_s23 }
 0x1d8   : > { %2514 = vst.msk [vmem:[#allocation3 + $0x40] sm:$0xff] %vm2505_vm7, %v2187_v37  ;;  %516 = vrot.lane.b32.xlu0 %v8345_v8, %s8151_s24 }
 0x1d9   : > { %v755_v42 = vpop.permute.xlu1 %754 }
 0x1da   : > { %v477_v0 = vpop.permute.xlu0 %476  ;;  %761 = vst.msk [vmem:[#allocation2 + $0x100] sm:$0xff] %vm647_vm2, %v755_v42 }
 0x1db   : > { %485 = vst.msk [vmem:[#allocation2 + $0x108] sm:$0xff] %vm349_vm0, %v477_v0  ;;  %524 = vrot.lane.b32.xlu1 %v8327_v4, %s8152_s28 }
 0x1dc   : > { %1047 = vst.msk [vmem:[#allocation2 + $0x100] sm:$0xff] %vm933_vm3, %v8637_v16  ;;  %1665 = vrot.lane.b32.xlu0 %v8611_v3, %s11026_s0 }
 0x1dd   : > { %v763_v44 = vpop.permute.xlu1 %762  ;;  %v1806_v45 = vld [vmem:[#allocation2 + $0xf0] sm:$0xff] }
 0x1de   : > { %v1620_v43 = vpop.permute.xlu0 %1619  ;;  %771 = vst.msk [vmem:[#allocation2 + $0x108] sm:$0xff] %vm647_vm2, %v763_v44  ;;  %7452 = vmatprep.mubr.msk.f32.mxu0 %vm1859_vm6, %v1806_v45 }
 0x1df   : > { %1627 = vst.msk [vmem:[#allocation2 + $0xf8] sm:$0xff] %vm1505_vm5, %v1620_v43  ;;  %1667 = vrot.lane.b32.xlu1 %v8627_v12, %s11026_s0  ;;  %v2605_v61 = vld [vmem:[#allocation3 + $0x40] ss:$2 sm:$0xf] }
 0x1e0   : > { %802 = vrot.lane.b32.xlu0 %v8620_v9, %s11025_s29  ;;  %v2609_v62 = vld [vmem:[#allocation3 + $0x41] ss:$2 sm:$0xf] }
 0x1e1   : > { %v1336_v3 = vpop.permute.xlu1 %1335  ;;  %v2619_v6 = vmax.f32 %v2605_v61, %v2609_v62 }
 0x1e2   : > { %v1049_v47 = vpop.permute.xlu0 %1048  ;;  %1342 = vst.msk [vmem:[#allocation2 + $0x100] sm:$0xff] %vm1219_vm4, %v1336_v3 }
 0x1e3   : > { %1057 = vst.msk [vmem:[#allocation2 + $0x108] sm:$0xff] %vm933_vm3, %v1049_v47  ;;  %1088 = vrot.lane.b32.xlu1 %v8637_v16, %s11027_s1  ;;  %v9144_v47 = vld [vmem:[%s8308_s22 + $0x3] sm:$0xff] }
 0x1e4   : > { %810 = vrot.lane.b32.xlu0 %v8570_v52, %s11031_s15 }
 0x1e5   : > { %v1344_v48 = vpop.permute.xlu1 %1343 }
 0x1e6   : > { %v479_v46 = vpop.permute.xlu0 %478  ;;  %v1807_v49 = vld [vmem:[#allocation2 + $0xf8] sm:$0xff]  ;;  %1352 = vst.msk [vmem:[#allocation2 + $0x108] sm:$0xff] %vm1219_vm4, %v1344_v48  ;;  %v7424_v12 = vpop.f32.mrf.mxu0 }
 0x1e7   : > { %486 = vst.msk [vmem:[#allocation2 + $0x110] sm:$0xff] %vm349_vm0, %v479_v46  ;;  %7453 = vmatmul.mubr.msk.f32.gmra.mxu0 %vm1859_vm6, %v1807_v49  ;;  %v2202_v50 = vadd.f32 %v7424_v12, %v8870_v51  ;;  %1383 = vrot.lane.b32.xlu1 %v8685_v34, %s11024_s23  ;;  %v9156_v12 = vld [vmem:[%s8308_s22 + $0xb] sm:$0xff] }
 0x1e8   : > { %1096 = vrot.lane.b32.xlu0 %v8587_v59, %s11029_s11  ;;  %v2196_v53 = vpop.f32.mrf.mxu0 }
 0x1e9   : > { %2517 = vst.msk [vmem:[#allocation3 + $0x58] sm:$0xff] %vm2505_vm7, %v2202_v50  ;;  %v2197_v54 = vadd.f32 %v8870_v51, %v2196_v53  ;;  %v481_v57 = vpop.permute.xlu1 %480 }
 0x1ea   : > { %v1622_v56 = vpop.permute.xlu0 %1621  ;;  %487 = vst.msk [vmem:[#allocation2 + $0x118] sm:$0xff] %vm349_vm0, %v481_v57 }
 0x1eb   : > { %1628 = vst.msk [vmem:[#allocation2 + $0x100] sm:$0xff] %vm1505_vm5, %v1622_v56  ;;  %1669 = vrot.lane.b32.xlu1 %v8700_v39, %s11026_s0  ;;  %s10988_s0 = smov 112  }
 0x1ec   : > { %2516 = vst.msk [vmem:[#allocation3 + $0x50] sm:$0xff] %vm2505_vm7, %v2197_v54  ;;  %526 = vrot.lane.b32.xlu0 %v8338_v7, %s8152_s28 }
 0x1ed   : > { %v1630_v58 = vpop.permute.xlu1 %1629 }
 0x1ee   : > { %v765_v34 = vpop.permute.xlu0 %764  ;;  %1638 = vst.msk [vmem:[#allocation2 + $0x108] sm:$0xff] %vm1505_vm5, %v1630_v58 }
 0x1ef   : > { %772 = vst.msk [vmem:[#allocation2 + $0x110] sm:$0xff] %vm647_vm2, %v765_v34  ;;  %812 = vrot.lane.b32.xlu1 %v8579_v55, %s11031_s15 }
 0x1f0   : > { %528 = vrot.lane.b32.xlu0 %v8345_v8, %s8152_s28  ;;  %v2613_v2 = vld [vmem:[#allocation3 + $0x58] ss:$2 sm:$0xf]  ;;  %v2617_v5 = vld [vmem:[#allocation3 + $0x59] ss:$2 sm:$0xf] }
 0x1f1   : > { %v2621_v10 = vmax.f32 %v2613_v2, %v2617_v5  ;;  %v1051_v13 = vpop.permute.xlu1 %1050  ;;  %v9186_v5 = vld [vmem:[%s8308_s22 + $0x13] sm:$0xff] }
 0x1f2   : > { %v767_v11 = vpop.permute.xlu0 %766  ;;  %v1808_v14 = vld [vmem:[#allocation2 + $0x100] sm:$0xff]  ;;  %1058 = vst.msk [vmem:[#allocation2 + $0x110] sm:$0xff] %vm933_vm3, %v1051_v13 }
 0x1f3   : > { %v2611_v15 = vld [vmem:[#allocation3 + $0x48] ss:$2 sm:$0xff]  ;;  %v2615_v19 = vld [vmem:[#allocation3 + $0x49] ss:$2 sm:$0xff]  ;;  %773 = vst.msk [vmem:[#allocation2 + $0x118] sm:$0xff] %vm647_vm2, %v767_v11  ;;  %7455 = vmatprep.mubr.msk.f32.mxu0 %vm1859_vm6, %v1808_v14  ;;  %814 = vrot.lane.b32.xlu1 %v8620_v9, %s11031_s15  ;;  %v2623_v23 = vmax.f32 %v2619_v6, %v2621_v10 }
 0x1f4   : > { %v2620_v21 = vmax.f32 %v2611_v15, %v2615_v19  ;;  %1677 = vrot.lane.b32.xlu0 %v9088_v22, %s11030_s18  ;;  %v9200_v14 = vld [vmem:[%s8308_s22 + $0x14] sm:$0xff] }
 0x1f5   : > { %v1346_v25 = vpop.permute.xlu1 %1345  ;;  %v1809_v17 = vld [vmem:[#allocation2 + $0x108] sm:$0xff]  ;;  %2625 = vst.msk [vmem:[#allocation4 + $0x14] sm:$0xf] %vm2600_vm8, %v2623_v23 }
 0x1f6   : > { %v1053_v24 = vpop.permute.xlu0 %1052  ;;  %v2622_v26 = vmax.f32 %v2618_v20, %v2620_v21  ;;  %1353 = vst.msk [vmem:[#allocation2 + $0x110] sm:$0xff] %vm1219_vm4, %v1346_v25  ;;  %7456 = vmatmul.mubr.msk.f32.gmra.mxu0 %vm1859_vm6, %v1809_v17 }
 0x1f7   : > { %1059 = vst.msk [vmem:[#allocation2 + $0x118] sm:$0xff] %vm933_vm3, %v1053_v24  ;;  %1100 = vrot.lane.b32.xlu1 %v8637_v16, %s11029_s11 }
 0x1f8   : > { %1098 = vrot.lane.b32.xlu0 %v8592_v60, %s11029_s11  ;;  %2624 = vst.msk [vmem:[#allocation4 + $0xc] sm:$0xff] %vm2505_vm7, %v2622_v26 }
 0x1f9   : > { %v1348_v27 = vpop.permute.xlu1 %1347 }
 0x1fa   : > { %v489_v18 = vpop.permute.xlu0 %488  ;;  %1354 = vst.msk [vmem:[#allocation2 + $0x118] sm:$0xff] %vm1219_vm4, %v1348_v27  ;;  %v7427_v28 = vpop.f32.mrf.mxu0 }
 0x1fb   : > { %497 = vst.msk [vmem:[#allocation2 + $0x120] sm:$0xff] %vm349_vm0, %v489_v18  ;;  %v2212_v29 = vadd.f32 %v7427_v28, %v8870_v51  ;;  %1679 = vrot.lane.b32.xlu1 %v9109_v30, %s11030_s18 }
 0x1fc   : > { %536 = vrot.lane.b32.xlu0 %v8327_v4, %s10988_s0  ;;  %v2206_v31 = vpop.f32.mrf.mxu0 }
 0x1fd   : > { %2519 = vst.msk [vmem:[#allocation3 + $0x68] sm:$0xff] %vm2505_vm7, %v2212_v29  ;;  %v2207_v32 = vadd.f32 %v8870_v51, %v2206_v31  ;;  %v491_v35 = vpop.permute.xlu1 %490 }
 0x1fe   : > { %v1632_v33 = vpop.permute.xlu0 %1631  ;;  %498 = vst.msk [vmem:[#allocation2 + $0x128] sm:$0xff] %vm349_vm0, %v491_v35 }
 0x1ff   : > { %1639 = vst.msk [vmem:[#allocation2 + $0x110] sm:$0xff] %vm1505_vm5, %v1632_v33  ;;  %822 = vrot.lane.b32.xlu1 %v8570_v52, %s11035_s12  ;;  %v9122_v36 = vld [vmem:[#allocation4 + $0xc] sm:$0xff] }
 0x200   : > { %2518 = vst.msk [vmem:[#allocation3 + $0x60] sm:$0xff] %vm2505_vm7, %v2207_v32  ;;  %538 = vrot.lane.b32.xlu0 %v8338_v7, %s10988_s0  ;;  %3043 = vst.msk [vmem:[#allocation5 + $0x20] sm:$0xff] %vm2505_vm7, %v9122_v36 }
 0x201   : > { %v1634_v38 = vpop.permute.xlu1 %1633 }
 0x202   : > { %v775_v37 = vpop.permute.xlu0 %774  ;;  %1640 = vst.msk [vmem:[#allocation2 + $0x118] sm:$0xff] %vm1505_vm5, %v1634_v38 }
 0x203   : > { %783 = vst.msk [vmem:[#allocation2 + $0x120] sm:$0xff] %vm647_vm2, %v775_v37  ;;  %824 = vrot.lane.b32.xlu1 %v8579_v55, %s11035_s12 }
 0x204   : > { %1681 = vrot.lane.b32.xlu0 %v8700_v39, %s11030_s18  ;;  %s10990_s18 = smov 111  }
 0x205   : > { %v1061_v41 = vpop.permute.xlu1 %1060 }
 0x206   : > { %v777_v40 = vpop.permute.xlu0 %776  ;;  %v1810_v0 = vld [vmem:[#allocation2 + $0x110] sm:$0xff]  ;;  %1069 = vst.msk [vmem:[#allocation2 + $0x120] sm:$0xff] %vm933_vm3, %v1061_v41 }
 0x207   : > { %784 = vst.msk [vmem:[#allocation2 + $0x128] sm:$0xff] %vm647_vm2, %v777_v40  ;;  %7458 = vmatprep.mubr.msk.f32.mxu0 %vm1859_vm6, %v1810_v0  ;;  %1110 = vrot.lane.b32.xlu1 %v8592_v60, %s11033_s30  ;;  %v2627_v23 = vld [vmem:[#allocation3 + $0x60] ss:$2 sm:$0xff]  ;;  %v2631_v24 = vld [vmem:[#allocation3 + $0x61] ss:$2 sm:$0xff] }
 0x208   : > { %1108 = vrot.lane.b32.xlu0 %v8587_v59, %s11033_s30  ;;  %v2642_v32 = vmax.f32 %v2627_v23, %v2631_v24 }
 0x209   : > { %v1356_v42 = vpop.permute.xlu1 %1355  ;;  %v1811_v43 = vld [vmem:[#allocation2 + $0x118] sm:$0xff] }
 0x20a   : > { %v1063_v39 = vpop.permute.xlu0 %1062  ;;  %1364 = vst.msk [vmem:[#allocation2 + $0x120] sm:$0xff] %vm1219_vm4, %v1356_v42  ;;  %v7430_v44 = vpop.f32.mrf.mxu0  ;;  %7459 = vmatmul.mubr.msk.f32.gmra.mxu0 %vm1859_vm6, %v1811_v43 }
 0x20b   : > { %1070 = vst.msk [vmem:[#allocation2 + $0x128] sm:$0xff] %vm933_vm3, %v1063_v39  ;;  %v2222_v45 = vadd.f32 %v7430_v44, %v8870_v51  ;;  %540 = vrot.lane.b32.xlu1 %v8345_v8, %s10988_s0  ;;  %s11038_s0 = smov 116  }
 0x20c   : > { %1394 = vrot.lane.b32.xlu0 %v9144_v47, %s11034_s20  ;;  %v2216_v3 = vpop.f32.mrf.mxu0 }
 0x20d   : > { %2521 = vst.msk [vmem:[#allocation3 + $0x78] sm:$0xff] %vm2505_vm7, %v2222_v45  ;;  %v2217_v46 = vadd.f32 %v8870_v51, %v2216_v3  ;;  %v1358_v49 = vpop.permute.xlu1 %1357 }
 0x20e   : > { %v493_v48 = vpop.permute.xlu0 %492  ;;  %1365 = vst.msk [vmem:[#allocation2 + $0x128] sm:$0xff] %vm1219_vm4, %v1358_v49 }
 0x20f   : > { %499 = vst.msk [vmem:[#allocation2 + $0x130] sm:$0xff] %vm349_vm0, %v493_v48  ;;  %1689 = vrot.lane.b32.xlu1 %v9088_v22, %s11014_s21 }
 0x210   : > { %2520 = vst.msk [vmem:[#allocation3 + $0x70] sm:$0xff] %vm2505_vm7, %v2217_v46  ;;  %1396 = vrot.lane.b32.xlu0 %v9156_v12, %s11034_s20 }
 0x211   : > { %v501_v53 = vpop.permute.xlu1 %500 }
 0x212   : > { %v1642_v50 = vpop.permute.xlu0 %1641  ;;  %509 = vst.msk [vmem:[#allocation2 + $0x138] sm:$0xff] %vm349_vm0, %v501_v53 }
 0x213   : > { %1650 = vst.msk [vmem:[#allocation2 + $0x120] sm:$0xff] %vm1505_vm5, %v1642_v50  ;;  %826 = vrot.lane.b32.xlu1 %v8620_v9, %s11035_s12 }
 0x214   : > { %548 = vrot.lane.b32.xlu0 %v8327_v4, %s10990_s18 }
 0x215   : > { %v1644_v56 = vpop.permute.xlu1 %1643 }
 0x216   : > { %v779_v54 = vpop.permute.xlu0 %778  ;;  %1651 = vst.msk [vmem:[#allocation2 + $0x128] sm:$0xff] %vm1505_vm5, %v1644_v56 }
 0x217   : > { %785 = vst.msk [vmem:[#allocation2 + $0x130] sm:$0xff] %vm647_vm2, %v779_v54  ;;  %834 = vrot.lane.b32.xlu1 %v8570_v52, %s11038_s0  ;;  %v2629_v20 = vld [vmem:[#allocation3 + $0x70] ss:$2 sm:$0xf] }
 0x218   : > { %1691 = vrot.lane.b32.xlu0 %v9109_v30, %s11014_s21  ;;  %v2633_v21 = vld [vmem:[#allocation3 + $0x71] ss:$2 sm:$0xf] }
 0x219   : > { %v1065_v34 = vpop.permute.xlu1 %1064  ;;  %v2643_v26 = vmax.f32 %v2629_v20, %v2633_v21 }
 0x21a   : > { %v787_v57 = vpop.permute.xlu0 %786  ;;  %v1812_v58 = vld [vmem:[#allocation2 + $0x120] sm:$0xff]  ;;  %1071 = vst.msk [vmem:[#allocation2 + $0x130] sm:$0xff] %vm933_vm3, %v1065_v34 }
 0x21b   : > { %795 = vst.msk [vmem:[#allocation2 + $0x138] sm:$0xff] %vm647_vm2, %v787_v57  ;;  %7461 = vmatprep.mubr.msk.f32.mxu0 %vm1859_vm6, %v1812_v58  ;;  %1120 = vrot.lane.b32.xlu1 %v8587_v59, %s11036_s19 }
 0x21c   : > { %1112 = vrot.lane.b32.xlu0 %v8637_v16, %s11033_s30 }
 0x21d   : > { %v1360_v62 = vpop.permute.xlu1 %1359  ;;  %v1813_v63 = vld [vmem:[#allocation2 + $0x128] sm:$0xff] }
 0x21e   : > { %v1073_v61 = vpop.permute.xlu0 %1072  ;;  %1366 = vst.msk [vmem:[#allocation2 + $0x130] sm:$0xff] %vm1219_vm4, %v1360_v62  ;;  %7462 = vmatmul.mubr.msk.f32.gmra.mxu0 %vm1859_vm6, %v1813_v63 }
 0x21f   : > { %1081 = vst.msk [vmem:[#allocation2 + $0x138] sm:$0xff] %vm933_vm3, %v1073_v61  ;;  %v7433_v1 = vpop.f32.mrf.mxu0  ;;  %550 = vrot.lane.b32.xlu1 %v8338_v7, %s10990_s18 }
 0x220   : > { %v2232_v2 = vadd.f32 %v7433_v1, %v8870_v51  ;;  %1398 = vrot.lane.b32.xlu0 %v9186_v5, %s11034_s20 }
 0x221   : > { %v2226_v6 = vpop.f32.mrf.mxu0  ;;  %v1368_v13 = vpop.permute.xlu1 %1367 }
 0x222   : > { %2523 = vst.msk [vmem:[#allocation3 + $0x88] sm:$0xff] %vm2505_vm7, %v2232_v2  ;;  %v2227_v10 = vadd.f32 %v8870_v51, %v2226_v6  ;;  %v503_v11 = vpop.permute.xlu0 %502 }
 0x223   : > { %510 = vst.msk [vmem:[#allocation2 + $0x140] sm:$0xff] %vm349_vm0, %v503_v11  ;;  %1693 = vrot.lane.b32.xlu1 %v9200_v14, %s11014_s21 }
 0x224   : > { %1376 = vst.msk [vmem:[#allocation2 + $0x138] sm:$0xff] %vm1219_vm4, %v1368_v13  ;;  %1406 = vrot.lane.b32.xlu0 %v9144_v47, %s11017_s27 }
 0x225   : > { %2522 = vst.msk [vmem:[#allocation3 + $0x80] sm:$0xff] %vm2505_vm7, %v2227_v10  ;;  %v505_v19 = vpop.permute.xlu1 %504 }
 0x226   : > { %v1646_v15 = vpop.permute.xlu0 %1645  ;;  %511 = vst.msk [vmem:[#allocation2 + $0x148] sm:$0xff] %vm349_vm0, %v505_v19 }
 0x227   : > { %1652 = vst.msk [vmem:[#allocation2 + $0x130] sm:$0xff] %vm1505_vm5, %v1646_v15  ;;  %836 = vrot.lane.b32.xlu1 %v8579_v55, %s11038_s0 }
 0x228   : > { %552 = vrot.lane.b32.xlu0 %v8345_v8, %s10990_s18  ;;  %s10994_s18 = smov 110  }
 0x229   : > { %v2637_v25 = vld [vmem:[#allocation3 + $0x88] ss:$2 sm:$0xf]  ;;  %v2641_v17 = vld [vmem:[#allocation3 + $0x89] ss:$2 sm:$0xf]  ;;  %v1654_v28 = vpop.permute.xlu1 %1653 }
 0x22a   : > { %v2645_v18 = vmax.f32 %v2637_v25, %v2641_v17  ;;  %v789_v27 = vpop.permute.xlu0 %788  ;;  %1662 = vst.msk [vmem:[#allocation2 + $0x138] sm:$0xff] %vm1505_vm5, %v1654_v28 }
 0x22b   : > { %796 = vst.msk [vmem:[#allocation2 + $0x140] sm:$0xff] %vm647_vm2, %v789_v27  ;;  %838 = vrot.lane.b32.xlu1 %v8620_v9, %s11038_s0 }
 0x22c   : > { %v2635_v29 = vld [vmem:[#allocation3 + $0x78] ss:$2 sm:$0xff]  ;;  %v2639_v31 = vld [vmem:[#allocation3 + $0x79] ss:$2 sm:$0xff]  ;;  %1701 = vrot.lane.b32.xlu0 %v9088_v22, %s11018_s25  ;;  %v2647_v35 = vmax.f32 %v2643_v26, %v2645_v18 }
 0x22d   : > { %v2644_v33 = vmax.f32 %v2635_v29, %v2639_v31  ;;  %v1075_v38 = vpop.permute.xlu1 %1074  ;;  %v9315_v31 = vld [vmem:[%s10917_s2] ss:$0 sm:$0xff] }
 0x22e   : > { %v791_v37 = vpop.permute.xlu0 %790  ;;  %v1814_v40 = vld [vmem:[#allocation2 + $0x130] sm:$0xff]  ;;  %2649 = vst.msk [vmem:[#allocation4 + $0x20] sm:$0xf] %vm2600_vm8, %v2647_v35 }
 0x22f   : > { %v2646_v41 = vmax.f32 %v2642_v32, %v2644_v33  ;;  %797 = vst.msk [vmem:[#allocation2 + $0x148] sm:$0xff] %vm647_vm2, %v791_v37  ;;  %7464 = vmatprep.mubr.msk.f32.mxu0 %vm1859_vm6, %v1814_v40  ;;  %1124 = vrot.lane.b32.xlu1 %v8637_v16, %s11036_s19 }
 0x230   : > { %1082 = vst.msk [vmem:[#allocation2 + $0x140] sm:$0xff] %vm933_vm3, %v1075_v38  ;;  %1122 = vrot.lane.b32.xlu0 %v8592_v60, %s11036_s19 }
 0x231   : > { %2648 = vst.msk [vmem:[#allocation4 + $0x18] sm:$0xff] %vm2505_vm7, %v2646_v41  ;;  %v1370_v39 = vpop.permute.xlu1 %1369  ;;  %v1815_v42 = vld [vmem:[#allocation2 + $0x138] sm:$0xff] }
 0x232   : > { %v1077_v0 = vpop.permute.xlu0 %1076  ;;  %1377 = vst.msk [vmem:[#allocation2 + $0x140] sm:$0xff] %vm1219_vm4, %v1370_v39  ;;  %7465 = vmatmul.mubr.msk.f32.gmra.mxu0 %vm1859_vm6, %v1815_v42 }
 0x233   : > { %1083 = vst.msk [vmem:[#allocation2 + $0x148] sm:$0xff] %vm933_vm3, %v1077_v0  ;;  %v7436_v43 = vpop.f32.mrf.mxu0  ;;  %560 = vrot.lane.b32.xlu1 %v8327_v4, %s10994_s18 }
 0x234   : > { %v2242_v44 = vadd.f32 %v7436_v43, %v8870_v51  ;;  %1408 = vrot.lane.b32.xlu0 %v9156_v12, %s11017_s27 }
 0x235   : > { %v2236_v45 = vpop.f32.mrf.mxu0  ;;  %v1372_v48 = vpop.permute.xlu1 %1371 }
 0x236   : > { %2525 = vst.msk [vmem:[#allocation3 + $0x98] sm:$0xff] %vm2505_vm7, %v2242_v44  ;;  %v2237_v3 = vadd.f32 %v8870_v51, %v2236_v45  ;;  %v513_v46 = vpop.permute.xlu0 %512 }
 0x237   : > { %521 = vst.msk [vmem:[#allocation2 + $0x150] sm:$0xff] %vm349_vm0, %v513_v46  ;;  %1703 = vrot.lane.b32.xlu1 %v9109_v30, %s11018_s25 }
 0x238   : > { %1378 = vst.msk [vmem:[#allocation2 + $0x148] sm:$0xff] %vm1219_vm4, %v1372_v48  ;;  %1410 = vrot.lane.b32.xlu0 %v9186_v5, %s11017_s27  ;;  %v9242_v49 = vld [vmem:[#allocation4 + $0x18] sm:$0xff] }
 0x239   : > { %2524 = vst.msk [vmem:[#allocation3 + $0x90] sm:$0xff] %vm2505_vm7, %v2237_v3  ;;  %3192 = vst.msk [vmem:[#allocation5 + $0x40] sm:$0xff] %vm2505_vm7, %v9242_v49  ;;  %v515_v53 = vpop.permute.xlu1 %514 }
 0x23a   : > { %v1656_v50 = vpop.permute.xlu0 %1655  ;;  %522 = vst.msk [vmem:[#allocation2 + $0x158] sm:$0xff] %vm349_vm0, %v515_v53 }
 0x23b   : > { %1663 = vst.msk [vmem:[#allocation2 + $0x140] sm:$0xff] %vm1505_vm5, %v1656_v50  ;;  %846 = vrot.lane.b32.xlu1 %v8570_v52, %s10992_s14 }
 0x23c   : > { %562 = vrot.lane.b32.xlu0 %v8338_v7, %s10994_s18 }
 0x23d   : > { %v1658_v56 = vpop.permute.xlu1 %1657 }
 0x23e   : > { %v799_v54 = vpop.permute.xlu0 %798  ;;  %1664 = vst.msk [vmem:[#allocation2 + $0x148] sm:$0xff] %vm1505_vm5, %v1658_v56 }
 0x23f   : > { %807 = vst.msk [vmem:[#allocation2 + $0x150] sm:$0xff] %vm647_vm2, %v799_v54  ;;  %848 = vrot.lane.b32.xlu1 %v8579_v55, %s10992_s14 }
 0x240   : > { %1705 = vrot.lane.b32.xlu0 %v9200_v14, %s11018_s25  ;;  %s8156_s25 = smov 109   ;;  %v2651_v41 = vld [vmem:[#allocation3 + $0x90] ss:$2 sm:$0xff]  ;;  %v2655_v0 = vld [vmem:[#allocation3 + $0x91] ss:$2 sm:$0xff] }
 0x241   : > { %v1085_v34 = vpop.permute.xlu1 %1084  ;;  %v2666_v53 = vmax.f32 %v2651_v41, %v2655_v0 }
 0x242   : > { %v801_v57 = vpop.permute.xlu0 %800  ;;  %v1816_v58 = vld [vmem:[#allocation2 + $0x140] sm:$0xff]  ;;  %1093 = vst.msk [vmem:[#allocation2 + $0x150] sm:$0xff] %vm933_vm3, %v1085_v34 }
 0x243   : > { %808 = vst.msk [vmem:[#allocation2 + $0x158] sm:$0xff] %vm647_vm2, %v801_v57  ;;  %7467 = vmatprep.mubr.msk.f32.mxu0 %vm1859_vm6, %v1816_v58  ;;  %1134 = vrot.lane.b32.xlu1 %v8592_v60, %s11037_s9 }
 0x244   : > { %1132 = vrot.lane.b32.xlu0 %v8587_v59, %s11037_s9 }
 0x245   : > { %v1380_v62 = vpop.permute.xlu1 %1379  ;;  %v1817_v63 = vld [vmem:[#allocation2 + $0x148] sm:$0xff] }
 0x246   : > { %v1087_v61 = vpop.permute.xlu0 %1086  ;;  %1388 = vst.msk [vmem:[#allocation2 + $0x150] sm:$0xff] %vm1219_vm4, %v1380_v62  ;;  %7468 = vmatmul.mubr.msk.f32.gmra.mxu0 %vm1859_vm6, %v1817_v63 }
 0x247   : > { %1094 = vst.msk [vmem:[#allocation2 + $0x158] sm:$0xff] %vm933_vm3, %v1087_v61  ;;  %v7439_v1 = vpop.f32.mrf.mxu0  ;;  %564 = vrot.lane.b32.xlu1 %v8345_v8, %s10994_s18  ;;  %s8162_s18 = smov 40  }
 0x248   : > { %v2252_v2 = vadd.f32 %v7439_v1, %v8870_v51  ;;  %1418 = vrot.lane.b32.xlu0 %v9144_v47, %s11020_s26 }
 0x249   : > { %v2246_v6 = vpop.f32.mrf.mxu0  ;;  %v1382_v13 = vpop.permute.xlu1 %1381 }
 0x24a   : > { %2527 = vst.msk [vmem:[#allocation3 + $0xa8] sm:$0xff] %vm2505_vm7, %v2252_v2  ;;  %v2247_v10 = vadd.f32 %v8870_v51, %v2246_v6  ;;  %v517_v11 = vpop.permute.xlu0 %516 }
 0x24b   : > { %523 = vst.msk [vmem:[#allocation2 + $0x160] sm:$0xff] %vm349_vm0, %v517_v11  ;;  %1713 = vrot.lane.b32.xlu1 %v9088_v22, %s11021_s17 }
 0x24c   : > { %1389 = vst.msk [vmem:[#allocation2 + $0x158] sm:$0xff] %vm1219_vm4, %v1382_v13  ;;  %1420 = vrot.lane.b32.xlu0 %v9156_v12, %s11020_s26 }
 0x24d   : > { %2526 = vst.msk [vmem:[#allocation3 + $0xa0] sm:$0xff] %vm2505_vm7, %v2247_v10  ;;  %v525_v19 = vpop.permute.xlu1 %524 }
 0x24e   : > { %v1666_v15 = vpop.permute.xlu0 %1665  ;;  %533 = vst.msk [vmem:[#allocation2 + $0x168] sm:$0xff] %vm349_vm0, %v525_v19 }
 0x24f   : > { %1674 = vst.msk [vmem:[#allocation2 + $0x150] sm:$0xff] %vm1505_vm5, %v1666_v15  ;;  %850 = vrot.lane.b32.xlu1 %v8620_v9, %s10992_s14  ;;  %s11042_s14 = smov 115  }
 0x250   : > { %572 = vrot.lane.b32.xlu0 %v8327_v4, %s8156_s25 }
 0x251   : > { %v1668_v21 = vpop.permute.xlu1 %1667 }
 0x252   : > { %v803_v20 = vpop.permute.xlu0 %802  ;;  %1675 = vst.msk [vmem:[#allocation2 + $0x158] sm:$0xff] %vm1505_vm5, %v1668_v21 }
 0x253   : > { %809 = vst.msk [vmem:[#allocation2 + $0x160] sm:$0xff] %vm647_vm2, %v803_v20  ;;  %858 = vrot.lane.b32.xlu1 %v8570_v52, %s8151_s24 }
 0x254   : > { %1715 = vrot.lane.b32.xlu0 %v9109_v30, %s11021_s17  ;;  %v2653_v38 = vld [vmem:[#allocation3 + $0xa0] ss:$2 sm:$0xf]  ;;  %v2657_v40 = vld [vmem:[#allocation3 + $0xa1] ss:$2 sm:$0xf] }
 0x255   : > { %v1089_v24 = vpop.permute.xlu1 %1088  ;;  %v2667_v43 = vmax.f32 %v2653_v38, %v2657_v40 }
 0x256   : > { %v811_v23 = vpop.permute.xlu0 %810  ;;  %v1818_v25 = vld [vmem:[#allocation2 + $0x150] sm:$0xff]  ;;  %1095 = vst.msk [vmem:[#allocation2 + $0x160] sm:$0xff] %vm933_vm3, %v1089_v24 }
 0x257   : > { %819 = vst.msk [vmem:[#allocation2 + $0x168] sm:$0xff] %vm647_vm2, %v811_v23  ;;  %7470 = vmatprep.mubr.msk.f32.mxu0 %vm1859_vm6, %v1818_v25  ;;  %1144 = vrot.lane.b32.xlu1 %v8587_v59, %s11025_s29 }
 0x258   : > { %1136 = vrot.lane.b32.xlu0 %v8637_v16, %s11037_s9 }
 0x259   : > { %v1384_v26 = vpop.permute.xlu1 %1383  ;;  %v1819_v18 = vld [vmem:[#allocation2 + $0x158] sm:$0xff] }
 0x25a   : > { %v1097_v17 = vpop.permute.xlu0 %1096  ;;  %1390 = vst.msk [vmem:[#allocation2 + $0x160] sm:$0xff] %vm1219_vm4, %v1384_v26  ;;  %7471 = vmatmul.mubr.msk.f32.gmra.mxu0 %vm1859_vm6, %v1819_v18 }
 0x25b   : > { %1105 = vst.msk [vmem:[#allocation2 + $0x168] sm:$0xff] %vm933_vm3, %v1097_v17  ;;  %v7442_v27 = vpop.f32.mrf.mxu0  ;;  %574 = vrot.lane.b32.xlu1 %v8338_v7, %s8156_s25 }
 0x25c   : > { %1391 = vst.msk [vmem:[#allocation2 + $0x168] sm:$0xff] %vm1219_vm4, %v9144_v47  ;;  %v2262_v28 = vadd.f32 %v7442_v27, %v8870_v51  ;;  %1422 = vrot.lane.b32.xlu0 %v9186_v5, %s11020_s26 }
 0x25d   : > { %v2256_v29 = vpop.f32.mrf.mxu0  ;;  %v1670_v35 = vpop.permute.xlu1 %1669 }
 0x25e   : > { %2529 = vst.msk [vmem:[#allocation3 + $0xb8] sm:$0xff] %vm2505_vm7, %v2262_v28  ;;  %v2257_v32 = vadd.f32 %v9315_v31, %v2256_v29  ;;  %v527_v33 = vpop.permute.xlu0 %526 }
 0x25f   : > { %534 = vst.msk [vmem:[#allocation2 + $0x170] sm:$0xff] %vm349_vm0, %v527_v33  ;;  %1717 = vrot.lane.b32.xlu1 %v9200_v14, %s11021_s17  ;;  %s8157_s17 = smov 108  }
 0x260   : > { %1676 = vst.msk [vmem:[#allocation2 + $0x160] sm:$0xff] %vm1505_vm5, %v1670_v35  ;;  %1430 = vrot.lane.b32.xlu0 %v9144_v47, %s11027_s1 }
 0x261   : > { %2528 = vst.msk [vmem:[#allocation3 + $0xb0] sm:$0xff] %vm2505_vm7, %v2257_v32  ;;  %v813_v37 = vpop.permute.xlu1 %812 }
 0x262   : > { %v529_v51 = vpop.permute.xlu0 %528  ;;  %820 = vst.msk [vmem:[#allocation2 + $0x170] sm:$0xff] %vm647_vm2, %v813_v37 }
 0x263   : > { %535 = vst.msk [vmem:[#allocation2 + $0x178] sm:$0xff] %vm349_vm0, %v529_v51  ;;  %860 = vrot.lane.b32.xlu1 %v8579_v55, %s8151_s24 }
 0x264   : > { %576 = vrot.lane.b32.xlu0 %v8345_v8, %s8156_s25 }
 0x265   : > { %v2661_v39 = vld [vmem:[#allocation3 + $0xb8] ss:$2 sm:$0xf]  ;;  %v2665_v42 = vld [vmem:[#allocation3 + $0xb9] ss:$2 sm:$0xf]  ;;  %v815_v3 = vpop.permute.xlu1 %814 }
 0x266   : > { %v2669_v44 = vmax.f32 %v2661_v39, %v2665_v42  ;;  %v1678_v45 = vpop.permute.xlu0 %1677  ;;  %821 = vst.msk [vmem:[#allocation2 + $0x178] sm:$0xff] %vm647_vm2, %v815_v3 }
 0x267   : > { %v1820_v46 = vld [vmem:[#allocation2 + $0x160] sm:$0xff]  ;;  %1686 = vst.msk [vmem:[#allocation2 + $0x168] sm:$0xff] %vm1505_vm5, %v1678_v45  ;;  %862 = vrot.lane.b32.xlu1 %v8620_v9, %s8151_s24  ;;  %s8164_s24 = smov 60  }
 0x268   : > { %v2659_v48 = vld [vmem:[#allocation3 + $0xa8] ss:$2 sm:$0xff]  ;;  %v2663_v50 = vld [vmem:[#allocation3 + $0xa9] ss:$2 sm:$0xff]  ;;  %7473 = vmatprep.mubr.msk.f32.mxu0 %vm1859_vm6, %v1820_v46  ;;  %1725 = vrot.lane.b32.xlu0 %v9088_v22, %s11024_s23  ;;  %v2671_v56 = vmax.f32 %v2667_v43, %v2669_v44 }
 0x269   : > { %v2668_v54 = vmax.f32 %v2659_v48, %v2663_v50  ;;  %v1101_v34 = vpop.permute.xlu1 %1100 }
 0x26a   : > { %v1099_v57 = vpop.permute.xlu0 %1098  ;;  %2673 = vst.msk [vmem:[#allocation4 + $0x2c] sm:$0xf] %vm2600_vm8, %v2671_v56 }
 0x26b   : > { %v2670_v58 = vmax.f32 %v2666_v53, %v2668_v54  ;;  %1106 = vst.msk [vmem:[#allocation2 + $0x170] sm:$0xff] %vm933_vm3, %v1099_v57  ;;  %1107 = vst.msk [vmem:[#allocation2 + $0x178] sm:$0xff] %vm933_vm3, %v1101_v34  ;;  %1148 = vrot.lane.b32.xlu1 %v8637_v16, %s11025_s29 }
 0x26c   : > { %1392 = vst.msk [vmem:[#allocation2 + $0x170] sm:$0xff] %vm1219_vm4, %v9156_v12  ;;  %1393 = vst.msk [vmem:[#allocation2 + $0x178] sm:$0xff] %vm1219_vm4, %v9186_v5  ;;  %1146 = vrot.lane.b32.xlu0 %v8592_v60, %s11025_s29  ;;  %s8158_s29 = smov 107  }
 0x26d   : > { %2672 = vst.msk [vmem:[#allocation4 + $0x24] sm:$0xff] %vm2505_vm7, %v2670_v58  ;;  %v1680_v62 = vpop.permute.xlu1 %1679 }
 0x26e   : > { %v537_v61 = vpop.permute.xlu0 %536  ;;  %v1821_v63 = vld [vmem:[#allocation2 + $0x168] sm:$0xff]  ;;  %1687 = vst.msk [vmem:[#allocation2 + $0x170] sm:$0xff] %vm1505_vm5, %v1680_v62 }
 0x26f   : > { %545 = vst.msk [vmem:[#allocation2 + $0x180] sm:$0xff] %vm349_vm0, %v537_v61  ;;  %v7445_v1 = vpop.f32.mrf.mxu0  ;;  %7474 = vmatmul.mubr.msk.f32.gmra.mxu0 %vm1859_vm6, %v1821_v63  ;;  %1434 = vrot.lane.b32.xlu1 %v9186_v5, %s11027_s1 }
 0x270   : > { %v2272_v2 = vadd.f32 %v9315_v31, %v7445_v1  ;;  %1432 = vrot.lane.b32.xlu0 %v9156_v12, %s11027_s1 }
 0x271   : > { %v2266_v6 = vpop.f32.mrf.mxu0  ;;  %v823_v13 = vpop.permute.xlu1 %822 }
 0x272   : > { %2531 = vst.msk [vmem:[#allocation3 + $0xc8] sm:$0xff] %vm2505_vm7, %v2272_v2  ;;  %v2267_v10 = vadd.f32 %v9315_v31, %v2266_v6  ;;  %v539_v11 = vpop.permute.xlu0 %538 }
 0x273   : > { %546 = vst.msk [vmem:[#allocation2 + $0x188] sm:$0xff] %vm349_vm0, %v539_v11  ;;  %1729 = vrot.lane.b32.xlu1 %v9200_v14, %s11024_s23 }
 0x274   : > { %831 = vst.msk [vmem:[#allocation2 + $0x180] sm:$0xff] %vm647_vm2, %v823_v13  ;;  %v9362_v15 = vld [vmem:[#allocation4 + $0x24] sm:$0xff]  ;;  %1727 = vrot.lane.b32.xlu0 %v9109_v30, %s11024_s23  ;;  %s11039_s23 = smov 112  }
 0x275   : > { %2530 = vst.msk [vmem:[#allocation3 + $0xc0] sm:$0xff] %vm2505_vm7, %v2267_v10  ;;  %3341 = vst.msk [vmem:[#allocation5 + $0x60] sm:$0xff] %vm2505_vm7, %v9362_v15  ;;  %v825_v20 = vpop.permute.xlu1 %824  ;;  %v1822_v21 = vld [vmem:[#allocation2 + $0x170] sm:$0xff] }
 0x276   : > { %v1682_v19 = vpop.permute.xlu0 %1681  ;;  %832 = vst.msk [vmem:[#allocation2 + $0x188] sm:$0xff] %vm647_vm2, %v825_v20  ;;  %7476 = vmatprep.mubr.msk.f32.mxu0 %vm1859_vm6, %v1822_v21 }
 0x277   : > { %1688 = vst.msk [vmem:[#allocation2 + $0x178] sm:$0xff] %vm1505_vm5, %v1682_v19  ;;  %586 = vrot.lane.b32.xlu1 %v8338_v7, %s8157_s17 }
 0x278   : > { %584 = vrot.lane.b32.xlu0 %v8327_v4, %s8157_s17 }
 0x279   : > { %v1111_v24 = vpop.permute.xlu1 %1110 }
 0x27a   : > { %v1109_v23 = vpop.permute.xlu0 %1108  ;;  %1118 = vst.msk [vmem:[#allocation2 + $0x188] sm:$0xff] %vm933_vm3, %v1111_v24 }
 0x27b   : > { %1117 = vst.msk [vmem:[#allocation2 + $0x180] sm:$0xff] %vm933_vm3, %v1109_v23  ;;  %872 = vrot.lane.b32.xlu1 %v8579_v55, %s8152_s28 }
 0x27c   : > { %870 = vrot.lane.b32.xlu0 %v8570_v52, %s8152_s28  ;;  %v2675_v62 = vld [vmem:[#allocation3 + $0xc0] ss:$2 sm:$0xff]  ;;  %v2679_v63 = vld [vmem:[#allocation3 + $0xc1] ss:$2 sm:$0xff] }
 0x27d   : > { %v541_v17 = vpop.permute.xlu1 %540  ;;  %v2690_v21 = vmax.f32 %v2675_v62, %v2679_v63 }
 0x27e   : > { %v1395_v25 = vpop.permute.xlu0 %1394  ;;  %v1823_v26 = vld [vmem:[#allocation2 + $0x178] sm:$0xff]  ;;  %547 = vst.msk [vmem:[#allocation2 + $0x190] sm:$0xff] %vm349_vm0, %v541_v17 }
 0x27f   : > { %1403 = vst.msk [vmem:[#allocation2 + $0x180] sm:$0xff] %vm1219_vm4, %v1395_v25  ;;  %7477 = vmatmul.mubr.msk.f32.gmra.mxu0 %vm1859_vm6, %v1823_v26  ;;  %1158 = vrot.lane.b32.xlu1 %v8592_v60, %s11031_s15 }
 0x280   : > { %1156 = vrot.lane.b32.xlu0 %v8587_v59, %s11031_s15 }
 0x281   : > { %v1690_v27 = vpop.permute.xlu1 %1689 }
 0x282   : > { %v1397_v18 = vpop.permute.xlu0 %1396  ;;  %1698 = vst.msk [vmem:[#allocation2 + $0x180] sm:$0xff] %vm1505_vm5, %v1690_v27 }
 0x283   : > { %1404 = vst.msk [vmem:[#allocation2 + $0x188] sm:$0xff] %vm1219_vm4, %v1397_v18  ;;  %v7448_v28 = vpop.f32.mrf.mxu0  ;;  %588 = vrot.lane.b32.xlu1 %v8345_v8, %s8157_s17 }
 0x284   : > { %v2282_v29 = vadd.f32 %v9315_v31, %v7448_v28  ;;  %1442 = vrot.lane.b32.xlu0 %v9144_v47, %s11029_s11 }
 0x285   : > { %v2276_v32 = vpop.f32.mrf.mxu0  ;;  %v827_v51 = vpop.permute.xlu1 %826 }
 0x286   : > { %2533 = vst.msk [vmem:[#allocation3 + $0xd8] sm:$0xff] %vm2505_vm7, %v2282_v29  ;;  %v2277_v33 = vadd.f32 %v9315_v31, %v2276_v32  ;;  %v549_v35 = vpop.permute.xlu0 %548 }
 0x287   : > { %557 = vst.msk [vmem:[#allocation2 + $0x198] sm:$0xff] %vm349_vm0, %v549_v35  ;;  %596 = vrot.lane.b32.xlu1 %v8327_v4, %s8158_s29 }
 0x288   : > { %833 = vst.msk [vmem:[#allocation2 + $0x190] sm:$0xff] %vm647_vm2, %v827_v51  ;;  %1444 = vrot.lane.b32.xlu0 %v9156_v12, %s11029_s11 }
 0x289   : > { %2532 = vst.msk [vmem:[#allocation3 + $0xd0] sm:$0xff] %vm2505_vm7, %v2277_v33  ;;  %v835_v38 = vpop.permute.xlu1 %834  ;;  %v1824_v40 = vld [vmem:[#allocation2 + $0x180] sm:$0xff] }
 0x28a   : > { %v1692_v37 = vpop.permute.xlu0 %1691  ;;  %843 = vst.msk [vmem:[#allocation2 + $0x198] sm:$0xff] %vm647_vm2, %v835_v38  ;;  %7479 = vmatprep.mubr.msk.f32.mxu0 %vm1859_vm6, %v1824_v40 }
 0x28b   : > { %1699 = vst.msk [vmem:[#allocation2 + $0x188] sm:$0xff] %vm1505_vm5, %v1692_v37  ;;  %882 = vrot.lane.b32.xlu1 %v8570_v52, %s11039_s23 }
 0x28c   : > { %874 = vrot.lane.b32.xlu0 %v8620_v9, %s8152_s28  ;;  %s8166_s28 = smov 80  }
 0x28d   : > { %v1121_v0 = vpop.permute.xlu1 %1120 }
 0x28e   : > { %v1113_v41 = vpop.permute.xlu0 %1112  ;;  %1129 = vst.msk [vmem:[#allocation2 + $0x198] sm:$0xff] %vm933_vm3, %v1121_v0 }
 0x28f   : > { %1119 = vst.msk [vmem:[#allocation2 + $0x190] sm:$0xff] %vm933_vm3, %v1113_v41  ;;  %1168 = vrot.lane.b32.xlu1 %v8587_v59, %s11035_s12 }
 0x290   : > { %1160 = vrot.lane.b32.xlu0 %v8637_v16, %s11031_s15  ;;  %v2677_v58 = vld [vmem:[#allocation3 + $0xd0] ss:$2 sm:$0xf]  ;;  %v2681_v61 = vld [vmem:[#allocation3 + $0xd1] ss:$2 sm:$0xf] }
 0x291   : > { %v551_v42 = vpop.permute.xlu1 %550  ;;  %v2691_v6 = vmax.f32 %v2677_v58, %v2681_v61  ;;  %s8160_s15 = smov 105  }
 0x292   : > { %v1399_v39 = vpop.permute.xlu0 %1398  ;;  %v1825_v43 = vld [vmem:[#allocation2 + $0x188] sm:$0xff]  ;;  %558 = vst.msk [vmem:[#allocation2 + $0x1a0] sm:$0xff] %vm349_vm0, %v551_v42 }
 0x293   : > { %1405 = vst.msk [vmem:[#allocation2 + $0x190] sm:$0xff] %vm1219_vm4, %v1399_v39  ;;  %7480 = vmatmul.mubr.msk.f32.gmra.mxu0 %vm1859_vm6, %v1825_v43  ;;  %598 = vrot.lane.b32.xlu1 %v8338_v7, %s8158_s29 }
 0x294   : > { %1446 = vrot.lane.b32.xlu0 %v9186_v5, %s11029_s11  ;;  %s8159_s11 = smov 106  }
 0x295   : > { %v1694_v45 = vpop.permute.xlu1 %1693 }
 0x296   : > { %v1407_v44 = vpop.permute.xlu0 %1406  ;;  %1700 = vst.msk [vmem:[#allocation2 + $0x190] sm:$0xff] %vm1505_vm5, %v1694_v45 }
 0x297   : > { %1415 = vst.msk [vmem:[#allocation2 + $0x198] sm:$0xff] %vm1219_vm4, %v1407_v44  ;;  %v7451_v3 = vpop.f32.mrf.mxu0  ;;  %600 = vrot.lane.b32.xlu1 %v8345_v8, %s8158_s29  ;;  %s8168_s29 = smov 100  }
 0x298   : > { %v2292_v46 = vadd.f32 %v9315_v31, %v7451_v3  ;;  %1454 = vrot.lane.b32.xlu0 %v9144_v47, %s11033_s30 }
 0x299   : > { %v2286_v48 = vpop.f32.mrf.mxu0  ;;  %v837_v54 = vpop.permute.xlu1 %836 }
 0x29a   : > { %2535 = vst.msk [vmem:[#allocation3 + $0xe8] sm:$0xff] %vm2505_vm7, %v2292_v46  ;;  %v2287_v50 = vadd.f32 %v9315_v31, %v2286_v48  ;;  %v553_v53 = vpop.permute.xlu0 %552 }
 0x29b   : > { %559 = vst.msk [vmem:[#allocation2 + $0x1a8] sm:$0xff] %vm349_vm0, %v553_v53  ;;  %1740 = vrot.lane.b32.xlu1 %v9088_v22, %s11034_s20 }
 0x29c   : > { %844 = vst.msk [vmem:[#allocation2 + $0x1a0] sm:$0xff] %vm647_vm2, %v837_v54  ;;  %884 = vrot.lane.b32.xlu0 %v8579_v55, %s11039_s23 }
 0x29d   : > { %2534 = vst.msk [vmem:[#allocation3 + $0xe0] sm:$0xff] %vm2505_vm7, %v2287_v50  ;;  %v839_v57 = vpop.permute.xlu1 %838  ;;  %v1826_v34 = vld [vmem:[#allocation2 + $0x190] sm:$0xff] }
 0x29e   : > { %v1702_v56 = vpop.permute.xlu0 %1701  ;;  %845 = vst.msk [vmem:[#allocation2 + $0x1a8] sm:$0xff] %vm647_vm2, %v839_v57  ;;  %7482 = vmatprep.mubr.msk.f32.mxu0 %vm1859_vm6, %v1826_v34 }
 0x29f   : > { %1710 = vst.msk [vmem:[#allocation2 + $0x198] sm:$0xff] %vm1505_vm5, %v1702_v56  ;;  %1170 = vrot.lane.b32.xlu1 %v8592_v60, %s11035_s12 }
 0x2a0   : > { %886 = vrot.lane.b32.xlu0 %v8620_v9, %s11039_s23 }
 0x2a1   : > { %v2685_v1 = vld [vmem:[#allocation3 + $0xe8] ss:$2 sm:$0xf]  ;;  %v2689_v2 = vld [vmem:[#allocation3 + $0xe9] ss:$2 sm:$0xf]  ;;  %v1125_v13 = vpop.permute.xlu1 %1124 }
 0x2a2   : > { %v2693_v10 = vmax.f32 %v2685_v1, %v2689_v2  ;;  %v1123_v11 = vpop.permute.xlu0 %1122  ;;  %1131 = vst.msk [vmem:[#allocation2 + $0x1a8] sm:$0xff] %vm933_vm3, %v1125_v13 }
 0x2a3   : > { %1130 = vst.msk [vmem:[#allocation2 + $0x1a0] sm:$0xff] %vm933_vm3, %v1123_v11  ;;  %1456 = vrot.lane.b32.xlu1 %v9156_v12, %s11033_s30 }
 0x2a4   : > { %v2683_v19 = vld [vmem:[#allocation3 + $0xd8] ss:$2 sm:$0xff]  ;;  %v2687_v20 = vld [vmem:[#allocation3 + $0xd9] ss:$2 sm:$0xff]  ;;  %1172 = vrot.lane.b32.xlu0 %v8637_v16, %s11035_s12  ;;  %v2695_v24 = vmax.f32 %v2691_v6, %v2693_v10  ;;  %s11040_s12 = smov 111  }
 0x2a5   : > { %v2692_v23 = vmax.f32 %v2683_v19, %v2687_v20  ;;  %v561_v17 = vpop.permute.xlu1 %560 }
 0x2a6   : > { %v1409_v25 = vpop.permute.xlu0 %1408  ;;  %v1827_v26 = vld [vmem:[#allocation2 + $0x198] sm:$0xff]  ;;  %2697 = vst.msk [vmem:[#allocation4 + $0x38] sm:$0xf] %vm2600_vm8, %v2695_v24 }
 0x2a7   : > { %v2694_v18 = vmax.f32 %v2690_v21, %v2692_v23  ;;  %1416 = vst.msk [vmem:[#allocation2 + $0x1a0] sm:$0xff] %vm1219_vm4, %v1409_v25  ;;  %v7454_v27 = vpop.f32.mrf.mxu0  ;;  %7483 = vmatmul.mubr.msk.f32.gmra.mxu0 %vm1859_vm6, %v1827_v26  ;;  %1458 = vrot.lane.b32.xlu1 %v9186_v5, %s11033_s30 }
 0x2a8   : > { %569 = vst.msk [vmem:[#allocation2 + $0x1b0] sm:$0xff] %vm349_vm0, %v561_v17  ;;  %v2302_v28 = vadd.f32 %v9315_v31, %v7454_v27  ;;  %608 = vrot.lane.b32.xlu0 %v8327_v4, %s8159_s11 }
 0x2a9   : > { %2696 = vst.msk [vmem:[#allocation4 + $0x30] sm:$0xff] %vm2505_vm7, %v2694_v18  ;;  %v2296_v29 = vpop.f32.mrf.mxu0  ;;  %v1704_v35 = vpop.permute.xlu1 %1703 }
 0x2aa   : > { %2537 = vst.msk [vmem:[#allocation3 + $0xf8] sm:$0xff] %vm2505_vm7, %v2302_v28  ;;  %v2297_v32 = vadd.f32 %v9315_v31, %v2296_v29  ;;  %v1411_v33 = vpop.permute.xlu0 %1410  ;;  %v9553_v28 = vld [vmem:[%s8308_s22 + $0x4] sm:$0xff] }
 0x2ab   : > { %1417 = vst.msk [vmem:[#allocation2 + $0x1a8] sm:$0xff] %vm1219_vm4, %v1411_v33  ;;  %610 = vrot.lane.b32.xlu1 %v8338_v7, %s8159_s11 }
 0x2ac   : > { %1711 = vst.msk [vmem:[#allocation2 + $0x1a0] sm:$0xff] %vm1505_vm5, %v1704_v35  ;;  %1742 = vrot.lane.b32.xlu0 %v9109_v30, %s11034_s20 }
 0x2ad   : > { %2536 = vst.msk [vmem:[#allocation3 + $0xf0] sm:$0xff] %vm2505_vm7, %v2297_v32  ;;  %v847_v37 = vpop.permute.xlu1 %846 }
 0x2ae   : > { %v563_v51 = vpop.permute.xlu0 %562  ;;  %855 = vst.msk [vmem:[#allocation2 + $0x1b0] sm:$0xff] %vm647_vm2, %v847_v37 }
 0x2af   : > { %570 = vst.msk [vmem:[#allocation2 + $0x1b8] sm:$0xff] %vm349_vm0, %v563_v51  ;;  %1744 = vrot.lane.b32.xlu1 %v9200_v14, %s11034_s20  ;;  %s11041_s20 = smov 110  }
 0x2b0   : > { %894 = vrot.lane.b32.xlu0 %v8570_v52, %s11040_s12  ;;  %v9478_v38 = vld [vmem:[#allocation4 + $0x30] sm:$0xff] }
 0x2b1   : > { %3490 = vst.msk [vmem:[#allocation5 + $0x80] sm:$0xff] %vm2505_vm7, %v9478_v38  ;;  %v849_v41 = vpop.permute.xlu1 %848 }
 0x2b2   : > { %v1706_v40 = vpop.permute.xlu0 %1705  ;;  %856 = vst.msk [vmem:[#allocation2 + $0x1b8] sm:$0xff] %vm647_vm2, %v849_v41 }
 0x2b3   : > { %v1828_v0 = vld [vmem:[#allocation2 + $0x1a0] sm:$0xff]  ;;  %1712 = vst.msk [vmem:[#allocation2 + $0x1a8] sm:$0xff] %vm1505_vm5, %v1706_v40  ;;  %1180 = vrot.lane.b32.xlu1 %v8587_v59, %s11038_s0 }
 0x2b4   : > { %7485 = vmatprep.mubr.msk.f32.mxu0 %vm1859_vm6, %v1828_v0  ;;  %896 = vrot.lane.b32.xlu0 %v8579_v55, %s11040_s12  ;;  %v2699_v19 = vld [vmem:[#allocation3 + $0xf0] ss:$2 sm:$0xff]  ;;  %v2703_v20 = vld [vmem:[#allocation3 + $0xf1] ss:$2 sm:$0xff] }
 0x2b5   : > { %v1135_v42 = vpop.permute.xlu1 %1134  ;;  %v2714_v18 = vmax.f32 %v2699_v19, %v2703_v20  ;;  %v7639_v19 = vld [vmem:[%s10918_s3 + $0x30] sm:$0xff]  }
 0x2b6   : > { %v1133_v39 = vpop.permute.xlu0 %1132  ;;  %1142 = vst.msk [vmem:[#allocation2 + $0x1b8] sm:$0xff] %vm933_vm3, %v1135_v42  ;;  %v7457_v43 = vpop.f32.mrf.mxu0  ;;  %v2926_v20 = vld [vmem:[#allocation4 + $0x10] sm:$0xff] }
 0x2b7   : > { %1141 = vst.msk [vmem:[#allocation2 + $0x1b0] sm:$0xff] %vm933_vm3, %v1133_v39  ;;  %v2312_v44 = vadd.f32 %v9315_v31, %v7457_v43  ;;  %1466 = vrot.lane.b32.xlu1 %v9144_v47, %s11036_s19 }
 0x2b8   : > { %1182 = vrot.lane.b32.xlu0 %v8592_v60, %s11038_s0  ;;  %v2306_v45 = vpop.f32.mrf.mxu0 }
 0x2b9   : > { %2539 = vst.msk [vmem:[#allocation3 + $0x108] sm:$0xff] %vm2505_vm7, %v2312_v44  ;;  %v2307_v3 = vadd.f32 %v9315_v31, %v2306_v45  ;;  %v565_v48 = vpop.permute.xlu1 %564  ;;  %v2903_v44 = vld [vmem:[#allocation4 + $0xd] sm:$0xff] }
 0x2ba   : > { %v1419_v46 = vpop.permute.xlu0 %1418  ;;  %v1829_v50 = vld [vmem:[#allocation2 + $0x1a8] sm:$0xff]  ;;  %571 = vst.msk [vmem:[#allocation2 + $0x1c0] sm:$0xff] %vm349_vm0, %v565_v48 }
 0x2bb   : > { %1427 = vst.msk [vmem:[#allocation2 + $0x1b0] sm:$0xff] %vm1219_vm4, %v1419_v46  ;;  %7486 = vmatmul.mubr.msk.f32.gmra.mxu0 %vm1859_vm6, %v1829_v50  ;;  %1468 = vrot.lane.b32.xlu1 %v9156_v12, %s11036_s19  ;;  %v2912_v46 = vld [vmem:[#allocation4 + $0xe] sm:$0xff] }
 0x2bc   : > { %2538 = vst.msk [vmem:[#allocation3 + $0x100] sm:$0xff] %vm2505_vm7, %v2307_v3  ;;  %612 = vrot.lane.b32.xlu0 %v8345_v8, %s8159_s11  ;;  %v9597_v3 = vld [vmem:[#allocation4 + $0x19] sm:$0xff]  ;;  %s8165_s11 = smov 72  }
 0x2bd   : > { %v1714_v54 = vpop.permute.xlu1 %1713 }
 0x2be   : > { %v1421_v53 = vpop.permute.xlu0 %1420  ;;  %1722 = vst.msk [vmem:[#allocation2 + $0x1b0] sm:$0xff] %vm1505_vm5, %v1714_v54 }
 0x2bf   : > { %1428 = vst.msk [vmem:[#allocation2 + $0x1b8] sm:$0xff] %vm1219_vm4, %v1421_v53  ;;  %620 = vrot.lane.b32.xlu1 %v8327_v4, %s8160_s15 }
 0x2c0   : > { %1752 = vrot.lane.b32.xlu0 %v9088_v22, %s11017_s27 }
 0x2c1   : > { %v851_v57 = vpop.permute.xlu1 %850 }
 0x2c2   : > { %v573_v56 = vpop.permute.xlu0 %572  ;;  %857 = vst.msk [vmem:[#allocation2 + $0x1c0] sm:$0xff] %vm647_vm2, %v851_v57  ;;  %v2868_v57 = vld [vmem:[#allocation4 + $0x1] sm:$0xff] }
 0x2c3   : > { %581 = vst.msk [vmem:[#allocation2 + $0x1c8] sm:$0xff] %vm349_vm0, %v573_v56  ;;  %1754 = vrot.lane.b32.xlu1 %v9109_v30, %s11017_s27  ;;  %v2701_v11 = vld [vmem:[#allocation3 + $0x100] ss:$2 sm:$0xf] }
 0x2c4   : > { %898 = vrot.lane.b32.xlu0 %v8620_v9, %s11040_s12  ;;  %v2705_v13 = vld [vmem:[#allocation3 + $0x101] ss:$2 sm:$0xf]  ;;  %s8163_s12 = smov 52  }
 0x2c5   : > { %v859_v58 = vpop.permute.xlu1 %858  ;;  %v1830_v61 = vld [vmem:[#allocation2 + $0x1b0] sm:$0xff]  ;;  %v9605_v56 = vld [vmem:[#allocation4 + $0x1a] sm:$0xff] }
 0x2c6   : > { %v1716_v34 = vpop.permute.xlu0 %1715  ;;  %867 = vst.msk [vmem:[#allocation2 + $0x1c8] sm:$0xff] %vm647_vm2, %v859_v58  ;;  %7488 = vmatprep.mubr.msk.f32.mxu0 %vm1859_vm6, %v1830_v61 }
 0x2c7   : > { %1723 = vst.msk [vmem:[#allocation2 + $0x1b8] sm:$0xff] %vm1505_vm5, %v1716_v34  ;;  %1184 = vrot.lane.b32.xlu1 %v8637_v16, %s11038_s0 }
 0x2c8   : > { %906 = vrot.lane.b32.xlu0 %v8570_v52, %s11041_s20 }
 0x2c9   : > { %v1145_v22 = vpop.permute.xlu1 %1144 }
 0x2ca   : > { %v1137_v4 = vpop.permute.xlu0 %1136  ;;  %1153 = vst.msk [vmem:[#allocation2 + $0x1c8] sm:$0xff] %vm933_vm3, %v1145_v22  ;;  %v7460_v30 = vpop.f32.mrf.mxu0 }
 0x2cb   : > { %1143 = vst.msk [vmem:[#allocation2 + $0x1c0] sm:$0xff] %vm933_vm3, %v1137_v4  ;;  %v2322_v62 = vadd.f32 %v9315_v31, %v7460_v30  ;;  %1470 = vrot.lane.b32.xlu1 %v9186_v5, %s11036_s19  ;;  %v2919_v4 = vld [vmem:[#allocation4 + $0xf] sm:$0xff]  ;;  %s8175_s19 = smov 56  }
 0x2cc   : > { %1192 = vrot.lane.b32.xlu0 %v8587_v59, %s11042_s14  ;;  %v2316_v63 = vpop.f32.mrf.mxu0 }
 0x2cd   : > { %2541 = vst.msk [vmem:[#allocation3 + $0x118] sm:$0xff] %vm2505_vm7, %v2322_v62  ;;  %v2317_v52 = vadd.f32 %v9315_v31, %v2316_v63  ;;  %v575_v2 = vpop.permute.xlu1 %574  ;;  %v7636_v62 = vld [vmem:[%s10918_s3 + $0x78] sm:$0xff]  }
 0x2ce   : > { %v1423_v1 = vpop.permute.xlu0 %1422  ;;  %v1831_v6 = vld [vmem:[#allocation2 + $0x1b8] sm:$0xff]  ;;  %582 = vst.msk [vmem:[#allocation2 + $0x1d0] sm:$0xff] %vm349_vm0, %v575_v2  ;;  %7275 = vmatprep.subr.bf16.mxu1 %v7636_v62 }
 0x2cf   : > { %1429 = vst.msk [vmem:[#allocation2 + $0x1c0] sm:$0xff] %vm1219_vm4, %v1423_v1  ;;  %7489 = vmatmul.mubr.msk.f32.gmra.mxu0 %vm1859_vm6, %v1831_v6  ;;  %1478 = vrot.lane.b32.xlu1 %v9144_v47, %s11037_s9  ;;  %v2715_v47 = vmax.f32 %v2701_v11, %v2705_v13  ;;  %v7637_v2 = vld [vmem:[%s10918_s3 + $0x38] sm:$0xff]  }
 0x2d0   : > { %2540 = vst.msk [vmem:[#allocation3 + $0x110] sm:$0xff] %vm2505_vm7, %v2317_v52  ;;  %622 = vrot.lane.b32.xlu0 %v8338_v7, %s8160_s15  ;;  %v9626_v6 = vld [vmem:[#allocation4 + $0x1b] sm:$0xff]  ;;  %7276 = vmatpush3.bf16.msra.mxu1 %v7637_v2 }
 0x2d1   : > { %v1718_v10 = vpop.permute.xlu1 %1717 }
 0x2d2   : > { %v1431_v59 = vpop.permute.xlu0 %1430  ;;  %1724 = vst.msk [vmem:[#allocation2 + $0x1c0] sm:$0xff] %vm1505_vm5, %v1718_v10  ;;  %v7638_v10 = vld [vmem:[%s10918_s3 + $0x70] sm:$0xff]  }
 0x2d3   : > { %1439 = vst.msk [vmem:[#allocation2 + $0x1c8] sm:$0xff] %vm1219_vm4, %v1431_v59  ;;  %624 = vrot.lane.b32.xlu1 %v8345_v8, %s8160_s15  ;;  %v2875_v59 = vld [vmem:[#allocation4 + $0x2] sm:$0xff]  ;;  %7277 = vmatprep.subr.bf16.mxu1 %v7638_v10  ;;  %s8176_s15 = smov 76  }
 0x2d4   : > { %1756 = vrot.lane.b32.xlu0 %v9200_v14, %s11017_s27  ;;  %v2709_v7 = vld [vmem:[#allocation3 + $0x118] ss:$2 sm:$0xf]  ;;  %v2713_v21 = vld [vmem:[#allocation3 + $0x119] ss:$2 sm:$0xf]  ;;  %7278 = vmatpush3.bf16.msra.mxu1 %v7639_v19 }
 0x2d5   : > { %v2717_v23 = vmax.f32 %v2709_v7, %v2713_v21  ;;  %v861_v25 = vpop.permute.xlu1 %860  ;;  %v7640_v7 = vld [vmem:[%s10918_s3 + $0x68] sm:$0xff]   ;;  %v9737_v19 = vld [vmem:[#allocation4 + $0x31] sm:$0xff] }
 0x2d6   : > { %v577_v24 = vpop.permute.xlu0 %576  ;;  %868 = vst.msk [vmem:[#allocation2 + $0x1d0] sm:$0xff] %vm647_vm2, %v861_v25  ;;  %7279 = vmatprep.subr.bf16.mxu1 %v7640_v7  ;;  %v2882_v25 = vld [vmem:[#allocation4 + $0x3] sm:$0xff] }
 0x2d7   : > { %v2707_v17 = vld [vmem:[#allocation3 + $0x108] ss:$2 sm:$0xff]  ;;  %v2711_v26 = vld [vmem:[#allocation3 + $0x109] ss:$2 sm:$0xff]  ;;  %583 = vst.msk [vmem:[#allocation2 + $0x1d8] sm:$0xff] %vm349_vm0, %v577_v24  ;;  %1764 = vrot.lane.b32.xlu1 %v9553_v28, %s11020_s26  ;;  %v2719_v8 = vmax.f32 %v2715_v47, %v2717_v23  ;;  %v9654_v24 = vld [vmem:[#allocation4 + $0x1c] sm:$0xff] }
 0x2d8   : > { %v2716_v27 = vmax.f32 %v2707_v17, %v2711_v26  ;;  %908 = vrot.lane.b32.xlu0 %v8579_v55, %s11041_s20  ;;  %v7641_v23 = vld [vmem:[%s10918_s3 + $0x28] sm:$0xff]   ;;  %v7642_v26 = vld [vmem:[%s10918_s3 + $0x60] sm:$0xff]  }
 0x2d9   : > { %v863_v32 = vpop.permute.xlu1 %862  ;;  %v1832_v33 = vld [vmem:[#allocation2 + $0x1c0] sm:$0xff]  ;;  %2721 = vst.msk [vmem:[#allocation4 + $0x44] sm:$0xf] %vm2600_vm8, %v2719_v8  ;;  %7280 = vmatpush3.bf16.msra.mxu1 %v7641_v23 }
 0x2da   : > { %v1726_v29 = vpop.permute.xlu0 %1725  ;;  %v2718_v35 = vmax.f32 %v2714_v18, %v2716_v27  ;;  %869 = vst.msk [vmem:[#allocation2 + $0x1d8] sm:$0xff] %vm647_vm2, %v863_v32  ;;  %7491 = vmatprep.mubr.msk.f32.mxu0 %vm1859_vm6, %v1832_v33  ;;  %7281 = vmatprep.subr.bf16.mxu1 %v7642_v26  ;;  %v3111_v10 = vld [vmem:[#allocation4 + $0x26] sm:$0xff] }
 0x2db   : > { %1734 = vst.msk [vmem:[#allocation2 + $0x1c8] sm:$0xff] %vm1505_vm5, %v1726_v29  ;;  %1194 = vrot.lane.b32.xlu1 %v8592_v60, %s11042_s14  ;;  %v7644_v29 = vld [vmem:[%s10918_s3 + $0x58] sm:$0xff]  }
 0x2dc   : > { %910 = vrot.lane.b32.xlu0 %v8620_v9, %s11041_s20  ;;  %2720 = vst.msk [vmem:[#allocation4 + $0x3c] sm:$0xff] %vm2505_vm7, %v2718_v35  ;;  %v7645_v35 = vld [vmem:[%s10918_s3 + $0x18] sm:$0xff]  }
 0x2dd   : > { %v1149_v51 = vpop.permute.xlu1 %1148 }
 0x2de   : > { %v1147_v55 = vpop.permute.xlu0 %1146  ;;  %1155 = vst.msk [vmem:[#allocation2 + $0x1d8] sm:$0xff] %vm933_vm3, %v1149_v51  ;;  %v7463_v37 = vpop.f32.mrf.mxu0 }
 0x2df   : > { %1154 = vst.msk [vmem:[#allocation2 + $0x1d0] sm:$0xff] %vm933_vm3, %v1147_v55  ;;  %v2332_v40 = vadd.f32 %v9315_v31, %v7463_v37  ;;  %1480 = vrot.lane.b32.xlu1 %v9156_v12, %s11037_s9  ;;  %v2889_v37 = vld [vmem:[#allocation4 + $0x4] sm:$0xff] }
 0x2e0   : > { %1196 = vrot.lane.b32.xlu0 %v8637_v16, %s11042_s14  ;;  %v2326_v9 = vpop.f32.mrf.mxu0  ;;  %v9584_v16 = vld [vmem:[%s8308_s22 + $0xc] sm:$0xff]  ;;  %s11043_s22 = smov 20   ;;  %s8167_s14 = smov 92  }
 0x2e1   : > { %2543 = vst.msk [vmem:[#allocation3 + $0x128] sm:$0xff] %vm2505_vm7, %v2332_v40  ;;  %v2327_v60 = vadd.f32 %v9315_v31, %v2326_v9  ;;  %v1435_v0 = vpop.permute.xlu1 %1434  ;;  %v7646_v9 = vld [vmem:[%s10918_s3 + $0x50] sm:$0xff]  }
 0x2e2   : > { %v1433_v41 = vpop.permute.xlu0 %1432  ;;  %v1833_v39 = vld [vmem:[#allocation2 + $0x1c8] sm:$0xff]  ;;  %1441 = vst.msk [vmem:[#allocation2 + $0x1d8] sm:$0xff] %vm1219_vm4, %v1435_v0  ;;  %v7647_v0 = vld [vmem:[%s10918_s3 + $0x10] sm:$0xff]  }
 0x2e3   : > { %1440 = vst.msk [vmem:[#allocation2 + $0x1d0] sm:$0xff] %vm1219_vm4, %v1433_v41  ;;  %7492 = vmatmul.mubr.msk.f32.gmra.mxu0 %vm1859_vm6, %v1833_v39  ;;  %v9578_v42 = vld [vmem:[#allocation4 + $0x3c] sm:$0xff]  ;;  %1766 = vrot.lane.b32.xlu1 %v9584_v16, %s11020_s26 }
 0x2e4   : > { %2542 = vst.msk [vmem:[#allocation3 + $0x120] sm:$0xff] %vm2505_vm7, %v2327_v60  ;;  %1482 = vrot.lane.b32.xlu0 %v9186_v5, %s11037_s9  ;;  %3639 = vst.msk [vmem:[#allocation5 + $0xa0] sm:$0xff] %vm2505_vm7, %v9578_v42 }
 0x2e5   : > { %v1730_v43 = vpop.permute.xlu1 %1729 }
 0x2e6   : > { %v1728_v12 = vpop.permute.xlu0 %1727  ;;  %1736 = vst.msk [vmem:[#allocation2 + $0x1d8] sm:$0xff] %vm1505_vm5, %v1730_v43  ;;  %v7649_v43 = vld [vmem:[%s10918_s3 + $0x8] sm:$0xff]  }
 0x2e7   : > { %1735 = vst.msk [vmem:[#allocation2 + $0x1d0] sm:$0xff] %vm1505_vm5, %v1728_v12  ;;  %2905 = vrot.lane.b32.xlu1 %v2903_v44, %s11037_s9 }
 0x2e8   : > { %1768 = vrot.lane.b32.xlu0 %v9200_v14, %s11020_s26  ;;  %s8161_s26 = smov 32  }
 0x2e9   : > { %v587_v45 = vpop.permute.xlu1 %586 }
 0x2ea   : > { %v585_v5 = vpop.permute.xlu0 %584  ;;  %594 = vst.msk [vmem:[#allocation2 + $0x1e8] sm:$0xff] %vm349_vm0, %v587_v45 }
 0x2eb   : > { %593 = vst.msk [vmem:[#allocation2 + $0x1e0] sm:$0xff] %vm349_vm0, %v585_v5  ;;  %2914 = vrot.lane.b32.xlu1 %v2912_v46, %s11023_s16  ;;  %v9708_v5 = vld [vmem:[#allocation4 + $0x25] sm:$0xff] }
 0x2ec   : > { %3076 = vrot.lane.b32.xlu0 %v9597_v3, %s11037_s9 }
 0x2ed   : > { %v873_v50 = vpop.permute.xlu1 %872  ;;  %v1835_v54 = vld [vmem:[#allocation2 + $0x1d8] sm:$0xff] }
 0x2ee   : > { %v871_v48 = vpop.permute.xlu0 %870  ;;  %v1834_v53 = vld [vmem:[#allocation2 + $0x1d0] sm:$0xff]  ;;  %880 = vst.msk [vmem:[#allocation2 + $0x1e8] sm:$0xff] %vm647_vm2, %v873_v50 }
 0x2ef   : > { %879 = vst.msk [vmem:[#allocation2 + $0x1e0] sm:$0xff] %vm647_vm2, %v871_v48  ;;  %7494 = vmatprep.mubr.msk.f32.mxu0 %vm1859_vm6, %v1834_v53  ;;  %2870 = vrot.lane.b32.xlu1 %v2868_v57, %s11043_s22  ;;  %v2727_v48 = vld [vmem:[#allocation3 + $0x121] ss:$2 sm:$0xff] }
 0x2f0   : > { %7495 = vmatmul.mubr.msk.f32.gmra.mxu0 %vm1859_vm6, %v1835_v54  ;;  %3083 = vrot.lane.b32.xlu0 %v9605_v56, %s11023_s16 }
 0x2f1   : > { %v1159_v58 = vpop.permute.xlu1 %1158 }
 0x2f2   : > { %v1157_v34 = vpop.permute.xlu0 %1156  ;;  %1166 = vst.msk [vmem:[#allocation2 + $0x1e8] sm:$0xff] %vm933_vm3, %v1159_v58  ;;  %v7466_v61 = vpop.f32.mrf.mxu0 }
 0x2f3   : > { %1165 = vst.msk [vmem:[#allocation2 + $0x1e0] sm:$0xff] %vm933_vm3, %v1157_v34  ;;  %v2342_v22 = vadd.f32 %v9315_v31, %v7466_v61  ;;  %3046 = vrot.lane.b32.xlu1 %v2903_v44, %s11043_s22  ;;  %v7650_v61 = vld [vmem:[%s10918_s3 + $0x40] sm:$0xff]  }
 0x2f4   : > { %2921 = vrot.lane.b32.xlu0 %v2919_v4, %s8161_s26  ;;  %v2336_v30 = vpop.f32.mrf.mxu0 }
 0x2f5   : > { %2545 = vst.msk [vmem:[#allocation3 + $0x138] sm:$0xff] %vm2505_vm7, %v2342_v22  ;;  %v2337_v63 = vadd.f32 %v9315_v31, %v2336_v30  ;;  %v589_v1 = vpop.permute.xlu1 %588 }
 0x2f6   : > { %v1443_v52 = vpop.permute.xlu0 %1442  ;;  %595 = vst.msk [vmem:[#allocation2 + $0x1f0] sm:$0xff] %vm349_vm0, %v589_v1 }
 0x2f7   : > { %1451 = vst.msk [vmem:[#allocation2 + $0x1e0] sm:$0xff] %vm1219_vm4, %v1443_v52  ;;  %2877 = vrot.lane.b32.xlu1 %v2875_v59, %s8162_s18 }
 0x2f8   : > { %2544 = vst.msk [vmem:[#allocation3 + $0x130] sm:$0xff] %vm2505_vm7, %v2337_v63  ;;  %3089 = vrot.lane.b32.xlu0 %v9626_v6, %s8161_s26 }
 0x2f9   : > { %1737 = vst.msk [vmem:[#allocation2 + $0x1e0] sm:$0xff] %vm1505_vm5, %v9553_v28  ;;  %v597_v13 = vpop.permute.xlu1 %596  ;;  %v7643_v28 = vld [vmem:[%s10918_s3 + $0x20] sm:$0xff]  }
 0x2fa   : > { %v1445_v11 = vpop.permute.xlu0 %1444  ;;  %605 = vst.msk [vmem:[#allocation2 + $0x1f8] sm:$0xff] %vm349_vm0, %v597_v13  ;;  %7282 = vmatpush3.bf16.msra.mxu1 %v7643_v28  ;;  %v9765_v28 = vld [vmem:[#allocation4 + $0x27] sm:$0xff] }
 0x2fb   : > { %1452 = vst.msk [vmem:[#allocation2 + $0x1e8] sm:$0xff] %vm1219_vm4, %v1445_v11  ;;  %3052 = vrot.lane.b32.xlu1 %v2912_v46, %s8162_s18  ;;  %7283 = vmatprep.subr.bf16.mxu1 %v7644_v29  ;;  %v2723_v46 = vld [vmem:[#allocation3 + $0x120] ss:$2 sm:$0xff] }
 0x2fc   : > { %1738 = vst.msk [vmem:[#allocation2 + $0x1e8] sm:$0xff] %vm1505_vm5, %v9584_v16  ;;  %2928 = vrot.lane.b32.xlu0 %v2926_v20, %s8163_s12 }
 0x2fd   : > { %v883_v47 = vpop.permute.xlu1 %882 }
 0x2fe   : > { %v875_v21 = vpop.permute.xlu0 %874  ;;  %891 = vst.msk [vmem:[#allocation2 + $0x1f8] sm:$0xff] %vm647_vm2, %v883_v47  ;;  %7284 = vmatpush3.bf16.msra.mxu1 %v7645_v35 }
 0x2ff   : > { %881 = vst.msk [vmem:[#allocation2 + $0x1f0] sm:$0xff] %vm647_vm2, %v875_v21  ;;  %2884 = vrot.lane.b32.xlu1 %v2882_v25, %s8164_s24  ;;  %7285 = vmatprep.subr.bf16.mxu1 %v7646_v9  ;;  %v2725_v39 = vld [vmem:[#allocation3 + $0x130] ss:$2 sm:$0xf] }
 0x300   : > { %3095 = vrot.lane.b32.xlu0 %v9654_v24, %s8163_s12  ;;  %v1836_v17 = vld [vmem:[#allocation2 + $0x1e0] sm:$0xff]  ;;  %v2729_v44 = vld [vmem:[#allocation3 + $0x131] ss:$2 sm:$0xf] }
 0x301   : > { %7497 = vmatprep.mubr.msk.f32.mxu0 %vm1859_vm6, %v1836_v17  ;;  %v1169_v27 = vpop.permute.xlu1 %1168  ;;  %v2739_v54 = vmax.f32 %v2725_v39, %v2729_v44  ;;  %v9752_v17 = vld [vmem:[#allocation4 + $0x32] sm:$0xff] }
 0x302   : > { %v1161_v18 = vpop.permute.xlu0 %1160  ;;  %1177 = vst.msk [vmem:[#allocation2 + $0x1f8] sm:$0xff] %vm933_vm3, %v1169_v27  ;;  %7286 = vmatpush3.bf16.msra.mxu1 %v7647_v0  ;;  %v9790_v9 = vld [vmem:[#allocation4 + $0x34] sm:$0xff] }
 0x303   : > { %1167 = vst.msk [vmem:[#allocation2 + $0x1f0] sm:$0xff] %vm933_vm3, %v1161_v18  ;;  %v1837_v8 = vld [vmem:[#allocation2 + $0x1e8] sm:$0xff]  ;;  %3058 = vrot.lane.b32.xlu1 %v2919_v4, %s8164_s24  ;;  %v7651_v4 = vld [vmem:[%s10918_s3] sm:$0xff]  }
 0x304   : > { %2935 = vrot.lane.b32.xlu0 %v9242_v49, %s8165_s11  ;;  %7498 = vmatmul.mubr.msk.f32.gmra.mxu0 %vm1859_vm6, %v1837_v8 }
 0x305   : > { %v599_v33 = vpop.permute.xlu1 %598 }
 0x306   : > { %v1447_v32 = vpop.permute.xlu0 %1446  ;;  %606 = vst.msk [vmem:[#allocation2 + $0x200] sm:$0xff] %vm349_vm0, %v599_v33  ;;  %v7469_v55 = vpop.f32.mrf.mxu0 }
 0x307   : > { %1453 = vst.msk [vmem:[#allocation2 + $0x1f0] sm:$0xff] %vm1219_vm4, %v1447_v32  ;;  %v2352_v51 = vadd.f32 %v9315_v31, %v7469_v55  ;;  %2891 = vrot.lane.b32.xlu1 %v2889_v37, %s8166_s28  ;;  %v9773_v32 = vld [vmem:[#allocation4 + $0x33] sm:$0xff] }
 0x308   : > { %1739 = vst.msk [vmem:[#allocation2 + $0x1f0] sm:$0xff] %vm1505_vm5, %v9200_v14  ;;  %3101 = vrot.lane.b32.xlu0 %v9362_v15, %s8165_s11  ;;  %v2346_v40 = vpop.f32.mrf.mxu0 }
 0x309   : > { %2547 = vst.msk [vmem:[#allocation3 + $0x148] sm:$0xff] %vm2505_vm7, %v2352_v51  ;;  %v2347_v60 = vadd.f32 %v9315_v31, %v2346_v40  ;;  %v601_v41 = vpop.permute.xlu1 %600  ;;  %v7648_v31 = vld [vmem:[%s10918_s3 + $0x48] sm:$0xff]  }
 0x30a   : > { %v1455_v14 = vpop.permute.xlu0 %1454  ;;  %607 = vst.msk [vmem:[#allocation2 + $0x208] sm:$0xff] %vm349_vm0, %v601_v41  ;;  %7287 = vmatprep.subr.bf16.mxu1 %v7648_v31  ;;  %v9782_v51 = vld [vmem:[#allocation4 + $0x28] sm:$0xff] }
 0x30b   : > { %1463 = vst.msk [vmem:[#allocation2 + $0x1f8] sm:$0xff] %vm1219_vm4, %v1455_v14  ;;  %3064 = vrot.lane.b32.xlu1 %v2926_v20, %s8166_s28  ;;  %7288 = vmatpush3.bf16.msra.mxu1 %v7649_v43  ;;  %v9742_v20 = vld [vmem:[%s10917_s2] ss:$0 sm:$0xff] }
 0x30c   : > { %2546 = vst.msk [vmem:[#allocation3 + $0x140] sm:$0xff] %vm2505_vm7, %v2347_v60  ;;  %2942 = vrot.lane.b32.xlu0 %v9597_v3, %s8167_s14  ;;  %7289 = vmatprep.subr.bf16.mxu1 %v7650_v61 }
 0x30d   : > { %v1741_v12 = vpop.permute.xlu1 %1740 }
 0x30e   : > { %v885_v16 = vpop.permute.xlu0 %884  ;;  %1749 = vst.msk [vmem:[#allocation2 + $0x1f8] sm:$0xff] %vm1505_vm5, %v1741_v12 }
 0x30f   : > { %892 = vst.msk [vmem:[#allocation2 + $0x200] sm:$0xff] %vm647_vm2, %v885_v16  ;;  %v1838_v45 = vld [vmem:[#allocation2 + $0x1f0] sm:$0xff]  ;;  %2898 = vrot.lane.b32.xlu1 %v9122_v36, %s8168_s29  ;;  %v2738_v36 = vmax.f32 %v2723_v46, %v2727_v48  ;;  %7290 = vmatpush3.bf16.msra.mxu1 %v7651_v4  ;;  %v9821_v46 = vld [vmem:[#allocation4 + $0x3d] sm:$0xff] }
 0x310   : > { %3107 = vrot.lane.b32.xlu0 %v9708_v5, %s8167_s14  ;;  %7500 = vmatprep.mubr.msk.f32.mxu0 %vm1859_vm6, %v1838_v45  ;;  %v2733_v50 = vld [vmem:[#allocation3 + $0x148] ss:$2 sm:$0xf]  ;;  %v2737_v53 = vld [vmem:[#allocation3 + $0x149] ss:$2 sm:$0xf] }
 0x311   : > { %v2741_v57 = vmax.f32 %v2733_v50, %v2737_v53  ;;  %v1171_v58 = vpop.permute.xlu1 %1170 }
 0x312   : > { %v887_v34 = vpop.permute.xlu0 %886  ;;  %1178 = vst.msk [vmem:[#allocation2 + $0x200] sm:$0xff] %vm933_vm3, %v1171_v58  ;;  %v9838_v58 = vld [vmem:[#allocation4 + $0x3e] sm:$0xff] }
 0x313   : > { %v2731_v22 = vld [vmem:[#allocation3 + $0x138] ss:$2 sm:$0xff]  ;;  %v2735_v30 = vld [vmem:[#allocation3 + $0x139] ss:$2 sm:$0xff]  ;;  %893 = vst.msk [vmem:[#allocation2 + $0x208] sm:$0xff] %vm647_vm2, %v887_v34  ;;  %v2743_v63 = vmax.f32 %v2739_v54, %v2741_v57  ;;  %3070 = vrot.lane.b32.xlu1 %v9242_v49, %s8168_s29 }
 0x314   : > { %v2740_v62 = vmax.f32 %v2731_v22, %v2735_v30  ;;  %2949 = vrot.lane.b32.xlu0 %v9605_v56, %s11039_s23 }
 0x315   : > { %v1457_v1 = vpop.permute.xlu1 %1456  ;;  %v1839_v2 = vld [vmem:[#allocation2 + $0x1f8] sm:$0xff]  ;;  %2745 = vst.msk [vmem:[#allocation4 + $0x50] sm:$0xf] %vm2600_vm8, %v2743_v63 }
 0x316   : > { %v1173_v52 = vpop.permute.xlu0 %1172  ;;  %v2742_v59 = vmax.f32 %v2738_v36, %v2740_v62  ;;  %1464 = vst.msk [vmem:[#allocation2 + $0x200] sm:$0xff] %vm1219_vm4, %v1457_v1  ;;  %7501 = vmatmul.mubr.msk.f32.gmra.mxu0 %vm1859_vm6, %v1839_v2 }
 0x317   : > { %1179 = vst.msk [vmem:[#allocation2 + $0x208] sm:$0xff] %vm933_vm3, %v1173_v52  ;;  %3225 = vrot.lane.b32.xlu1 %v9708_v5, %s11037_s9 }
 0x318   : > { %3113 = vrot.lane.b32.xlu0 %v3111_v10, %s11039_s23  ;;  %2744 = vst.msk [vmem:[#allocation4 + $0x48] sm:$0xff] %vm2505_vm7, %v2742_v59 }
 0x319   : > { %v1459_v11 = vpop.permute.xlu1 %1458 }
 0x31a   : > { %v609_v49 = vpop.permute.xlu0 %608  ;;  %1465 = vst.msk [vmem:[#allocation2 + $0x208] sm:$0xff] %vm1219_vm4, %v1459_v11  ;;  %v7472_v13 = vpop.f32.mrf.mxu0 }
 0x31b   : > { %617 = vst.msk [vmem:[#allocation2 + $0x210] sm:$0xff] %vm349_vm0, %v609_v49  ;;  %v2362_v7 = vadd.f32 %v9742_v20, %v7472_v13  ;;  %3232 = vrot.lane.b32.xlu1 %v3111_v10, %s11023_s16 }
 0x31c   : > { %3374 = vrot.lane.b32.xlu0 %v9737_v19, %s11037_s9  ;;  %v2356_v21 = vpop.f32.mrf.mxu0 }
 0x31d   : > { %2549 = vst.msk [vmem:[#allocation3 + $0x158] sm:$0xff] %vm2505_vm7, %v2362_v7  ;;  %v2357_v47 = vadd.f32 %v9742_v20, %v2356_v21  ;;  %v611_v25 = vpop.permute.xlu1 %610 }
 0x31e   : > { %v1743_v23 = vpop.permute.xlu0 %1742  ;;  %618 = vst.msk [vmem:[#allocation2 + $0x218] sm:$0xff] %vm349_vm0, %v611_v25 }
 0x31f   : > { %1750 = vst.msk [vmem:[#allocation2 + $0x200] sm:$0xff] %vm1505_vm5, %v1743_v23  ;;  %v9757_v26 = vld [vmem:[#allocation4 + $0x48] sm:$0xff]  ;;  %3195 = vrot.lane.b32.xlu1 %v9597_v3, %s11043_s22 }
 0x320   : > { %2548 = vst.msk [vmem:[#allocation3 + $0x150] sm:$0xff] %vm2505_vm7, %v2357_v47  ;;  %3381 = vrot.lane.b32.xlu0 %v9752_v17, %s11023_s16  ;;  %3788 = vst.msk [vmem:[#allocation5 + $0xc0] sm:$0xff] %vm2505_vm7, %v9757_v26  ;;  %v9848_v49 = vld [vmem:[#allocation4 + $0x49] sm:$0xff] }
 0x321   : > { %v1745_v27 = vpop.permute.xlu1 %1744 }
 0x322   : > { %v895_v18 = vpop.permute.xlu0 %894  ;;  %1751 = vst.msk [vmem:[#allocation2 + $0x208] sm:$0xff] %vm1505_vm5, %v1745_v27 }
 0x323   : > { %903 = vst.msk [vmem:[#allocation2 + $0x210] sm:$0xff] %vm647_vm2, %v895_v18  ;;  %3344 = vrot.lane.b32.xlu1 %v9708_v5, %s11043_s22  ;;  %v9857_v18 = vld [vmem:[#allocation4 + $0x4a] sm:$0xff] }
 0x324   : > { %3238 = vrot.lane.b32.xlu0 %v9765_v28, %s8161_s26 }
 0x325   : > { %v1181_v29 = vpop.permute.xlu1 %1180 }
 0x326   : > { %v897_v8 = vpop.permute.xlu0 %896  ;;  %v1840_v3 = vld [vmem:[#allocation2 + $0x200] sm:$0xff]  ;;  %1189 = vst.msk [vmem:[#allocation2 + $0x210] sm:$0xff] %vm933_vm3, %v1181_v29 }
 0x327   : > { %904 = vst.msk [vmem:[#allocation2 + $0x218] sm:$0xff] %vm647_vm2, %v897_v8  ;;  %7503 = vmatprep.mubr.msk.f32.mxu0 %vm1859_vm6, %v1840_v3  ;;  %3201 = vrot.lane.b32.xlu1 %v9605_v56, %s8162_s18  ;;  %v2747_v22 = vld [vmem:[#allocation3 + $0x150] ss:$2 sm:$0xff]  ;;  %v2751_v30 = vld [vmem:[#allocation3 + $0x151] ss:$2 sm:$0xff] }
 0x328   : > { %3387 = vrot.lane.b32.xlu0 %v9773_v32, %s8161_s26  ;;  %v2762_v11 = vmax.f32 %v2747_v22, %v2751_v30 }
 0x329   : > { %v1467_v35 = vpop.permute.xlu1 %1466  ;;  %v1841_v55 = vld [vmem:[#allocation2 + $0x208] sm:$0xff] }
 0x32a   : > { %v1183_v33 = vpop.permute.xlu0 %1182  ;;  %1475 = vst.msk [vmem:[#allocation2 + $0x210] sm:$0xff] %vm1219_vm4, %v1467_v35  ;;  %7504 = vmatmul.mubr.msk.f32.gmra.mxu0 %vm1859_vm6, %v1841_v55 }
 0x32b   : > { %1190 = vst.msk [vmem:[#allocation2 + $0x218] sm:$0xff] %vm933_vm3, %v1183_v33  ;;  %3350 = vrot.lane.b32.xlu1 %v3111_v10, %s8162_s18  ;;  %v9867_v33 = vld [vmem:[#allocation4 + $0x3f] sm:$0xff] }
 0x32c   : > { %3244 = vrot.lane.b32.xlu0 %v9782_v51, %s8163_s12 }
 0x32d   : > { %v1469_v40 = vpop.permute.xlu1 %1468 }
 0x32e   : > { %v613_v37 = vpop.permute.xlu0 %612  ;;  %1476 = vst.msk [vmem:[#allocation2 + $0x218] sm:$0xff] %vm1219_vm4, %v1469_v40 }
 0x32f   : > { %619 = vst.msk [vmem:[#allocation2 + $0x220] sm:$0xff] %vm349_vm0, %v613_v37  ;;  %v7475_v56 = vpop.f32.mrf.mxu0  ;;  %3207 = vrot.lane.b32.xlu1 %v9626_v6, %s8164_s24 }
 0x330   : > { %v2372_v60 = vadd.f32 %v9742_v20, %v7475_v56  ;;  %3393 = vrot.lane.b32.xlu0 %v9790_v9, %s8163_s12  ;;  %v9879_v56 = vld [vmem:[#allocation4 + $0x4b] sm:$0xff] }
 0x331   : > { %v2366_v14 = vpop.f32.mrf.mxu0  ;;  %v621_v31 = vpop.permute.xlu1 %620 }
 0x332   : > { %2551 = vst.msk [vmem:[#allocation3 + $0x168] sm:$0xff] %vm2505_vm7, %v2372_v60  ;;  %v2367_v41 = vadd.f32 %v9742_v20, %v2366_v14  ;;  %v1753_v0 = vpop.permute.xlu0 %1752 }
 0x333   : > { %1761 = vst.msk [vmem:[#allocation2 + $0x210] sm:$0xff] %vm1505_vm5, %v1753_v0  ;;  %3356 = vrot.lane.b32.xlu1 %v9765_v28, %s8164_s24  ;;  %v9895_v0 = vld [vmem:[#allocation4 + $0x40] sm:$0xff] }
 0x334   : > { %629 = vst.msk [vmem:[#allocation2 + $0x228] sm:$0xff] %vm349_vm0, %v621_v31  ;;  %3250 = vrot.lane.b32.xlu0 %v9478_v38, %s8165_s11 }
 0x335   : > { %2550 = vst.msk [vmem:[#allocation3 + $0x160] sm:$0xff] %vm2505_vm7, %v2367_v41  ;;  %v1755_v39 = vpop.permute.xlu1 %1754 }
 0x336   : > { %v899_v6 = vpop.permute.xlu0 %898  ;;  %1762 = vst.msk [vmem:[#allocation2 + $0x218] sm:$0xff] %vm1505_vm5, %v1755_v39  ;;  %v9906_v39 = vld [vmem:[#allocation4 + $0x4c] sm:$0xff] }
 0x337   : > { %905 = vst.msk [vmem:[#allocation2 + $0x220] sm:$0xff] %vm647_vm2, %v899_v6  ;;  %3213 = vrot.lane.b32.xlu1 %v9654_v24, %s8166_s28 }
 0x338   : > { %3399 = vrot.lane.b32.xlu0 %v9578_v42, %s8165_s11 }
 0x339   : > { %v1185_v12 = vpop.permute.xlu1 %1184 }
 0x33a   : > { %v907_v16 = vpop.permute.xlu0 %906  ;;  %v1842_v43 = vld [vmem:[#allocation2 + $0x210] sm:$0xff]  ;;  %1191 = vst.msk [vmem:[#allocation2 + $0x220] sm:$0xff] %vm933_vm3, %v1185_v12 }
 0x33b   : > { %915 = vst.msk [vmem:[#allocation2 + $0x228] sm:$0xff] %vm647_vm2, %v907_v16  ;;  %7506 = vmatprep.mubr.msk.f32.mxu0 %vm1859_vm6, %v1842_v43  ;;  %3362 = vrot.lane.b32.xlu1 %v9782_v51, %s8166_s28 }
 0x33c   : > { %3256 = vrot.lane.b32.xlu0 %v9737_v19, %s8167_s14  ;;  %v2749_v61 = vld [vmem:[#allocation3 + $0x160] ss:$2 sm:$0xf]  ;;  %v2753_v4 = vld [vmem:[#allocation3 + $0x161] ss:$2 sm:$0xf] }
 0x33d   : > { %v1471_v5 = vpop.permute.xlu1 %1470  ;;  %v1843_v45 = vld [vmem:[#allocation2 + $0x218] sm:$0xff]  ;;  %v2763_v63 = vmax.f32 %v2749_v61, %v2753_v4 }
 0x33e   : > { %v1193_v44 = vpop.permute.xlu0 %1192  ;;  %1477 = vst.msk [vmem:[#allocation2 + $0x220] sm:$0xff] %vm1219_vm4, %v1471_v5  ;;  %7507 = vmatmul.mubr.msk.f32.gmra.mxu0 %vm1859_vm6, %v1843_v45 }
 0x33f   : > { %1201 = vst.msk [vmem:[#allocation2 + $0x228] sm:$0xff] %vm933_vm3, %v1193_v44  ;;  %v7478_v24 = vpop.f32.mrf.mxu0  ;;  %3219 = vrot.lane.b32.xlu1 %v9362_v15, %s8168_s29 }
 0x340   : > { %v2382_v48 = vadd.f32 %v9742_v20, %v7478_v24  ;;  %3405 = vrot.lane.b32.xlu0 %v9821_v46, %s8167_s14 }
 0x341   : > { %v2376_v50 = vpop.f32.mrf.mxu0  ;;  %v1479_v57 = vpop.permute.xlu1 %1478 }
 0x342   : > { %2553 = vst.msk [vmem:[#allocation3 + $0x178] sm:$0xff] %vm2505_vm7, %v2382_v48  ;;  %v2377_v53 = vadd.f32 %v9742_v20, %v2376_v50  ;;  %v623_v54 = vpop.permute.xlu0 %622 }
 0x343   : > { %630 = vst.msk [vmem:[#allocation2 + $0x230] sm:$0xff] %vm349_vm0, %v623_v54  ;;  %3368 = vrot.lane.b32.xlu1 %v9478_v38, %s8168_s29 }
 0x344   : > { %1487 = vst.msk [vmem:[#allocation2 + $0x228] sm:$0xff] %vm1219_vm4, %v1479_v57  ;;  %3262 = vrot.lane.b32.xlu0 %v9752_v17, %s11039_s23 }
 0x345   : > { %2552 = vst.msk [vmem:[#allocation3 + $0x170] sm:$0xff] %vm2505_vm7, %v2377_v53  ;;  %v625_v34 = vpop.permute.xlu1 %624 }
 0x346   : > { %v1757_v15 = vpop.permute.xlu0 %1756  ;;  %631 = vst.msk [vmem:[#allocation2 + $0x238] sm:$0xff] %vm349_vm0, %v625_v34  ;;  %vm2938_vm0 = vcmask 753216  }
 0x347   : > { %1763 = vst.msk [vmem:[#allocation2 + $0x220] sm:$0xff] %vm1505_vm5, %v1757_v15  ;;  %3523 = vrot.lane.b32.xlu1 %v9821_v46, %s11037_s9 }
 0x348   : > { %3411 = vrot.lane.b32.xlu0 %v9838_v58, %s11039_s23 }
 0x349   : > { %v2757_v36 = vld [vmem:[#allocation3 + $0x178] ss:$2 sm:$0xf]  ;;  %v2761_v62 = vld [vmem:[#allocation3 + $0x179] ss:$2 sm:$0xf]  ;;  %v1765_v2 = vpop.permute.xlu1 %1764 }
 0x34a   : > { %v2765_v52 = vmax.f32 %v2757_v36, %v2761_v62  ;;  %v909_v1 = vpop.permute.xlu0 %908  ;;  %1773 = vst.msk [vmem:[#allocation2 + $0x228] sm:$0xff] %vm1505_vm5, %v1765_v2 }
 0x34b   : > { %916 = vst.msk [vmem:[#allocation2 + $0x230] sm:$0xff] %vm647_vm2, %v909_v1  ;;  %3530 = vrot.lane.b32.xlu1 %v9838_v58, %s11023_s16 }
 0x34c   : > { %v2755_v59 = vld [vmem:[#allocation3 + $0x168] ss:$2 sm:$0xff]  ;;  %v2759_v10 = vld [vmem:[#allocation3 + $0x169] ss:$2 sm:$0xff]  ;;  %3672 = vrot.lane.b32.xlu0 %v9848_v49, %s11037_s9  ;;  %v2767_v7 = vmax.f32 %v2763_v63, %v2765_v52 }
 0x34d   : > { %v2764_v13 = vmax.f32 %v2755_v59, %v2759_v10  ;;  %v1195_v47 = vpop.permute.xlu1 %1194 }
 0x34e   : > { %v911_v21 = vpop.permute.xlu0 %910  ;;  %v1844_v25 = vld [vmem:[#allocation2 + $0x220] sm:$0xff]  ;;  %2769 = vst.msk [vmem:[#allocation4 + $0x5c] sm:$0xf] %vm2600_vm8, %v2767_v7 }
 0x34f   : > { %v2766_v23 = vmax.f32 %v2762_v11, %v2764_v13  ;;  %917 = vst.msk [vmem:[#allocation2 + $0x238] sm:$0xff] %vm647_vm2, %v911_v21  ;;  %7509 = vmatprep.mubr.msk.f32.mxu0 %vm1859_vm6, %v1844_v25  ;;  %3493 = vrot.lane.b32.xlu1 %v9737_v19, %s11043_s22  ;;  %vm10996_vm2 = vcmask 917216  }
 0x350   : > { %1202 = vst.msk [vmem:[#allocation2 + $0x230] sm:$0xff] %vm933_vm3, %v1195_v47  ;;  %3679 = vrot.lane.b32.xlu0 %v9857_v18, %s11023_s16 }
 0x351   : > { %2768 = vst.msk [vmem:[#allocation4 + $0x54] sm:$0xff] %vm2505_vm7, %v2766_v23  ;;  %v1481_v8 = vpop.permute.xlu1 %1480  ;;  %v1845_v29 = vld [vmem:[#allocation2 + $0x228] sm:$0xff] }
 0x352   : > { %v1197_v27 = vpop.permute.xlu0 %1196  ;;  %1488 = vst.msk [vmem:[#allocation2 + $0x230] sm:$0xff] %vm1219_vm4, %v1481_v8  ;;  %7510 = vmatmul.mubr.msk.f32.gmra.mxu0 %vm1859_vm6, %v1845_v29 }
 0x353   : > { %1203 = vst.msk [vmem:[#allocation2 + $0x238] sm:$0xff] %vm933_vm3, %v1197_v27  ;;  %v7481_v3 = vpop.f32.mrf.mxu0  ;;  %3642 = vrot.lane.b32.xlu1 %v9821_v46, %s11043_s22  ;;  %vm2901_vm3 = vcmask 982816  }
 0x354   : > { %v2392_v35 = vadd.f32 %v9742_v20, %v7481_v3  ;;  %3536 = vrot.lane.b32.xlu0 %v9867_v33, %s8161_s26 }
 0x355   : > { %v2386_v19 = vpop.f32.mrf.mxu0  ;;  %v1767_v40 = vpop.permute.xlu1 %1766 }
 0x356   : > { %2555 = vst.msk [vmem:[#allocation3 + $0x188] sm:$0xff] %vm2505_vm7, %v2392_v35  ;;  %v2387_v55 = vadd.f32 %v9742_v20, %v2386_v19  ;;  %v1483_v37 = vpop.permute.xlu0 %1482 }
 0x357   : > { %1489 = vst.msk [vmem:[#allocation2 + $0x238] sm:$0xff] %vm1219_vm4, %v1483_v37  ;;  %3499 = vrot.lane.b32.xlu1 %v9752_v17, %s8162_s18  ;;  %vm2908_vm4 = vcmask 1048512  }
 0x358   : > { %1774 = vst.msk [vmem:[#allocation2 + $0x230] sm:$0xff] %vm1505_vm5, %v1767_v40  ;;  %v9881_v60 = vld [vmem:[#allocation4 + $0x54] sm:$0xff]  ;;  %3685 = vrot.lane.b32.xlu0 %v9879_v56, %s8161_s26 }
 0x359   : > { %2554 = vst.msk [vmem:[#allocation3 + $0x180] sm:$0xff] %vm2505_vm7, %v2387_v55  ;;  %3937 = vst.msk [vmem:[#allocation5 + $0xe0] sm:$0xff] %vm2505_vm7, %v9881_v60  ;;  %v9890_v41 = vpop.permute.xlu1 %2905  ;;  %v3701_v54 = vld [vmem:[#allocation4 + $0x55] sm:$0xff] }
 0x35a   : > { %v1769_v14 = vpop.permute.xlu0 %1768  ;;  %2911 = vst.msk [vmem:[#allocation5 + $0x8] sm:$0xff] %vm2910_vm9, %v9890_v41  ;;  %v3707_v61 = vld [vmem:[#allocation4 + $0x56] sm:$0xff] }
 0x35b   : > { %1775 = vst.msk [vmem:[#allocation2 + $0x238] sm:$0xff] %vm1505_vm5, %v1769_v14  ;;  %3648 = vrot.lane.b32.xlu1 %v9838_v58, %s8162_s18  ;;  %vm2952_vm5 = vcmask 1048448  }
 0x35c   : > { %3542 = vrot.lane.b32.xlu0 %v9895_v0, %s8163_s12 }
 0x35d   : > { %v2915_v17 = vpop.permute.xlu1 %2914 }
 0x35e   : > { %v9901_v31 = vpop.permute.xlu0 %3076  ;;  %2918 = vst.msk [vmem:[#allocation5 + $0x8] sm:$0xff] %vm2917_vm10, %v2915_v17 }
 0x35f   : > { %v1846_v6 = vld [vmem:[#allocation2 + $0x230] sm:$0xff]  ;;  %3080 = vst.msk [vmem:[#allocation5 + $0x28] sm:$0xff] %vm2910_vm9, %v9901_v31  ;;  %3505 = vrot.lane.b32.xlu1 %v9773_v32, %s8164_s24 }
 0x360   : > { %7512 = vmatprep.mubr.msk.f32.mxu0 %vm1859_vm6, %v1846_v6  ;;  %3691 = vrot.lane.b32.xlu0 %v9906_v39, %s8163_s12  ;;  %v2771_v11 = vld [vmem:[#allocation3 + $0x180] ss:$2 sm:$0xff]  ;;  %v2775_v13 = vld [vmem:[#allocation3 + $0x181] ss:$2 sm:$0xff] }
 0x361   : > { %v2871_v43 = vpop.permute.xlu1 %2870  ;;  %v2786_v29 = vmax.f32 %v2771_v11, %v2775_v13  ;;  %v2963_v11 = vld [vmem:[#allocation4 + $0x1c] sm:$0xff] }
 0x362   : > { %v3084_v16 = vpop.permute.xlu0 %3083  ;;  %v1847_v12 = vld [vmem:[#allocation2 + $0x238] sm:$0xff]  ;;  %2874 = vst.msk [vmem:[#allocation5] sm:$0xff] %vm2873_vm11, %v2871_v43 }
 0x363   : > { %3086 = vst.msk [vmem:[#allocation5 + $0x28] sm:$0xff] %vm2917_vm10, %v3084_v16  ;;  %7513 = vmatmul.mubr.msk.f32.gmra.mxu0 %vm1859_vm6, %v1847_v12  ;;  %3654 = vrot.lane.b32.xlu1 %v9867_v33, %s8164_s24  ;;  %vm2954_vm6 = vcmask 31744  }
 0x364   : > { %3548 = vrot.lane.b32.xlu0 %v9757_v26, %s8165_s11 }
 0x365   : > { %v3047_v32 = vpop.permute.xlu1 %3046 }
 0x366   : > { %v2922_v44 = vpop.permute.xlu0 %2921  ;;  %3049 = vst.msk [vmem:[#allocation5 + $0x20] sm:$0xff] %vm2873_vm11, %v3047_v32 }
 0x367   : > { %2925 = vst.msk [vmem:[#allocation5 + $0x8] sm:$0xff] %vm2924_vm12, %v2922_v44  ;;  %v7484_v5 = vpop.f32.mrf.mxu0  ;;  %3511 = vrot.lane.b32.xlu1 %v9790_v9, %s8166_s28 }
 0x368   : > { %v2402_v45 = vadd.f32 %v9742_v20, %v7484_v5  ;;  %3697 = vrot.lane.b32.xlu0 %v9881_v60, %s8165_s11 }
 0x369   : > { %v2396_v24 = vpop.f32.mrf.mxu0  ;;  %v2878_v50 = vpop.permute.xlu1 %2877 }
 0x36a   : > { %2557 = vst.msk [vmem:[#allocation3 + $0x198] sm:$0xff] %vm2505_vm7, %v2402_v45  ;;  %v2397_v46 = vadd.f32 %v9742_v20, %v2396_v24  ;;  %v3090_v48 = vpop.permute.xlu0 %3089 }
 0x36b   : > { %3092 = vst.msk [vmem:[#allocation5 + $0x28] sm:$0xff] %vm2924_vm12, %v3090_v48  ;;  %3660 = vrot.lane.b32.xlu1 %v9895_v0, %s8166_s28 }
 0x36c   : > { %2556 = vst.msk [vmem:[#allocation3 + $0x190] sm:$0xff] %vm2505_vm7, %v2397_v46  ;;  %3554 = vrot.lane.b32.xlu0 %v9848_v49, %s8167_s14 }
 0x36d   : > { %2881 = vst.msk [vmem:[#allocation5] sm:$0xff] %vm2880_vm13, %v2878_v50  ;;  %v3053_v53 = vpop.permute.xlu1 %3052 }
 0x36e   : > { %v2929_v9 = vpop.permute.xlu0 %2928  ;;  %3055 = vst.msk [vmem:[#allocation5 + $0x20] sm:$0xff] %vm2880_vm13, %v3053_v53 }
 0x36f   : > { %2932 = vst.msk [vmem:[#allocation5 + $0x8] sm:$0xff] %vm2931_vm14, %v2929_v9  ;;  %3517 = vrot.lane.b32.xlu1 %v9578_v42, %s8168_s29 }
 0x370   : > { %3703 = vrot.lane.b32.xlu0 %v3701_v54, %s8167_s14 }
 0x371   : > { %v2885_v15 = vpop.permute.xlu1 %2884 }
 0x372   : > { %v3096_v57 = vpop.permute.xlu0 %3095  ;;  %2888 = vst.msk [vmem:[#allocation5] sm:$0xff] %vm2887_vm15, %v2885_v15 }
 0x373   : > { %3098 = vst.msk [vmem:[#allocation5 + $0x28] sm:$0xff] %vm2931_vm14, %v3096_v57  ;;  %3666 = vrot.lane.b32.xlu1 %v9757_v26, %s8168_s29  ;;  %v2773_v2 = vld [vmem:[#allocation3 + $0x190] ss:$2 sm:$0xf] }
 0x374   : > { %3560 = vrot.lane.b32.xlu0 %v9857_v18, %s11039_s23  ;;  %v2777_v59 = vld [vmem:[#allocation3 + $0x191] ss:$2 sm:$0xf] }
 0x375   : > { %v3059_v58 = vpop.permute.xlu1 %3058 }
 0x376   : > { %v2936_v34 = vpop.permute.xlu0 %2935  ;;  %3061 = vst.msk [vmem:[#allocation5 + $0x20] sm:$0xff] %vm2887_vm15, %v3059_v58 }
 0x377   : > { %2939 = vst.msk [vmem:[#allocation5 + $0x8] sm:$0xff] %vm2938_vm0, %v2936_v34  ;;  %3821 = vrot.lane.b32.xlu1 %v3701_v54, %s11037_s9 }
 0x378   : > { %3709 = vrot.lane.b32.xlu0 %v3707_v61, %s11039_s23 }
 0x379   : > { %v2892_v4 = vpop.permute.xlu1 %2891 }
 0x37a   : > { %v3102_v42 = vpop.permute.xlu0 %3101  ;;  %2895 = vst.msk [vmem:[#allocation5] sm:$0xff] %vm2894_vm1, %v2892_v4 }
 0x37b   : > { %3104 = vst.msk [vmem:[#allocation5 + $0x28] sm:$0xff] %vm2938_vm0, %v3102_v42  ;;  %v7487_v22 = vpop.f32.mrf.mxu0  ;;  %3828 = vrot.lane.b32.xlu1 %v3707_v61, %s11023_s16 }
 0x37c   : > { %v2412_v30 = vadd.f32 %v9742_v20, %v7487_v22 }
 0x37d   : > { %v2406_v36 = vpop.f32.mrf.mxu0  ;;  %v3065_v52 = vpop.permute.xlu1 %3064 }
 0x37e   : > { %2559 = vst.msk [vmem:[#allocation3 + $0x1a8] sm:$0xff] %vm2505_vm7, %v2412_v30  ;;  %v2407_v62 = vadd.f32 %v9742_v20, %v2406_v36  ;;  %v2943_v63 = vpop.permute.xlu0 %2942 }
 0x37f   : > { %2946 = vst.msk [vmem:[#allocation5 + $0x8] sm:$0xff] %vm10996_vm2, %v2943_v63  ;;  %3791 = vrot.lane.b32.xlu1 %v9848_v49, %s11043_s22  ;;  %v2787_v49 = vmax.f32 %v2773_v2, %v2777_v59  ;;  %v2956_v63 = vld [vmem:[#allocation4 + $0x1b] sm:$0xff] }
 0x380   : > { %2558 = vst.msk [vmem:[#allocation3 + $0x1a0] sm:$0xff] %vm2505_vm7, %v2407_v62 }
 0x381   : > { %3067 = vst.msk [vmem:[#allocation5 + $0x20] sm:$0xff] %vm2894_vm1, %v3065_v52  ;;  %v2899_v10 = vpop.permute.xlu1 %2898 }
 0x382   : > { %v3108_v1 = vpop.permute.xlu0 %3107  ;;  %2902 = vst.msk [vmem:[#allocation5] sm:$0xff] %vm2901_vm3, %v2899_v10 }
 0x383   : > { %3110 = vst.msk [vmem:[#allocation5 + $0x28] sm:$0xff] %vm10996_vm2, %v3108_v1  ;;  %3940 = vrot.lane.b32.xlu1 %v3701_v54, %s11043_s22  ;;  %v10016_v54 = vld [vmem:[#allocation4 + $0x58] sm:$0xff]  ;;  %s8171_s22 = smov 64  }
 0x384   : > { %2909 = vst.msk [vmem:[#allocation5] sm:$0xff] %vm2908_vm4, %v9890_v41 }
 0x385   : > { %v2781_v7 = vld [vmem:[#allocation3 + $0x1a8] ss:$2 sm:$0xf]  ;;  %v2785_v21 = vld [vmem:[#allocation3 + $0x1a9] ss:$2 sm:$0xf]  ;;  %v3071_v8 = vpop.permute.xlu1 %3070 }
 0x386   : > { %v2789_v47 = vmax.f32 %v2781_v7, %v2785_v21  ;;  %v2950_v23 = vpop.permute.xlu0 %2949  ;;  %3073 = vst.msk [vmem:[#allocation5 + $0x20] sm:$0xff] %vm2901_vm3, %v3071_v8 }
 0x387   : > { %v2779_v25 = vld [vmem:[#allocation3 + $0x198] ss:$2 sm:$0xff]  ;;  %v2783_v27 = vld [vmem:[#allocation3 + $0x199] ss:$2 sm:$0xff]  ;;  %2953 = vst.msk [vmem:[#allocation5 + $0x8] sm:$0xff] %vm2952_vm5, %v2950_v23  ;;  %3797 = vrot.lane.b32.xlu1 %v9857_v18, %s8162_s18 }
 0x388   : > { %2955 = vst.msk [vmem:[#allocation5 + $0x10] sm:$0xff] %vm2954_vm6, %v2950_v23  ;;  %v2788_v3 = vmax.f32 %v2779_v25, %v2783_v27  ;;  %v2791_v35 = vmax.f32 %v2787_v49, %v2789_v47  ;;  %v2970_v25 = vld [vmem:[#allocation4 + $0x24] sm:$0xff] }
 0x389   : > { %3079 = vst.msk [vmem:[#allocation5 + $0x20] sm:$0xff] %vm2908_vm4, %v9901_v31  ;;  %v9977_v37 = vpop.permute.xlu1 %3225 }
 0x38a   : > { %v3114_v19 = vpop.permute.xlu0 %3113  ;;  %v2790_v55 = vmax.f32 %v2786_v29, %v2788_v3  ;;  %2793 = vst.msk [vmem:[#allocation4 + $0x68] sm:$0xf] %vm2600_vm8, %v2791_v35 }
 0x38b   : > { %3116 = vst.msk [vmem:[#allocation5 + $0x28] sm:$0xff] %vm2952_vm5, %v3114_v19  ;;  %3946 = vrot.lane.b32.xlu1 %v3707_v61, %s8162_s18  ;;  %v4085_v45 = vld [vmem:[#allocation5] sm:$0xff]  ;;  %s8173_s18 = smov 104  }
 0x38c   : > { %3117 = vst.msk [vmem:[#allocation5 + $0x30] sm:$0xff] %vm2954_vm6, %v3114_v19 }
 0x38d   : > { %3229 = vst.msk [vmem:[#allocation5 + $0x48] sm:$0xff] %vm2910_vm9, %v9977_v37  ;;  %v3233_v18 = vpop.permute.xlu1 %3232 }
 0x38e   : > { %2792 = vst.msk [vmem:[#allocation4 + $0x60] sm:$0xff] %vm2505_vm7, %v2790_v55  ;;  %v9983_v40 = vpop.permute.xlu0 %3374  ;;  %v4086_v12 = vld [vmem:[#allocation5 + $0x8] sm:$0xff] }
 0x38f   : > { %3378 = vst.msk [vmem:[#allocation5 + $0x68] sm:$0xff] %vm2910_vm9, %v9983_v40  ;;  %v7490_v14 = vpop.f32.mrf.mxu0  ;;  %3803 = vrot.lane.b32.xlu1 %v9879_v56, %s8164_s24  ;;  %v10000_v56 = vld [vmem:[#allocation4 + $0x57] sm:$0xff] }
 0x390   : > { %3235 = vst.msk [vmem:[#allocation5 + $0x48] sm:$0xff] %vm2917_vm10, %v3233_v18  ;;  %v2422_v41 = vadd.f32 %v9742_v20, %v7490_v14  ;;  %v4089_v17 = vld [vmem:[#allocation5 + $0x20] sm:$0xff] }
 0x391   : > { %v2416_v31 = vpop.f32.mrf.mxu0  ;;  %v3196_v44 = vpop.permute.xlu1 %3195  ;;  %v4117_v24 = vpack.c.bf16 %v4089_v17, %v4085_v45 }
 0x392   : > { %2561 = vst.msk [vmem:[#allocation3 + $0x1b8] sm:$0xff] %vm2505_vm7, %v2422_v41  ;;  %v2417_v6 = vadd.f32 %v9742_v20, %v2416_v31  ;;  %v3382_v16 = vpop.permute.xlu0 %3381  ;;  %v4090_v43 = vld [vmem:[#allocation5 + $0x28] sm:$0xff] }
 0x393   : > { %3384 = vst.msk [vmem:[#allocation5 + $0x68] sm:$0xff] %vm2917_vm10, %v3382_v16  ;;  %v4118_v5 = vpack.c.bf16 %v4090_v43, %v4086_v12  ;;  %3952 = vrot.lane.b32.xlu1 %v10000_v56, %s8164_s24  ;;  %v2977_v43 = vld [vmem:[#allocation4 + $0x25] sm:$0xff] }
 0x394   : > { %2560 = vst.msk [vmem:[#allocation3 + $0x1b0] sm:$0xff] %vm2505_vm7, %v2417_v6 }
 0x395   : > { %v9994_v32 = vld [vmem:[#allocation4 + $0x61] sm:$0xff]  ;;  %3198 = vst.msk [vmem:[#allocation5 + $0x40] sm:$0xff] %vm2873_vm11, %v3196_v44  ;;  %4441 = vmatprep.mubr.bf16.mxu1 %v4118_v5  ;;  %v3345_v48 = vpop.permute.xlu1 %3344 }
 0x396   : > { %3970 = vrot.lane.b32.xlu0 %v9994_v32, %s11037_s9  ;;  %v3239_v46 = vpop.permute.xlu0 %3238  ;;  %4442 = vmatmul.mubr.bf16.vlgmr.msra.gmra.mxu1 %v4117_v24  ;;  %v10005_v50 = vld [vmem:[#allocation4 + $0x62] sm:$0xff]  ;;  %3347 = vst.msk [vmem:[#allocation5 + $0x60] sm:$0xff] %vm2873_vm11, %v3345_v48  ;;  %s8170_s9 = smov 44  }
 0x397   : > { %3241 = vst.msk [vmem:[#allocation5 + $0x48] sm:$0xff] %vm2924_vm12, %v3239_v46  ;;  %3809 = vrot.lane.b32.xlu1 %v9906_v39, %s8166_s28  ;;  %v10021_v34 = vld [vmem:[#allocation4 + $0x63] sm:$0xff] }
 0x398   : > { %v10033_v4 = vld [vmem:[#allocation4 + $0x60] sm:$0xff] }
 0x399   : > { %v3202_v53 = vpop.permute.xlu1 %3201  ;;  %v10040_v62 = vld [vmem:[#allocation4 + $0x64] sm:$0xff] }
 0x39a   : > { %3977 = vrot.lane.b32.xlu0 %v10005_v50, %s11023_s16  ;;  %v3388_v9 = vpop.permute.xlu0 %3387  ;;  %3204 = vst.msk [vmem:[#allocation5 + $0x40] sm:$0xff] %vm2880_vm13, %v3202_v53  ;;  %s8169_s16 = smov 24  }
 0x39b   : > { %3390 = vst.msk [vmem:[#allocation5 + $0x68] sm:$0xff] %vm2924_vm12, %v3388_v9  ;;  %3958 = vrot.lane.b32.xlu1 %v10016_v54, %s8166_s28  ;;  %v2795_v29 = vld [vmem:[#allocation3 + $0x1b0] ss:$2 sm:$0xff]  ;;  %v2799_v3 = vld [vmem:[#allocation3 + $0x1b1] ss:$2 sm:$0xff]  ;;  %s8177_s28 = smov 96  }
 0x39c   : > { %v10090_v9 = vld [vmem:[#allocation4 + $0x31] sm:$0xff] }
 0x39d   : > { %v3351_v15 = vpop.permute.xlu1 %3350 }
 0x39e   : > { %3834 = vrot.lane.b32.xlu0 %v10000_v56, %s8161_s26  ;;  %v3245_v57 = vpop.permute.xlu0 %3244  ;;  %3353 = vst.msk [vmem:[#allocation5 + $0x60] sm:$0xff] %vm2880_vm13, %v3351_v15 }
 0x39f   : > { %3247 = vst.msk [vmem:[#allocation5 + $0x48] sm:$0xff] %vm2931_vm14, %v3245_v57  ;;  %3815 = vrot.lane.b32.xlu1 %v9881_v60, %s8168_s29 }
 0x3a1   : > { %v3208_v58 = vpop.permute.xlu1 %3207 }
 0x3a2   : > { %3983 = vrot.lane.b32.xlu0 %v10021_v34, %s8161_s26  ;;  %v3394_v39 = vpop.permute.xlu0 %3393  ;;  %3210 = vst.msk [vmem:[#allocation5 + $0x40] sm:$0xff] %vm2887_vm15, %v3208_v58  ;;  %s8172_s26 = smov 84  }
 0x3a3   : > { %3396 = vst.msk [vmem:[#allocation5 + $0x68] sm:$0xff] %vm2931_vm14, %v3394_v39  ;;  %v7493_v61 = vpop.f32.mrf.mxu0  ;;  %3964 = vrot.lane.b32.xlu1 %v10033_v4, %s8168_s29 }
 0x3a4   : > { %v2432_v42 = vadd.f32 %v9742_v20, %v7493_v61 }
 0x3a5   : > { %v2426_v22 = vpop.f32.mrf.mxu0  ;;  %v3357_v36 = vpop.permute.xlu1 %3356 }
 0x3a6   : > { %3840 = vrot.lane.b32.xlu0 %v10016_v54, %s8163_s12  ;;  %2563 = vst.msk [vmem:[#allocation3 + $0x1c8] sm:$0xff] %vm2505_vm7, %v2432_v42  ;;  %v2427_v60 = vadd.f32 %v9742_v20, %v2426_v22  ;;  %v3251_v30 = vpop.permute.xlu0 %3250  ;;  %v2984_v22 = vld [vmem:[#allocation4 + $0x26] sm:$0xff] }
 0x3a7   : > { %3253 = vst.msk [vmem:[#allocation5 + $0x48] sm:$0xff] %vm2938_vm0, %v3251_v30  ;;  %2958 = vrot.lane.b32.xlu1 %v2956_v63, %s11014_s21  ;;  %v10107_v63 = vld [vmem:[#allocation4 + $0x32] sm:$0xff] }
 0x3a8   : > { %2562 = vst.msk [vmem:[#allocation3 + $0x1c0] sm:$0xff] %vm2505_vm7, %v2427_v60 }
 0x3a9   : > { %3359 = vst.msk [vmem:[#allocation5 + $0x60] sm:$0xff] %vm2887_vm15, %v3357_v36  ;;  %v3214_v1 = vpop.permute.xlu1 %3213 }
 0x3aa   : > { %3989 = vrot.lane.b32.xlu0 %v10040_v62, %s8163_s12  ;;  %v3400_v52 = vpop.permute.xlu0 %3399  ;;  %3216 = vst.msk [vmem:[#allocation5 + $0x40] sm:$0xff] %vm2894_vm1, %v3214_v1 }
 0x3ab   : > { %3402 = vst.msk [vmem:[#allocation5 + $0x68] sm:$0xff] %vm2938_vm0, %v3400_v52  ;;  %3120 = vrot.lane.b32.xlu1 %v9765_v28, %s11014_s21 }
 0x3ad   : > { %v3363_v59 = vpop.permute.xlu1 %3362 }
 0x3ae   : > { %3846 = vrot.lane.b32.xlu0 %v10033_v4, %s8165_s11  ;;  %v3257_v2 = vpop.permute.xlu0 %3256  ;;  %3365 = vst.msk [vmem:[#allocation5 + $0x60] sm:$0xff] %vm2894_vm1, %v3363_v59 }
 0x3af   : > { %3259 = vst.msk [vmem:[#allocation5 + $0x48] sm:$0xff] %vm10996_vm2, %v3257_v2  ;;  %2965 = vrot.lane.b32.xlu1 %v2963_v11, %s8169_s16  ;;  %v2797_v27 = vld [vmem:[#allocation3 + $0x1c0] ss:$2 sm:$0xf]  ;;  %v2991_v2 = vld [vmem:[#allocation4 + $0x27] sm:$0xff] }
 0x3b0   : > { %v7496_v10 = vpop.f32.mrf.mxu0  ;;  %v2801_v8 = vld [vmem:[#allocation3 + $0x1c1] ss:$2 sm:$0xf] }
 0x3b1   : > { %v2442_v13 = vadd.f32 %v9742_v20, %v7496_v10  ;;  %v3220_v28 = vpop.permute.xlu1 %3219  ;;  %v2811_v55 = vmax.f32 %v2797_v27, %v2801_v8 }
 0x3b2   : > { %v2436_v7 = vpop.f32.mrf.mxu0  ;;  %v3406_v21 = vpop.permute.xlu0 %3405  ;;  %3222 = vst.msk [vmem:[#allocation5 + $0x40] sm:$0xff] %vm2901_vm3, %v3220_v28 }
 0x3b3   : > { %2565 = vst.msk [vmem:[#allocation3 + $0x1d8] sm:$0xff] %vm2505_vm7, %v2442_v13  ;;  %v2437_v49 = vadd.f32 %v9742_v20, %v2436_v7  ;;  %3126 = vrot.lane.b32.xlu1 %v9782_v51, %s8169_s16  ;;  %v10122_v13 = vld [vmem:[#allocation4 + $0x33] sm:$0xff] }
 0x3b4   : > { %3408 = vst.msk [vmem:[#allocation5 + $0x68] sm:$0xff] %vm10996_vm2, %v3406_v21 }
 0x3b5   : > { %2564 = vst.msk [vmem:[#allocation3 + $0x1d0] sm:$0xff] %vm2505_vm7, %v2437_v49  ;;  %v3369_v23 = vpop.permute.xlu1 %3368 }
 0x3b6   : > { %3228 = vst.msk [vmem:[#allocation5 + $0x40] sm:$0xff] %vm2908_vm4, %v9977_v37  ;;  %v3263_v47 = vpop.permute.xlu0 %3262 }
 0x3b7   : > { %3265 = vst.msk [vmem:[#allocation5 + $0x48] sm:$0xff] %vm2952_vm5, %v3263_v47  ;;  %2972 = vrot.lane.b32.xlu1 %v2970_v25, %s8170_s9 }
 0x3b8   : > { %3266 = vst.msk [vmem:[#allocation5 + $0x50] sm:$0xff] %vm2954_vm6, %v3263_v47 }
 0x3b9   : > { %3371 = vst.msk [vmem:[#allocation5 + $0x60] sm:$0xff] %vm2901_vm3, %v3369_v23  ;;  %v10074_v18 = vpop.permute.xlu1 %3523 }
 0x3ba   : > { %3377 = vst.msk [vmem:[#allocation5 + $0x60] sm:$0xff] %vm2908_vm4, %v9983_v40  ;;  %v2805_v51 = vld [vmem:[#allocation3 + $0x1d8] ss:$2 sm:$0xf]  ;;  %v3412_v19 = vpop.permute.xlu0 %3411  ;;  %v2810_v40 = vmax.f32 %v2795_v29, %v2799_v3  ;;  %v2998_v29 = vld [vmem:[#allocation4 + $0x28] sm:$0xff] }
 0x3bb   : > { %v2809_v35 = vld [vmem:[#allocation3 + $0x1d9] ss:$2 sm:$0xf]  ;;  %3414 = vst.msk [vmem:[#allocation5 + $0x68] sm:$0xff] %vm2952_vm5, %v3412_v19  ;;  %3132 = vrot.lane.b32.xlu1 %v9478_v38, %s8170_s9 }
 0x3bc   : > { %v2813_v37 = vmax.f32 %v2805_v51, %v2809_v35  ;;  %3415 = vst.msk [vmem:[#allocation5 + $0x70] sm:$0xff] %vm2954_vm6, %v3412_v19  ;;  %v2803_v14 = vld [vmem:[#allocation3 + $0x1c8] ss:$2 sm:$0xff]  ;;  %v2807_v41 = vld [vmem:[#allocation3 + $0x1c9] ss:$2 sm:$0xff] }
 0x3bd   : > { %3527 = vst.msk [vmem:[#allocation5 + $0x88] sm:$0xff] %vm2910_vm9, %v10074_v18  ;;  %v2812_v31 = vmax.f32 %v2803_v14, %v2807_v41  ;;  %v3531_v16 = vpop.permute.xlu1 %3530  ;;  %v4093_v48 = vld [vmem:[#allocation5 + $0x40] sm:$0xff]  ;;  %v3279_v14 = vld [vmem:[#allocation4 + $0x3c] sm:$0xff]  ;;  %v7652_v41 = vld [vmem:[%s10918_s3 + $0xf8] ss:$0 sps:$4 sm:$0x33]  }
 0x3be   : > { %v2815_v17 = vmax.f32 %v2811_v55, %v2813_v37  ;;  %v10080_v6 = vpop.permute.xlu0 %3672  ;;  %3533 = vst.msk [vmem:[#allocation5 + $0x88] sm:$0xff] %vm2917_vm10, %v3531_v16  ;;  %v4094_v5 = vld [vmem:[#allocation5 + $0x48] sm:$0xff]  ;;  %v3007_v19 = vld [vmem:[#allocation4 + $0x30] sm:$0xff] }
 0x3bf   : > { %3676 = vst.msk [vmem:[#allocation5 + $0xa8] sm:$0xff] %vm2910_vm9, %v10080_v6  ;;  %v2814_v12 = vmax.f32 %v2810_v40, %v2812_v31  ;;  %2979 = vrot.lane.b32.xlu1 %v2977_v43, %s8171_s22  ;;  %v7654_v16 = vld [vmem:[%s10918_s3 + $0xf0] sm:$0xff]  }
 0x3c0   : > { %2817 = vst.msk [vmem:[#allocation4 + $0x74] sm:$0xf] %vm2600_vm8, %v2815_v17  ;;  %v10182_v17 = vld [vmem:[%s10917_s2] ss:$0 sm:$0xff] }
 0x3c1   : > { %v4097_v44 = vld [vmem:[#allocation5 + $0x60] sm:$0xff]  ;;  %2816 = vst.msk [vmem:[#allocation4 + $0x6c] sm:$0xff] %vm2505_vm7, %v2814_v12  ;;  %v3494_v24 = vpop.permute.xlu1 %3493 }
 0x3c2   : > { %v3680_v38 = vpop.permute.xlu0 %3679  ;;  %v4098_v45 = vld [vmem:[#allocation5 + $0x68] sm:$0xff]  ;;  %3496 = vst.msk [vmem:[#allocation5 + $0x80] sm:$0xff] %vm2873_vm11, %v3494_v24  ;;  %v4121_v53 = vpack.c.bf16 %v4097_v44, %v4093_v48  ;;  %v7655_v12 = vld [vmem:[%s10918_s3 + $0xb0] sm:$0xff]  }
 0x3c3   : > { %3682 = vst.msk [vmem:[#allocation5 + $0xa8] sm:$0xff] %vm2917_vm10, %v3680_v38  ;;  %v4122_v46 = vpack.c.bf16 %v4098_v45, %v4094_v5  ;;  %3138 = vrot.lane.b32.xlu1 %v10090_v9, %s8171_s22  ;;  %v3285_v5 = vld [vmem:[#allocation4 + $0x3d] sm:$0xff]  ;;  %v7657_v45 = vld [vmem:[%s10918_s3 + $0xa8] sm:$0xff]  }
 0x3c4   : > { %v7499_v57 = vpop.f32.mrf.mxu0 }
 0x3c5   : > { %4449 = vmatprep.mubr.bf16.mxu1 %v4122_v46  ;;  %v2452_v15 = vadd.f32 %v9742_v20, %v7499_v57  ;;  %v3643_v61 = vpop.permute.xlu1 %3642 }
 0x3c6   : > { %v3537_v39 = vpop.permute.xlu0 %3536  ;;  %4450 = vmatmul.mubr.bf16.gmra.mxu1 %v4121_v53  ;;  %v2446_v58 = vpop.f32.mrf.mxu0  ;;  %3645 = vst.msk [vmem:[#allocation5 + $0xa0] sm:$0xff] %vm2873_vm11, %v3643_v61 }
 0x3c7   : > { %3539 = vst.msk [vmem:[#allocation5 + $0x88] sm:$0xff] %vm2924_vm12, %v3537_v39  ;;  %v2447_v42 = vadd.f32 %v9742_v20, %v2446_v58  ;;  %2986 = vrot.lane.b32.xlu1 %v2984_v22, %s8172_s26 }
 0x3c8   : > { %2567 = vst.msk [vmem:[#allocation3 + $0x1e8] sm:$0xff] %vm2505_vm7, %v2452_v15  ;;  %v10099_v60 = vld [vmem:[#allocation4 + $0x6c] sm:$0xff] }
 0x3c9   : > { %3995 = vrot.lane.b32.xlu0 %v10099_v60, %s8165_s11  ;;  %2566 = vst.msk [vmem:[#allocation3 + $0x1e0] sm:$0xff] %vm2505_vm7, %v2447_v42  ;;  %v3500_v36 = vpop.permute.xlu1 %3499  ;;  %v10115_v59 = vld [vmem:[#allocation4 + $0x6d] sm:$0xff] }
 0x3ca   : > { %v3686_v30 = vpop.permute.xlu0 %3685  ;;  %3502 = vst.msk [vmem:[#allocation5 + $0x80] sm:$0xff] %vm2880_vm13, %v3500_v36  ;;  %v10130_v28 = vld [vmem:[#allocation4 + $0x6e] sm:$0xff]  ;;  %v7659_v36 = vld [vmem:[%s10918_s3 + $0xa0] sm:$0xff]  }
 0x3cb   : > { %3688 = vst.msk [vmem:[#allocation5 + $0xa8] sm:$0xff] %vm2924_vm12, %v3686_v30  ;;  %3144 = vrot.lane.b32.xlu1 %v10107_v63, %s8172_s26  ;;  %v10207_v15 = vld [vmem:[#allocation4 + $0x49] sm:$0xff]  ;;  %v7658_v30 = vld [vmem:[%s10918_s3 + $0xe0] sm:$0xff]  }
 0x3cd   : > { %3852 = vrot.lane.b32.xlu0 %v9994_v32, %s8167_s14  ;;  %v3649_v1 = vpop.permute.xlu1 %3648 }
 0x3ce   : > { %v3543_v52 = vpop.permute.xlu0 %3542  ;;  %3651 = vst.msk [vmem:[#allocation5 + $0xa0] sm:$0xff] %vm2880_vm13, %v3649_v1 }
 0x3cf   : > { %3545 = vst.msk [vmem:[#allocation5 + $0x88] sm:$0xff] %vm2931_vm14, %v3543_v52  ;;  %2993 = vrot.lane.b32.xlu1 %v2991_v2, %s8173_s18 }
 0x3d0   : > { %v2819_v58 = vld [vmem:[#allocation3 + $0x1e0] ss:$2 sm:$0xff]  ;;  %v2823_v61 = vld [vmem:[#allocation3 + $0x1e1] ss:$2 sm:$0xff] }
 0x3d1   : > { %4001 = vrot.lane.b32.xlu0 %v10115_v59, %s8167_s14  ;;  %v3506_v11 = vpop.permute.xlu1 %3505  ;;  %s8174_s14 = smov 36  }
 0x3d2   : > { %v3692_v10 = vpop.permute.xlu0 %3691  ;;  %3508 = vst.msk [vmem:[#allocation5 + $0x80] sm:$0xff] %vm2887_vm15, %v3506_v11 }
 0x3d3   : > { %3694 = vst.msk [vmem:[#allocation5 + $0xa8] sm:$0xff] %vm2931_vm14, %v3692_v10  ;;  %3150 = vrot.lane.b32.xlu1 %v10122_v13, %s8173_s18  ;;  %v2834_v10 = vmax.f32 %v2819_v58, %v2823_v61 }
 0x3d5   : > { %3858 = vrot.lane.b32.xlu0 %v10005_v50, %s11039_s23  ;;  %v3655_v21 = vpop.permute.xlu1 %3654 }
 0x3d6   : > { %v3549_v7 = vpop.permute.xlu0 %3548  ;;  %v7502_v49 = vpop.f32.mrf.mxu0  ;;  %3657 = vst.msk [vmem:[#allocation5 + $0xa0] sm:$0xff] %vm2887_vm15, %v3655_v21 }
 0x3d7   : > { %3551 = vst.msk [vmem:[#allocation5 + $0x88] sm:$0xff] %vm2938_vm0, %v3549_v7  ;;  %v2462_v47 = vadd.f32 %v9742_v20, %v7502_v49  ;;  %3269 = vrot.lane.b32.xlu1 %v10122_v13, %s11014_s21 }
 0x3d8   : > { %v2456_v23 = vpop.f32.mrf.mxu0 }
 0x3d9   : > { %4007 = vrot.lane.b32.xlu0 %v10130_v28, %s11039_s23  ;;  %2569 = vst.msk [vmem:[#allocation3 + $0x1f8] sm:$0xff] %vm2505_vm7, %v2462_v47  ;;  %v2457_v27 = vadd.f32 %v9742_v20, %v2456_v23  ;;  %v3512_v8 = vpop.permute.xlu1 %3511  ;;  %v10147_v20 = vld [vmem:[#allocation4 + $0x34] sm:$0xff]  ;;  %s11044_s23 = smov 16   ;;  %v3291_v47 = vld [vmem:[#allocation4 + $0x3e] sm:$0xff] }
 0x3da   : > { %v3698_v25 = vpop.permute.xlu0 %3697  ;;  %3514 = vst.msk [vmem:[#allocation5 + $0x80] sm:$0xff] %vm2894_vm1, %v3512_v8 }
 0x3db   : > { %3700 = vst.msk [vmem:[#allocation5 + $0xa8] sm:$0xff] %vm2938_vm0, %v3698_v25  ;;  %3418 = vrot.lane.b32.xlu1 %v9867_v33, %s11014_s21 }
 0x3dc   : > { %2568 = vst.msk [vmem:[#allocation3 + $0x1f0] sm:$0xff] %vm2505_vm7, %v2457_v27  ;;  %v7661_v27 = vld [vmem:[%s10918_s3 + $0x98] sm:$0xff]  }
 0x3dd   : > { %3000 = vrot.lane.b32.xlu0 %v2998_v29, %s11027_s1  ;;  %v3661_v51 = vpop.permute.xlu1 %3660 }
 0x3de   : > { %v3555_v3 = vpop.permute.xlu0 %3554  ;;  %3663 = vst.msk [vmem:[#allocation5 + $0xa0] sm:$0xff] %vm2894_vm1, %v3661_v51  ;;  %v7662_v51 = vld [vmem:[%s10918_s3 + $0xd0] sm:$0xff]  }
 0x3df   : > { %3557 = vst.msk [vmem:[#allocation5 + $0x88] sm:$0xff] %vm10996_vm2, %v3555_v3  ;;  %3275 = vrot.lane.b32.xlu1 %v10147_v20, %s8169_s16  ;;  %v10231_v3 = vld [vmem:[#allocation4 + $0x4a] sm:$0xff] }
 0x3e1   : > { %3156 = vrot.lane.b32.xlu0 %v10147_v20, %s11027_s1  ;;  %v3518_v33 = vpop.permute.xlu1 %3517 }
 0x3e2   : > { %v3704_v35 = vpop.permute.xlu0 %3703  ;;  %3520 = vst.msk [vmem:[#allocation5 + $0x80] sm:$0xff] %vm2901_vm3, %v3518_v33 }
 0x3e3   : > { %3706 = vst.msk [vmem:[#allocation5 + $0xa8] sm:$0xff] %vm10996_vm2, %v3704_v35  ;;  %3424 = vrot.lane.b32.xlu1 %v9895_v0, %s8169_s16  ;;  %vm4405_vm2 = vcmask 1041408   ;;  %v7653_v0 = vld [vmem:[%s10918_s3 + $0xb8] sm:$0xff]   ;;  %v2821_v24 = vld [vmem:[#allocation3 + $0x1f0] ss:$2 sm:$0xf] }
 0x3e4   : > { %3526 = vst.msk [vmem:[#allocation5 + $0x80] sm:$0xff] %vm2908_vm4, %v10074_v18  ;;  %7515 = vmatprep.subr.msk.bf16.mxu1 %vm4405_vm2, %v7652_v41  ;;  %v2825_v46 = vld [vmem:[#allocation3 + $0x1f1] ss:$2 sm:$0xf]  ;;  %v7665_v41 = vld [vmem:[%s10918_s3 + $0x88] sm:$0xff]   ;;  %vm3019_vm2 = vcmask 458016  }
 0x3e5   : > { %3009 = vrot.lane.b32.xlu0 %v3007_v19, %s11044_s23  ;;  %v3667_v37 = vpop.permute.xlu1 %3666  ;;  %7316 = vmatpush3.bf16.msra.mxu1 %v7653_v0  ;;  %v2835_v22 = vmax.f32 %v2821_v24, %v2825_v46  ;;  %v7663_v35 = vld [vmem:[%s10918_s3 + $0x90] sm:$0xff]  }
 0x3e6   : > { %v3561_v55 = vpop.permute.xlu0 %3560  ;;  %3669 = vst.msk [vmem:[#allocation5 + $0xa0] sm:$0xff] %vm2901_vm3, %v3667_v37  ;;  %7317 = vmatprep.subr.bf16.mxu1 %v7654_v16  ;;  %v7667_v16 = vld [vmem:[%s10918_s3 + $0x80] sm:$0xff]  }
 0x3e7   : > { %3563 = vst.msk [vmem:[#allocation5 + $0x88] sm:$0xff] %vm2952_vm5, %v3561_v55  ;;  %3281 = vrot.lane.b32.xlu1 %v3279_v14, %s8170_s9 }
 0x3e8   : > { %3564 = vst.msk [vmem:[#allocation5 + $0x90] sm:$0xff] %vm2954_vm6, %v3561_v55  ;;  %v3297_v55 = vld [vmem:[#allocation4 + $0x3f] sm:$0xff] }
 0x3e9   : > { %3675 = vst.msk [vmem:[#allocation5 + $0xa0] sm:$0xff] %vm2908_vm4, %v10080_v6  ;;  %3163 = vrot.lane.b32.xlu0 %v3279_v14, %s11044_s23  ;;  %v10175_v40 = vpop.permute.xlu1 %3821  ;;  %7318 = vmatpush3.bf16.msra.mxu1 %v7655_v12  ;;  %v7664_v14 = vld [vmem:[%s10918_s3 + $0xc8] sm:$0xff]  }
 0x3ea   : > { %v3710_v18 = vpop.permute.xlu0 %3709  ;;  %v7505_v31 = vpop.f32.mrf.mxu0  ;;  %3825 = vst.msk [vmem:[#allocation5 + $0xc8] sm:$0xff] %vm2910_vm9, %v10175_v40 }
 0x3eb   : > { %3712 = vst.msk [vmem:[#allocation5 + $0xa8] sm:$0xff] %vm2952_vm5, %v3710_v18  ;;  %v2472_v6 = vadd.f32 %v10182_v17, %v7505_v31  ;;  %3430 = vrot.lane.b32.xlu1 %v9757_v26, %s8170_s9  ;;  %v7656_v26 = vld [vmem:[%s10918_s3 + $0xe8] sm:$0xff]   ;;  %v4101_v42 = vld [vmem:[#allocation5 + $0x80] sm:$0xff] }
 0x3ec   : > { %3713 = vst.msk [vmem:[#allocation5 + $0xb0] sm:$0xff] %vm2954_vm6, %v3710_v18  ;;  %v2466_v43 = vpop.f32.mrf.mxu0  ;;  %7319 = vmatprep.subr.bf16.mxu1 %v7656_v26  ;;  %v10257_v31 = vld [vmem:[#allocation4 + $0x4b] sm:$0xff] }
 0x3ed   : > { %3016 = vrot.lane.b32.xlu0 %v10090_v9, %s8174_s14  ;;  %2571 = vst.msk [vmem:[#allocation3 + $0x208] sm:$0xff] %vm2505_vm7, %v2472_v6  ;;  %v2467_v44 = vadd.f32 %v10182_v17, %v2466_v43  ;;  %v3829_v38 = vpop.permute.xlu1 %3828  ;;  %7320 = vmatpush3.bf16.msra.mxu1 %v7657_v45  ;;  %v7666_v6 = vld [vmem:[%s10918_s3 + $0xc0] sm:$0xff]   ;;  %v10282_v45 = vld [vmem:[#allocation4 + $0x4c] sm:$0xff] }
 0x3ee   : > { %3831 = vst.msk [vmem:[#allocation5 + $0xc8] sm:$0xff] %vm2917_vm10, %v3829_v38  ;;  %v4102_v48 = vld [vmem:[#allocation5 + $0x88] sm:$0xff]  ;;  %7321 = vmatprep.subr.bf16.mxu1 %v7658_v30 }
 0x3ef   : > { %2570 = vst.msk [vmem:[#allocation3 + $0x200] sm:$0xff] %vm2505_vm7, %v2467_v44  ;;  %3287 = vrot.lane.b32.xlu1 %v3285_v5, %s8171_s22  ;;  %v3185_v44 = vld [vmem:[#allocation4 + $0x40] sm:$0xff] }
 0x3f0   : > { %v4105_v53 = vld [vmem:[#allocation5 + $0xa0] sm:$0xff] }
 0x3f1   : > { %3169 = vrot.lane.b32.xlu0 %v3285_v5, %s8174_s14  ;;  %v3792_v57 = vpop.permute.xlu1 %3791  ;;  %v4125_v52 = vpack.c.bf16 %v4105_v53, %v4101_v42  ;;  %7322 = vmatpush3.bf16.msra.mxu1 %v7659_v36  ;;  %v3577_v42 = vld [vmem:[#allocation4 + $0x54] sm:$0xff] }
 0x3f2   : > { %v4106_v9 = vld [vmem:[#allocation5 + $0xa8] sm:$0xff]  ;;  %3794 = vst.msk [vmem:[#allocation5 + $0xc0] sm:$0xff] %vm2873_vm11, %v3792_v57 }
 0x3f3   : > { %v4126_v39 = vpack.c.bf16 %v4106_v9, %v4102_v48  ;;  %3436 = vrot.lane.b32.xlu1 %v10207_v15, %s8171_s22  ;;  %v3310_v9 = vld [vmem:[#allocation4 + $0x48] sm:$0xff] }
 0x3f4   : > { %v2829_v1 = vld [vmem:[#allocation3 + $0x208] ss:$2 sm:$0xf]  ;;  %v2833_v2 = vld [vmem:[#allocation3 + $0x209] ss:$2 sm:$0xf] }
 0x3f5   : > { %3023 = vrot.lane.b32.xlu0 %v10107_v63, %s8175_s19  ;;  %4457 = vmatprep.mubr.bf16.mxu1 %v4126_v39  ;;  %v2837_v11 = vmax.f32 %v2829_v1, %v2833_v2  ;;  %v3941_v7 = vpop.permute.xlu1 %3940  ;;  %v7660_v63 = vld [vmem:[%s10918_s3 + $0xd8] sm:$0xff]  }
 0x3f6   : > { %4458 = vmatmul.mubr.bf16.gmra.mxu1 %v4125_v52  ;;  %v2827_v21 = vld [vmem:[#allocation3 + $0x1f8] ss:$2 sm:$0xff]  ;;  %v2831_v49 = vld [vmem:[#allocation3 + $0x1f9] ss:$2 sm:$0xff]  ;;  %3943 = vst.msk [vmem:[#allocation5 + $0xe0] sm:$0xff] %vm2873_vm11, %v3941_v7  ;;  %7323 = vmatprep.subr.bf16.mxu1 %v7660_v63  ;;  %vm2975_vm11 = vcmask 523616  }
 0x3f7   : > { %v2836_v23 = vmax.f32 %v2827_v21, %v2831_v49  ;;  %v2839_v25 = vmax.f32 %v2835_v22, %v2837_v11  ;;  %3293 = vrot.lane.b32.xlu1 %v3291_v47, %s8172_s26  ;;  %7324 = vmatpush3.bf16.msra.mxu1 %v7661_v27  ;;  %v3583_v52 = vld [vmem:[#allocation4 + $0x55] sm:$0xff] }
 0x3f8   : > { %7325 = vmatprep.subr.bf16.mxu1 %v7662_v51  ;;  %v3589_v21 = vld [vmem:[#allocation4 + $0x56] sm:$0xff] }
 0x3f9   : > { %3175 = vrot.lane.b32.xlu0 %v3291_v47, %s8175_s19  ;;  %v2838_v8 = vmax.f32 %v2834_v10, %v2836_v23  ;;  %2841 = vst.msk [vmem:[#allocation4 + $0x80] sm:$0xf] %vm2600_vm8, %v2839_v25  ;;  %v3798_v29 = vpop.permute.xlu1 %3797 }
 0x3fa   : > { %3800 = vst.msk [vmem:[#allocation5 + $0xc0] sm:$0xff] %vm2880_vm13, %v3798_v29 }
 0x3fb   : > { %2840 = vst.msk [vmem:[#allocation4 + $0x78] sm:$0xff] %vm2505_vm7, %v2838_v8  ;;  %3442 = vrot.lane.b32.xlu1 %v10231_v3, %s8172_s26  ;;  %7326 = vmatpush3.bf16.msra.mxu1 %v7663_v35 }
 0x3fc   : > { %7327 = vmatprep.subr.bf16.mxu1 %v7664_v14 }
 0x3fd   : > { %3030 = vrot.lane.b32.xlu0 %v10122_v13, %s8176_s15  ;;  %v3947_v33 = vpop.permute.xlu1 %3946 }
 0x3fe   : > { %v7508_v19 = vpop.f32.mrf.mxu0  ;;  %3949 = vst.msk [vmem:[#allocation5 + $0xe0] sm:$0xff] %vm2880_vm13, %v3947_v33  ;;  %vm2996_vm13 = vcmask 1015616  }
 0x3ff   : > { %v2482_v37 = vadd.f32 %v10182_v17, %v7508_v19  ;;  %3299 = vrot.lane.b32.xlu1 %v3297_v55, %s8173_s18  ;;  %7328 = vmatpush3.bf16.msra.mxu1 %v7665_v41 }
 0x400   : > { %v2476_v13 = vpop.f32.mrf.mxu0  ;;  %7329 = vmatprep.subr.bf16.mxu1 %v7666_v6 }
 0x401   : > { %3181 = vrot.lane.b32.xlu0 %v3297_v55, %s8176_s15  ;;  %2573 = vst.msk [vmem:[#allocation3 + $0x218] sm:$0xff] %vm2505_vm7, %v2482_v37  ;;  %v2477_v0 = vadd.f32 %v10182_v17, %v2476_v13  ;;  %v3804_v18 = vpop.permute.xlu1 %3803 }
 0x402   : > { %3806 = vst.msk [vmem:[#allocation5 + $0xc0] sm:$0xff] %vm2887_vm15, %v3804_v18 }
 0x403   : > { %2572 = vst.msk [vmem:[#allocation3 + $0x210] sm:$0xff] %vm2505_vm7, %v2477_v0  ;;  %3448 = vrot.lane.b32.xlu1 %v10257_v31, %s8173_s18  ;;  %7330 = vmatpush3.bf16.msra.mxu1 %v7667_v16  ;;  %v10350_v0 = vld [vmem:[#allocation4 + $0x6f] sm:$0xff] }
 0x405   : > { %3037 = vrot.lane.b32.xlu0 %v10147_v20, %s8177_s28  ;;  %v3953_v43 = vpop.permute.xlu1 %3952 }
 0x406   : > { %3955 = vst.msk [vmem:[#allocation5 + $0xe0] sm:$0xff] %vm2887_vm15, %v3953_v43  ;;  %vm3003_vm15 = vcmask 1048544  }
 0x407   : > { %3567 = vrot.lane.b32.xlu1 %v10257_v31, %s11014_s21 }
 0x408   : > { %v3971_v12 = vpop.permute.xlu0 %3970 }
 0x409   : > { %3974 = vst.msk [vmem:[#allocation5 + $0xe8] sm:$0xff] %vm2910_vm9, %v3971_v12  ;;  %3187 = vrot.lane.b32.xlu0 %v3185_v44, %s8177_s28  ;;  %v3810_v20 = vpop.permute.xlu1 %3809  ;;  %vm2961_vm9 = vcmask 195616  }
 0x40a   : > { %3812 = vst.msk [vmem:[#allocation5 + $0xc0] sm:$0xff] %vm2894_vm1, %v3810_v20  ;;  %v2843_v25 = vld [vmem:[#allocation3 + $0x210] ss:$2 sm:$0xff]  ;;  %v2847_v63 = vld [vmem:[#allocation3 + $0x211] ss:$2 sm:$0xff] }
 0x40b   : > { %3716 = vrot.lane.b32.xlu1 %v10000_v56, %s11014_s21  ;;  %v2858_v29 = vmax.f32 %v2843_v25, %v2847_v63 }
 0x40c   : > { %v3978_v38 = vpop.permute.xlu0 %3977 }
 0x40d   : > { %3980 = vst.msk [vmem:[#allocation5 + $0xe8] sm:$0xff] %vm2917_vm10, %v3978_v38  ;;  %3305 = vrot.lane.b32.xlu0 %v3185_v44, %s11027_s1  ;;  %v3959_v26 = vpop.permute.xlu1 %3958  ;;  %vm2968_vm10 = vcmask 359616  }
 0x40e   : > { %3961 = vst.msk [vmem:[#allocation5 + $0xe0] sm:$0xff] %vm2894_vm1, %v3959_v26  ;;  %vm3012_vm1 = vcmask 294016  }
 0x40f   : > { %3573 = vrot.lane.b32.xlu1 %v10282_v45, %s8169_s16 }
 0x410   : > { %v3835_v5 = vpop.permute.xlu0 %3834 }
 0x411   : > { %3837 = vst.msk [vmem:[#allocation5 + $0xc8] sm:$0xff] %vm2924_vm12, %v3835_v5  ;;  %3454 = vrot.lane.b32.xlu0 %v10282_v45, %s11027_s1  ;;  %v3816_v46 = vpop.permute.xlu1 %3815 }
 0x412   : > { %v7511_v48 = vpop.f32.mrf.mxu0  ;;  %3818 = vst.msk [vmem:[#allocation5 + $0xc0] sm:$0xff] %vm2901_vm3, %v3816_v46  ;;  %v10396_v46 = vld [vmem:[#allocation4 + $0x79] sm:$0xff] }
 0x413   : > { %v2492_v53 = vadd.f32 %v10182_v17, %v7511_v48  ;;  %3824 = vst.msk [vmem:[#allocation5 + $0xc0] sm:$0xff] %vm2908_vm4, %v10175_v40  ;;  %3722 = vrot.lane.b32.xlu1 %v10016_v54, %s8169_s16 }
 0x414   : > { %v3984_v24 = vpop.permute.xlu0 %3983  ;;  %v2486_v57 = vpop.f32.mrf.mxu0 }
 0x415   : > { %3986 = vst.msk [vmem:[#allocation5 + $0xe8] sm:$0xff] %vm2924_vm12, %v3984_v24  ;;  %3312 = vrot.lane.b32.xlu0 %v3310_v9, %s11044_s23  ;;  %v2487_v58 = vadd.f32 %v10182_v17, %v2486_v57  ;;  %v3965_v61 = vpop.permute.xlu1 %3964  ;;  %vm2982_vm12 = vcmask 687616  }
 0x416   : > { %2575 = vst.msk [vmem:[#allocation3 + $0x228] sm:$0xff] %vm2505_vm7, %v2492_v53 }
 0x417   : > { %3967 = vst.msk [vmem:[#allocation5 + $0xe0] sm:$0xff] %vm2901_vm3, %v3965_v61  ;;  %3579 = vrot.lane.b32.xlu1 %v3577_v42, %s8170_s9  ;;  %vm3026_vm3 = vcmask 622016  }
 0x418   : > { %v3841_v39 = vpop.permute.xlu0 %3840  ;;  %2574 = vst.msk [vmem:[#allocation3 + $0x220] sm:$0xff] %vm2505_vm7, %v2487_v58 }
 0x419   : > { %3843 = vst.msk [vmem:[#allocation5 + $0xc8] sm:$0xff] %vm2931_vm14, %v3841_v39  ;;  %3461 = vrot.lane.b32.xlu0 %v3577_v42, %s11044_s23  ;;  %v2959_v22 = vpop.permute.xlu1 %2958 }
 0x41a   : > { %3973 = vst.msk [vmem:[#allocation5 + $0xe0] sm:$0xff] %vm2908_vm4, %v3971_v12  ;;  %v4109_v9 = vld [vmem:[#allocation5 + $0xc0] sm:$0xff]  ;;  %vm3033_vm4 = vcmask 786016  }
 0x41b   : > { %2962 = vst.msk [vmem:[#allocation5 + $0x10] sm:$0xff] %vm2961_vm9, %v2959_v22  ;;  %3728 = vrot.lane.b32.xlu1 %v10033_v4, %s8170_s9 }
 0x41c   : > { %v3990_v40 = vpop.permute.xlu0 %3989 }
 0x41d   : > { %3992 = vst.msk [vmem:[#allocation5 + $0xe8] sm:$0xff] %vm2931_vm14, %v3990_v40  ;;  %3318 = vrot.lane.b32.xlu0 %v10207_v15, %s8174_s14  ;;  %v3121_v36 = vpop.permute.xlu1 %3120 }
 0x41e   : > { %3123 = vst.msk [vmem:[#allocation5 + $0x30] sm:$0xff] %vm2961_vm9, %v3121_v36 }
 0x41f   : > { %3585 = vrot.lane.b32.xlu1 %v3583_v52, %s8171_s22  ;;  %v2845_v49 = vld [vmem:[#allocation3 + $0x220] ss:$2 sm:$0xf]  ;;  %v2849_v47 = vld [vmem:[#allocation3 + $0x221] ss:$2 sm:$0xf] }
 0x420   : > { %v3847_v30 = vpop.permute.xlu0 %3846  ;;  %v2859_v27 = vmax.f32 %v2845_v49, %v2849_v47 }
 0x421   : > { %3849 = vst.msk [vmem:[#allocation5 + $0xc8] sm:$0xff] %vm2938_vm0, %v3847_v30  ;;  %3467 = vrot.lane.b32.xlu0 %v3583_v52, %s8174_s14  ;;  %v2966_v1 = vpop.permute.xlu1 %2965  ;;  %v4113_v5 = vld [vmem:[#allocation5 + $0xe0] sm:$0xff] }
 0x422   : > { %2969 = vst.msk [vmem:[#allocation5 + $0x10] sm:$0xff] %vm2968_vm10, %v2966_v1 }
 0x423   : > { %v7514_v2 = vpop.f32.mrf.mxu0  ;;  %3734 = vrot.lane.b32.xlu1 %v9994_v32, %s8171_s22 }
 0x424   : > { %v2502_v10 = vadd.f32 %v10182_v17, %v7514_v2  ;;  %v10440_v2 = vld [vmem:[#allocation4 + $0x7c] sm:$0xff] }
 0x425   : > { %3324 = vrot.lane.b32.xlu0 %v10231_v3, %s8175_s19  ;;  %v2496_v15 = vpop.f32.mrf.mxu0  ;;  %v3127_v7 = vpop.permute.xlu1 %3126 }
 0x426   : > { %2577 = vst.msk [vmem:[#allocation3 + $0x238] sm:$0xff] %vm2505_vm7, %v2502_v10  ;;  %v2497_v11 = vadd.f32 %v10182_v17, %v2496_v15 }
 0x427   : > { %3129 = vst.msk [vmem:[#allocation5 + $0x30] sm:$0xff] %vm2968_vm10, %v3127_v7  ;;  %3591 = vrot.lane.b32.xlu1 %v3589_v21, %s8172_s26 }
 0x428   : > { %2576 = vst.msk [vmem:[#allocation3 + $0x230] sm:$0xff] %vm2505_vm7, %v2497_v11 }
 0x429   : > { %3473 = vrot.lane.b32.xlu0 %v3589_v21, %s8175_s19  ;;  %v2973_v23 = vpop.permute.xlu1 %2972 }
 0x42a   : > { %2976 = vst.msk [vmem:[#allocation5 + $0x10] sm:$0xff] %vm2975_vm11, %v2973_v23 }
 0x42b   : > { %3740 = vrot.lane.b32.xlu1 %v10005_v50, %s8172_s26 }
 0x42d   : > { %3330 = vrot.lane.b32.xlu0 %v10257_v31, %s8176_s15  ;;  %v2853_v17 = vld [vmem:[#allocation3 + $0x238] ss:$2 sm:$0xf]  ;;  %v2857_v8 = vld [vmem:[#allocation3 + $0x239] ss:$2 sm:$0xf]  ;;  %v3133_v51 = vpop.permute.xlu1 %3132 }
 0x42e   : > { %v2861_v3 = vmax.f32 %v2853_v17, %v2857_v8  ;;  %3135 = vst.msk [vmem:[#allocation5 + $0x30] sm:$0xff] %vm2975_vm11, %v3133_v51 }
 0x42f   : > { %v2851_v35 = vld [vmem:[#allocation3 + $0x228] ss:$2 sm:$0xff]  ;;  %v2855_v33 = vld [vmem:[#allocation3 + $0x229] ss:$2 sm:$0xff]  ;;  %3597 = vrot.lane.b32.xlu1 %v10000_v56, %s8173_s18 }
 0x430   : > { %v2860_v19 = vmax.f32 %v2851_v35, %v2855_v33  ;;  %v2863_v55 = vmax.f32 %v2859_v27, %v2861_v3 }
 0x431   : > { %3479 = vrot.lane.b32.xlu0 %v10000_v56, %s8176_s15  ;;  %v2980_v14 = vpop.permute.xlu1 %2979 }
 0x432   : > { %v2862_v37 = vmax.f32 %v2858_v29, %v2860_v19  ;;  %2865 = vst.msk [vmem:[#allocation4 + $0x8c] sm:$0xf] %vm2600_vm8, %v2863_v55  ;;  %vm2989_vm8 = vcmask 851616  }
 0x433   : > { %2983 = vst.msk [vmem:[#allocation5 + $0x10] sm:$0xff] %vm2982_vm12, %v2980_v14  ;;  %3746 = vrot.lane.b32.xlu1 %v10021_v34, %s8173_s18 }
 0x434   : > { %2864 = vst.msk [vmem:[#allocation4 + $0x84] sm:$0xff] %vm2505_vm7, %v2862_v37  ;;  %vm11045_vm7 = vcmask 917216  }
 0x435   : > { %3336 = vrot.lane.b32.xlu0 %v10282_v45, %s8177_s28  ;;  %v3139_v41 = vpop.permute.xlu1 %3138  ;;  %vm11046_vm14 = vmmov %vm11045_vm7 }
 0x436   : > { %3141 = vst.msk [vmem:[#allocation5 + $0x30] sm:$0xff] %vm2982_vm12, %v3139_v41 }
 0x437   : > { %3865 = vrot.lane.b32.xlu1 %v10021_v34, %s11014_s21 }
 0x439   : > { %3485 = vrot.lane.b32.xlu0 %v10016_v54, %s8177_s28  ;;  %v2987_v56 = vpop.permute.xlu1 %2986 }
 0x43a   : > { %2990 = vst.msk [vmem:[#allocation5 + $0x10] sm:$0xff] %vm2989_vm8, %v2987_v56 }
 0x43b   : > { %v3996_v13 = vpop.permute.xlu0 %3995  ;;  %4014 = vrot.lane.b32.xlu1 %v10350_v0, %s11014_s21  ;;  %v4055_v49 = vld [vmem:[#allocation4 + $0x84] sm:$0xff] }
 0x43c   : > { %3998 = vst.msk [vmem:[#allocation5 + $0xe8] sm:$0xff] %vm2938_vm0, %v3996_v13  ;;  %vm3005_vm0 = vcmask 130048   ;;  %v4061_v8 = vld [vmem:[#allocation4 + $0x85] sm:$0xff] }
 0x43d   : > { %3603 = vrot.lane.b32.xlu0 %v10016_v54, %s11027_s1  ;;  %v3145_v18 = vpop.permute.xlu1 %3144  ;;  %v10364_v54 = vld [vmem:[#allocation4 + $0x70] sm:$0xff] }
 0x43e   : > { %3147 = vst.msk [vmem:[#allocation5 + $0x30] sm:$0xff] %vm2989_vm8, %v3145_v18  ;;  %v4067_v18 = vld [vmem:[#allocation4 + $0x86] sm:$0xff] }
 0x43f   : > { %v3853_v31 = vpop.permute.xlu0 %3852  ;;  %3871 = vrot.lane.b32.xlu1 %v10040_v62, %s8169_s16 }
 0x440   : > { %3855 = vst.msk [vmem:[#allocation5 + $0xc8] sm:$0xff] %vm11045_vm7, %v3853_v31 }
 0x441   : > { %3752 = vrot.lane.b32.xlu0 %v10040_v62, %s11027_s1  ;;  %v2994_v6 = vpop.permute.xlu1 %2993 }
 0x442   : > { %2997 = vst.msk [vmem:[#allocation5 + $0x10] sm:$0xff] %vm2996_vm13, %v2994_v6 }
 0x443   : > { %v4002_v16 = vpop.permute.xlu0 %4001  ;;  %4020 = vrot.lane.b32.xlu1 %v10364_v54, %s8169_s16  ;;  %s8179_s16 = smov 50  }
 0x444   : > { %4004 = vst.msk [vmem:[#allocation5 + $0xe8] sm:$0xff] %vm11046_vm14, %v4002_v16 }
 0x445   : > { %3610 = vrot.lane.b32.xlu0 %v10033_v4, %s11044_s23  ;;  %v3151_v12 = vpop.permute.xlu1 %3150  ;;  %v10380_v4 = vld [vmem:[#allocation4 + $0x78] sm:$0xff] }
 0x446   : > { %3153 = vst.msk [vmem:[#allocation5 + $0x30] sm:$0xff] %vm2996_vm13, %v3151_v12 }
 0x447   : > { %v3859_v43 = vpop.permute.xlu0 %3858  ;;  %3877 = vrot.lane.b32.xlu1 %v10099_v60, %s8170_s9 }
 0x448   : > { %3861 = vst.msk [vmem:[#allocation5 + $0xc8] sm:$0xff] %vm2952_vm5, %v3859_v43 }
 0x449   : > { %3862 = vst.msk [vmem:[#allocation5 + $0xd0] sm:$0xff] %vm2954_vm6, %v3859_v43  ;;  %3759 = vrot.lane.b32.xlu0 %v10099_v60, %s11044_s23  ;;  %v3270_v44 = vpop.permute.xlu1 %3269 }
 0x44a   : > { %3272 = vst.msk [vmem:[#allocation5 + $0x50] sm:$0xff] %vm2961_vm9, %v3270_v44 }
 0x44b   : > { %v4008_v38 = vpop.permute.xlu0 %4007  ;;  %4026 = vrot.lane.b32.xlu1 %v10380_v4, %s8170_s9 }
 0x44c   : > { %4010 = vst.msk [vmem:[#allocation5 + $0xe8] sm:$0xff] %vm2952_vm5, %v4008_v38  ;;  %vm3040_vm5 = vcmask 950016  }
 0x44d   : > { %4011 = vst.msk [vmem:[#allocation5 + $0xf0] sm:$0xff] %vm2954_vm6, %v4008_v38  ;;  %3616 = vrot.lane.b32.xlu0 %v9994_v32, %s8174_s14  ;;  %v3419_v20 = vpop.permute.xlu1 %3418  ;;  %vm4392_vm6 = vcmask 949248  }
 0x44e   : > { %3421 = vst.msk [vmem:[#allocation5 + $0x70] sm:$0xff] %vm2961_vm9, %v3419_v20 }
 0x44f   : > { %v3001_v60 = vpop.permute.xlu0 %3000  ;;  %3883 = vrot.lane.b32.xlu1 %v10115_v59, %s8171_s22  ;;  %v4110_v32 = vld [vmem:[#allocation5 + $0xc8] sm:$0xff] }
 0x450   : > { %3004 = vst.msk [vmem:[#allocation5 + $0x10] sm:$0xff] %vm3003_vm15, %v3001_v60 }
 0x451   : > { %3006 = vst.msk [vmem:[#allocation5 + $0x18] sm:$0xff] %vm3005_vm0, %v3001_v60  ;;  %3765 = vrot.lane.b32.xlu0 %v10115_v59, %s8174_s14  ;;  %v3276_v26 = vpop.permute.xlu1 %3275  ;;  %v4129_v59 = vpack.c.bf16 %v4113_v5, %v4109_v9 }
 0x452   : > { %3278 = vst.msk [vmem:[#allocation5 + $0x50] sm:$0xff] %vm2968_vm10, %v3276_v26 }
 0x453   : > { %v3157_v45 = vpop.permute.xlu0 %3156  ;;  %v4114_v24 = vld [vmem:[#allocation5 + $0xe8] sm:$0xff]  ;;  %4032 = vrot.lane.b32.xlu1 %v10396_v46, %s8171_s22  ;;  %s8180_s22 = smov 22  }
 0x454   : > { %3159 = vst.msk [vmem:[#allocation5 + $0x30] sm:$0xff] %vm3003_vm15, %v3157_v45  ;;  %v4130_v48 = vpack.c.bf16 %v4114_v24, %v4110_v32 }
 0x455   : > { %3160 = vst.msk [vmem:[#allocation5 + $0x38] sm:$0xff] %vm3005_vm0, %v3157_v45  ;;  %3622 = vrot.lane.b32.xlu0 %v10005_v50, %s8175_s19  ;;  %v3425_v53 = vpop.permute.xlu1 %3424  ;;  %v10410_v50 = vld [vmem:[#allocation4 + $0x7a] sm:$0xff]  ;;  %v4079_v45 = vld [vmem:[#allocation4 + $0x88] sm:$0xff] }
 0x456   : > { %4465 = vmatprep.mubr.bf16.mxu1 %v4130_v48  ;;  %3427 = vst.msk [vmem:[#allocation5 + $0x70] sm:$0xff] %vm2968_vm10, %v3425_v53  ;;  %v10448_v21 = vpop.f32.mrf.mxu1 }
 0x457   : > { %v3010_v57 = vpop.permute.xlu0 %3009  ;;  %4466 = vmatmul.mubr.bf16.gmra.mxu1 %v4129_v59  ;;  %3889 = vrot.lane.b32.xlu1 %v10130_v28, %s8172_s26  ;;  %v4087_v37 = vld [vmem:[#allocation5 + $0x10] sm:$0xff] }
 0x458   : > { %3013 = vst.msk [vmem:[#allocation5 + $0x18] sm:$0xff] %vm3012_vm1, %v3010_v57  ;;  %v10453_v25 = vpop.f32.mrf.mxu1 }
 0x459   : > { %3771 = vrot.lane.b32.xlu0 %v10130_v28, %s8175_s19  ;;  %v3282_v39 = vpop.permute.xlu1 %3281 }
 0x45a   : > { %3284 = vst.msk [vmem:[#allocation5 + $0x50] sm:$0xff] %vm2975_vm11, %v3282_v39  ;;  %v10459_v17 = vpop.f32.mrf.mxu1 }
 0x45b   : > { %v3164_v58 = vpop.permute.xlu0 %3163  ;;  %4038 = vrot.lane.b32.xlu1 %v10410_v50, %s8172_s26  ;;  %v4091_v29 = vld [vmem:[#allocation5 + $0x30] sm:$0xff] }
 0x45c   : > { %3166 = vst.msk [vmem:[#allocation5 + $0x38] sm:$0xff] %vm3012_vm1, %v3164_v58  ;;  %v10465_v19 = vpop.f32.mrf.mxu1  ;;  %v4119_v14 = vpack.c.bf16 %v4091_v29, %v4087_v37 }
 0x45d   : > { %3628 = vrot.lane.b32.xlu0 %v10021_v34, %s8176_s15  ;;  %v3431_v61 = vpop.permute.xlu1 %3430  ;;  %v10424_v34 = vld [vmem:[#allocation4 + $0x7b] sm:$0xff] }
 0x45e   : > { %3433 = vst.msk [vmem:[#allocation5 + $0x70] sm:$0xff] %vm2975_vm11, %v3431_v61 }
 0x45f   : > { %v3017_v42 = vpop.permute.xlu0 %3016  ;;  %3895 = vrot.lane.b32.xlu1 %v10350_v0, %s8173_s18 }
 0x460   : > { %3020 = vst.msk [vmem:[#allocation5 + $0x18] sm:$0xff] %vm3019_vm2, %v3017_v42 }
 0x461   : > { %3777 = vrot.lane.b32.xlu0 %v10350_v0, %s8176_s15  ;;  %v3288_v28 = vpop.permute.xlu1 %3287 }
 0x462   : > { %3290 = vst.msk [vmem:[#allocation5 + $0x50] sm:$0xff] %vm2982_vm12, %v3288_v28 }
 0x463   : > { %v3170_v40 = vpop.permute.xlu0 %3169  ;;  %4044 = vrot.lane.b32.xlu1 %v10424_v34, %s8173_s18 }
 0x464   : > { %3172 = vst.msk [vmem:[#allocation5 + $0x38] sm:$0xff] %vm3019_vm2, %v3170_v40 }
 0x465   : > { %3634 = vrot.lane.b32.xlu0 %v10040_v62, %s8177_s28  ;;  %v3437_v22 = vpop.permute.xlu1 %3436 }
 0x466   : > { %3439 = vst.msk [vmem:[#allocation5 + $0x70] sm:$0xff] %vm2982_vm12, %v3437_v22 }
 0x467   : > { %v3024_v30 = vpop.permute.xlu0 %3023 }
 0x468   : > { %3027 = vst.msk [vmem:[#allocation5 + $0x18] sm:$0xff] %vm3026_vm3, %v3024_v30 }
 0x469   : > { %3783 = vrot.lane.b32.xlu0 %v10364_v54, %s8177_s28  ;;  %v3294_v36 = vpop.permute.xlu1 %3293 }
 0x46a   : > { %3296 = vst.msk [vmem:[#allocation5 + $0x50] sm:$0xff] %vm2989_vm8, %v3294_v36 }
 0x46b   : > { %v3176_v52 = vpop.permute.xlu0 %3175 }
 0x46c   : > { %3178 = vst.msk [vmem:[#allocation5 + $0x38] sm:$0xff] %vm3026_vm3, %v3176_v52 }
 0x46d   : > { %3901 = vrot.lane.b32.xlu0 %v10364_v54, %s11027_s1  ;;  %v3443_v62 = vpop.permute.xlu1 %3442 }
 0x46e   : > { %3445 = vst.msk [vmem:[#allocation5 + $0x70] sm:$0xff] %vm2989_vm8, %v3443_v62 }
 0x46f   : > { %v3031_v1 = vpop.permute.xlu0 %3030 }
 0x470   : > { %3034 = vst.msk [vmem:[#allocation5 + $0x18] sm:$0xff] %vm3033_vm4, %v3031_v1 }
 0x471   : > { %4050 = vrot.lane.b32.xlu0 %v10440_v2, %s11027_s1  ;;  %v3300_v10 = vpop.permute.xlu1 %3299 }
 0x472   : > { %3302 = vst.msk [vmem:[#allocation5 + $0x50] sm:$0xff] %vm2996_vm13, %v3300_v10 }
 0x473   : > { %v3182_v15 = vpop.permute.xlu0 %3181 }
 0x474   : > { %3184 = vst.msk [vmem:[#allocation5 + $0x38] sm:$0xff] %vm3033_vm4, %v3182_v15 }
 0x475   : > { %3908 = vrot.lane.b32.xlu0 %v10380_v4, %s11044_s23  ;;  %v3449_v11 = vpop.permute.xlu1 %3448  ;;  %v4073_v4 = vld [vmem:[#allocation4 + $0x87] sm:$0xff] }
 0x476   : > { %3451 = vst.msk [vmem:[#allocation5 + $0x70] sm:$0xff] %vm2996_vm13, %v3449_v11 }
 0x477   : > { %v3038_v7 = vpop.permute.xlu0 %3037 }
 0x478   : > { %3041 = vst.msk [vmem:[#allocation5 + $0x18] sm:$0xff] %vm3040_vm5, %v3038_v7 }
 0x479   : > { %4057 = vrot.lane.b32.xlu0 %v4055_v49, %s11044_s23  ;;  %v3568_v47 = vpop.permute.xlu1 %3567 }
 0x47a   : > { %3570 = vst.msk [vmem:[#allocation5 + $0x90] sm:$0xff] %vm2961_vm9, %v3568_v47 }
 0x47b   : > { %v3188_v23 = vpop.permute.xlu0 %3187 }
 0x47c   : > { %3190 = vst.msk [vmem:[#allocation5 + $0x38] sm:$0xff] %vm3040_vm5, %v3188_v23 }
 0x47d   : > { %3914 = vrot.lane.b32.xlu0 %v10396_v46, %s8174_s14  ;;  %v3717_v63 = vpop.permute.xlu1 %3716 }
 0x47e   : > { %3719 = vst.msk [vmem:[#allocation5 + $0xb0] sm:$0xff] %vm2961_vm9, %v3717_v63 }
 0x47f   : > { %v3306_v27 = vpop.permute.xlu0 %3305  ;;  %v4088_v35 = vld [vmem:[#allocation5 + $0x18] sm:$0xff] }
 0x480   : > { %3308 = vst.msk [vmem:[#allocation5 + $0x50] sm:$0xff] %vm3003_vm15, %v3306_v27 }
 0x481   : > { %3309 = vst.msk [vmem:[#allocation5 + $0x58] sm:$0xff] %vm3005_vm0, %v3306_v27  ;;  %4063 = vrot.lane.b32.xlu0 %v4061_v8, %s8174_s14  ;;  %v3574_v3 = vpop.permute.xlu1 %3573 }
 0x482   : > { %3576 = vst.msk [vmem:[#allocation5 + $0x90] sm:$0xff] %vm2968_vm10, %v3574_v3 }
 0x483   : > { %v3455_v51 = vpop.permute.xlu0 %3454  ;;  %v4092_v33 = vld [vmem:[#allocation5 + $0x38] sm:$0xff] }
 0x484   : > { %3457 = vst.msk [vmem:[#allocation5 + $0x70] sm:$0xff] %vm3003_vm15, %v3455_v51  ;;  %v4120_v55 = vpack.c.bf16 %v4092_v33, %v4088_v35 }
 0x485   : > { %3458 = vst.msk [vmem:[#allocation5 + $0x78] sm:$0xff] %vm3005_vm0, %v3455_v51  ;;  %3920 = vrot.lane.b32.xlu0 %v10410_v50, %s8175_s19  ;;  %v3723_v56 = vpop.permute.xlu1 %3722 }
 0x486   : > { %v7297_v41 = vpop.f32.mrf.mxu1  ;;  %6957 = vmatprep.mubr.msk.bf16.mxu1 %vm4392_vm6, %v4120_v55  ;;  %3725 = vst.msk [vmem:[#allocation5 + $0xb0] sm:$0xff] %vm2968_vm10, %v3723_v56 }
 0x487   : > { %v3313_v13 = vpop.permute.xlu0 %3312  ;;  %4507 = vmatmul.mubr.bf16.vlgmr.msra.gmra.mxu1 %v4119_v14  ;;  %v4095_v36 = vld [vmem:[#allocation5 + $0x50] sm:$0xff] }
 0x488   : > { %3315 = vst.msk [vmem:[#allocation5 + $0x58] sm:$0xff] %vm3012_vm1, %v3313_v13  ;;  %v7298_v0 = vpop.f32.mrf.mxu1 }
 0x489   : > { %v10475_v31 = vadd.f32 %v7298_v0, %v7297_v41  ;;  %4069 = vrot.lane.b32.xlu0 %v4067_v18, %s8175_s19  ;;  %v3580_v16 = vpop.permute.xlu1 %3579 }
 0x48a   : > { %v7300_v6 = vpop.f32.mrf.mxu1  ;;  %3582 = vst.msk [vmem:[#allocation5 + $0x90] sm:$0xff] %vm2975_vm11, %v3580_v16 }
 0x48b   : > { %v3462_v54 = vpop.permute.xlu0 %3461  ;;  %v4099_v42 = vld [vmem:[#allocation5 + $0x70] sm:$0xff] }
 0x48c   : > { %3464 = vst.msk [vmem:[#allocation5 + $0x78] sm:$0xff] %vm3012_vm1, %v3462_v54  ;;  %v7301_v12 = vpop.f32.mrf.mxu1  ;;  %v4123_v52 = vpack.c.bf16 %v4099_v42, %v4095_v36 }
 0x48d   : > { %v10480_v43 = vadd.f32 %v7301_v12, %v7300_v6  ;;  %3926 = vrot.lane.b32.xlu0 %v10424_v34, %s8176_s15  ;;  %v3729_v44 = vpop.permute.xlu1 %3728 }
 0x48e   : > { %3731 = vst.msk [vmem:[#allocation5 + $0xb0] sm:$0xff] %vm2975_vm11, %v3729_v44 }
 0x48f   : > { %v3319_v38 = vpop.permute.xlu0 %3318 }
 0x490   : > { %3321 = vst.msk [vmem:[#allocation5 + $0x58] sm:$0xff] %vm3019_vm2, %v3319_v38 }
 0x491   : > { %4075 = vrot.lane.b32.xlu0 %v4073_v4, %s8176_s15  ;;  %v3586_v20 = vpop.permute.xlu1 %3585 }
 0x492   : > { %3588 = vst.msk [vmem:[#allocation5 + $0x90] sm:$0xff] %vm2982_vm12, %v3586_v20 }
 0x493   : > { %v3468_v60 = vpop.permute.xlu0 %3467 }
 0x494   : > { %3470 = vst.msk [vmem:[#allocation5 + $0x78] sm:$0xff] %vm3019_vm2, %v3468_v60 }
 0x495   : > { %3932 = vrot.lane.b32.xlu0 %v10440_v2, %s8177_s28  ;;  %v3735_v5 = vpop.permute.xlu1 %3734 }
 0x496   : > { %3737 = vst.msk [vmem:[#allocation5 + $0xb0] sm:$0xff] %vm2982_vm12, %v3735_v5 }
 0x497   : > { %v3325_v26 = vpop.permute.xlu0 %3324 }
 0x498   : > { %3327 = vst.msk [vmem:[#allocation5 + $0x58] sm:$0xff] %vm3026_vm3, %v3325_v26 }
 0x499   : > { %4081 = vrot.lane.b32.xlu0 %v4079_v45, %s8177_s28  ;;  %v3592_v32 = vpop.permute.xlu1 %3591 }
 0x49a   : > { %3594 = vst.msk [vmem:[#allocation5 + $0x90] sm:$0xff] %vm2989_vm8, %v3592_v32 }
 0x49b   : > { %v3474_v24 = vpop.permute.xlu0 %3473 }
 0x49c   : > { %3476 = vst.msk [vmem:[#allocation5 + $0x78] sm:$0xff] %vm3026_vm3, %v3474_v24 }
 0x49d   : > { %v3741_v46 = vpop.permute.xlu1 %3740 }
 0x49e   : > { %3743 = vst.msk [vmem:[#allocation5 + $0xb0] sm:$0xff] %vm2989_vm8, %v3741_v46 }
 0x49f   : > { %v3331_v48 = vpop.permute.xlu0 %3330 }
 0x4a0   : > { %3333 = vst.msk [vmem:[#allocation5 + $0x58] sm:$0xff] %vm3033_vm4, %v3331_v48 }
 0x4a1   : > { %v3598_v9 = vpop.permute.xlu1 %3597 }
 0x4a2   : > { %3600 = vst.msk [vmem:[#allocation5 + $0x90] sm:$0xff] %vm2996_vm13, %v3598_v9 }
 0x4a3   : > { %v3480_v59 = vpop.permute.xlu0 %3479 }
 0x4a4   : > { %3482 = vst.msk [vmem:[#allocation5 + $0x78] sm:$0xff] %vm3033_vm4, %v3480_v59 }
 0x4a5   : > { %v3747_v53 = vpop.permute.xlu1 %3746 }
 0x4a6   : > { %3749 = vst.msk [vmem:[#allocation5 + $0xb0] sm:$0xff] %vm2996_vm13, %v3747_v53 }
 0x4a7   : > { %v3337_v57 = vpop.permute.xlu0 %3336 }
 0x4a8   : > { %3339 = vst.msk [vmem:[#allocation5 + $0x58] sm:$0xff] %vm3040_vm5, %v3337_v57 }
 0x4a9   : > { %v3866_v39 = vpop.permute.xlu1 %3865 }
 0x4aa   : > { %3868 = vst.msk [vmem:[#allocation5 + $0xd0] sm:$0xff] %vm2961_vm9, %v3866_v39 }
 0x4ab   : > { %v3486_v58 = vpop.permute.xlu0 %3485 }
 0x4ac   : > { %3488 = vst.msk [vmem:[#allocation5 + $0x78] sm:$0xff] %vm3040_vm5, %v3486_v58 }
 0x4ad   : > { %v4015_v50 = vpop.permute.xlu1 %4014 }
 0x4ae   : > { %4017 = vst.msk [vmem:[#allocation5 + $0xf0] sm:$0xff] %vm2961_vm9, %v4015_v50  ;;  %vm4539_vm9 = vcmask 408576  }
 0x4af   : > { %v3604_v61 = vpop.permute.xlu0 %3603  ;;  %v4096_v34 = vld [vmem:[#allocation5 + $0x58] sm:$0xff] }
 0x4b0   : > { %3606 = vst.msk [vmem:[#allocation5 + $0x90] sm:$0xff] %vm3003_vm15, %v3604_v61 }
 0x4b1   : > { %3607 = vst.msk [vmem:[#allocation5 + $0x98] sm:$0xff] %vm3005_vm0, %v3604_v61  ;;  %v3872_v28 = vpop.permute.xlu1 %3871 }
 0x4b2   : > { %3874 = vst.msk [vmem:[#allocation5 + $0xd0] sm:$0xff] %vm2968_vm10, %v3872_v28 }
 0x4b3   : > { %v3753_v40 = vpop.permute.xlu0 %3752  ;;  %v4100_v22 = vld [vmem:[#allocation5 + $0x78] sm:$0xff] }
 0x4b4   : > { %3755 = vst.msk [vmem:[#allocation5 + $0xb0] sm:$0xff] %vm3003_vm15, %v3753_v40  ;;  %v4124_v30 = vpack.c.bf16 %v4100_v22, %v4096_v34  ;;  %v7293_v22 = vadd.f32 %v10453_v25, %v10448_v21 }
 0x4b5   : > { %3756 = vst.msk [vmem:[#allocation5 + $0xb8] sm:$0xff] %vm3005_vm0, %v3753_v40  ;;  %v4021_v62 = vpop.permute.xlu1 %4020 }
 0x4b6   : > { %6958 = vmatprep.mubr.msk.bf16.mxu1 %vm4392_vm6, %v4124_v30  ;;  %v7303_v1 = vpop.f32.mrf.mxu1  ;;  %4023 = vst.msk [vmem:[#allocation5 + $0xf0] sm:$0xff] %vm2968_vm10, %v4021_v62  ;;  %v10561_v30 = vld [vmem:[%s10919_s4] ss:$0 sm:$0xff] }
 0x4b7   : > { %4515 = vmatmul.mubr.bf16.gmra.mxu1 %v4123_v52  ;;  %v3611_v2 = vpop.permute.xlu0 %3610  ;;  %v4103_v54 = vld [vmem:[#allocation5 + $0x90] sm:$0xff]  ;;  %v4444_v62 = vadd.f32 %v7293_v22, %v10561_v30  ;;  %v7682_v22 = vld [vmem:[#allocation8 + $0x264] ss:$16 sps:$4 sm:$0xff]  }
 0x4b8   : > { %3613 = vst.msk [vmem:[#allocation5 + $0x98] sm:$0xff] %vm3012_vm1, %v3611_v2  ;;  %v7304_v10 = vpop.f32.mrf.mxu1 }
 0x4b9   : > { %v10513_v15 = vadd.f32 %v7304_v10, %v7303_v1  ;;  %v3878_v11 = vpop.permute.xlu1 %3877  ;;  %v7296_v1 = vadd.f32 %v10465_v19, %v10459_v17 }
 0x4ba   : > { %3880 = vst.msk [vmem:[#allocation5 + $0xd0] sm:$0xff] %vm2975_vm11, %v3878_v11  ;;  %v10547_v46 = vpop.f32.mrf.mxu1 }
 0x4bb   : > { %v3760_v7 = vpop.permute.xlu0 %3759  ;;  %v4107_v13 = vld [vmem:[#allocation5 + $0xb0] sm:$0xff] }
 0x4bc   : > { %3762 = vst.msk [vmem:[#allocation5 + $0xb8] sm:$0xff] %vm3012_vm1, %v3760_v7  ;;  %v4127_v12 = vpack.c.bf16 %v4107_v13, %v4103_v54  ;;  %v10549_v53 = vpop.f32.mrf.mxu1 }
 0x4bd   : > { %v4027_v49 = vpop.permute.xlu1 %4026 }
 0x4be   : > { %4029 = vst.msk [vmem:[#allocation5 + $0xf0] sm:$0xff] %vm2975_vm11, %v4027_v49  ;;  %v4447_v49 = vadd.f32 %v7296_v1, %v10561_v30 }
 0x4bf   : > { %v3617_v47 = vpop.permute.xlu0 %3616 }
 0x4c0   : > { %3619 = vst.msk [vmem:[#allocation5 + $0x98] sm:$0xff] %vm3019_vm2, %v3617_v47  ;;  %v4558_v47 = vlaneseq }
 0x4c1   : > { %v3884_v23 = vpop.permute.xlu1 %3883 }
 0x4c2   : > { %3886 = vst.msk [vmem:[#allocation5 + $0xd0] sm:$0xff] %vm2982_vm12, %v3884_v23  ;;  %v8178_v23 = vmov 1966171168   ;;  %vm4560_vm10 = vcmp.lt.s32.totalorder %v4558_v47, 50  ;;  %vm10605_vm11 = vcmp.ge.s32.totalorder %v4558_v47, 50  ;;  %vm10613_vm7 = vcmp.ge.s32.totalorder %v4558_v47, 100 }
 0x4c3   : > { %v3766_v63 = vpop.permute.xlu0 %3765  ;;  %vm10623_vm14 = vcmp.ge.s32.totalorder %v4558_v47, 22 }
 0x4c4   : > { %3768 = vst.msk [vmem:[#allocation5 + $0xb8] sm:$0xff] %vm3019_vm2, %v3766_v63  ;;  %v4565_v63 = vunpack.c.l.s4 %v8178_v23  ;;  %v4460_v23 = vadd.f32 %v10513_v15, %v10561_v30 }
 0x4c5   : > { %v4033_v27 = vpop.permute.xlu1 %4032 }
 0x4c6   : > { %4035 = vst.msk [vmem:[#allocation5 + $0xf0] sm:$0xff] %vm2982_vm12, %v4033_v27  ;;  %v4566_v27 = vunpack.c.0.s8 %v4565_v63  ;;  %v7308_v63 = vadd.f32 %v10549_v53, %v10547_v46  ;;  %v7691_v46 = vld [vmem:[#allocation8 + $0x204] ss:$16 sps:$4 sm:$0xff]   ;;  %v7692_v53 = vld [vmem:[#allocation8 + $0xe0] ss:$16 sps:$4 sm:$0xff]   ;;  %vm4590_vm12 = vcmp.lt.s32.totalorder %v4558_v47, 100 }
 0x4c7   : > { %v3623_v8 = vpop.permute.xlu0 %3622 }
 0x4c8   : > { %3625 = vst.msk [vmem:[#allocation5 + $0x98] sm:$0xff] %vm3026_vm3, %v3623_v8  ;;  %v10570_v8 = vshrl.u32 %v4558_v47, 7 }
 0x4c9   : > { %v3890_v29 = vpop.permute.xlu1 %3889 }
 0x4ca   : > { %3892 = vst.msk [vmem:[#allocation5 + $0xd0] sm:$0xff] %vm2989_vm8, %v3890_v29 }
 0x4cb   : > { %v3772_v3 = vpop.permute.xlu0 %3771 }
 0x4cc   : > { %3774 = vst.msk [vmem:[#allocation5 + $0xb8] sm:$0xff] %vm3026_vm3, %v3772_v3 }
 0x4cd   : > { %v4039_v51 = vpop.permute.xlu1 %4038 }
 0x4ce   : > { %4041 = vst.msk [vmem:[#allocation5 + $0xf0] sm:$0xff] %vm2989_vm8, %v4039_v51  ;;  %vm4591_vm8 = vmand %vm10605_vm11, %vm4590_vm12 }
 0x4cf   : > { %v3629_v35 = vpop.permute.xlu0 %3628 }
 0x4d0   : > { %3631 = vst.msk [vmem:[#allocation5 + $0x98] sm:$0xff] %vm3033_vm4, %v3629_v35 }
 0x4d1   : > { %v3896_v33 = vpop.permute.xlu1 %3895 }
 0x4d2   : > { %3898 = vst.msk [vmem:[#allocation5 + $0xd0] sm:$0xff] %vm2996_vm13, %v3896_v33  ;;  %v10573_v33 = vsub.s32 %v4566_v27, %v10570_v8 }
 0x4d3   : > { %v3778_v55 = vpop.permute.xlu0 %3777 }
 0x4d4   : > { %3780 = vst.msk [vmem:[#allocation5 + $0xb8] sm:$0xff] %vm3033_vm4, %v3778_v55 }
 0x4d5   : > { %v4045_v37 = vpop.permute.xlu1 %4044 }
 0x4d6   : > { %4047 = vst.msk [vmem:[#allocation5 + $0xf0] sm:$0xff] %vm2996_vm13, %v4045_v37  ;;  %vm10618_vm13 = vcmp.lt.s32.totalorder %v4558_v47, 150 }
 0x4d7   : > { %v3635_v14 = vpop.permute.xlu0 %3634 }
 0x4d8   : > { %3637 = vst.msk [vmem:[#allocation5 + $0x98] sm:$0xff] %vm3040_vm5, %v3635_v14 }
 0x4db   : > { %v3784_v41 = vpop.permute.xlu0 %3783 }
 0x4dc   : > { %3786 = vst.msk [vmem:[#allocation5 + $0xb8] sm:$0xff] %vm3040_vm5, %v3784_v41 }
 0x4df   : > { %v3902_v56 = vpop.permute.xlu0 %3901  ;;  %v4104_v18 = vld [vmem:[#allocation5 + $0x98] sm:$0xff] }
 0x4e0   : > { %3904 = vst.msk [vmem:[#allocation5 + $0xd0] sm:$0xff] %vm3003_vm15, %v3902_v56 }
 0x4e1   : > { %3905 = vst.msk [vmem:[#allocation5 + $0xd8] sm:$0xff] %vm3005_vm0, %v3902_v56 }
 0x4e3   : > { %v4051_v0 = vpop.permute.xlu0 %4050  ;;  %v4108_v6 = vld [vmem:[#allocation5 + $0xb8] sm:$0xff] }
 0x4e4   : > { %4053 = vst.msk [vmem:[#allocation5 + $0xf0] sm:$0xff] %vm3003_vm15, %v4051_v0  ;;  %v4128_v16 = vpack.c.bf16 %v4108_v6, %v4104_v18  ;;  %v7668_v6 = vld [vmem:[#allocation8 + $0x2e0] ss:$16 sps:$4 sm:$0xff]   ;;  %vm10628_vm15 = vcmp.lt.s32.totalorder %v4558_v47, 72 }
 0x4e5   : > { %4054 = vst.msk [vmem:[#allocation5 + $0xf8] sm:$0xff] %vm3005_vm0, %v4051_v0  ;;  %vm4597_vm0 = vcmask 818176  }
 0x4e6   : > { %6959 = vmatprep.mubr.msk.bf16.mxu1 %vm4392_vm6, %v4128_v16  ;;  %v7670_v16 = vld [vmem:[#allocation8 + $0x2e4] ss:$16 sps:$4 sm:$0xff]  }
 0x4e7   : > { %v3909_v44 = vpop.permute.xlu0 %3908  ;;  %4523 = vmatmul.mubr.bf16.gmra.mxu1 %v4127_v12  ;;  %v4111_v39 = vld [vmem:[#allocation5 + $0xd0] sm:$0xff]  ;;  %6129 = vmatprep.subr.bf16.mxu0 %v7670_v16  ;;  %v4452_v12 = vadd.f32 %v10475_v31, %v10561_v30 }
 0x4e8   : > { %3911 = vst.msk [vmem:[#allocation5 + $0xd8] sm:$0xff] %vm3012_vm1, %v3909_v44  ;;  %6130 = vmatpush1.bf16.msra.mxu0 %v7668_v6  ;;  %v7697_v6 = vld [vmem:[#allocation8 + $0xc4] ss:$16 sps:$4 sm:$0xff]  }
 0x4eb   : > { %v4058_v38 = vpop.permute.xlu0 %4057  ;;  %v4115_v48 = vld [vmem:[#allocation5 + $0xf0] sm:$0xff] }
 0x4ec   : > { %4060 = vst.msk [vmem:[#allocation5 + $0xf8] sm:$0xff] %vm3012_vm1, %v4058_v38  ;;  %v4131_v58 = vpack.c.bf16 %v4115_v48, %v4111_v39  ;;  %v7674_v39 = vld [vmem:[#allocation8 + $0x2a0] ss:$16 sps:$4 sm:$0xff]   ;;  %vm4602_vm1 = vmand %vm10613_vm7, %vm10618_vm13  ;;  %vm4668_vm7 = vcmp.lt.s32.totalorder %v4558_v47, 94  ;;  %vm4678_vm13 = vcmp.ge.s32.totalorder %v4558_v47, 94 }
 0x4ef   : > { %v3915_v4 = vpop.permute.xlu0 %3914 }
 0x4f0   : > { %3917 = vst.msk [vmem:[#allocation5 + $0xd8] sm:$0xff] %vm3019_vm2, %v3915_v4  ;;  %v7671_v4 = vld [vmem:[#allocation8 + $0x2c0] ss:$16 sps:$4 sm:$0xff]  }
 0x4f3   : > { %v4064_v20 = vpop.permute.xlu0 %4063 }
 0x4f4   : > { %4066 = vst.msk [vmem:[#allocation5 + $0xf8] sm:$0xff] %vm3019_vm2, %v4064_v20  ;;  %v7673_v20 = vld [vmem:[#allocation8 + $0x2c4] ss:$16 sps:$4 sm:$0xff]   ;;  %vm4610_vm2 = vmand %vm10623_vm14, %vm10628_vm15  ;;  %vm4679_vm14 = vcmp.lt.s32.totalorder %v4558_v47, 144  ;;  %vm4675_vm15 = vcmask 769024  }
 0x4f5   : > { %6131 = vmatprep.subr.bf16.mxu0 %v7673_v20 }
 0x4f6   : > { %6132 = vmatpush1.bf16.msra.mxu0 %v7671_v4  ;;  %v7703_v4 = vld [vmem:[#allocation8 + $0xa4] ss:$16 sps:$4 sm:$0xff]  }
 0x4f7   : > { %v3921_v60 = vpop.permute.xlu0 %3920 }
 0x4f8   : > { %3923 = vst.msk [vmem:[#allocation5 + $0xd8] sm:$0xff] %vm3026_vm3, %v3921_v60 }
 0x4fb   : > { %v4070_v5 = vpop.permute.xlu0 %4069 }
 0x4fc   : > { %4072 = vst.msk [vmem:[#allocation5 + $0xf8] sm:$0xff] %vm3026_vm3, %v4070_v5  ;;  %vm10653_vm3 = vcmp.ge.s32.totalorder %v4558_v47, 72 }
 0x4ff   : > { %v3927_v26 = vpop.permute.xlu0 %3926 }
 0x500   : > { %3929 = vst.msk [vmem:[#allocation5 + $0xd8] sm:$0xff] %vm3033_vm4, %v3927_v26  ;;  %v4455_v26 = vadd.f32 %v10480_v43, %v10561_v30  ;;  %v7677_v43 = vld [vmem:[#allocation8 + $0x280] ss:$16 sps:$4 sm:$0xff]  }
 0x503   : > { %v4076_v45 = vpop.permute.xlu0 %4075 }
 0x504   : > { %4078 = vst.msk [vmem:[#allocation5 + $0xf8] sm:$0xff] %vm3033_vm4, %v4076_v45  ;;  %vm10658_vm4 = vcmp.lt.s32.totalorder %v4558_v47, 122 }
 0x505   : > { %vm4643_vm11 = vmand %vm10653_vm3, %vm10658_vm4  ;;  %vm4712_vm3 = vcmp.lt.s32.totalorder %v4558_v47, 66 }
 0x507   : > { %v3933_v32 = vpop.permute.xlu0 %3932 }
 0x508   : > { %3935 = vst.msk [vmem:[#allocation5 + $0xd8] sm:$0xff] %vm3040_vm5, %v3933_v32 }
 0x50b   : > { %v4082_v24 = vpop.permute.xlu0 %4081 }
 0x50c   : > { %4084 = vst.msk [vmem:[#allocation5 + $0xf8] sm:$0xff] %vm3040_vm5, %v4082_v24  ;;  %vm10663_vm5 = vcmp.ge.s32.totalorder %v4558_v47, 122 }
 0x50f   : > { %v4112_v9 = vld [vmem:[#allocation5 + $0xd8] sm:$0xff] }
 0x513   : > { %v4116_v59 = vld [vmem:[#allocation5 + $0xf8] sm:$0xff] }
 0x514   : > { %v4132_v57 = vpack.c.bf16 %v4116_v59, %v4112_v9 }
 0x516   : > { %6960 = vmatprep.mubr.msk.bf16.mxu1 %vm4392_vm6, %v4132_v57 }
 0x517   : > { %v7309_v50 = vpop.f32.mrf.mxu1  ;;  %4531 = vmatmul.mubr.bf16.gmra.mxu1 %v4131_v58  ;;  %v7676_v58 = vld [vmem:[#allocation8 + $0x2a4] ss:$16 sps:$4 sm:$0xff]  }
 0x518   : > { %6133 = vmatprep.subr.bf16.mxu0 %v7676_v58  ;;  %v7707_v58 = vld [vmem:[#allocation8 + $0x60] ss:$16 sps:$4 sm:$0xff]  }
 0x519   : > { %v7310_v61 = vpop.f32.mrf.mxu1  ;;  %6134 = vmatpush1.bf16.msra.mxu0 %v7674_v39 }
 0x51a   : > { %v10552_v42 = vadd.f32 %v7310_v61, %v7309_v50 }
 0x51b   : > { %v7312_v28 = vpop.f32.mrf.mxu1 }
 0x51d   : > { %v7313_v40 = vpop.f32.mrf.mxu1 }
 0x51e   : > { %v10554_v34 = vadd.f32 %v7313_v40, %v7312_v28  ;;  %v7679_v28 = vld [vmem:[#allocation8 + $0x284] ss:$16 sps:$4 sm:$0xff]  }
 0x51f   : > { %6135 = vmatprep.subr.bf16.mxu0 %v7679_v28  ;;  %v7718_v28 = vld [vmem:[#allocation8 + $0x24] ss:$16 sps:$4 sm:$0xff]  }
 0x520   : > { %6136 = vmatpush1.bf16.msra.mxu0 %v7677_v43  ;;  %v7713_v43 = vld [vmem:[#allocation8 + $0x40] ss:$16 sps:$4 sm:$0xff]  }
 0x521   : > { %6137 = vmatprep.subr.bf16.mxu0 %v7682_v22  ;;  %v7716_v22 = vld [vmem:[#allocation8 + $0x20] ss:$16 sps:$4 sm:$0xff]  }
 0x547   : > { %v7331_v36 = vpop.f32.mrf.mxu1 }
 0x549   : > { %v7332_v52 = vpop.f32.mrf.mxu1 }
 0x54a   : > { %v7333_v2 = vadd.f32 %v7332_v52, %v7331_v36  ;;  %v7680_v52 = vld [vmem:[#allocation8 + $0x260] ss:$16 sps:$4 sm:$0xff]  }
 0x54b   : > { %v7334_v10 = vpop.f32.mrf.mxu1  ;;  %6138 = vmatpush1.bf16.msra.mxu0 %v7680_v52  ;;  %v7805_v52 = vld [vmem:[#allocation8 + $0x2c] ss:$16 sps:$4 sm:$0xff]  }
 0x54c   : > { %v4509_v11 = vadd.f32 %v7333_v2, %v4444_v62  ;;  %v7685_v62 = vld [vmem:[#allocation8 + $0x244] ss:$16 sps:$4 sm:$0xff]  }
 0x54d   : > { %v7335_v7 = vpop.f32.mrf.mxu1  ;;  %6139 = vmatprep.subr.bf16.mxu0 %v7685_v62  ;;  %v7724_v62 = vld [vmem:[#allocation8 + $0x4] ss:$16 sps:$4 sm:$0xff]  }
 0x54e   : > { %4540 = vst.msk [vmem:[#allocation6] sm:$0xff] %vm4539_vm9, %v4509_v11  ;;  %v7336_v21 = vadd.f32 %v7335_v7, %v7334_v10  ;;  %v7683_v10 = vld [vmem:[#allocation8 + $0x240] ss:$16 sps:$4 sm:$0xff]   ;;  %v7688_v11 = vld [vmem:[#allocation8 + $0x224] ss:$16 sps:$4 sm:$0xff]  }
 0x54f   : > { %6140 = vmatpush1.bf16.msra.mxu0 %v7683_v10 }
 0x550   : > { %v4512_v25 = vadd.f32 %v7336_v21, %v4447_v49  ;;  %v7686_v49 = vld [vmem:[#allocation8 + $0x220] ss:$16 sps:$4 sm:$0xff]   ;;  %6141 = vmatprep.subr.bf16.mxu0 %v7688_v11 }
 0x552   : > { %4541 = vst.msk [vmem:[#allocation6 + $0x8] sm:$0xff] %vm4539_vm9, %v4512_v25 }
 0x553   : > { %6142 = vmatpush1.bf16.msra.mxu0 %v7686_v49  ;;  %v7722_v49 = vld [vmem:[#allocation8] ss:$16 sps:$4 sm:$0xff]  }
 0x554   : > { %6143 = vmatprep.subr.bf16.mxu0 %v7691_v46  ;;  %v7742_v46 = vld [vmem:[#allocation8 + $0x184] ss:$16 sps:$4 sm:$0xff]  }
 0x555   : > { %v4548_v17 = vld [vmem:[#allocation6] ss:$2 sm:$0xf]  ;;  %v4550_v19 = vld [vmem:[#allocation6 + $0x1] ss:$2 sm:$0xf] }
 0x556   : > { %v4555_v51 = vmax.f32 %v4548_v17, %v4550_v19 }
 0x559   : > { %v4552_v29 = vld [vmem:[#allocation6 + $0x8] ss:$2 sm:$0xf]  ;;  %v4554_v3 = vld [vmem:[#allocation6 + $0x9] ss:$2 sm:$0xf] }
 0x55a   : > { %v4556_v35 = vmax.f32 %v4552_v29, %v4554_v3  ;;  %v4463_v3 = vadd.f32 %v7308_v63, %v10561_v30 }
 0x55c   : > { %v4557_v55 = vmax.f32 %v4555_v51, %v4556_v35 }
 0x55e   : > { %v4570_v37 = vrot.slane %v4557_v55, %v10573_v33  ;;  %4562 = vst.msk [vmem:[#allocation7] sm:$0x1] %vm4560_vm10, %v4557_v55  ;;  %vm4656_vm10 = vcmask 998400  }
 0x560   : > { %v4578_v14 = vrot.slane %v4570_v37, %v10573_v33  ;;  %v4571_v41 = vcombine.high %v4570_v37, %v4570_v37 }
 0x562   : > { %v4593_v56 = vcombine.high %v4578_v14, %v4578_v14  ;;  %v4585_v13 = vrot.slane %v4571_v41, %v10573_v33 }
 0x564   : > { %4594 = vrot.lane.b32.xlu1 %v4593_v56, %s8168_s29  ;;  %4586 = vrot.lane.b32.xlu0 %v4585_v13, %s8179_s16  ;;  %v4604_v0 = vcombine.high %v4585_v13, %v4585_v13  ;;  %s8181_s29 = smov 94   ;;  %v7689_v13 = vld [vmem:[#allocation8 + $0x200] ss:$16 sps:$4 sm:$0xff]  }
 0x565   : > { %6144 = vmatpush1.bf16.msra.mxu0 %v7689_v13 }
 0x568   : > { %4605 = vrot.lane.b32.xlu0 %v4604_v0, %s8180_s22  ;;  %v7694_v0 = vld [vmem:[#allocation8 + $0xe4] ss:$16 sps:$4 sm:$0xff]  }
 0x569   : > { %6088 = vmatprep.subr.bf16.mxu1 %v7694_v0  ;;  %v7740_v0 = vld [vmem:[#allocation8 + $0x180] ss:$16 sps:$4 sm:$0xff]  }
 0x56a   : > { %6089 = vmatpush1.bf16.msra.mxu1 %v7692_v53 }
 0x56b   : > { %6090 = vmatprep.subr.bf16.mxu1 %v7697_v6 }
 0x577   : > { %v7337_v18 = vpop.f32.mrf.mxu1 }
 0x579   : > { %v7338_v54 = vpop.f32.mrf.mxu1 }
 0x57a   : > { %v7339_v44 = vadd.f32 %v7338_v54, %v7337_v18  ;;  %v7695_v54 = vld [vmem:[#allocation8 + $0xc0] ss:$16 sps:$4 sm:$0xff]  }
 0x57b   : > { %v7340_v38 = vpop.f32.mrf.mxu1  ;;  %6091 = vmatpush1.bf16.msra.mxu1 %v7695_v54 }
 0x57c   : > { %v4517_v60 = vadd.f32 %v7339_v44, %v4452_v12  ;;  %v7698_v12 = vld [vmem:[#allocation8 + $0x3e0] ss:$16 sps:$4 sm:$0xff]   ;;  %v7700_v44 = vld [vmem:[#allocation8 + $0x3e4] ss:$16 sps:$4 sm:$0xff]   ;;  %6092 = vmatprep.subr.bf16.mxu1 %v7703_v4 }
 0x57d   : > { %v7341_v5 = vpop.f32.mrf.mxu1  ;;  %6145 = vmatprep.subr.bf16.mxu0 %v7700_v44  ;;  %v7743_v44 = vld [vmem:[#allocation8 + $0x160] ss:$16 sps:$4 sm:$0xff]  }
 0x57e   : > { %4542 = vst.msk [vmem:[#allocation6 + $0x10] sm:$0xff] %vm4539_vm9, %v4517_v60  ;;  %v7342_v45 = vadd.f32 %v7341_v5, %v7340_v38  ;;  %v7701_v5 = vld [vmem:[#allocation8 + $0xa0] ss:$16 sps:$4 sm:$0xff]   ;;  %6146 = vmatpush2.bf16.msra.mxu0 %v7698_v12  ;;  %v7745_v12 = vld [vmem:[#allocation8 + $0x164] ss:$16 sps:$4 sm:$0xff]  }
 0x57f   : > { %6093 = vmatpush1.bf16.msra.mxu1 %v7701_v5  ;;  %v7749_v5 = vld [vmem:[#allocation8 + $0x340] ss:$16 sps:$4 sm:$0xff]  }
 0x580   : > { %v4520_v32 = vadd.f32 %v7342_v45, %v4455_v26  ;;  %v7712_v26 = vld [vmem:[#allocation8 + $0x3c4] ss:$16 sps:$4 sm:$0xff]  }
 0x581   : > { %v7706_v45 = vld [vmem:[#allocation8 + $0x84] ss:$16 sps:$4 sm:$0xff]   ;;  %6147 = vmatprep.subr.bf16.mxu0 %v7712_v26 }
 0x582   : > { %4543 = vst.msk [vmem:[#allocation6 + $0x18] sm:$0xff] %vm4539_vm9, %v4520_v32  ;;  %v7710_v32 = vld [vmem:[#allocation8 + $0x3c0] ss:$16 sps:$4 sm:$0xff]   ;;  %6094 = vmatprep.subr.bf16.mxu1 %v7706_v45  ;;  %v7751_v26 = vld [vmem:[#allocation8 + $0x344] ss:$16 sps:$4 sm:$0xff]  }
 0x583   : > { %6148 = vmatpush2.bf16.msra.mxu0 %v7710_v32  ;;  %v7754_v45 = vld [vmem:[#allocation8 + $0x124] ss:$16 sps:$4 sm:$0xff]  }
 0x585   : > { %v4613_v24 = vld [vmem:[#allocation6 + $0x10] ss:$2 sm:$0xf]  ;;  %v4615_v31 = vld [vmem:[#allocation6 + $0x11] ss:$2 sm:$0xf] }
 0x586   : > { %v4620_v59 = vmax.f32 %v4613_v24, %v4615_v31  ;;  %v7721_v24 = vld [vmem:[#allocation8 + $0x3a4] ss:$16 sps:$4 sm:$0xff]  }
 0x587   : > { %6149 = vmatprep.subr.bf16.mxu0 %v7721_v24 }
 0x589   : > { %v4617_v48 = vld [vmem:[#allocation6 + $0x18] ss:$2 sm:$0xf]  ;;  %v4619_v9 = vld [vmem:[#allocation6 + $0x19] ss:$2 sm:$0xf] }
 0x58a   : > { %v4621_v57 = vmax.f32 %v4617_v48, %v4619_v9  ;;  %v7704_v48 = vld [vmem:[#allocation8 + $0x80] ss:$16 sps:$4 sm:$0xff]   ;;  %v7709_v9 = vld [vmem:[#allocation8 + $0x64] ss:$16 sps:$4 sm:$0xff]  }
 0x58b   : > { %6095 = vmatpush1.bf16.msra.mxu1 %v7704_v48 }
 0x58c   : > { %v4622_v50 = vmax.f32 %v4620_v59, %v4621_v57  ;;  %v7719_v59 = vld [vmem:[#allocation8 + $0x3a0] ss:$16 sps:$4 sm:$0xff]   ;;  %v7730_v57 = vld [vmem:[#allocation8 + $0x384] ss:$16 sps:$4 sm:$0xff]   ;;  %6096 = vmatprep.subr.bf16.mxu1 %v7709_v9 }
 0x58d   : > { %6150 = vmatpush2.bf16.msra.mxu0 %v7719_v59  ;;  %v7752_v9 = vld [vmem:[#allocation8 + $0x120] ss:$16 sps:$4 sm:$0xff]  }
 0x58e   : > { %v4630_v61 = vrot.slane %v4622_v50, %v10573_v33  ;;  %v7715_v50 = vld [vmem:[#allocation8 + $0x44] ss:$16 sps:$4 sm:$0xff]   ;;  %6151 = vmatprep.subr.bf16.mxu0 %v7730_v57  ;;  %v7755_v59 = vld [vmem:[#allocation8 + $0x320] ss:$16 sps:$4 sm:$0xff]  }
 0x58f   : > { %6097 = vmatpush1.bf16.msra.mxu1 %v7707_v58  ;;  %v7760_v57 = vld [vmem:[#allocation8 + $0x104] ss:$16 sps:$4 sm:$0xff]  }
 0x590   : > { %v4645_v40 = vcombine.high %v4630_v61, %v4630_v61  ;;  %v4637_v2 = vrot.slane %v4630_v61, %v10573_v33  ;;  %v7728_v61 = vld [vmem:[#allocation8 + $0x380] ss:$16 sps:$4 sm:$0xff]   ;;  %6098 = vmatprep.subr.bf16.mxu1 %v7715_v50  ;;  %v7763_v58 = vld [vmem:[#allocation8 + $0x304] ss:$16 sps:$4 sm:$0xff]  }
 0x591   : > { %6152 = vmatpush2.bf16.msra.mxu0 %v7728_v61  ;;  %v7758_v50 = vld [vmem:[#allocation8 + $0x100] ss:$16 sps:$4 sm:$0xff]  }
 0x592   : > { %v4652_v36 = vrot.slane %v4645_v40, %v10573_v33  ;;  %v4663_v7 = vcombine.high %v4637_v2, %v4637_v2  ;;  %v7761_v61 = vld [vmem:[#allocation8 + $0x300] ss:$16 sps:$4 sm:$0xff]  }
 0x593   : > { %6099 = vmatpush1.bf16.msra.mxu1 %v7713_v43  ;;  %v7794_v40 = vld [vmem:[#allocation8 + $0x440] ss:$16 sps:$4 sm:$0xff]  }
 0x594   : > { %4653 = vrot.lane.b32.xlu1 %v4652_v36, %s11033_s30  ;;  %v4671_v1 = vcombine.high %v4652_v36, %v4652_v36  ;;  %s8182_s30 = smov 66   ;;  %6100 = vmatprep.subr.bf16.mxu1 %v7718_v28  ;;  %v7769_v28 = vld [vmem:[#allocation8 + $0xec] ss:$16 sps:$4 sm:$0xff]  }
 0x596   : > { %4672 = vrot.lane.b32.xlu0 %v4671_v1, %s8181_s29 }
 0x597   : > { %6101 = vmatpush1.bf16.msra.mxu1 %v7716_v22  ;;  %v7797_v22 = vld [vmem:[#allocation8 + $0x48] ss:$16 sps:$4 sm:$0xff]  }
 0x598   : > { %4638 = vrot.lane.b32.xlu1 %v4637_v2, %s8165_s11  ;;  %6102 = vmatprep.subr.bf16.mxu1 %v7724_v62  ;;  %s8184_s11 = smov 88   ;;  %v7800_v62 = vld [vmem:[#allocation8 + $0x420] ss:$16 sps:$4 sm:$0xff]  }
 0x59b   : > { %6103 = vmatpush1.bf16.msra.mxu1 %v7722_v49 }
 0x59c   : > { %4664 = vrot.lane.b32.xlu1 %v4663_v7, %s8170_s9 }
 0x5a7   : > { %v7343_v21 = vpop.f32.mrf.mxu1 }
 0x5a9   : > { %v7344_v25 = vpop.f32.mrf.mxu1 }
 0x5aa   : > { %v7345_v27 = vadd.f32 %v7344_v25, %v7343_v21  ;;  %v7727_v25 = vld [vmem:[#allocation8 + $0x1e4] ss:$16 sps:$4 sm:$0xff]  }
 0x5ab   : > { %v7346_v17 = vpop.f32.mrf.mxu1  ;;  %6104 = vmatprep.subr.bf16.mxu1 %v7727_v25 }
 0x5ac   : > { %v4525_v19 = vadd.f32 %v7345_v27, %v4460_v23 }
 0x5ad   : > { %v7347_v29 = vpop.f32.mrf.mxu1 }
 0x5ae   : > { %4544 = vst.msk [vmem:[#allocation6 + $0x20] sm:$0xff] %vm4539_vm9, %v4525_v19  ;;  %v7348_v51 = vadd.f32 %v7347_v29, %v7346_v17  ;;  %v4468_v17 = vadd.f32 %v10552_v42, %v10561_v30  ;;  %v7725_v29 = vld [vmem:[#allocation8 + $0x1e0] ss:$16 sps:$4 sm:$0xff]  }
 0x5af   : > { %6105 = vmatpush2.bf16.msra.mxu1 %v7725_v29  ;;  %v7826_v29 = vld [vmem:[#allocation8 + $0x5a4] ss:$16 sps:$4 sm:$0xff]  }
 0x5b0   : > { %v4528_v35 = vadd.f32 %v7348_v51, %v4463_v3  ;;  %v7733_v51 = vld [vmem:[#allocation8 + $0x1c4] ss:$16 sps:$4 sm:$0xff]  }
 0x5b1   : > { %6106 = vmatprep.subr.bf16.mxu1 %v7733_v51 }
 0x5b2   : > { %4545 = vst.msk [vmem:[#allocation6 + $0x28] sm:$0xff] %vm4539_vm9, %v4528_v35 }
 0x5b5   : > { %v4683_v55 = vld [vmem:[#allocation6 + $0x20] ss:$2 sm:$0xf]  ;;  %v4685_v37 = vld [vmem:[#allocation6 + $0x21] ss:$2 sm:$0xf] }
 0x5b6   : > { %v4690_v15 = vmax.f32 %v4683_v55, %v4685_v37  ;;  %v4471_v37 = vadd.f32 %v10554_v34, %v10561_v30  ;;  %v7739_v34 = vld [vmem:[#allocation8 + $0x364] ss:$16 sps:$4 sm:$0xff]  }
 0x5b7   : > { %6153 = vmatprep.subr.bf16.mxu0 %v7739_v34 }
 0x5b9   : > { %v4687_v14 = vld [vmem:[#allocation6 + $0x28] ss:$2 sm:$0xf]  ;;  %v4689_v41 = vld [vmem:[#allocation6 + $0x29] ss:$2 sm:$0xf] }
 0x5ba   : > { %v4691_v56 = vmax.f32 %v4687_v14, %v4689_v41  ;;  %v7731_v41 = vld [vmem:[#allocation8 + $0x1c0] ss:$16 sps:$4 sm:$0xff]  }
 0x5bb   : > { %6107 = vmatpush2.bf16.msra.mxu1 %v7731_v41 }
 0x5bc   : > { %v4692_v18 = vmax.f32 %v4690_v15, %v4691_v56  ;;  %v7736_v15 = vld [vmem:[#allocation8 + $0x1a4] ss:$16 sps:$4 sm:$0xff]   ;;  %v7734_v56 = vld [vmem:[#allocation8 + $0x1a0] ss:$16 sps:$4 sm:$0xff]  }
 0x5bd   : > { %6108 = vmatprep.subr.bf16.mxu1 %v7736_v15 }
 0x5be   : > { %v4700_v16 = vrot.slane %v4692_v18, %v10573_v33  ;;  %v7737_v18 = vld [vmem:[#allocation8 + $0x360] ss:$16 sps:$4 sm:$0xff]  }
 0x5bf   : > { %6109 = vmatpush2.bf16.msra.mxu1 %v7734_v56  ;;  %6154 = vmatpush2.bf16.msra.mxu0 %v7737_v18  ;;  %v4834_v56 = vsub.s32 3, %v10570_v8 }
 0x5c0   : > { %v4707_v38 = vrot.slane %v4700_v16, %v10573_v33  ;;  %v4715_v60 = vcombine.high %v4700_v16, %v4700_v16  ;;  %6110 = vmatprep.subr.bf16.mxu1 %v7742_v46  ;;  %6155 = vmatprep.subr.bf16.mxu0 %v7751_v26  ;;  %v4830_v46 = vsub.s32 2, %v10570_v8  ;;  %v7770_v26 = vld [vmem:[#allocation8 + $0x4c0] ss:$16 sps:$4 sm:$0xff]  }
 0x5c2   : > { %4708 = vrot.lane.b32.xlu1 %v4707_v38, %s11044_s23  ;;  %v4730_v20 = vcombine.high %v4707_v38, %v4707_v38  ;;  %v4722_v31 = vrot.slane %v4715_v60, %v10573_v33  ;;  %v7748_v60 = vld [vmem:[#allocation8 + $0x144] ss:$16 sps:$4 sm:$0xff]   ;;  %s11068_s23 = sld [smem:[#allocation24_spill]] }
 0x5c3   : > { %6111 = vmatpush2.bf16.msra.mxu1 %v7740_v0  ;;  %6156 = vmatpush2.bf16.msra.mxu0 %v7749_v5 }
 0x5c4   : > { %4731 = vrot.lane.b32.xlu0 %v4730_v20, %s11038_s0  ;;  %v4740_v39 = vcombine.high %v4722_v31, %v4722_v31  ;;  %s8183_s0 = smov 38   ;;  %6112 = vmatprep.subr.bf16.mxu1 %v7745_v12  ;;  %v7746_v20 = vld [vmem:[#allocation8 + $0x140] ss:$16 sps:$4 sm:$0xff]  }
 0x5c5   : > { %v7764_v12 = vld [vmem:[#allocation8 + $0x4e0] ss:$16 sps:$4 sm:$0xff]  }
 0x5c7   : > { %6113 = vmatpush2.bf16.msra.mxu1 %v7743_v44  ;;  %v7767_v44 = vld [vmem:[#allocation8 + $0xe8] ss:$16 sps:$4 sm:$0xff]  }
 0x5c8   : > { %4723 = vrot.lane.b32.xlu0 %v4722_v31, %s8182_s30  ;;  %6114 = vmatprep.subr.bf16.mxu1 %v7748_v60  ;;  %v7757_v31 = vld [vmem:[#allocation8 + $0x324] ss:$16 sps:$4 sm:$0xff]   ;;  %v7775_v60 = vld [vmem:[#allocation8 + $0xcc] ss:$16 sps:$4 sm:$0xff]   ;;  %s338_s30 = sand.u32 1, %s8105_s10  }
 0x5c9   : > { %6157 = vmatprep.subr.bf16.mxu0 %v7757_v31  ;;  %v7776_v31 = vld [vmem:[#allocation8 + $0x4a0] ss:$16 sps:$4 sm:$0xff]   ;;  %s6763_s19 = scalar_lea.sflag [#allocation10], %s338_s30 }
 0x5ca   : > { %6158 = vmatpush2.bf16.msra.mxu0 %v7755_v59  ;;  %v7787_v59 = vld [vmem:[#allocation8 + $0x8c] ss:$16 sps:$4 sm:$0xff]  }
 0x5cb   : > { %6115 = vmatpush2.bf16.msra.mxu1 %v7746_v20  ;;  %6159 = vmatprep.subr.bf16.mxu0 %v7763_v58  ;;  %v7772_v20 = vld [vmem:[#allocation8 + $0x4c4] ss:$16 sps:$4 sm:$0xff]  }
 0x5cc   : > { %4741 = vrot.lane.b32.xlu0 %v4740_v39, %s8183_s0  ;;  %6116 = vmatprep.subr.bf16.mxu1 %v7754_v45  ;;  %v7773_v45 = vld [vmem:[#allocation8 + $0xc8] ss:$16 sps:$4 sm:$0xff]   ;;  %v7790_v58 = vld [vmem:[#allocation8 + $0x464] ss:$16 sps:$4 sm:$0xff]  }
 0x5ce   : > { %6160 = vmatpush2.bf16.msra.mxu0 %v7761_v61  ;;  %v7788_v61 = vld [vmem:[#allocation8 + $0x460] ss:$16 sps:$4 sm:$0xff]  }
 0x5cf   : > { %6117 = vmatpush2.bf16.msra.mxu1 %v7752_v9  ;;  %6252 = vmatprep.subr.bf16.mxu0 %v7769_v28  ;;  %v7784_v9 = vld [vmem:[#allocation8 + $0x484] ss:$16 sps:$4 sm:$0xff]   ;;  %v7799_v28 = vld [vmem:[#allocation8 + $0x4c] ss:$16 sps:$4 sm:$0xff]  }
 0x5d0   : > { %6118 = vmatprep.subr.bf16.mxu1 %v7760_v57  ;;  %v7782_v57 = vld [vmem:[#allocation8 + $0x480] ss:$16 sps:$4 sm:$0xff]  }
 0x5d3   : > { %6119 = vmatpush2.bf16.msra.mxu1 %v7758_v50  ;;  %v7793_v50 = vld [vmem:[#allocation8 + $0x6c] ss:$16 sps:$4 sm:$0xff]  }
 0x5d6   : > { %v4595_v10 = vpop.permute.xlu1 %4594  ;;  %v4587_v11 = vpop.permute.xlu0 %4586 }
 0x5d7   : > { %v4596_v7 = vrot.slane %v4595_v10, 7  ;;  %4592 = vst.msk [vmem:[#allocation7] sm:$0x1] %vm4591_vm8, %v4587_v11  ;;  %v7349_v21 = vpop.f32.mrf.mxu1  ;;  %vm4667_vm8 = vcmp.ge.s32.totalorder %v4558_v47, 44 }
 0x5d9   : > { %v4598_v23 = vsel %vm4597_vm0, %v4596_v7, %v4595_v10  ;;  %v7350_v63 = vpop.f32.mrf.mxu1  ;;  %vm4669_vm0 = vmand %vm4667_vm8, %vm4668_vm7  ;;  %vm4744_vm7 = vcmp.ge.s32.totalorder %v4558_v47, 38 }
 0x5da   : > { %v4606_v27 = vpop.permute.xlu0 %4605  ;;  %4603 = vst.msk [vmem:[#allocation7] sm:$0x3] %vm4602_vm1, %v4598_v23  ;;  %v7351_v19 = vadd.f32 %v7350_v63, %v7349_v21  ;;  %vm4680_vm1 = vmand %vm4678_vm13, %vm4679_vm14  ;;  %vm4745_vm13 = vcmp.lt.s32.totalorder %v4558_v47, 88 }
 0x5db   : > { %4611 = vst.msk [vmem:[#allocation7 + $0x1] sm:$0x1] %vm4610_vm2, %v4606_v27  ;;  %v7352_v3 = vpop.f32.mrf.mxu1  ;;  %vm4711_vm2 = vcmp.ge.s32.totalorder %v4558_v47, 16  ;;  %vm4746_vm14 = vmand %vm4744_vm7, %vm4745_vm13  ;;  %vm6084_vm13 = vcmask 261120  }
 0x5dc   : > { %v4533_v35 = vadd.f32 %v7351_v19, %v4468_v17  ;;  %vm4713_vm4 = vmand %vm4711_vm2, %vm4712_vm3  ;;  %vm4796_vm2 = vcmp.lt.s32.totalorder %v4558_v47, 60  ;;  %vm4777_vm3 = vcmask 719872  }
 0x5dd   : > { %v7353_v55 = vpop.f32.mrf.mxu1 }
 0x5de   : > { %4546 = vst.msk [vmem:[#allocation6 + $0x30] sm:$0xff] %vm4539_vm9, %v4533_v35  ;;  %v7354_v14 = vadd.f32 %v7353_v55, %v7352_v3 }
 0x5e0   : > { %v4536_v42 = vadd.f32 %v7354_v14, %v4471_v37 }
 0x5e2   : > { %4547 = vst.msk [vmem:[#allocation6 + $0x38] sm:$0xff] %vm4539_vm9, %v4536_v42  ;;  %vm10668_vm9 = vcmp.lt.s32.totalorder %v4558_v47, 172  ;;  %v4826_v42 = vsub.s32 1, %v10570_v8 }
 0x5e3   : > { %vm4661_vm12 = vmand %vm10663_vm5, %vm10668_vm9  ;;  %vm4726_vm5 = vcmp.ge.s32.totalorder %v4558_v47, 66  ;;  %vm4727_vm9 = vcmp.lt.s32.totalorder %v4558_v47, 116 }
 0x5e5   : > { %v4749_v13 = vld [vmem:[#allocation6 + $0x30] ss:$2 sm:$0xf]  ;;  %v4751_v53 = vld [vmem:[#allocation6 + $0x31] ss:$2 sm:$0xf] }
 0x5e6   : > { %v4756_v16 = vmax.f32 %v4749_v13, %v4751_v53  ;;  %v4822_v13 = vsub.s32 0, %v10570_v8  ;;  %v4842_v53 = vsub.s32 5, %v10570_v8 }
 0x5e9   : > { %v4753_v30 = vld [vmem:[#allocation6 + $0x38] ss:$2 sm:$0xf]  ;;  %v4755_v6 = vld [vmem:[#allocation6 + $0x39] ss:$2 sm:$0xf] }
 0x5ea   : > { %v4757_v54 = vmax.f32 %v4753_v30, %v4755_v6 }
 0x5ec   : > { %v4758_v38 = vmax.f32 %v4756_v16, %v4757_v54 }
 0x5ee   : > { %v4766_v4 = vrot.slane %v4758_v38, %v10573_v33 }
 0x5f0   : > { %v4773_v32 = vrot.slane %v4766_v4, %v10573_v33  ;;  %v4784_v24 = vcombine.high %v4766_v4, %v4766_v4 }
 0x5f2   : > { %4774 = vrot.lane.b32.xlu1 %v4773_v32, %s8184_s11  ;;  %v4791_v48 = vrot.slane %v4784_v24, %v10573_v33  ;;  %v4799_v43 = vcombine.high %v4773_v32, %v4773_v32  ;;  %v7766_v33 = vld [vmem:[#allocation8 + $0x4e4] ss:$16 sps:$4 sm:$0xff]   ;;  %v7781_v24 = vld [vmem:[#allocation8 + $0xac] ss:$16 sps:$4 sm:$0xff]  }
 0x5f3   : > { %6170 = vmatprep.subr.bf16.mxu1 %v7766_v33  ;;  %v7778_v32 = vld [vmem:[#allocation8 + $0x4a4] ss:$16 sps:$4 sm:$0xff]  }
 0x5f4   : > { %4792 = vrot.lane.b32.xlu0 %v4791_v48, %s11032_s5  ;;  %v4807_v39 = vcombine.high %v4791_v48, %v4791_v48  ;;  %v7779_v48 = vld [vmem:[#allocation8 + $0xa8] ss:$16 sps:$4 sm:$0xff]   ;;  %v7796_v33 = vld [vmem:[#allocation8 + $0x444] ss:$16 sps:$4 sm:$0xff]  }
 0x5f6   : > { %4808 = vrot.lane.b32.xlu1 %v4807_v39, %s11041_s20  ;;  %v7785_v39 = vld [vmem:[#allocation8 + $0x88] ss:$16 sps:$4 sm:$0xff]   ;;  %s7195_s20 = sshll.u32 %s8258_s13, 4  ;;  %s8186_s13 = smov [#allocation11]  }
 0x5f7   : > { %s10880_s14 = scalar_lea.hbm %s11068_s23, %s7195_s20  ;;  %s8053_s17 = sshll.u32 %s8186_s13, 4  ;;  %s8054_s17 = int_to_ptr.vmem [resolvable:$false] %s8053_s17 }
 0x5f8   : > { %s8055_s12 = scalar_lea.vmem %s8054_s17, 32 }
 0x5fa   : > { %4800 = vrot.lane.b32.xlu1 %v4799_v43, %s8164_s24  ;;  %v7791_v43 = vld [vmem:[#allocation8 + $0x68] ss:$16 sps:$4 sm:$0xff]   ;;  %s339_s24 = scalar_lea.vmem [#allocation11], %s338_s30 }
 0x5fb   : > { %s6775_s9 = sshll.u32 %s339_s24, 4  ;;  %s6776_s9 = int_to_ptr.vmem [resolvable:$true] %s6775_s9 }
 0x5fc   : > { %s8049_s15 = scalar_lea.vmem %s6776_s9, 16  ;;  %p8056_p11 = scmp.lt.s32.totalorder %s6776_s9, %s8054_s17 }
 0x5fd   : > { %p8050_p6 = scmp.ne.s32.totalorder %s6776_s9, %s8049_s15  ;;  %p8057_p12 = scmp.lt.s32.totalorder %s8055_s12, %s8049_s15 }
 0x5ff   : > { %p8051_p9 = pnand %p8050_p6, %p8275_p5  ;;  %p8058_p13 = por %p8057_p12, %p8056_p11 }
 0x601   : > { %p8052_p10 = pneg %p8051_p9 }
 0x603   : > { %p8059_p0 = pnand %p8058_p13, %p8052_p10 }
 0x606   : > { %v4654_v36 = vpop.permute.xlu1 %4653 }
 0x607   : > { %v4655_v1 = vrot.slane %v4654_v36, 7 }
 0x608   : > { %v4673_v2 = vpop.permute.xlu0 %4672 }
 0x609   : > { %v4657_v11 = vsel %vm4656_vm10, %v4655_v1, %v4654_v36  ;;  %v4674_v7 = vrot.slane %v4673_v2, 7  ;;  %vm4736_vm10 = vcmp.ge.s32.totalorder %v4558_v47, 116  ;;  %v7802_v36 = vld [vmem:[#allocation8 + $0x424] ss:$16 sps:$4 sm:$0xff]   ;;  %v7803_v1 = vld [vmem:[#allocation8 + $0x28] ss:$16 sps:$4 sm:$0xff]  }
 0x60a   : > { %v4639_v10 = vpop.permute.xlu1 %4638 }
 0x60b   : > { %4644 = vst.msk [vmem:[#allocation7 + $0x1] sm:$0x1] %vm4643_vm11, %v4639_v10  ;;  %v4676_v21 = vsel %vm4675_vm15, %v4674_v7, %v4673_v2  ;;  %vm4737_vm11 = vcmp.lt.s32.totalorder %v4558_v47, 166  ;;  %vm4780_vm15 = vcmp.ge.s32.totalorder %v4558_v47, 88  ;;  %v7808_v2 = vld [vmem:[#allocation8 + $0x404] ss:$16 sps:$4 sm:$0xff]  }
 0x60c   : > { %4662 = vst.msk [vmem:[#allocation7 + $0x1] sm:$0x3] %vm4661_vm12, %v4657_v11  ;;  %vm4728_vm12 = vmand %vm4726_vm5, %vm4727_vm9  ;;  %vm4803_vm5 = vcmp.ge.s32.totalorder %v4558_v47, 60  ;;  %vm4804_vm9 = vcmp.lt.s32.totalorder %v4558_v47, 110  ;;  %v7811_v10 = vld [vmem:[#allocation8 + $0xc] ss:$16 sps:$4 sm:$0xff]  }
 0x60d   : > { %vm4738_vm8 = vmand %vm4736_vm10, %vm4737_vm11  ;;  %vm4814_vm10 = vcmp.ge.s32.totalorder %v4558_v47, 110  ;;  %vm4815_vm11 = vcmp.lt.s32.totalorder %v4558_v47, 160  ;;  %v7806_v11 = vld [vmem:[#allocation8 + $0x400] ss:$16 sps:$4 sm:$0xff]   ;;  %v7809_v7 = vld [vmem:[#allocation8 + $0x8] ss:$16 sps:$4 sm:$0xff]  }
 0x60e   : > { %v4665_v49 = vpop.permute.xlu1 %4664  ;;  %vm4816_vm7 = vmand %vm4814_vm10, %vm4815_vm11 }
 0x60f   : > { %4670 = vst.msk [vmem:[#allocation7 + $0x2] sm:$0x1] %vm4669_vm0, %v4665_v49  ;;  %vm4781_vm0 = vcmp.lt.s32.totalorder %v4558_v47, 138  ;;  %v7814_v49 = vld [vmem:[#allocation8 + $0x5e4] ss:$16 sps:$4 sm:$0xff]  }
 0x610   : > { %4681 = vst.msk [vmem:[#allocation7 + $0x2] sm:$0x3] %vm4680_vm1, %v4676_v21  ;;  %vm10696_vm1 = vcmp.ge.s32.totalorder %v4558_v47, 10  ;;  %v7817_v21 = vld [vmem:[#allocation8 + $0x1ec] ss:$16 sps:$4 sm:$0xff]  }
 0x634   : > { %v4709_v25 = vpop.permute.xlu1 %4708 }
 0x635   : > { %4714 = vst.msk [vmem:[#allocation7 + $0x3] sm:$0x1] %vm4713_vm4, %v4709_v25  ;;  %vm4782_vm4 = vmand %vm4780_vm15, %vm4781_vm0  ;;  %v7812_v25 = vld [vmem:[#allocation8 + $0x5e0] ss:$16 sps:$4 sm:$0xff]  }
 0x636   : > { %v4732_v23 = vpop.permute.xlu0 %4731 }
 0x637   : > { %v4733_v63 = vrot.slane %v4732_v23, 7 }
 0x639   : > { %v4734_v17 = vsel %vm4392_vm6, %v4733_v63, %v4732_v23  ;;  %vm4797_vm6 = vmand %vm10696_vm1, %vm4796_vm2  ;;  %v7815_v23 = vld [vmem:[#allocation8 + $0x1e8] ss:$16 sps:$4 sm:$0xff]   ;;  %v7820_v63 = vld [vmem:[#allocation8 + $0x5c4] ss:$16 sps:$4 sm:$0xff]  }
 0x63a   : > { %v4724_v27 = vpop.permute.xlu0 %4723 }
 0x63b   : > { %4729 = vst.msk [vmem:[#allocation7 + $0x3] sm:$0x1] %vm4728_vm12, %v4724_v27  ;;  %vm4811_vm12 = vcmask 900096   ;;  %v7823_v27 = vld [vmem:[#allocation8 + $0x1cc] ss:$16 sps:$4 sm:$0xff]  }
 0x63c   : > { %4739 = vst.msk [vmem:[#allocation7 + $0x3] sm:$0x3] %vm4738_vm8, %v4734_v17  ;;  %vm4805_vm8 = vmand %vm4803_vm5, %vm4804_vm9  ;;  %v7818_v17 = vld [vmem:[#allocation8 + $0x5c0] ss:$16 sps:$4 sm:$0xff]  }
 0x63e   : > { %v4742_v19 = vpop.permute.xlu0 %4741 }
 0x63f   : > { %4747 = vst.msk [vmem:[#allocation7 + $0x4] sm:$0x1] %vm4746_vm14, %v4742_v19  ;;  %v7821_v19 = vld [vmem:[#allocation8 + $0x1c8] ss:$16 sps:$4 sm:$0xff]  }
 0x664   : > { %v4775_v3 = vpop.permute.xlu1 %4774 }
 0x665   : > { %v4776_v51 = vrot.slane %v4775_v3, 7 }
 0x666   : > { %v4793_v55 = vpop.permute.xlu0 %4792 }
 0x667   : > { %v4778_v35 = vsel %vm4777_vm3, %v4776_v51, %v4775_v3  ;;  %v7829_v3 = vld [vmem:[#allocation8 + $0x1ac] ss:$16 sps:$4 sm:$0xff]   ;;  %v7824_v51 = vld [vmem:[#allocation8 + $0x5a0] ss:$16 sps:$4 sm:$0xff]  }
 0x668   : > { %4783 = vst.msk [vmem:[#allocation7 + $0x4] sm:$0x3] %vm4782_vm4, %v4778_v35  ;;  %v4809_v37 = vpop.permute.xlu1 %4808  ;;  %v7827_v35 = vld [vmem:[#allocation8 + $0x1a8] ss:$16 sps:$4 sm:$0xff]  }
 0x669   : > { %4798 = vst.msk [vmem:[#allocation7 + $0x5] sm:$0x1] %vm4797_vm6, %v4793_v55  ;;  %v4810_v14 = vrot.slane %v4809_v37, 7  ;;  %v7832_v55 = vld [vmem:[#allocation8 + $0x584] ss:$16 sps:$4 sm:$0xff]  }
 0x66b   : > { %v4812_v15 = vsel %vm4811_vm12, %v4810_v14, %v4809_v37  ;;  %v7835_v37 = vld [vmem:[#allocation8 + $0x18c] ss:$16 sps:$4 sm:$0xff]   ;;  %v7830_v14 = vld [vmem:[#allocation8 + $0x580] ss:$16 sps:$4 sm:$0xff]  }
 0x66c   : > { %v4801_v41 = vpop.permute.xlu1 %4800 }
 0x66d   : > { %4806 = vst.msk [vmem:[#allocation7 + $0x5] sm:$0x1] %vm4805_vm8, %v4801_v41  ;;  %v7833_v41 = vld [vmem:[#allocation8 + $0x188] ss:$16 sps:$4 sm:$0xff]  }
 0x66e   : > { %4817 = vst.msk [vmem:[#allocation7 + $0x5] sm:$0x3] %vm4816_vm7, %v4812_v15  ;;  %v7838_v15 = vld [vmem:[#allocation8 + $0x564] ss:$16 sps:$4 sm:$0xff]  }
 0x675   : > { %v10712_v47 = vld [vmem:[#allocation7] sm:$0x7f] }
 0x676   : > { %v4827_v0 = vrot.slane %v10712_v47, %v4826_v42  ;;  %v4835_v18 = vrot.slane %v10712_v47, %v4834_v56  ;;  %v4823_v34 = vrot.slane %v10712_v47, %v4822_v13  ;;  %v4831_v30 = vrot.slane %v10712_v47, %v4830_v46 }
 0x677   : > { %v4843_v6 = vrot.slane %v10712_v47, %v4842_v53  ;;  %v7841_v53 = vld [vmem:[#allocation8 + $0x16c] ss:$16 sps:$4 sm:$0xff]  }
 0x678   : > { %v4856_v16 = vpack.c.bf16 %v4827_v0, %v4827_v0  ;;  %v10727_v54 = vpack.c.bf16 %v4835_v18, %v4835_v18  ;;  %v10729_v38 = vpack.c.bf16 %v4823_v34, %v4823_v34  ;;  %v10731_v4 = vpack.c.bf16 %v4831_v30, %v4831_v30  ;;  %v7836_v0 = vld [vmem:[#allocation8 + $0x560] ss:$16 sps:$4 sm:$0xff]   ;;  %v7839_v18 = vld [vmem:[#allocation8 + $0x168] ss:$16 sps:$4 sm:$0xff]   ;;  %v7844_v34 = vld [vmem:[#allocation8 + $0x544] ss:$16 sps:$4 sm:$0xff]  }
 0x679   : > { %v10736_v5 = vpack.c.bf16 %v4843_v6, %v4843_v6  ;;  %v7847_v30 = vld [vmem:[#allocation8 + $0x14c] ss:$16 sps:$4 sm:$0xff]   ;;  %v7842_v6 = vld [vmem:[#allocation8 + $0x540] ss:$16 sps:$4 sm:$0xff]  }
 0x67a   : > { %6120 = vmatprep.mubr.bf16.mxu1 %v4856_v16  ;;  %6161 = vmatprep.mubr.bf16.mxu0 %v10727_v54 }
 0x67b   : > { %6121 = vmatmul.mubr.bf16.vlgmr.msra.gmra.mxu1 %v10729_v38  ;;  %6162 = vmatmul.mubr.bf16.vlgmr.msra.gmra.mxu0 %v10731_v4 }
 0x67c   : > { %6171 = vmatpush1.bf16.msra.mxu1 %v7764_v12  ;;  %6253 = vmatpush1.bf16.msra.mxu0 %v7767_v44  ;;  %v7850_v12 = vld [vmem:[#allocation8 + $0x524] ss:$16 sps:$4 sm:$0xff]   ;;  %v7853_v44 = vld [vmem:[#allocation8 + $0x12c] ss:$16 sps:$4 sm:$0xff]  }
 0x67d   : > { %6202 = vmatprep.mubr.bf16.mxu1 %v10736_v5  ;;  %6284 = vmatprep.mubr.bf16.mxu0 %v4856_v16  ;;  %v7845_v16 = vld [vmem:[#allocation8 + $0x148] ss:$16 sps:$4 sm:$0xff]  }
 0x67e   : > { %6172 = vmatprep.subr.bf16.mxu1 %v7772_v20  ;;  %6254 = vmatprep.subr.bf16.mxu0 %v7775_v60  ;;  %v7848_v20 = vld [vmem:[#allocation8 + $0x520] ss:$16 sps:$4 sm:$0xff]   ;;  %v7851_v60 = vld [vmem:[#allocation8 + $0x128] ss:$16 sps:$4 sm:$0xff]  }
 0x680   : > { %6173 = vmatpush1.bf16.msra.mxu1 %v7770_v26  ;;  %6255 = vmatpush1.bf16.msra.mxu0 %v7773_v45  ;;  %v7856_v26 = vld [vmem:[#allocation8 + $0x504] ss:$16 sps:$4 sm:$0xff]   ;;  %v7859_v45 = vld [vmem:[#allocation8 + $0x10c] ss:$16 sps:$4 sm:$0xff]  }
 0x681   : > { %6174 = vmatprep.subr.bf16.mxu1 %v7778_v32  ;;  %6256 = vmatprep.subr.bf16.mxu0 %v7781_v24  ;;  %v4838_v32 = vsub.s32 4, %v10570_v8  ;;  %v7854_v24 = vld [vmem:[#allocation8 + $0x500] ss:$16 sps:$4 sm:$0xff]  }
 0x684   : > { %6175 = vmatpush1.bf16.msra.mxu1 %v7776_v31  ;;  %6257 = vmatpush1.bf16.msra.mxu0 %v7779_v48  ;;  %v7857_v31 = vld [vmem:[#allocation8 + $0x108] ss:$16 sps:$4 sm:$0xff]   ;;  %v4839_v48 = vrot.slane %v10712_v47, %v4838_v32  ;;  %v7937_v32 = vld [vmem:[#allocation8 + $0x56c] ss:$16 sps:$4 sm:$0xff]  }
 0x685   : > { %6176 = vmatprep.subr.bf16.mxu1 %v7784_v9  ;;  %6258 = vmatprep.subr.bf16.mxu0 %v7787_v59  ;;  %v7862_v9 = vld [vmem:[#allocation8 + $0x624] ss:$16 sps:$4 sm:$0xff]   ;;  %v7865_v59 = vld [vmem:[#allocation8 + $0x4ec] ss:$16 sps:$4 sm:$0xff]  }
 0x688   : > { %6177 = vmatpush1.bf16.msra.mxu1 %v7782_v57  ;;  %6259 = vmatpush1.bf16.msra.mxu0 %v7785_v39  ;;  %v7860_v57 = vld [vmem:[#allocation8 + $0x620] ss:$16 sps:$4 sm:$0xff]   ;;  %v7863_v39 = vld [vmem:[#allocation8 + $0x4e8] ss:$16 sps:$4 sm:$0xff]  }
 0x689   : > { %6178 = vmatprep.subr.bf16.mxu1 %v7790_v58  ;;  %6260 = vmatprep.subr.bf16.mxu0 %v7793_v50  ;;  %v10741_v58 = vpack.c.bf16 %v4839_v48, %v4839_v48  ;;  %v7868_v50 = vld [vmem:[#allocation8 + $0x604] ss:$16 sps:$4 sm:$0xff]   ;;  %v7940_v48 = vld [vmem:[#allocation8 + $0x38c] ss:$16 sps:$4 sm:$0xff]  }
 0x68c   : > { %6179 = vmatpush1.bf16.msra.mxu1 %v7788_v61  ;;  %6261 = vmatpush1.bf16.msra.mxu0 %v7791_v43  ;;  %v4846_v61 = vsub.s32 6, %v10570_v8  ;;  %v7871_v43 = vld [vmem:[#allocation8 + $0x4cc] ss:$16 sps:$4 sm:$0xff]  }
 0x68d   : > { %6180 = vmatprep.subr.bf16.mxu1 %v7796_v33  ;;  %6262 = vmatprep.subr.bf16.mxu0 %v7799_v28  ;;  %v7866_v33 = vld [vmem:[#allocation8 + $0x600] ss:$16 sps:$4 sm:$0xff]   ;;  %v7869_v28 = vld [vmem:[#allocation8 + $0x4c8] ss:$16 sps:$4 sm:$0xff]  }
 0x690   : > { %6181 = vmatpush1.bf16.msra.mxu1 %v7794_v40  ;;  %6263 = vmatpush1.bf16.msra.mxu0 %v7797_v22  ;;  %v4847_v40 = vrot.slane %v10712_v47, %v4846_v61  ;;  %v7874_v22 = vld [vmem:[#allocation8 + $0x2ec] ss:$16 sps:$4 sm:$0xff]   ;;  %v7878_v47 = vld [vmem:[#allocation8 + $0x2c8] ss:$16 sps:$4 sm:$0xff]  }
 0x691   : > { %6182 = vmatprep.subr.bf16.mxu1 %v7802_v36  ;;  %6264 = vmatprep.subr.bf16.mxu0 %v7805_v52  ;;  %v7877_v36 = vld [vmem:[#allocation8 + $0x4ac] ss:$16 sps:$4 sm:$0xff]   ;;  %v8185_v52 = vmov 0   ;;  %v7944_v61 = vld [vmem:[#allocation8 + $0x368] ss:$16 sps:$4 sm:$0xff]  }
 0x694   : > { %6183 = vmatpush1.bf16.msra.mxu1 %v7800_v62  ;;  %6265 = vmatpush1.bf16.msra.mxu0 %v7803_v1  ;;  %v7872_v62 = vld [vmem:[#allocation8 + $0x2e8] ss:$16 sps:$4 sm:$0xff]  }
 0x695   : > { %6184 = vmatprep.subr.bf16.mxu1 %v7808_v2  ;;  %6266 = vmatprep.subr.bf16.mxu0 %v7811_v10  ;;  %v7875_v1 = vld [vmem:[#allocation8 + $0x4a8] ss:$16 sps:$4 sm:$0xff]   ;;  %v7880_v2 = vld [vmem:[#allocation8 + $0x2cc] ss:$16 sps:$4 sm:$0xff]  }
 0x696   : > { %v7881_v10 = vld [vmem:[#allocation8 + $0x488] ss:$16 sps:$4 sm:$0xff]  }
 0x698   : > { %6185 = vmatpush1.bf16.msra.mxu1 %v7806_v11  ;;  %6267 = vmatpush1.bf16.msra.mxu0 %v7809_v7  ;;  %v7886_v11 = vld [vmem:[#allocation8 + $0x2ac] ss:$16 sps:$4 sm:$0xff]  }
 0x699   : > { %6186 = vmatprep.subr.bf16.mxu1 %v7814_v49  ;;  %6268 = vmatprep.subr.bf16.mxu0 %v7817_v21  ;;  %v7889_v7 = vld [vmem:[#allocation8 + $0x46c] ss:$16 sps:$4 sm:$0xff]   ;;  %v7884_v49 = vld [vmem:[#allocation8 + $0x2a8] ss:$16 sps:$4 sm:$0xff]  }
 0x69a   : > { %v7887_v21 = vld [vmem:[#allocation8 + $0x468] ss:$16 sps:$4 sm:$0xff]  }
 0x69c   : > { %6187 = vmatpush2.bf16.msra.mxu1 %v7812_v25  ;;  %6269 = vmatpush2.bf16.msra.mxu0 %v7815_v23  ;;  %v7892_v25 = vld [vmem:[#allocation8 + $0x28c] ss:$16 sps:$4 sm:$0xff]  }
 0x69d   : > { %6188 = vmatprep.subr.bf16.mxu1 %v7820_v63  ;;  %6270 = vmatprep.subr.bf16.mxu0 %v7823_v27  ;;  %v7895_v23 = vld [vmem:[#allocation8 + $0x44c] ss:$16 sps:$4 sm:$0xff]   ;;  %v7890_v63 = vld [vmem:[#allocation8 + $0x288] ss:$16 sps:$4 sm:$0xff]  }
 0x69e   : > { %v7898_v27 = vld [vmem:[#allocation8 + $0x26c] ss:$16 sps:$4 sm:$0xff]  }
 0x6a0   : > { %6189 = vmatpush2.bf16.msra.mxu1 %v7818_v17  ;;  %6271 = vmatpush2.bf16.msra.mxu0 %v7821_v19  ;;  %v7901_v17 = vld [vmem:[#allocation8 + $0x42c] ss:$16 sps:$4 sm:$0xff]   ;;  %v7896_v19 = vld [vmem:[#allocation8 + $0x268] ss:$16 sps:$4 sm:$0xff]  }
 0x6a1   : > { %6190 = vmatprep.subr.bf16.mxu1 %v7826_v29  ;;  %6272 = vmatprep.subr.bf16.mxu0 %v7829_v3  ;;  %v7899_v29 = vld [vmem:[#allocation8 + $0x428] ss:$16 sps:$4 sm:$0xff]   ;;  %v7904_v3 = vld [vmem:[#allocation8 + $0x24c] ss:$16 sps:$4 sm:$0xff]  }
 0x6a4   : > { %6191 = vmatpush2.bf16.msra.mxu1 %v7824_v51  ;;  %6273 = vmatpush2.bf16.msra.mxu0 %v7827_v35  ;;  %v7907_v51 = vld [vmem:[#allocation8 + $0x40c] ss:$16 sps:$4 sm:$0xff]   ;;  %v7902_v35 = vld [vmem:[#allocation8 + $0x248] ss:$16 sps:$4 sm:$0xff]  }
 0x6a5   : > { %6192 = vmatprep.subr.bf16.mxu1 %v7832_v55  ;;  %6274 = vmatprep.subr.bf16.mxu0 %v7835_v37  ;;  %v7905_v55 = vld [vmem:[#allocation8 + $0x408] ss:$16 sps:$4 sm:$0xff]   ;;  %v7910_v37 = vld [vmem:[#allocation8 + $0x22c] ss:$16 sps:$4 sm:$0xff]  }
 0x6a8   : > { %6193 = vmatpush2.bf16.msra.mxu1 %v7830_v14  ;;  %6275 = vmatpush2.bf16.msra.mxu0 %v7833_v41  ;;  %v7913_v14 = vld [vmem:[#allocation8 + $0x5ec] ss:$16 sps:$4 sm:$0xff]   ;;  %v7908_v41 = vld [vmem:[#allocation8 + $0x228] ss:$16 sps:$4 sm:$0xff]  }
 0x6a9   : > { %6194 = vmatprep.subr.bf16.mxu1 %v7838_v15  ;;  %6276 = vmatprep.subr.bf16.mxu0 %v7841_v53  ;;  %v7911_v15 = vld [vmem:[#allocation8 + $0x5e8] ss:$16 sps:$4 sm:$0xff]   ;;  %v7916_v53 = vld [vmem:[#allocation8 + $0x20c] ss:$16 sps:$4 sm:$0xff]  }
 0x6ac   : > { %6195 = vmatpush2.bf16.msra.mxu1 %v7836_v0  ;;  %6277 = vmatpush2.bf16.msra.mxu0 %v7839_v18  ;;  %v7919_v0 = vld [vmem:[#allocation8 + $0x5cc] ss:$16 sps:$4 sm:$0xff]   ;;  %v7914_v18 = vld [vmem:[#allocation8 + $0x208] ss:$16 sps:$4 sm:$0xff]  }
 0x6ad   : > { %6196 = vmatprep.subr.bf16.mxu1 %v7844_v34  ;;  %6278 = vmatprep.subr.bf16.mxu0 %v7847_v30  ;;  %v7917_v34 = vld [vmem:[#allocation8 + $0x5c8] ss:$16 sps:$4 sm:$0xff]   ;;  %v7922_v30 = vld [vmem:[#allocation8 + $0x3ec] ss:$16 sps:$4 sm:$0xff]  }
 0x6b0   : > { %6197 = vmatpush2.bf16.msra.mxu1 %v7842_v6  ;;  %6279 = vmatpush2.bf16.msra.mxu0 %v7845_v16  ;;  %v7925_v6 = vld [vmem:[#allocation8 + $0x5ac] ss:$16 sps:$4 sm:$0xff]   ;;  %v7920_v16 = vld [vmem:[#allocation8 + $0x3e8] ss:$16 sps:$4 sm:$0xff]  }
 0x6b1   : > { %6198 = vmatprep.subr.bf16.mxu1 %v7850_v12  ;;  %6280 = vmatprep.subr.bf16.mxu0 %v7853_v44  ;;  %v7923_v12 = vld [vmem:[#allocation8 + $0x5a8] ss:$16 sps:$4 sm:$0xff]   ;;  %v7928_v44 = vld [vmem:[#allocation8 + $0x3cc] ss:$16 sps:$4 sm:$0xff]  }
 0x6b4   : > { %6199 = vmatpush2.bf16.msra.mxu1 %v7848_v20  ;;  %6281 = vmatpush2.bf16.msra.mxu0 %v7851_v60  ;;  %v7931_v20 = vld [vmem:[#allocation8 + $0x58c] ss:$16 sps:$4 sm:$0xff]   ;;  %v7926_v60 = vld [vmem:[#allocation8 + $0x3c8] ss:$16 sps:$4 sm:$0xff]  }
 0x6b5   : > { %6200 = vmatprep.subr.bf16.mxu1 %v7856_v26  ;;  %6282 = vmatprep.subr.bf16.mxu0 %v7859_v45  ;;  %v7929_v26 = vld [vmem:[#allocation8 + $0x588] ss:$16 sps:$4 sm:$0xff]   ;;  %v7934_v45 = vld [vmem:[#allocation8 + $0x3ac] ss:$16 sps:$4 sm:$0xff]  }
 0x6b8   : > { %6201 = vmatpush2.bf16.msra.mxu1 %v7854_v24  ;;  %6283 = vmatpush2.bf16.msra.mxu0 %v7857_v31  ;;  %v7932_v24 = vld [vmem:[#allocation8 + $0x3a8] ss:$16 sps:$4 sm:$0xff]  }
 0x6b9   : > { %6223 = vmatprep.subr.bf16.mxu1 %v7862_v9  ;;  %6334 = vmatprep.subr.bf16.mxu0 %v7865_v59  ;;  %v7935_v31 = vld [vmem:[#allocation8 + $0x568] ss:$16 sps:$4 sm:$0xff]   ;;  %v7943_v9 = vld [vmem:[#allocation8 + $0x54c] ss:$16 sps:$4 sm:$0xff]  }
 0x6ba   : > { %v7938_v59 = vld [vmem:[#allocation8 + $0x388] ss:$16 sps:$4 sm:$0xff]  }
 0x6bb   : > { %6203 = vmatmul.mubr.bf16.vlgmr.msra.gmra.mxu1 %v10741_v58  ;;  %6285 = vmatmul.mubr.bf16.vlgmr.msra.gmra.mxu0 %v10729_v38  ;;  %v10749_v38 = vpack.c.bf16 %v4847_v40, %v4847_v40  ;;  %v7950_v40 = vld [vmem:[#allocation8 + $0x348] ss:$16 sps:$4 sm:$0xff]  }
 0x6bc   : > { %6224 = vmatpush1.bf16.msra.mxu1 %v7860_v57  ;;  %6335 = vmatpush1.bf16.msra.mxu0 %v7863_v39  ;;  %v7941_v57 = vld [vmem:[#allocation8 + $0x548] ss:$16 sps:$4 sm:$0xff]   ;;  %v7946_v39 = vld [vmem:[#allocation8 + $0x36c] ss:$16 sps:$4 sm:$0xff]  }
 0x6bd   : > { %6366 = vmatprep.mubr.bf16.mxu0 %v10736_v5  ;;  %6225 = vmatprep.subr.bf16.mxu1 %v7868_v50  ;;  %v7883_v5 = vld [vmem:[#allocation8 + $0x48c] ss:$16 sps:$4 sm:$0xff]  }
 0x6be   : > { %6336 = vmatprep.subr.bf16.mxu0 %v7871_v43  ;;  %6243 = vmatprep.mubr.bf16.mxu1 %v8185_v52  ;;  %v7949_v50 = vld [vmem:[#allocation8 + $0x52c] ss:$16 sps:$4 sm:$0xff]   ;;  %v7947_v43 = vld [vmem:[#allocation8 + $0x528] ss:$16 sps:$4 sm:$0xff]  }
 0x6c0   : > { %6226 = vmatpush1.bf16.msra.mxu1 %v7866_v33  ;;  %6337 = vmatpush1.bf16.msra.mxu0 %v7869_v28  ;;  %v7952_v33 = vld [vmem:[#allocation8 + $0x34c] ss:$16 sps:$4 sm:$0xff]  }
 0x6c1   : > { %6293 = vmatprep.subr.bf16.mxu1 %v7874_v22  ;;  %6338 = vmatprep.subr.bf16.mxu0 %v7877_v36  ;;  %v7955_v28 = vld [vmem:[#allocation8 + $0x50c] ss:$16 sps:$4 sm:$0xff]   ;;  %v7953_v22 = vld [vmem:[#allocation8 + $0x508] ss:$16 sps:$4 sm:$0xff]  }
 0x6c2   : > { %v7958_v36 = vld [vmem:[#allocation8 + $0x32c] ss:$16 sps:$4 sm:$0xff]  }
 0x6c3   : > { %7161 = vmatmul.mubr.msk.bf16.vlgmr.msra.gmra.mxu1 %vm6084_vm13, %v10749_v38 }
 0x6c4   : > { %6294 = vmatpush1.bf16.msra.mxu1 %v7872_v62  ;;  %6325 = vmatprep.mubr.bf16.mxu1 %v10727_v54  ;;  %v7893_v54 = vld [vmem:[#allocation8 + $0x448] ss:$16 sps:$4 sm:$0xff]  }
 0x6c5   : > { %6339 = vmatpush1.bf16.msra.mxu0 %v7875_v1  ;;  %6295 = vmatprep.subr.bf16.mxu1 %v7880_v2  ;;  %v7956_v62 = vld [vmem:[#allocation8 + $0x328] ss:$16 sps:$4 sm:$0xff]   ;;  %v7961_v1 = vld [vmem:[#allocation8 + $0x30c] ss:$16 sps:$4 sm:$0xff]  }
 0x6c6   : > { %6340 = vmatprep.subr.bf16.mxu0 %v7883_v5  ;;  %v7959_v2 = vld [vmem:[#allocation8 + $0x308] ss:$16 sps:$4 sm:$0xff]   ;;  %v7964_v5 = vld [vmem:[#allocation8 + $0x62c] ss:$16 sps:$4 sm:$0xff]  }
 0x6c8   : > { %6296 = vmatpush1.bf16.msra.mxu1 %v7878_v47  ;;  %v7962_v47 = vld [vmem:[#allocation8 + $0x628] ss:$16 sps:$4 sm:$0xff]  }
 0x6c9   : > { %6341 = vmatpush1.bf16.msra.mxu0 %v7881_v10  ;;  %6297 = vmatprep.subr.bf16.mxu1 %v7886_v11  ;;  %v7967_v10 = vld [vmem:[#allocation8 + $0x60c] ss:$16 sps:$4 sm:$0xff]   ;;  %v7965_v11 = vld [vmem:[#allocation8 + $0x608] ss:$16 sps:$4 sm:$0xff]  }
 0x6ca   : > { %6342 = vmatprep.subr.bf16.mxu0 %v7889_v7  ;;  %v7968_v7 = vld [vmem:[%s10922_s7 + $0x78] sm:$0xff]  }
 0x6cc   : > { %6298 = vmatpush1.bf16.msra.mxu1 %v7884_v49  ;;  %v7970_v49 = vld [vmem:[%s10922_s7 + $0x70] sm:$0xff]  }
 0x6cd   : > { %6343 = vmatpush1.bf16.msra.mxu0 %v7887_v21  ;;  %6299 = vmatprep.subr.bf16.mxu1 %v7892_v25  ;;  %v7984_v21 = vld [vmem:[%s10922_s7 + $0xf8] sm:$0xff]  }
 0x6ce   : > { %6344 = vmatprep.subr.bf16.mxu0 %v7895_v23  ;;  %v7985_v25 = vld [vmem:[%s10922_s7 + $0xb8] sm:$0xff]   ;;  %v7973_v23 = vld [vmem:[%s10922_s7 + $0x28] sm:$0xff]  }
 0x6d0   : > { %6300 = vmatpush1.bf16.msra.mxu1 %v7890_v63  ;;  %v7987_v63 = vld [vmem:[%s10922_s7 + $0xb0] sm:$0xff]  }
 0x6d1   : > { %6345 = vmatpush1.bf16.msra.mxu0 %v7893_v54  ;;  %6301 = vmatprep.subr.bf16.mxu1 %v7898_v27  ;;  %v7974_v54 = vld [vmem:[%s10922_s7 + $0x60] sm:$0xff]  }
 0x6d2   : > { %6346 = vmatprep.subr.bf16.mxu0 %v7901_v17  ;;  %v7975_v27 = vld [vmem:[%s10922_s7 + $0x20] sm:$0xff]   ;;  %v7976_v17 = vld [vmem:[%s10922_s7 + $0x58] sm:$0xff]  }
 0x6d4   : > { %6302 = vmatpush1.bf16.msra.mxu1 %v7896_v19  ;;  %v7977_v19 = vld [vmem:[%s10922_s7 + $0x18] sm:$0xff]  }
 0x6d5   : > { %6347 = vmatpush1.bf16.msra.mxu0 %v7899_v29  ;;  %6303 = vmatprep.subr.bf16.mxu1 %v7904_v3  ;;  %v7978_v29 = vld [vmem:[%s10922_s7 + $0x50] sm:$0xff]  }
 0x6d6   : > { %6348 = vmatprep.subr.bf16.mxu0 %v7907_v51  ;;  %v7979_v3 = vld [vmem:[%s10922_s7 + $0x10] sm:$0xff]   ;;  %v7980_v51 = vld [vmem:[%s10922_s7 + $0x48] sm:$0xff]  }
 0x6d8   : > { %6304 = vmatpush1.bf16.msra.mxu1 %v7902_v35  ;;  %v7981_v35 = vld [vmem:[%s10922_s7 + $0x8] sm:$0xff]  }
 0x6d9   : > { %6349 = vmatpush1.bf16.msra.mxu0 %v7905_v55  ;;  %6305 = vmatprep.subr.bf16.mxu1 %v7910_v37  ;;  %v7982_v55 = vld [vmem:[%s10922_s7 + $0x40] sm:$0xff]  }
 0x6da   : > { %6350 = vmatprep.subr.bf16.mxu0 %v7913_v14  ;;  %v7983_v37 = vld [vmem:[%s10922_s7] sm:$0xff]  }
 0x6db   : > { %v10822_v14 = vld [vmem:[%s10921_s6] sm:$0xf] }
 0x6dc   : > { %6306 = vmatpush1.bf16.msra.mxu1 %v7908_v41  ;;  %v6067_v41 = vrot.slane %v10822_v14, %v4822_v13 }
 0x6dd   : > { %6351 = vmatpush2.bf16.msra.mxu0 %v7911_v15  ;;  %6307 = vmatprep.subr.bf16.mxu1 %v7916_v53  ;;  %v6071_v15 = vrot.slane %v10822_v14, %v4826_v42 }
 0x6de   : > { %6352 = vmatprep.subr.bf16.mxu0 %v7919_v0 }
 0x6e0   : > { %6308 = vmatpush1.bf16.msra.mxu1 %v7914_v18 }
 0x6e1   : > { %6353 = vmatpush2.bf16.msra.mxu0 %v7917_v34  ;;  %6309 = vmatprep.subr.bf16.mxu1 %v7922_v30  ;;  %v7988_v34 = vld [vmem:[%s10922_s7 + $0xe8] sm:$0xff]  }
 0x6e2   : > { %6354 = vmatprep.subr.bf16.mxu0 %v7925_v6 }
 0x6e4   : > { %6310 = vmatpush2.bf16.msra.mxu1 %v7920_v16  ;;  %v7989_v16 = vld [vmem:[%s10922_s7 + $0xa8] sm:$0xff]  }
 0x6e5   : > { %6355 = vmatpush2.bf16.msra.mxu0 %v7923_v12  ;;  %6311 = vmatprep.subr.bf16.mxu1 %v7928_v44 }
 0x6e6   : > { %6356 = vmatprep.subr.bf16.mxu0 %v7931_v20 }
 0x6e8   : > { %6312 = vmatpush2.bf16.msra.mxu1 %v7926_v60  ;;  %v7990_v60 = vld [vmem:[%s10922_s7 + $0xe0] sm:$0xff]  }
 0x6e9   : > { %6357 = vmatpush2.bf16.msra.mxu0 %v7929_v26  ;;  %6313 = vmatprep.subr.bf16.mxu1 %v7934_v45 }
 0x6ea   : > { %6358 = vmatprep.subr.bf16.mxu0 %v7937_v32  ;;  %v7991_v32 = vld [vmem:[%s10922_s7 + $0xa0] sm:$0xff]  }
 0x6ec   : > { %6314 = vmatpush2.bf16.msra.mxu1 %v7932_v24  ;;  %v7992_v24 = vld [vmem:[%s10922_s7 + $0xd8] sm:$0xff]  }
 0x6ed   : > { %6359 = vmatpush2.bf16.msra.mxu0 %v7935_v31  ;;  %6315 = vmatprep.subr.bf16.mxu1 %v7940_v48  ;;  %v7993_v31 = vld [vmem:[%s10922_s7 + $0x98] sm:$0xff]   ;;  %v7994_v48 = vld [vmem:[%s10922_s7 + $0xd0] sm:$0xff]  }
 0x6ee   : > { %6360 = vmatprep.subr.bf16.mxu0 %v7943_v9  ;;  %v7995_v9 = vld [vmem:[%s10922_s7 + $0x90] sm:$0xff]  }
 0x6f0   : > { %6316 = vmatpush2.bf16.msra.mxu1 %v7938_v59  ;;  %v7996_v59 = vld [vmem:[%s10922_s7 + $0xc8] sm:$0xff]  }
 0x6f1   : > { %6361 = vmatpush2.bf16.msra.mxu0 %v7941_v57  ;;  %6317 = vmatprep.subr.bf16.mxu1 %v7946_v39  ;;  %v7997_v57 = vld [vmem:[%s10922_s7 + $0x88] sm:$0xff]   ;;  %v7998_v39 = vld [vmem:[%s10922_s7 + $0xc0] sm:$0xff]  }
 0x6f2   : > { %6362 = vmatprep.subr.bf16.mxu0 %v7949_v50  ;;  %v7999_v50 = vld [vmem:[%s10922_s7 + $0x80] sm:$0xff]  }
 0x6f4   : > { %6318 = vmatpush2.bf16.msra.mxu1 %v7944_v61 }
 0x6f5   : > { %6363 = vmatpush2.bf16.msra.mxu0 %v7947_v43  ;;  %6319 = vmatprep.subr.bf16.mxu1 %v7952_v33 }
 0x6f6   : > { %6364 = vmatprep.subr.bf16.mxu0 %v7955_v28 }
 0x6f8   : > { %6320 = vmatpush2.bf16.msra.mxu1 %v7950_v40 }
 0x6f9   : > { %6365 = vmatpush2.bf16.msra.mxu0 %v7953_v22  ;;  %6321 = vmatprep.subr.bf16.mxu1 %v7958_v36 }
 0x6fa   : > { %7377 = vmatprep.subr.bf16.mxu0 %v7984_v21 }
 0x6fc   : > { %6367 = vmatmul.mubr.bf16.vlgmr.msra.gmra.mxu0 %v10741_v58  ;;  %6322 = vmatpush2.bf16.msra.mxu1 %v7956_v62  ;;  %v7969_v58 = vld [vmem:[%s10922_s7 + $0x38] sm:$0xff]  }
 0x6fd   : > { %6323 = vmatprep.subr.bf16.mxu1 %v7961_v1  ;;  %7378 = vmatpush3.bf16.msra.mxu0 %v7985_v25 }
 0x700   : > { %6324 = vmatpush2.bf16.msra.mxu1 %v7959_v2 }
 0x701   : > { %6387 = vmatprep.subr.bf16.mxu1 %v7964_v5 }
 0x703   : > { %6326 = vmatmul.mubr.bf16.vlgmr.msra.gmra.mxu1 %v10731_v4  ;;  %v7971_v4 = vld [vmem:[%s10922_s7 + $0x30] sm:$0xff]  }
 0x704   : > { %6388 = vmatpush1.bf16.msra.mxu1 %v7962_v47  ;;  %6407 = vmatprep.mubr.bf16.mxu1 %v8185_v52  ;;  %v7972_v52 = vld [vmem:[%s10922_s7 + $0x68] sm:$0xff]  }
 0x705   : > { %6389 = vmatprep.subr.bf16.mxu1 %v7967_v10 }
 0x708   : > { %6390 = vmatpush1.bf16.msra.mxu1 %v7965_v11 }
 0x709   : > { %7355 = vmatprep.subr.bf16.mxu1 %v7968_v7 }
 0x70b   : > { %7162 = vmatmul.mubr.msk.bf16.vlgmr.msra.gmra.mxu1 %vm6084_vm13, %v10749_v38  ;;  %v7986_v38 = vld [vmem:[%s10922_s7 + $0xf0] sm:$0xff]  }
 0x70c   : > { %7356 = vmatpush3.bf16.msra.mxu1 %v7969_v58  ;;  %7379 = vmatprep.subr.bf16.mxu0 %v7986_v38 }
 0x70d   : > { %7357 = vmatprep.subr.bf16.mxu1 %v7970_v49  ;;  %7380 = vmatpush3.bf16.msra.mxu0 %v7987_v63 }
 0x70e   : > { %7381 = vmatprep.subr.bf16.mxu0 %v7988_v34 }
 0x710   : > { %7358 = vmatpush3.bf16.msra.mxu1 %v7971_v4 }
 0x711   : > { %7359 = vmatprep.subr.bf16.mxu1 %v7972_v52  ;;  %7382 = vmatpush3.bf16.msra.mxu0 %v7989_v16 }
 0x712   : > { %7383 = vmatprep.subr.bf16.mxu0 %v7990_v60 }
 0x714   : > { %7360 = vmatpush3.bf16.msra.mxu1 %v7973_v23  ;;  %v6075_v23 = vrot.slane %v10822_v14, %v4830_v46 }
 0x715   : > { %7361 = vmatprep.subr.bf16.mxu1 %v7974_v54  ;;  %7384 = vmatpush3.bf16.msra.mxu0 %v7991_v32  ;;  %v6079_v54 = vrot.slane %v10822_v14, %v4834_v56 }
 0x716   : > { %7385 = vmatprep.subr.bf16.mxu0 %v7992_v24 }
 0x718   : > { %7362 = vmatpush3.bf16.msra.mxu1 %v7975_v27 }
 0x719   : > { %7363 = vmatprep.subr.bf16.mxu1 %v7976_v17  ;;  %7386 = vmatpush3.bf16.msra.mxu0 %v7993_v31 }
 0x71a   : > { %7387 = vmatprep.subr.bf16.mxu0 %v7994_v48 }
 0x71c   : > { %7364 = vmatpush3.bf16.msra.mxu1 %v7977_v19 }
 0x71d   : > { %7365 = vmatprep.subr.bf16.mxu1 %v7978_v29  ;;  %7388 = vmatpush3.bf16.msra.mxu0 %v7995_v9 }
 0x71e   : > { %7389 = vmatprep.subr.bf16.mxu0 %v7996_v59 }
 0x720   : > { %7366 = vmatpush3.bf16.msra.mxu1 %v7979_v3 }
 0x721   : > { %7367 = vmatprep.subr.bf16.mxu1 %v7980_v51  ;;  %7390 = vmatpush3.bf16.msra.mxu0 %v7997_v57 }
 0x722   : > { %7391 = vmatprep.subr.bf16.mxu0 %v7998_v39 }
 0x724   : > { %7368 = vmatpush3.bf16.msra.mxu1 %v7981_v35 }
 0x725   : > { %7369 = vmatprep.subr.bf16.mxu1 %v7982_v55  ;;  %7392 = vmatpush3.bf16.msra.mxu0 %v7999_v50 }
 0x728   : > { %7370 = vmatpush3.bf16.msra.mxu1 %v7983_v37 }
 0x73b   : > { %v6122_v53 = vpop.f32.mrf.mxu1  ;;  %v6163_v0 = vpop.f32.mrf.mxu0 }
 0x73c   : > { %v6123_v18 = vadd.f32 %v6122_v53, %v6067_v41 }
 0x73d   : > { %v6124_v30 = vpop.f32.mrf.mxu1  ;;  %v6165_v6 = vpop.f32.mrf.mxu0 }
 0x73e   : > { %v6164_v12 = vadd.f32 %v6163_v0, %v6123_v18  ;;  %v6125_v44 = vadd.f32 %v6124_v30, %v6071_v15 }
 0x73f   : > { %v6126_v13 = vpop.f32.mrf.mxu1  ;;  %v6167_v20 = vpop.f32.mrf.mxu0 }
 0x740   : > { %v6166_v42 = vadd.f32 %v6165_v6, %v6125_v44 }
 0x741   : > { %v6127_v26 = vpop.f32.mrf.mxu1  ;;  %v6168_v45 = vpop.f32.mrf.mxu0 }
 0x77b   : > { %v6204_v61 = vpop.f32.mrf.mxu1  ;;  %v6286_v43 = vpop.f32.mrf.mxu0 }
 0x77c   : > { %v6205_v1 = vadd.f32 %v6204_v61, %v6164_v12  ;;  %v6287_v19 = vadd.f32 %v6286_v43, %v6075_v23 }
 0x77d   : > { %v6206_v33 = vpop.f32.mrf.mxu1  ;;  %v6288_v28 = vpop.f32.mrf.mxu0 }
 0x77e   : > { %v6207_v5 = vadd.f32 %v6206_v33, %v6166_v42  ;;  %v6289_v3 = vadd.f32 %v6288_v28, %v6079_v54  ;;  %v6488_v42 = vld [vmem:[%s10923_s8] sm:$0x1] }
 0x77f   : > { %v6208_v40 = vpop.f32.mrf.mxu1  ;;  %v6290_v22 = vpop.f32.mrf.mxu0 }
 0x781   : > { %v6209_v36 = vpop.f32.mrf.mxu1  ;;  %v6291_v62 = vpop.f32.mrf.mxu0 }
 0x783   : > { %v6245_v2 = vpop.f32.mrf.mxu1 }
 0x784   : > { %v6246_v47 = vadd.f32 %v6245_v2, %v6205_v1 }
 0x785   : > { %v6247_v10 = vpop.f32.mrf.mxu1 }
 0x786   : > { %v6248_v11 = vadd.f32 %v6247_v10, %v6207_v5  ;;  %v6416_v7 = vmax.f32 %v6246_v47, 0.0 }
 0x787   : > { %v6249_v58 = vpop.f32.mrf.mxu1 }
 0x788   : > { %v6417_v49 = vmax.f32 %v6248_v11, 0.0  ;;  %v6420_v21 = vpack.c.bf16 %v6416_v7, %v6416_v7 }
 0x789   : > { %v6250_v4 = vpop.f32.mrf.mxu1 }
 0x78a   : > { %v6421_v52 = vpack.c.bf16 %v6417_v49, %v6417_v49 }
 0x78c   : > { %6713 = vmatprep.mubr.bf16.mxu1 %v6421_v52 }
 0x78d   : > { %6714 = vmatmul.mubr.bf16.vlgmr.msra.gmra.mxu1 %v6420_v21 }
 0x7bc   : > { %v6368_v25 = vpop.f32.mrf.mxu0 }
 0x7be   : > { %v6370_v38 = vpop.f32.mrf.mxu0 }
 0x7c0   : > { %v6372_v63 = vpop.f32.mrf.mxu0 }
 0x7c2   : > { %v6373_v27 = vpop.f32.mrf.mxu0 }
 0x7c3   : > { %v6327_v17 = vpop.f32.mrf.mxu1 }
 0x7c4   : > { %v6328_v51 = vadd.f32 %v6327_v17, %v6287_v19 }
 0x7c5   : > { %v6329_v29 = vpop.f32.mrf.mxu1 }
 0x7c6   : > { %v6330_v55 = vadd.f32 %v6329_v29, %v6289_v3  ;;  %v6369_v41 = vadd.f32 %v6368_v25, %v6328_v51 }
 0x7c7   : > { %v6331_v35 = vpop.f32.mrf.mxu1 }
 0x7c8   : > { %v6371_v0 = vadd.f32 %v6370_v38, %v6330_v55 }
 0x7c9   : > { %v6332_v37 = vpop.f32.mrf.mxu1 }
 0x7cb   : > { %v6409_v15 = vpop.f32.mrf.mxu1 }
 0x7cc   : > { %v6410_v53 = vadd.f32 %v6409_v15, %v6369_v41 }
 0x7cd   : > { %v6411_v46 = vpop.f32.mrf.mxu1 }
 0x7ce   : > { %v6412_v18 = vadd.f32 %v6411_v46, %v6371_v0  ;;  %v6418_v34 = vmax.f32 %v6410_v53, 0.0 }
 0x7cf   : > { %v6413_v8 = vpop.f32.mrf.mxu1 }
 0x7d0   : > { %v6419_v56 = vmax.f32 %v6412_v18, 0.0  ;;  %v6422_v6 = vpack.c.bf16 %v6418_v34, %v6418_v34 }
 0x7d1   : > { %v6414_v14 = vpop.f32.mrf.mxu1 }
 0x7d2   : > { %v6423_v30 = vpack.c.bf16 %v6419_v56, %v6419_v56 }
 0x7d4   : > { %6753 = vmatprep.mubr.bf16.mxu0 %v6423_v30 }
 0x7d5   : > { %6754 = vmatmul.mubr.bf16.vlgmr.msra.gmra.mxu0 %v6422_v6 }
 0x84d   : > { %v7371_v16 = vpop.f32.mrf.mxu1 }
 0x84f   : > { %v7372_v12 = vpop.f32.mrf.mxu1 }
 0x850   : > { %v7373_v44 = vadd.f32 %v7372_v12, %v7371_v16 }
 0x851   : > { %v7374_v13 = vpop.f32.mrf.mxu1 }
 0x852   : > { %v6716_v45 = vadd.f32 %v7373_v44, %v6488_v42 }
 0x853   : > { %v7375_v20 = vpop.f32.mrf.mxu1 }
 0x895   : > { %v7393_v60 = vpop.f32.mrf.mxu0 }
 0x897   : > { %v7394_v26 = vpop.f32.mrf.mxu0 }
 0x898   : > { %v7395_v32 = vadd.f32 %v7394_v26, %v7393_v60 }
 0x899   : > { %v7396_v24 = vpop.f32.mrf.mxu0 }
 0x89a   : > { %v6756_v31 = vadd.f32 %v7395_v32, %v6716_v45 }
 0x89b   : > { %v7397_v48 = vpop.f32.mrf.mxu0 }
 0x89c   : > { %6761 = vst [vmem:[%s339_s24] sm:$0x1] %v6756_v31 }
 0x89d   : > { %8062 = shalt.err (!%p8059_p0)
}
 0x89e   : > { %s8063_s28 = scalar_lea.hbm %s10880_s14, 16  ;;  %s8067_s1 = scalar_lea.hbm %s11068_s23, 32 }
 0x89f   : > { %p8064_p1 = scmp.ne.s32.totalorder %s10880_s14, %s8063_s28  ;;  %p8068_p4 = scmp.lt.s32.totalorder %s10880_s14, %s11068_s23 }
 0x8a0   : > { %p8069_p7 = scmp.lt.s32.totalorder %s8067_s1, %s8063_s28 }
 0x8a1   : > { %p8065_p2 = pnand %p8064_p1, %p8275_p5 }
 0x8a2   : > { %p8070_p8 = por %p8069_p7, %p8068_p4 }
 0x8a3   : > { %p8066_p3 = pneg %p8065_p2 }
 0x8a5   : > { %p8071_p6 = pnand %p8070_p8, %p8066_p3 }
 0x8a7   : > { %8074 = shalt.err (!%p8071_p6)
}
 0x8a8   : > { %7520 = dma.vmem_to_hbm [thread:$0]  (%p8275_p5), %s6776_s9, 16, %s10880_s14, %s6763_s19  }
 0x8a9 PF: > { %s11069_s22 = sld [smem:[#allocation16_spill]] }
 0x8aa   : > { %s11070_s29 = sld [smem:[#allocation14_spill]] }
 0x8ab   : > { %s11071_s30 = sld [smem:[#allocation20_spill]] }
 0x8af   : > { %p7532_p9 = scmp.ge.s32.totalorder %s11069_s22, 2 }
 0x8b0   : > { %s6787_s0 = sand.u32 1, %s11070_s29  }
 0x8b1   : > { %p11072_p10 = scmp.ne.s32.totalorder %s11071_s30, 0  ;;  %s6788_s11 = scalar_lea.sflag [#allocation10], %s6787_s0 }
 0x8b3   : > { %p7527_p11 = pnand %p7532_p9, %p11072_p10 }
 0x8b5   : > { %p7528_p12 = pneg %p7527_p11 }
 0x8b7   : > { %8096 = dma.done.wait (%p7528_p12), %s6788_s11, 16  }
 0x8b8   : > { %8098 = vsyncadd (%p7528_p12), %s6788_s11, 4294967280  ;;  %s11073_s12 = sld [smem:[#allocation17_spill]]  ;;  %s11076_s30 = smov %s8105_s10 }
 0x8b9   : > { %s11074_s20 = sld [smem:[#allocation15_spill]] }
 0x8ba   : > { %s11075_s11 = sld [smem:[#allocation18_spill]] }
 0x8be   : > { %p20_p13 = scmp.ge.s32.totalorder %s11073_s12, 4  }
 0x8bf   : > { %s11077_s10 = smov %s11074_s20 }
 0x8c0   :  { %22 = sbr.rel (!%p20_p13) target bundleno = 9 (0x9), region = 206 }
 0x8c5   :  { %6792 = vsyncpa [#allocation9], 1 }
 0x8c6   :  { %6794 = vsyncpa [#allocation9 + $0x1], 1 }
 0x8c7   :  { %6795 = vsyncpa [#allocation10], 1 }
 0x8c8   :  { %6797 = vsyncpa [#allocation10 + $0x1], 1 }

</bundles_post_ra>
